<compile_context>
chip_gen: v7x
topology: tpu7x:2x2x1
jax: 0.10.0
libtpu: 0.0.40
codegen_flags: <defaults>
</compile_context>

<pallas_src>
import jax
import jax.numpy as jnp
import numpy as np
from jax.experimental import pallas as pl
from jax.experimental.pallas import tpu as pltpu

# --- module constants (from train.py) ---
EMBD_DIM = 16              # D
MAX_LEN = 10
T = MAX_LEN + 2            # 12
RHS_MAX_LEN = 4
NUM_HEADS = 4              # H
HEAD_SIZE = 4              # hd
HIDDEN = 4 * EMBD_DIM      # 64
LN_EPS = 1e-5


def _layer_norm(v, g, b):
    mu = jnp.mean(v, axis=-1, keepdims=True)
    c = v - mu
    var = jnp.mean(c * c, axis=-1, keepdims=True)
    return c * jax.lax.rsqrt(var + LN_EPS) * g + b


def block_kernel(x_ref, wqkv_ref, wproj_ref, bproj_ref, w1_ref, b1_ref,
                 w2_ref, b2_ref, ln1g_ref, ln1b_ref, ln2g_ref, ln2b_ref,
                 hmask_ref, amask_ref, out_ref):
    NT, D = x_ref.shape                     # NT = NB * L tokens per step
    H = NUM_HEADS

    x = x_ref[...]                          # (NT, D) f32

    # ---- ln1 + fused QKV projection (one bf16 MXU pass) ----
    h1 = _layer_norm(x, ln1g_ref[...], ln1b_ref[...])
    qkv = jnp.dot(h1.astype(jnp.bfloat16), wqkv_ref[...],
                  preferred_element_type=jnp.float32)          # (NT, 3D) f32
    q = qkv[:, 0:D]                          # Q columns pre-scaled by sqrt(D)
    k = qkv[:, D:2 * D]
    v = qkv[:, 2 * D:3 * D]

    # ---- all heads x all batch elements at once (extended block-diag mask) --
    hmask = hmask_ref[...]                                      # (H*NT, D)
    q_big = (jnp.tile(q, (H, 1)) * hmask).astype(jnp.bfloat16)  # (H*NT, D)
    # scores[h*NT + t, m] = <Q_head_h[t], K_head_h[m]>; cross-batch / non-causal
    # pairs are removed by the additive mask below.
    s = jnp.einsum('nd,md->nm', q_big, k.astype(jnp.bfloat16),
                   preferred_element_type=jnp.float32)          # (H*NT, NT)
    s = s + amask_ref[...]                                      # 0 / -1e30
    s = s - jnp.max(s, axis=-1, keepdims=True)
    p = jnp.exp(s)
    p = p * pl.reciprocal(jnp.sum(p, axis=-1, keepdims=True), approx=True)

    o = jnp.dot(p.astype(jnp.bfloat16), v.astype(jnp.bfloat16),
                preferred_element_type=jnp.float32)             # (H*NT, D)
    attn = (o * hmask).reshape(H, NT, D).sum(axis=0)            # (NT, D)

    sa = jnp.dot(attn.astype(jnp.bfloat16), wproj_ref[...],
                 preferred_element_type=jnp.float32) + bproj_ref[...]
    x1 = x + sa                              # residual 1

    # ---- ln2 + MLP ----
    h2 = _layer_norm(x1, ln2g_ref[...], ln2b_ref[...])
    ff = jnp.dot(h2.astype(jnp.bfloat16), w1_ref[...],
                 preferred_element_type=jnp.float32) + b1_ref[...]
    ff = jnp.maximum(ff, 0.0)                # ReLU
    ff = jnp.dot(ff.astype(jnp.bfloat16), w2_ref[...],
                 preferred_element_type=jnp.float32) + b2_ref[...]

    out_ref[...] = (x1 + ff).astype(out_ref.dtype)


def block_forward(x2d, inputs, num_steps, tokens_per_step):
    D = EMBD_DIM
    (wqkv, wproj, bproj, w1, b1, w2, b2,
     ln1g, ln1b, ln2g, ln2b, hmask, amask) = inputs
    n_tok = x2d.shape[0]
    assert tokens_per_step % 8 == 0, "tokens per grid step must be 8-aligned"

    def const(arr):  # resident, full-block, constant index -> one-time DMA
        return pl.BlockSpec(arr.shape, lambda s: (0, 0))

    return pl.pallas_call(
        block_kernel,
        out_shape=jax.ShapeDtypeStruct((n_tok, D), jnp.float32),
        grid_spec=pltpu.PrefetchScalarGridSpec(
            num_scalar_prefetch=0,
            grid=(num_steps,),
            in_specs=[
                pl.BlockSpec((tokens_per_step, D), lambda s: (s, 0)),  # acts
                const(wqkv), const(wproj), const(bproj),
                const(w1), const(b1), const(w2), const(b2),
                const(ln1g), const(ln1b), const(ln2g), const(ln2b),
                const(hmask), const(amask),
            ],
            out_specs=pl.BlockSpec((tokens_per_step, D), lambda s: (s, 0)),
        ),
        compiler_params=pltpu.CompilerParams(
            dimension_semantics=("parallel",)),
    )(x2d, wqkv, wproj, bproj, w1, b1, w2, b2,
      ln1g, ln1b, ln2g, ln2b, hmask, amask)


def _default_num_steps(batch):
    """2 fat steps on 2-TensorCore chips (v7x), 1 step otherwise."""
    try:
        kind = jax.devices()[0].device_kind.lower()
    except Exception:
        kind = ""
    return 2 if ("v7" in kind and batch % 2 == 0) else 1


# --- wrapper-side parameter / constant packing (free layout plumbing) ---
def prepare_inputs(params, nb, seq_len):
    (ln1_g, ln1_b, wq, wk, wv, wproj, bproj,
     ln2_g, ln2_b, w1, b1, w2, b2) = params
    D, H, L = EMBD_DIM, NUM_HEADS, seq_len
    NT = nb * L

    # fold the reference scale (`/ D**(-0.5)` == * sqrt(D)) into the Q weights
    wq_scaled = wq * jnp.float32(np.sqrt(float(D)))
    wqkv = jnp.concatenate([wq_scaled, wk, wv], axis=1).astype(jnp.bfloat16)

    # additive mask: keep (0) iff same batch element AND causal-window keep,
    # else -1e30; tiled over heads -> (H*NT, NT)
    keep = np.tril(np.ones((T, T), dtype=bool), k=T - (RHS_MAX_LEN + 1))[:L, :L]
    tok_b = np.arange(NT) // L
    tok_p = np.arange(NT) % L
    same_batch = tok_b[:, None] == tok_b[None, :]
    keep_full = same_batch & keep[tok_p[:, None], tok_p[None, :]]
    amask = np.where(keep_full, 0.0, -1e30).astype(np.float32)      # (NT, NT)
    amask = jnp.asarray(np.tile(amask, (H, 1)))                     # (H*NT, NT)

    # block-diagonal head mask: row h*NT+t selects head h's feature columns
    col_head = np.arange(D) // HEAD_SIZE
    row_head = np.repeat(np.arange(H), NT)
    hmask = jnp.asarray((row_head[:, None] == col_head[None, :])
                        .astype(np.float32))                        # (H*NT, D)

    return (wqkv,
            wproj.astype(jnp.bfloat16),
            jnp.asarray(bproj, jnp.float32),
            w1.astype(jnp.bfloat16),
            jnp.asarray(b1, jnp.float32),
            w2.astype(jnp.bfloat16),
            jnp.asarray(b2, jnp.float32),
            jnp.asarray(ln1_g, jnp.float32), jnp.asarray(ln1_b, jnp.float32),
            jnp.asarray(ln2_g, jnp.float32), jnp.asarray(ln2_b, jnp.float32),
            hmask, amask)


# --- pure-JAX reference (mirrors PyTorch eval forward) for sanity check ---
def block_reference(x, params):
    (ln1_g, ln1_b, wq, wk, wv, wproj, bproj,
     ln2_g, ln2_b, w1, b1, w2, b2) = params
    B, L, D = x.shape
    tril = jnp.tril(jnp.ones((T, T), jnp.float32), k=T - (RHS_MAX_LEN + 1))[:L, :L]
    h1 = _layer_norm(x, ln1_g, ln1_b)
    q = h1 @ wq
    k = h1 @ wk
    v = h1 @ wv
    outs = []
    for h in range(NUM_HEADS):
        sl = slice(h * HEAD_SIZE, (h + 1) * HEAD_SIZE)
        wei = jnp.einsum('bld,bmd->blm', q[..., sl], k[..., sl]) / (D ** (-0.5))
        wei = jnp.where(tril == 0, -jnp.inf, wei)
        wei = jax.nn.softmax(wei, axis=-1)
        outs.append(jnp.einsum('blm,bmd->bld', wei, v[..., sl]))
    sa = jnp.concatenate(outs, axis=-1) @ wproj + bproj
    x1 = x + sa
    h2 = _layer_norm(x1, ln2_g, ln2_b)
    ff = jnp.maximum(h2 @ w1 + b1, 0.0) @ w2 + b2
    return x1 + ff


def make_params(key):
    ks = jax.random.split(key, 16)

    def rn(k, shape, scale=0.1):
        return jax.random.normal(k, shape, dtype=jnp.float32) * scale

    ln1_g = 1.0 + rn(ks[0], (1, EMBD_DIM))
    ln1_b = rn(ks[1], (1, EMBD_DIM))
    wq = rn(ks[2], (EMBD_DIM, NUM_HEADS * HEAD_SIZE))   # (in, out), heads concat on out
    wk = rn(ks[3], (EMBD_DIM, NUM_HEADS * HEAD_SIZE))
    wv = rn(ks[4], (EMBD_DIM, NUM_HEADS * HEAD_SIZE))
    wproj = rn(ks[5], (NUM_HEADS * HEAD_SIZE, EMBD_DIM))
    bproj = rn(ks[6], (1, EMBD_DIM))
    ln2_g = 1.0 + rn(ks[7], (1, EMBD_DIM))
    ln2_b = rn(ks[8], (1, EMBD_DIM))
    w1 = rn(ks[9], (EMBD_DIM, HIDDEN))
    b1 = rn(ks[10], (1, HIDDEN))
    w2 = rn(ks[11], (HIDDEN, EMBD_DIM))
    b2 = rn(ks[12], (1, EMBD_DIM))
    return (ln1_g, ln1_b, wq, wk, wv, wproj, bproj,
            ln2_g, ln2_b, w1, b1, w2, b2)


if __name__ == "__main__":
    key = jax.random.PRNGKey(0)
    kx, kp = jax.random.split(key)

    # L=8 < T=12, so eval/train branches of the reference coincide.
    # B*L = 256 tokens -> 128 tokens per step on 2-core chips (lane-dense
    # scores), 256 tokens in one step on single-core chips.
    B, L = 32, 8
    x = jax.random.normal(kx, (B, L, EMBD_DIM), dtype=jnp.float32)
    params = make_params(kp)

    num_steps = _default_num_steps(B)
    nb = B // num_steps                                  # batch elems per step
    inputs = prepare_inputs(params, nb, L)
    x2d = x.reshape(B * L, EMBD_DIM)                     # wrapper-side layout plumbing

    out2d = block_forward(x2d, inputs, num_steps, nb * L)
    out2d = jax.block_until_ready(out2d)
    out = np.asarray(out2d).reshape(B, L, EMBD_DIM)

    ref = np.asarray(jax.block_until_ready(block_reference(x, params)))
    assert out.shape == (B, L, EMBD_DIM)
    # tolerance reflects bf16 MXU operands + approximate reciprocal
    assert np.allclose(out, ref, atol=3e-2, rtol=3e-2), \
        "Pallas kernel output mismatch vs JAX reference"

    print("KERNEL_OK")
</pallas_src>

<mosaic_0001>
module attributes {stable_mosaic.version = 11 : i64} {
  func.func @block_kernel(%arg0: i32, %arg1: memref<256x16xf32, #tpu.memory_space<vmem>>, %arg2: memref<16x48xbf16, #tpu.memory_space<vmem>>, %arg3: memref<16x16xbf16, #tpu.memory_space<vmem>>, %arg4: memref<1x16xf32, #tpu.memory_space<vmem>>, %arg5: memref<16x64xbf16, #tpu.memory_space<vmem>>, %arg6: memref<1x64xf32, #tpu.memory_space<vmem>>, %arg7: memref<64x16xbf16, #tpu.memory_space<vmem>>, %arg8: memref<1x16xf32, #tpu.memory_space<vmem>>, %arg9: memref<1x16xf32, #tpu.memory_space<vmem>>, %arg10: memref<1x16xf32, #tpu.memory_space<vmem>>, %arg11: memref<1x16xf32, #tpu.memory_space<vmem>>, %arg12: memref<1x16xf32, #tpu.memory_space<vmem>>, %arg13: memref<1024x16xf32, #tpu.memory_space<vmem>>, %arg14: memref<1024x256xf32, #tpu.memory_space<vmem>>, %arg15: memref<256x16xf32, #tpu.memory_space<vmem>>) attributes {dimension_semantics = [#tpu.dimension_semantics<parallel>], iteration_bounds = array<i64: 1>, scalar_prefetch = 0 : i64, scratch_operands = 0 : i64, tpu.core_type = #tpu.core_type<tc>, window_params = [{transform_indices = @transform_0, window_bounds = array<i64: 256, 16>}, {pipeline_mode = #tpu.pipeline_mode<synchronous>, transform_indices = @transform_1, window_bounds = array<i64: 16, 48>}, {pipeline_mode = #tpu.pipeline_mode<synchronous>, transform_indices = @transform_2, window_bounds = array<i64: 16, 16>}, {pipeline_mode = #tpu.pipeline_mode<synchronous>, transform_indices = @transform_3, window_bounds = array<i64: 1, 16>}, {pipeline_mode = #tpu.pipeline_mode<synchronous>, transform_indices = @transform_4, window_bounds = array<i64: 16, 64>}, {pipeline_mode = #tpu.pipeline_mode<synchronous>, transform_indices = @transform_5, window_bounds = array<i64: 1, 64>}, {pipeline_mode = #tpu.pipeline_mode<synchronous>, transform_indices = @transform_6, window_bounds = array<i64: 64, 16>}, {pipeline_mode = #tpu.pipeline_mode<synchronous>, transform_indices = @transform_7, window_bounds = array<i64: 1, 16>}, {pipeline_mode = #tpu.pipeline_mode<synchronous>, transform_indices = @transform_8, window_bounds = array<i64: 1, 16>}, {pipeline_mode = #tpu.pipeline_mode<synchronous>, transform_indices = @transform_9, window_bounds = array<i64: 1, 16>}, {pipeline_mode = #tpu.pipeline_mode<synchronous>, transform_indices = @transform_10, window_bounds = array<i64: 1, 16>}, {pipeline_mode = #tpu.pipeline_mode<synchronous>, transform_indices = @transform_11, window_bounds = array<i64: 1, 16>}, {pipeline_mode = #tpu.pipeline_mode<synchronous>, transform_indices = @transform_12, window_bounds = array<i64: 1024, 16>}, {pipeline_mode = #tpu.pipeline_mode<synchronous>, transform_indices = @transform_13, window_bounds = array<i64: 1024, 256>}, {transform_indices = @transform_14, window_bounds = array<i64: 256, 16>}]} {
    %c0 = arith.constant 0 : index
    %c0_0 = arith.constant 0 : index
    %0 = vector.load %arg1[%c0, %c0_0] : memref<256x16xf32, #tpu.memory_space<vmem>>, vector<256x16xf32>
    %c0_1 = arith.constant 0 : index
    %c0_2 = arith.constant 0 : index
    %1 = vector.load %arg9[%c0_1, %c0_2] : memref<1x16xf32, #tpu.memory_space<vmem>>, vector<1x16xf32>
    %c0_3 = arith.constant 0 : index
    %c0_4 = arith.constant 0 : index
    %2 = vector.load %arg10[%c0_3, %c0_4] : memref<1x16xf32, #tpu.memory_space<vmem>>, vector<1x16xf32>
    %cst = arith.constant dense<0.000000e+00> : vector<256xf32>
    %3 = vector.multi_reduction <add>, %0, %cst [1] : vector<256x16xf32> to vector<256xf32>
    %4 = vector.shape_cast %3 : vector<256xf32> to vector<256x1xf32>
    %cst_5 = arith.constant 1.600000e+01 : f32
    %5 = vector.broadcast %cst_5 : f32 to vector<256x1xf32>
    %6 = arith.divf %4, %5 : vector<256x1xf32>
    %7 = vector.broadcast %6 : vector<256x1xf32> to vector<256x16xf32>
    %8 = arith.subf %0, %7 : vector<256x16xf32>
    %9 = arith.mulf %8, %8 : vector<256x16xf32>
    %cst_6 = arith.constant dense<0.000000e+00> : vector<256xf32>
    %10 = vector.multi_reduction <add>, %9, %cst_6 [1] : vector<256x16xf32> to vector<256xf32>
    %11 = vector.shape_cast %10 : vector<256xf32> to vector<256x1xf32>
    %cst_7 = arith.constant 1.600000e+01 : f32
    %12 = vector.broadcast %cst_7 : f32 to vector<256x1xf32>
    %13 = arith.divf %11, %12 : vector<256x1xf32>
    %cst_8 = arith.constant 9.99999974E-6 : f32
    %14 = vector.broadcast %cst_8 : f32 to vector<256x1xf32>
    %15 = arith.addf %13, %14 : vector<256x1xf32>
    %16 = math.rsqrt %15 : vector<256x1xf32>
    %17 = vector.broadcast %16 : vector<256x1xf32> to vector<256x16xf32>
    %18 = arith.mulf %8, %17 : vector<256x16xf32>
    %19 = vector.broadcast %1 : vector<1x16xf32> to vector<256x16xf32>
    %20 = arith.mulf %18, %19 : vector<256x16xf32>
    %21 = vector.broadcast %2 : vector<1x16xf32> to vector<256x16xf32>
    %22 = arith.addf %20, %21 : vector<256x16xf32>
    %23 = arith.truncf %22 : vector<256x16xf32> to vector<256x16xbf16>
    %c0_9 = arith.constant 0 : index
    %c0_10 = arith.constant 0 : index
    %24 = vector.load %arg2[%c0_9, %c0_10] : memref<16x48xbf16, #tpu.memory_space<vmem>>, vector<16x48xbf16>
    %cst_11 = arith.constant dense<0.000000e+00> : vector<256x48xf32>
    %25 = tpu.matmul %23, %24, %cst_11 {dimension_numbers = #tpu.dot_dimension_numbers<[1], [0], [0], [1], [0, 0, 1, 1], [], []>} : vector<256x16xbf16>, vector<16x48xbf16>, vector<256x48xf32> -> vector<256x48xf32>
    %26 = vector.extract_strided_slice %25 {offsets = [0, 0], sizes = [256, 16], strides = [1, 1]} : vector<256x48xf32> to vector<256x16xf32>
    %27 = vector.extract_strided_slice %25 {offsets = [0, 16], sizes = [256, 16], strides = [1, 1]} : vector<256x48xf32> to vector<256x16xf32>
    %28 = vector.extract_strided_slice %25 {offsets = [0, 32], sizes = [256, 16], strides = [1, 1]} : vector<256x48xf32> to vector<256x16xf32>
    %c0_12 = arith.constant 0 : index
    %c0_13 = arith.constant 0 : index
    %29 = vector.load %arg13[%c0_12, %c0_13] : memref<1024x16xf32, #tpu.memory_space<vmem>>, vector<1024x16xf32>
    %30 = tpu.concatenate %26, %26, %26, %26 in 0 : vector<256x16xf32>, vector<256x16xf32>, vector<256x16xf32>, vector<256x16xf32> -> vector<1024x16xf32>
    %31 = arith.mulf %30, %29 : vector<1024x16xf32>
    %32 = arith.truncf %31 : vector<1024x16xf32> to vector<1024x16xbf16>
    %33 = arith.truncf %27 : vector<256x16xf32> to vector<256x16xbf16>
    "tpu.trace_start"() <{level = 10 : i32, message = "nd,md->nm"}> : () -> ()
    %cst_14 = arith.constant dense<0.000000e+00> : vector<1024x256xf32>
    %34 = tpu.matmul %32, %33, %cst_14 {dimension_numbers = #tpu.dot_dimension_numbers<[1], [1], [0], [0], [0, 0, 1, 0], [], []>} : vector<1024x16xbf16>, vector<256x16xbf16>, vector<1024x256xf32> -> vector<1024x256xf32>
    "tpu.trace_stop"() : () -> ()
    %c0_15 = arith.constant 0 : index
    %c0_16 = arith.constant 0 : index
    %35 = vector.load %arg14[%c0_15, %c0_16] : memref<1024x256xf32, #tpu.memory_space<vmem>>, vector<1024x256xf32>
    %36 = arith.addf %34, %35 : vector<1024x256xf32>
    %cst_17 = arith.constant dense<0xFF800000> : vector<1024xf32>
    %37 = vector.multi_reduction <maximumf>, %36, %cst_17 [1] : vector<1024x256xf32> to vector<1024xf32>
    %38 = vector.shape_cast %37 : vector<1024xf32> to vector<1024x1xf32>
    %39 = vector.broadcast %38 : vector<1024x1xf32> to vector<1024x256xf32>
    %40 = arith.subf %36, %39 : vector<1024x256xf32>
    %41 = math.exp %40 : vector<1024x256xf32>
    %cst_18 = arith.constant dense<0.000000e+00> : vector<1024xf32>
    %42 = vector.multi_reduction <add>, %41, %cst_18 [1] : vector<1024x256xf32> to vector<1024xf32>
    %43 = vector.shape_cast %42 : vector<1024xf32> to vector<1024x1xf32>
    %44 = tpu.reciprocal %43 {approx = true} : vector<1024x1xf32> -> vector<1024x1xf32>
    %45 = vector.broadcast %44 : vector<1024x1xf32> to vector<1024x256xf32>
    %46 = arith.mulf %41, %45 : vector<1024x256xf32>
    %47 = arith.truncf %46 : vector<1024x256xf32> to vector<1024x256xbf16>
    %48 = arith.truncf %28 : vector<256x16xf32> to vector<256x16xbf16>
    %cst_19 = arith.constant dense<0.000000e+00> : vector<1024x16xf32>
    %49 = tpu.matmul %47, %48, %cst_19 {dimension_numbers = #tpu.dot_dimension_numbers<[1], [0], [0], [1], [0, 0, 1, 1], [], []>} : vector<1024x256xbf16>, vector<256x16xbf16>, vector<1024x16xf32> -> vector<1024x16xf32>
    %50 = arith.mulf %49, %29 : vector<1024x16xf32>
    %51 = vector.shape_cast %50 : vector<1024x16xf32> to vector<4x256x16xf32>
    %cst_20 = arith.constant dense<0.000000e+00> : vector<256x16xf32>
    %52 = vector.multi_reduction <add>, %51, %cst_20 [0] : vector<4x256x16xf32> to vector<256x16xf32>
    %53 = arith.truncf %52 : vector<256x16xf32> to vector<256x16xbf16>
    %c0_21 = arith.constant 0 : index
    %c0_22 = arith.constant 0 : index
    %54 = vector.load %arg3[%c0_21, %c0_22] : memref<16x16xbf16, #tpu.memory_space<vmem>>, vector<16x16xbf16>
    %cst_23 = arith.constant dense<0.000000e+00> : vector<256x16xf32>
    %55 = tpu.matmul %53, %54, %cst_23 {dimension_numbers = #tpu.dot_dimension_numbers<[1], [0], [0], [1], [0, 0, 1, 1], [], []>} : vector<256x16xbf16>, vector<16x16xbf16>, vector<256x16xf32> -> vector<256x16xf32>
    %c0_24 = arith.constant 0 : index
    %c0_25 = arith.constant 0 : index
    %56 = vector.load %arg4[%c0_24, %c0_25] : memref<1x16xf32, #tpu.memory_space<vmem>>, vector<1x16xf32>
    %57 = vector.broadcast %56 : vector<1x16xf32> to vector<256x16xf32>
    %58 = arith.addf %55, %57 : vector<256x16xf32>
    %59 = arith.addf %0, %58 : vector<256x16xf32>
    %c0_26 = arith.constant 0 : index
    %c0_27 = arith.constant 0 : index
    %60 = vector.load %arg11[%c0_26, %c0_27] : memref<1x16xf32, #tpu.memory_space<vmem>>, vector<1x16xf32>
    %c0_28 = arith.constant 0 : index
    %c0_29 = arith.constant 0 : index
    %61 = vector.load %arg12[%c0_28, %c0_29] : memref<1x16xf32, #tpu.memory_space<vmem>>, vector<1x16xf32>
    %cst_30 = arith.constant dense<0.000000e+00> : vector<256xf32>
    %62 = vector.multi_reduction <add>, %59, %cst_30 [1] : vector<256x16xf32> to vector<256xf32>
    %63 = vector.shape_cast %62 : vector<256xf32> to vector<256x1xf32>
    %cst_31 = arith.constant 1.600000e+01 : f32
    %64 = vector.broadcast %cst_31 : f32 to vector<256x1xf32>
    %65 = arith.divf %63, %64 : vector<256x1xf32>
    %66 = vector.broadcast %65 : vector<256x1xf32> to vector<256x16xf32>
    %67 = arith.subf %59, %66 : vector<256x16xf32>
    %68 = arith.mulf %67, %67 : vector<256x16xf32>
    %cst_32 = arith.constant dense<0.000000e+00> : vector<256xf32>
    %69 = vector.multi_reduction <add>, %68, %cst_32 [1] : vector<256x16xf32> to vector<256xf32>
    %70 = vector.shape_cast %69 : vector<256xf32> to vector<256x1xf32>
    %cst_33 = arith.constant 1.600000e+01 : f32
    %71 = vector.broadcast %cst_33 : f32 to vector<256x1xf32>
    %72 = arith.divf %70, %71 : vector<256x1xf32>
    %cst_34 = arith.constant 9.99999974E-6 : f32
    %73 = vector.broadcast %cst_34 : f32 to vector<256x1xf32>
    %74 = arith.addf %72, %73 : vector<256x1xf32>
    %75 = math.rsqrt %74 : vector<256x1xf32>
    %76 = vector.broadcast %75 : vector<256x1xf32> to vector<256x16xf32>
    %77 = arith.mulf %67, %76 : vector<256x16xf32>
    %78 = vector.broadcast %60 : vector<1x16xf32> to vector<256x16xf32>
    %79 = arith.mulf %77, %78 : vector<256x16xf32>
    %80 = vector.broadcast %61 : vector<1x16xf32> to vector<256x16xf32>
    %81 = arith.addf %79, %80 : vector<256x16xf32>
    %82 = arith.truncf %81 : vector<256x16xf32> to vector<256x16xbf16>
    %c0_35 = arith.constant 0 : index
    %c0_36 = arith.constant 0 : index
    %83 = vector.load %arg5[%c0_35, %c0_36] : memref<16x64xbf16, #tpu.memory_space<vmem>>, vector<16x64xbf16>
    %cst_37 = arith.constant dense<0.000000e+00> : vector<256x64xf32>
    %84 = tpu.matmul %82, %83, %cst_37 {dimension_numbers = #tpu.dot_dimension_numbers<[1], [0], [0], [1], [0, 0, 1, 1], [], []>} : vector<256x16xbf16>, vector<16x64xbf16>, vector<256x64xf32> -> vector<256x64xf32>
    %c0_38 = arith.constant 0 : index
    %c0_39 = arith.constant 0 : index
    %85 = vector.load %arg6[%c0_38, %c0_39] : memref<1x64xf32, #tpu.memory_space<vmem>>, vector<1x64xf32>
    %86 = vector.broadcast %85 : vector<1x64xf32> to vector<256x64xf32>
    %87 = arith.addf %84, %86 : vector<256x64xf32>
    %cst_40 = arith.constant 0.000000e+00 : f32
    %88 = vector.broadcast %cst_40 : f32 to vector<256x64xf32>
    %89 = arith.maximumf %87, %88 : vector<256x64xf32>
    %90 = arith.truncf %89 : vector<256x64xf32> to vector<256x64xbf16>
    %c0_41 = arith.constant 0 : index
    %c0_42 = arith.constant 0 : index
    %91 = vector.load %arg7[%c0_41, %c0_42] : memref<64x16xbf16, #tpu.memory_space<vmem>>, vector<64x16xbf16>
    %cst_43 = arith.constant dense<0.000000e+00> : vector<256x16xf32>
    %92 = tpu.matmul %90, %91, %cst_43 {dimension_numbers = #tpu.dot_dimension_numbers<[1], [0], [0], [1], [0, 0, 1, 1], [], []>} : vector<256x64xbf16>, vector<64x16xbf16>, vector<256x16xf32> -> vector<256x16xf32>
    %c0_44 = arith.constant 0 : index
    %c0_45 = arith.constant 0 : index
    %93 = vector.load %arg8[%c0_44, %c0_45] : memref<1x16xf32, #tpu.memory_space<vmem>>, vector<1x16xf32>
    %94 = vector.broadcast %93 : vector<1x16xf32> to vector<256x16xf32>
    %95 = arith.addf %92, %94 : vector<256x16xf32>
    %96 = arith.addf %59, %95 : vector<256x16xf32>
    %c0_46 = arith.constant 0 : index
    %c0_47 = arith.constant 0 : index
    %97 = vector.load %arg15[%c0_46, %c0_47] : memref<256x16xf32, #tpu.memory_space<vmem>>, vector<256x16xf32>
    tpu.vector_store %arg15[%c0_46, %c0_47], %96 {strides = array<i32>} : memref<256x16xf32, #tpu.memory_space<vmem>>, vector<256x16xf32>,
    return
  }
  func.func @transform_0(%arg0: i32) -> (i32, i32) {
    %c0_i32 = arith.constant 0 : i32
    %c0_i32_0 = arith.constant 0 : i32
    return %arg0, %c0_i32 : i32, i32
  }
  func.func @transform_1(%arg0: i32) -> (i32, i32) {
    %c0_i32 = arith.constant 0 : i32
    %c0_i32_0 = arith.constant 0 : i32
    %c0_i32_1 = arith.constant 0 : i32
    return %c0_i32, %c0_i32_0 : i32, i32
  }
  func.func @transform_2(%arg0: i32) -> (i32, i32) {
    %c0_i32 = arith.constant 0 : i32
    %c0_i32_0 = arith.constant 0 : i32
    %c0_i32_1 = arith.constant 0 : i32
    return %c0_i32, %c0_i32_0 : i32, i32
  }
  func.func @transform_3(%arg0: i32) -> (i32, i32) {
    %c0_i32 = arith.constant 0 : i32
    %c0_i32_0 = arith.constant 0 : i32
    %c0_i32_1 = arith.constant 0 : i32
    return %c0_i32, %c0_i32_0 : i32, i32
  }
  func.func @transform_4(%arg0: i32) -> (i32, i32) {
    %c0_i32 = arith.constant 0 : i32
    %c0_i32_0 = arith.constant 0 : i32
    %c0_i32_1 = arith.constant 0 : i32
    return %c0_i32, %c0_i32_0 : i32, i32
  }
  func.func @transform_5(%arg0: i32) -> (i32, i32) {
    %c0_i32 = arith.constant 0 : i32
    %c0_i32_0 = arith.constant 0 : i32
    %c0_i32_1 = arith.constant 0 : i32
    return %c0_i32, %c0_i32_0 : i32, i32
  }
  func.func @transform_6(%arg0: i32) -> (i32, i32) {
    %c0_i32 = arith.constant 0 : i32
    %c0_i32_0 = arith.constant 0 : i32
    %c0_i32_1 = arith.constant 0 : i32
    return %c0_i32, %c0_i32_0 : i32, i32
  }
  func.func @transform_7(%arg0: i32) -> (i32, i32) {
    %c0_i32 = arith.constant 0 : i32
    %c0_i32_0 = arith.constant 0 : i32
    %c0_i32_1 = arith.constant 0 : i32
    return %c0_i32, %c0_i32_0 : i32, i32
  }
  func.func @transform_8(%arg0: i32) -> (i32, i32) {
    %c0_i32 = arith.constant 0 : i32
    %c0_i32_0 = arith.constant 0 : i32
    %c0_i32_1 = arith.constant 0 : i32
    return %c0_i32, %c0_i32_0 : i32, i32
  }
  func.func @transform_9(%arg0: i32) -> (i32, i32) {
    %c0_i32 = arith.constant 0 : i32
    %c0_i32_0 = arith.constant 0 : i32
    %c0_i32_1 = arith.constant 0 : i32
    return %c0_i32, %c0_i32_0 : i32, i32
  }
  func.func @transform_10(%arg0: i32) -> (i32, i32) {
    %c0_i32 = arith.constant 0 : i32
    %c0_i32_0 = arith.constant 0 : i32
    %c0_i32_1 = arith.constant 0 : i32
    return %c0_i32, %c0_i32_0 : i32, i32
  }
  func.func @transform_11(%arg0: i32) -> (i32, i32) {
    %c0_i32 = arith.constant 0 : i32
    %c0_i32_0 = arith.constant 0 : i32
    %c0_i32_1 = arith.constant 0 : i32
    return %c0_i32, %c0_i32_0 : i32, i32
  }
  func.func @transform_12(%arg0: i32) -> (i32, i32) {
    %c0_i32 = arith.constant 0 : i32
    %c0_i32_0 = arith.constant 0 : i32
    %c0_i32_1 = arith.constant 0 : i32
    return %c0_i32, %c0_i32_0 : i32, i32
  }
  func.func @transform_13(%arg0: i32) -> (i32, i32) {
    %c0_i32 = arith.constant 0 : i32
    %c0_i32_0 = arith.constant 0 : i32
    %c0_i32_1 = arith.constant 0 : i32
    return %c0_i32, %c0_i32_0 : i32, i32
  }
  func.func @transform_14(%arg0: i32) -> (i32, i32) {
    %c0_i32 = arith.constant 0 : i32
    %c0_i32_0 = arith.constant 0 : i32
    return %arg0, %c0_i32 : i32, i32
  }
}

</mosaic_0001>

<bundles_post_ra>
// kernel: tpu_custom_call.1
= control target key start
LH: loop header
LB: loop body
LE: loop exit
PB: predicated region body
PF: predicated region fallthrough
CT: control target
= control target key end

     0   :  { %19 = vsyncpa [#allocation3], 0  ;;  %s8343_s29 = smov [#allocation2]   ;;  %s14403_s0 = inlined_call_operand.vmem [shape: f32[256,16], index: 0, kind: input, shape index: {}]   ;;  %s14404_s1 = inlined_call_operand.vmem [shape: bf16[16,48], index: 1, kind: input, shape index: {}]   ;;  %s14405_s2 = inlined_call_operand.vmem [shape: bf16[16,16], index: 2, kind: input, shape index: {}]   ;;  %s14406_s3 = inlined_call_operand.vmem [shape: f32[1,16], index: 3, kind: input, shape index: {}]   ;;  %s14407_s4 = inlined_call_operand.vmem [shape: bf16[16,64], index: 4, kind: input, shape index: {}]   ;;  %s14408_s5 = inlined_call_operand.vmem [shape: f32[1,64], index: 5, kind: input, shape index: {}]   ;;  %s14409_s6 = inlined_call_operand.vmem [shape: bf16[64,16], index: 6, kind: input, shape index: {}]   ;;  %s14410_s7 = inlined_call_operand.vmem [shape: f32[1,16], index: 7, kind: input, shape index: {}]   ;;  %s14411_s8 = inlined_call_operand.vmem [shape: f32[1,16], index: 8, kind: input, shape index: {}]   ;;  %s14412_s9 = inlined_call_operand.vmem [shape: f32[1,16], index: 9, kind: input, shape index: {}]   ;;  %s14413_s10 = inlined_call_operand.vmem [shape: f32[1,16], index: 10, kind: input, shape index: {}]   ;;  %s14414_s11 = inlined_call_operand.vmem [shape: f32[1,16], index: 11, kind: input, shape index: {}]   ;;  %s14415_s12 = inlined_call_operand.vmem [shape: f32[1024,16], index: 12, kind: input, shape index: {}]   ;;  %s14416_s13 = inlined_call_operand.hbm [shape: f32[1024,256], index: 13, kind: input, shape index: {}]   ;;  %s14417_s14 = inlined_call_operand.vmem [shape: f32[256,16], index: 14, kind: output, shape index: {}]  }
   0x1   :  { %s51_s30 = sshll.u32 %s8343_s29, 4  ;;  %s8319_s17 = scalar_lea.hbm %s14416_s13, 32768  ;;  %s52_s30 = int_to_ptr.vmem [resolvable:$true] %s51_s30 }
   0x2   :  { %p8320_p0 = scmp.ne.s32.totalorder %s14416_s13, %s8319_s17  ;;  %p8323_p1 = scmp.lt.u32.totalorder %s8319_s17, %s14416_s13 }
   0x4   :  { %p8325_p2 = pnand %p8323_p1, %p8320_p0 }
   0x6   :  { %8328 = shalt.err (!%p8325_p2)
}
   0x7   :  { %s8329_s22 = scalar_lea.vmem %s52_s30, 32768  ;;  %p8334_p4 = scmp.lt.s32.totalorder %s52_s30, %s52_s30 }
   0x8   :  { %p8330_p3 = scmp.ne.s32.totalorder %s52_s30, %s8329_s22  ;;  %p8335_p5 = scmp.lt.s32.totalorder %s8329_s22, %s8329_s22 }
   0xa   :  { %p8336_p6 = por %p8335_p5, %p8334_p4 }
   0xc   :  { %p8337_p7 = pnand %p8336_p6, %p8330_p3 }
   0xe   :  { %8340 = shalt.err (!%p8337_p7)
}
   0xf   :  { %s8344_s23 = smov 256   ;;  %s8345_s24 = smov 16  }
  0x10   :  { %57 = dma.hbm_to_vmem [thread:$0]  %s14416_s13, 32768, %s52_s30, [#allocation3], %s8344_s23, %s8344_s23, %s8345_s24  }
  0x11   :  { %8341 = dma.done.wait [#allocation3], 32768  }
  0x12   :  { %8342 = vsyncadd [#allocation3], 4294934528  ;;  %vm96_vm0 = vcmask 130048   ;;  %v8439_v0 = vld [vmem:[%s14403_s0] sm:$0xff]  ;;  %v8444_v1 = vld [vmem:[%s14403_s0 + $0x10] sm:$0xff]  ;;  %s8348_s18 = smov 96  }
  0x13   :  { %v8449_v2 = vld [vmem:[%s14403_s0 + $0x8] sm:$0xff]  ;;  %v97_v3 = vsel %vm96_vm0, %v8439_v0, 0.0  ;;  %v103_v4 = vsel %vm96_vm0, %v8444_v1, 0.0  ;;  %v8458_v5 = vld [vmem:[%s14403_s0 + $0x18] sm:$0xff]  ;;  %v8467_v8 = vld [vmem:[%s14403_s0 + $0x20] sm:$0xff]  ;;  %vm6462_vm1 = vcmask 523264  }
  0x14   :  { %98 = vadd.xlane.f32.xlu0 %v97_v3  ;;  %104 = vadd.xlane.f32.xlu1 %v103_v4  ;;  %v100_v6 = vsel %vm96_vm0, %v8449_v2, 0.0  ;;  %v106_v7 = vsel %vm96_vm0, %v8458_v5, 0.0  ;;  %v8472_v9 = vld [vmem:[%s14403_s0 + $0x28] sm:$0xff]  ;;  %v109_v10 = vsel %vm96_vm0, %v8467_v8, 0.0  ;;  %v8481_v12 = vld [vmem:[%s14403_s0 + $0x30] sm:$0xff]  ;;  %v8486_v13 = vld [vmem:[%s14403_s0 + $0x38] sm:$0xff] }
  0x15   :  { %v112_v11 = vsel %vm96_vm0, %v8472_v9, 0.0  ;;  %v8491_v14 = vld [vmem:[%s14403_s0 + $0x40] sm:$0xff]  ;;  %v8496_v15 = vld [vmem:[%s14403_s0 + $0x48] sm:$0xff]  ;;  %v115_v16 = vsel %vm96_vm0, %v8481_v12, 0.0  ;;  %v118_v17 = vsel %vm96_vm0, %v8486_v13, 0.0  ;;  %v8509_v20 = vld [vmem:[%s14403_s0 + $0x50] sm:$0xff] }
  0x16   :  { %v121_v18 = vsel %vm96_vm0, %v8491_v14, 0.0  ;;  %v124_v19 = vsel %vm96_vm0, %v8496_v15, 0.0  ;;  %v8514_v21 = vld [vmem:[%s14403_s0 + $0x58] sm:$0xff]  ;;  %v127_v22 = vsel %vm96_vm0, %v8509_v20, 0.0  ;;  %v8523_v24 = vld [vmem:[%s14403_s0 + $0x60] sm:$0xff]  ;;  %v8528_v25 = vld [vmem:[%s14403_s0 + $0x68] sm:$0xff] }
  0x17   :  { %v130_v23 = vsel %vm96_vm0, %v8514_v21, 0.0  ;;  %v133_v26 = vsel %vm96_vm0, %v8523_v24, 0.0  ;;  %v136_v27 = vsel %vm96_vm0, %v8528_v25, 0.0  ;;  %v8537_v28 = vld [vmem:[%s14403_s0 + $0x70] sm:$0xff]  ;;  %v8542_v29 = vld [vmem:[%s14403_s0 + $0x78] sm:$0xff]  ;;  %v8551_v32 = vld [vmem:[%s14403_s0 + $0x80] sm:$0xff] }
  0x18   :  { %101 = vadd.xlane.f32.xlu0 %v100_v6  ;;  %107 = vadd.xlane.f32.xlu1 %v106_v7  ;;  %v139_v30 = vsel %vm96_vm0, %v8537_v28, 0.0  ;;  %v142_v31 = vsel %vm96_vm0, %v8542_v29, 0.0  ;;  %v8556_v33 = vld [vmem:[%s14403_s0 + $0x88] sm:$0xff]  ;;  %v145_v34 = vsel %vm96_vm0, %v8551_v32, 0.0  ;;  %v8565_v36 = vld [vmem:[%s14403_s0 + $0x90] sm:$0xff]  ;;  %v8570_v37 = vld [vmem:[%s14403_s0 + $0x98] sm:$0xff] }
  0x19   :  { %v148_v35 = vsel %vm96_vm0, %v8556_v33, 0.0  ;;  %v151_v38 = vsel %vm96_vm0, %v8565_v36, 0.0  ;;  %v154_v39 = vsel %vm96_vm0, %v8570_v37, 0.0  ;;  %v8579_v40 = vld [vmem:[%s14403_s0 + $0xa0] sm:$0xff]  ;;  %v8584_v41 = vld [vmem:[%s14403_s0 + $0xa8] sm:$0xff]  ;;  %v8593_v44 = vld [vmem:[%s14403_s0 + $0xb0] sm:$0xff] }
  0x1a   :  { %v157_v42 = vsel %vm96_vm0, %v8579_v40, 0.0  ;;  %v160_v43 = vsel %vm96_vm0, %v8584_v41, 0.0  ;;  %v8598_v45 = vld [vmem:[%s14403_s0 + $0xb8] sm:$0xff]  ;;  %v163_v46 = vsel %vm96_vm0, %v8593_v44, 0.0  ;;  %v8607_v48 = vld [vmem:[%s14403_s0 + $0xc0] sm:$0xff]  ;;  %v8612_v49 = vld [vmem:[%s14403_s0 + $0xc8] sm:$0xff] }
  0x1b   :  { %v166_v47 = vsel %vm96_vm0, %v8598_v45, 0.0  ;;  %v169_v50 = vsel %vm96_vm0, %v8607_v48, 0.0  ;;  %v172_v51 = vsel %vm96_vm0, %v8612_v49, 0.0  ;;  %v8621_v52 = vld [vmem:[%s14403_s0 + $0xd0] sm:$0xff]  ;;  %v8626_v53 = vld [vmem:[%s14403_s0 + $0xd8] sm:$0xff]  ;;  %v8635_v56 = vld [vmem:[%s14403_s0 + $0xe0] sm:$0xff] }
  0x1c   :  { %110 = vadd.xlane.f32.xlu0 %v109_v10  ;;  %113 = vadd.xlane.f32.xlu1 %v112_v11  ;;  %v175_v54 = vsel %vm96_vm0, %v8621_v52, 0.0  ;;  %v178_v55 = vsel %vm96_vm0, %v8626_v53, 0.0  ;;  %v8640_v57 = vld [vmem:[%s14403_s0 + $0xe8] sm:$0xff]  ;;  %v181_v58 = vsel %vm96_vm0, %v8635_v56, 0.0  ;;  %v8649_v60 = vld [vmem:[%s14403_s0 + $0xf0] sm:$0xff]  ;;  %v8654_v61 = vld [vmem:[%s14403_s0 + $0xf8] sm:$0xff] }
  0x1d   :  { %v184_v59 = vsel %vm96_vm0, %v8640_v57, 0.0  ;;  %v187_v62 = vsel %vm96_vm0, %v8649_v60, 0.0  ;;  %v190_v63 = vsel %vm96_vm0, %v8654_v61, 0.0 }
  0x20   :  { %116 = vadd.xlane.f32.xlu0 %v115_v16  ;;  %119 = vadd.xlane.f32.xlu1 %v118_v17 }
  0x24   :  { %122 = vadd.xlane.f32.xlu0 %v121_v18  ;;  %125 = vadd.xlane.f32.xlu1 %v124_v19 }
  0x28   :  { %128 = vadd.xlane.f32.xlu0 %v127_v22  ;;  %131 = vadd.xlane.f32.xlu1 %v130_v23 }
  0x2c   :  { %134 = vadd.xlane.f32.xlu0 %v133_v26  ;;  %137 = vadd.xlane.f32.xlu1 %v136_v27 }
  0x30   :  { %140 = vadd.xlane.f32.xlu0 %v139_v30  ;;  %143 = vadd.xlane.f32.xlu1 %v142_v31 }
  0x34   :  { %146 = vadd.xlane.f32.xlu0 %v145_v34  ;;  %149 = vadd.xlane.f32.xlu1 %v148_v35 }
  0x38   :  { %152 = vadd.xlane.f32.xlu0 %v151_v38  ;;  %155 = vadd.xlane.f32.xlu1 %v154_v39 }
  0x3c   :  { %158 = vadd.xlane.f32.xlu0 %v157_v42  ;;  %161 = vadd.xlane.f32.xlu1 %v160_v43 }
  0x40   :  { %164 = vadd.xlane.f32.xlu0 %v163_v46  ;;  %167 = vadd.xlane.f32.xlu1 %v166_v47 }
  0x44   :  { %170 = vadd.xlane.f32.xlu0 %v169_v50  ;;  %173 = vadd.xlane.f32.xlu1 %v172_v51 }
  0x48   :  { %176 = vadd.xlane.f32.xlu0 %v175_v54  ;;  %179 = vadd.xlane.f32.xlu1 %v178_v55 }
  0x4c   :  { %182 = vadd.xlane.f32.xlu0 %v181_v58  ;;  %185 = vadd.xlane.f32.xlu1 %v184_v59 }
  0x50   :  { %188 = vadd.xlane.f32.xlu0 %v187_v62  ;;  %191 = vadd.xlane.f32.xlu1 %v190_v63 }
  0xa1   :  { %v99_v3 = vpop.xlane.xlu0 %98  ;;  %v105_v4 = vpop.xlane.xlu1 %104 }
  0xa2   :  { %v194_v6 = vmul.f32 0.0625, %v99_v3  ;;  %v196_v7 = vmul.f32 0.0625, %v105_v4 }
  0xa4   :  { %v8661_v10 = vsub.f32 %v8439_v0, %v194_v6  ;;  %v8664_v11 = vsub.f32 %v8444_v1, %v196_v7 }
  0xa5   :  { %v102_v16 = vpop.xlane.xlu0 %101  ;;  %v108_v17 = vpop.xlane.xlu1 %107 }
  0xa6   :  { %v195_v18 = vmul.f32 0.0625, %v102_v16  ;;  %v197_v19 = vmul.f32 0.0625, %v108_v17  ;;  %v258_v22 = vmul.f32 %v8661_v10, %v8661_v10  ;;  %v260_v23 = vmul.f32 %v8664_v11, %v8664_v11 }
  0xa8   :  { %v8671_v26 = vsub.f32 %v8449_v2, %v195_v18  ;;  %v8674_v27 = vsub.f32 %v8458_v5, %v197_v19  ;;  %v290_v0 = vsel %vm96_vm0, %v258_v22, 0.0  ;;  %v296_v31 = vsel %vm96_vm0, %v260_v23, 0.0 }
  0xa9   :  { %291 = vadd.xlane.f32.xlu0 %v290_v0  ;;  %v111_v1 = vpop.xlane.xlu0 %110  ;;  %v114_v30 = vpop.xlane.xlu1 %113 }
  0xaa   :  { %v198_v34 = vmul.f32 0.0625, %v111_v1  ;;  %v199_v35 = vmul.f32 0.0625, %v114_v30  ;;  %v259_v38 = vmul.f32 %v8671_v26, %v8671_v26  ;;  %v261_v39 = vmul.f32 %v8674_v27, %v8674_v27 }
  0xac   :  { %v8683_v2 = vsub.f32 %v8467_v8, %v198_v34  ;;  %v8686_v5 = vsub.f32 %v8472_v9, %v199_v35  ;;  %v293_v42 = vsel %vm96_vm0, %v259_v38, 0.0  ;;  %v299_v47 = vsel %vm96_vm0, %v261_v39, 0.0 }
  0xad   :  { %297 = vadd.xlane.f32.xlu0 %v296_v31  ;;  %294 = vadd.xlane.f32.xlu1 %v293_v42  ;;  %v117_v43 = vpop.xlane.xlu0 %116  ;;  %v120_v46 = vpop.xlane.xlu1 %119 }
  0xae   :  { %v200_v50 = vmul.f32 0.0625, %v117_v43  ;;  %v201_v51 = vmul.f32 0.0625, %v120_v46  ;;  %v262_v54 = vmul.f32 %v8683_v2, %v8683_v2  ;;  %v263_v8 = vmul.f32 %v8686_v5, %v8686_v5 }
  0xb0   :  { %v8695_v55 = vsub.f32 %v8481_v12, %v200_v50  ;;  %v8698_v9 = vsub.f32 %v8486_v13, %v201_v51  ;;  %v302_v58 = vsel %vm96_vm0, %v262_v54, 0.0  ;;  %v305_v63 = vsel %vm96_vm0, %v263_v8, 0.0 }
  0xb1   :  { %300 = vadd.xlane.f32.xlu1 %v299_v47  ;;  %303 = vadd.xlane.f32.xlu0 %v302_v58  ;;  %v123_v59 = vpop.xlane.xlu0 %122  ;;  %v126_v62 = vpop.xlane.xlu1 %125 }
  0xb2   :  { %v202_v3 = vmul.f32 0.0625, %v123_v59  ;;  %v203_v4 = vmul.f32 0.0625, %v126_v62  ;;  %v264_v6 = vmul.f32 %v8695_v55, %v8695_v55  ;;  %v265_v12 = vmul.f32 %v8698_v9, %v8698_v9 }
  0xb4   :  { %v8707_v7 = vsub.f32 %v8491_v14, %v202_v3  ;;  %v8710_v13 = vsub.f32 %v8496_v15, %v203_v4  ;;  %v308_v16 = vsel %vm96_vm0, %v264_v6, 0.0  ;;  %v311_v19 = vsel %vm96_vm0, %v265_v12, 0.0 }
  0xb5   :  { %306 = vadd.xlane.f32.xlu1 %v305_v63  ;;  %309 = vadd.xlane.f32.xlu0 %v308_v16  ;;  %v129_v17 = vpop.xlane.xlu0 %128  ;;  %v132_v18 = vpop.xlane.xlu1 %131 }
  0xb6   :  { %v204_v22 = vmul.f32 0.0625, %v129_v17  ;;  %v205_v23 = vmul.f32 0.0625, %v132_v18  ;;  %v266_v0 = vmul.f32 %v8707_v7, %v8707_v7  ;;  %v267_v14 = vmul.f32 %v8710_v13, %v8710_v13 }
  0xb8   :  { %v8719_v1 = vsub.f32 %v8509_v20, %v204_v22  ;;  %v8722_v15 = vsub.f32 %v8514_v21, %v205_v23  ;;  %v314_v30 = vsel %vm96_vm0, %v266_v0, 0.0  ;;  %v317_v35 = vsel %vm96_vm0, %v267_v14, 0.0 }
  0xb9   :  { %312 = vadd.xlane.f32.xlu1 %v311_v19  ;;  %315 = vadd.xlane.f32.xlu0 %v314_v30  ;;  %v135_v31 = vpop.xlane.xlu0 %134  ;;  %v138_v34 = vpop.xlane.xlu1 %137 }
  0xba   :  { %v206_v38 = vmul.f32 0.0625, %v135_v31  ;;  %v207_v39 = vmul.f32 0.0625, %v138_v34  ;;  %v268_v42 = vmul.f32 %v8719_v1, %v8719_v1  ;;  %v269_v20 = vmul.f32 %v8722_v15, %v8722_v15 }
  0xbc   :  { %v8731_v43 = vsub.f32 %v8523_v24, %v206_v38  ;;  %v8734_v21 = vsub.f32 %v8528_v25, %v207_v39  ;;  %v320_v46 = vsel %vm96_vm0, %v268_v42, 0.0  ;;  %v323_v51 = vsel %vm96_vm0, %v269_v20, 0.0 }
  0xbd   :  { %318 = vadd.xlane.f32.xlu1 %v317_v35  ;;  %321 = vadd.xlane.f32.xlu0 %v320_v46  ;;  %v141_v47 = vpop.xlane.xlu0 %140  ;;  %v144_v50 = vpop.xlane.xlu1 %143 }
  0xbe   :  { %v208_v54 = vmul.f32 0.0625, %v141_v47  ;;  %v209_v8 = vmul.f32 0.0625, %v144_v50  ;;  %v270_v58 = vmul.f32 %v8731_v43, %v8731_v43  ;;  %v271_v24 = vmul.f32 %v8734_v21, %v8734_v21 }
  0xc0   :  { %v8743_v59 = vsub.f32 %v8537_v28, %v208_v54  ;;  %v8746_v25 = vsub.f32 %v8542_v29, %v209_v8  ;;  %v326_v62 = vsel %vm96_vm0, %v270_v58, 0.0  ;;  %v329_v4 = vsel %vm96_vm0, %v271_v24, 0.0 }
  0xc1   :  { %324 = vadd.xlane.f32.xlu1 %v323_v51  ;;  %327 = vadd.xlane.f32.xlu0 %v326_v62  ;;  %v147_v63 = vpop.xlane.xlu0 %146  ;;  %v150_v3 = vpop.xlane.xlu1 %149 }
  0xc2   :  { %v210_v6 = vmul.f32 0.0625, %v147_v63  ;;  %v211_v12 = vmul.f32 0.0625, %v150_v3  ;;  %v272_v16 = vmul.f32 %v8743_v59, %v8743_v59  ;;  %v273_v28 = vmul.f32 %v8746_v25, %v8746_v25 }
  0xc4   :  { %v8755_v17 = vsub.f32 %v8551_v32, %v210_v6  ;;  %v8758_v29 = vsub.f32 %v8556_v33, %v211_v12  ;;  %v332_v18 = vsel %vm96_vm0, %v272_v16, 0.0  ;;  %v335_v23 = vsel %vm96_vm0, %v273_v28, 0.0  ;;  %v7256_v16 = vld [vmem:[%s14404_s1] sm:$0xff]   ;;  %s8346_s1 = smov 112  }
  0xc5   :  { %330 = vadd.xlane.f32.xlu1 %v329_v4  ;;  %333 = vadd.xlane.f32.xlu0 %v332_v18  ;;  %v153_v19 = vpop.xlane.xlu0 %152  ;;  %v156_v22 = vpop.xlane.xlu1 %155 }
  0xc6   :  { %v212_v0 = vmul.f32 0.0625, %v153_v19  ;;  %v213_v14 = vmul.f32 0.0625, %v156_v22  ;;  %v274_v30 = vmul.f32 %v8755_v17, %v8755_v17  ;;  %v275_v32 = vmul.f32 %v8758_v29, %v8758_v29  ;;  %7098 = vmatprep.subr.bf16.mxu0 %v7256_v16 }
  0xc7   :  { %7099 = vmatpush3.bf16.msra.mxu0 %v7256_v16 }
  0xc8   :  { %v8767_v31 = vsub.f32 %v8565_v36, %v212_v0  ;;  %v8770_v33 = vsub.f32 %v8570_v37, %v213_v14  ;;  %v338_v34 = vsel %vm96_vm0, %v274_v30, 0.0  ;;  %v341_v39 = vsel %vm96_vm0, %v275_v32, 0.0 }
  0xc9   :  { %336 = vadd.xlane.f32.xlu1 %v335_v23  ;;  %339 = vadd.xlane.f32.xlu0 %v338_v34  ;;  %v159_v35 = vpop.xlane.xlu0 %158  ;;  %v162_v38 = vpop.xlane.xlu1 %161 }
  0xca   :  { %v214_v42 = vmul.f32 0.0625, %v159_v35  ;;  %v215_v20 = vmul.f32 0.0625, %v162_v38  ;;  %v276_v46 = vmul.f32 %v8767_v31, %v8767_v31  ;;  %v277_v36 = vmul.f32 %v8770_v33, %v8770_v33 }
  0xcc   :  { %v8779_v47 = vsub.f32 %v8579_v40, %v214_v42  ;;  %v8782_v37 = vsub.f32 %v8584_v41, %v215_v20  ;;  %v344_v50 = vsel %vm96_vm0, %v276_v46, 0.0  ;;  %v347_v8 = vsel %vm96_vm0, %v277_v36, 0.0 }
  0xcd   :  { %342 = vadd.xlane.f32.xlu1 %v341_v39  ;;  %345 = vadd.xlane.f32.xlu0 %v344_v50  ;;  %v165_v51 = vpop.xlane.xlu0 %164  ;;  %v168_v54 = vpop.xlane.xlu1 %167 }
  0xce   :  { %v216_v58 = vmul.f32 0.0625, %v165_v51  ;;  %v217_v24 = vmul.f32 0.0625, %v168_v54  ;;  %v278_v62 = vmul.f32 %v8779_v47, %v8779_v47  ;;  %v279_v40 = vmul.f32 %v8782_v37, %v8782_v37 }
  0xd0   :  { %v8791_v63 = vsub.f32 %v8593_v44, %v216_v58  ;;  %v8794_v41 = vsub.f32 %v8598_v45, %v217_v24  ;;  %v350_v3 = vsel %vm96_vm0, %v278_v62, 0.0  ;;  %v353_v12 = vsel %vm96_vm0, %v279_v40, 0.0 }
  0xd1   :  { %348 = vadd.xlane.f32.xlu1 %v347_v8  ;;  %351 = vadd.xlane.f32.xlu0 %v350_v3  ;;  %v171_v4 = vpop.xlane.xlu0 %170  ;;  %v174_v6 = vpop.xlane.xlu1 %173 }
  0xd2   :  { %v218_v28 = vmul.f32 0.0625, %v171_v4  ;;  %v219_v18 = vmul.f32 0.0625, %v174_v6  ;;  %v280_v44 = vmul.f32 %v8791_v63, %v8791_v63  ;;  %v281_v45 = vmul.f32 %v8794_v41, %v8794_v41 }
  0xd4   :  { %v8806_v19 = vsub.f32 %v8607_v48, %v218_v28  ;;  %v8809_v22 = vsub.f32 %v8612_v49, %v219_v18  ;;  %v356_v23 = vsel %vm96_vm0, %v280_v44, 0.0  ;;  %v359_v30 = vsel %vm96_vm0, %v281_v45, 0.0 }
  0xd5   :  { %354 = vadd.xlane.f32.xlu1 %v353_v12  ;;  %357 = vadd.xlane.f32.xlu0 %v356_v23  ;;  %v177_v0 = vpop.xlane.xlu0 %176  ;;  %v180_v14 = vpop.xlane.xlu1 %179 }
  0xd6   :  { %v220_v32 = vmul.f32 0.0625, %v177_v0  ;;  %v221_v34 = vmul.f32 0.0625, %v180_v14  ;;  %v282_v35 = vmul.f32 %v8806_v19, %v8806_v19  ;;  %v283_v48 = vmul.f32 %v8809_v22, %v8809_v22 }
  0xd8   :  { %v8818_v49 = vsub.f32 %v8621_v52, %v220_v32  ;;  %v8821_v38 = vsub.f32 %v8626_v53, %v221_v34  ;;  %v362_v39 = vsel %vm96_vm0, %v282_v35, 0.0  ;;  %v365_v46 = vsel %vm96_vm0, %v283_v48, 0.0 }
  0xd9   :  { %360 = vadd.xlane.f32.xlu1 %v359_v30  ;;  %363 = vadd.xlane.f32.xlu0 %v362_v39  ;;  %v183_v42 = vpop.xlane.xlu0 %182  ;;  %v186_v20 = vpop.xlane.xlu1 %185 }
  0xda   :  { %v222_v36 = vmul.f32 0.0625, %v183_v42  ;;  %v223_v50 = vmul.f32 0.0625, %v186_v20  ;;  %v284_v51 = vmul.f32 %v8818_v49, %v8818_v49  ;;  %v285_v52 = vmul.f32 %v8821_v38, %v8821_v38 }
  0xdc   :  { %v8830_v54 = vsub.f32 %v8635_v56, %v222_v36  ;;  %v8833_v53 = vsub.f32 %v8640_v57, %v223_v50  ;;  %v368_v8 = vsel %vm96_vm0, %v284_v51, 0.0  ;;  %v371_v62 = vsel %vm96_vm0, %v285_v52, 0.0 }
  0xdd   :  { %366 = vadd.xlane.f32.xlu1 %v365_v46  ;;  %369 = vadd.xlane.f32.xlu0 %v368_v8  ;;  %v189_v58 = vpop.xlane.xlu0 %188  ;;  %v192_v24 = vpop.xlane.xlu1 %191 }
  0xde   :  { %v224_v40 = vmul.f32 0.0625, %v189_v58  ;;  %v225_v3 = vmul.f32 0.0625, %v192_v24  ;;  %v286_v4 = vmul.f32 %v8830_v54, %v8830_v54  ;;  %v287_v56 = vmul.f32 %v8833_v53, %v8833_v53 }
  0xe0   :  { %v8842_v6 = vsub.f32 %v8649_v60, %v224_v40  ;;  %v8845_v57 = vsub.f32 %v8654_v61, %v225_v3  ;;  %v374_v12 = vsel %vm96_vm0, %v286_v4, 0.0  ;;  %v377_v16 = vsel %vm96_vm0, %v287_v56, 0.0 }
  0xe1   :  { %372 = vadd.xlane.f32.xlu1 %v371_v62  ;;  %375 = vadd.xlane.f32.xlu0 %v374_v12 }
  0xe2   :  { %v288_v28 = vmul.f32 %v8842_v6, %v8842_v6  ;;  %v289_v18 = vmul.f32 %v8845_v57, %v8845_v57 }
  0xe4   :  { %v380_v44 = vsel %vm96_vm0, %v288_v28, 0.0  ;;  %v383_v60 = vsel %vm96_vm0, %v289_v18, 0.0 }
  0xe5   :  { %378 = vadd.xlane.f32.xlu1 %v377_v16  ;;  %381 = vadd.xlane.f32.xlu0 %v380_v44  ;;  %v8859_v16 = vld [vmem:[%s14411_s8] ss:$0 sm:$0xff] }
  0xe9   :  { %384 = vadd.xlane.f32.xlu1 %v383_v60 }
 0x136   :  { %v292_v61 = vpop.xlane.xlu0 %291 }
 0x137   :  { %v386_v45 = vmul.f32 0.0625, %v292_v61 }
 0x139   :  { %v418_v23 = vadd.f32 1e-05, %v386_v45 }
 0x13a   :  { %v295_v0 = vpop.xlane.xlu1 %294  ;;  %v298_v14 = vpop.xlane.xlu0 %297 }
 0x13b   :  { %7263 = vrsqrt.f32 %v418_v23  ;;  %v387_v30 = vmul.f32 0.0625, %v295_v0  ;;  %v388_v32 = vmul.f32 0.0625, %v298_v14 }
 0x13d   :  { %v419_v34 = vadd.f32 1e-05, %v387_v30  ;;  %v420_v35 = vadd.f32 1e-05, %v388_v32  ;;  %v8866_v30 = vld [vmem:[%s14412_s9] ss:$0 sm:$0xff] }
 0x13e   :  { %v301_v48 = vpop.xlane.xlu1 %300  ;;  %v304_v39 = vpop.xlane.xlu0 %303 }
 0x13f   :  { %7265 = vrsqrt.f32 %v419_v34  ;;  %v389_v42 = vmul.f32 0.0625, %v301_v48  ;;  %v390_v20 = vmul.f32 0.0625, %v304_v39 }
 0x140   :  { %7267 = vrsqrt.f32 %v420_v35 }
 0x141   :  { %v421_v46 = vadd.f32 1e-05, %v389_v42  ;;  %v422_v36 = vadd.f32 1e-05, %v390_v20 }
 0x142   :  { %v307_v50 = vpop.xlane.xlu1 %306  ;;  %v310_v51 = vpop.xlane.xlu0 %309 }
 0x143   :  { %7269 = vrsqrt.f32 %v421_v46  ;;  %v391_v52 = vmul.f32 0.0625, %v307_v50  ;;  %v392_v8 = vmul.f32 0.0625, %v310_v51 }
 0x144   :  { %7271 = vrsqrt.f32 %v422_v36 }
 0x145   :  { %v7264_v58 = vpop.eup %7263  ;;  %v423_v24 = vadd.f32 1e-05, %v391_v52  ;;  %v424_v62 = vadd.f32 1e-05, %v392_v8 }
 0x146   :  { %v313_v40 = vpop.xlane.xlu1 %312  ;;  %v316_v3 = vpop.xlane.xlu0 %315  ;;  %v482_v4 = vmul.f32 %v7264_v58, %v8661_v10 }
 0x147   :  { %7273 = vrsqrt.f32 %v423_v24  ;;  %v393_v56 = vmul.f32 0.0625, %v313_v40  ;;  %v394_v12 = vmul.f32 0.0625, %v316_v3 }
 0x148   :  { %7275 = vrsqrt.f32 %v424_v62  ;;  %v520_v0 = vmul.f32 %v8859_v16, %v482_v4 }
 0x149   :  { %v7266_v28 = vpop.eup %7265  ;;  %v425_v18 = vadd.f32 1e-05, %v393_v56  ;;  %v426_v44 = vadd.f32 1e-05, %v394_v12 }
 0x14a   :  { %v7268_v60 = vpop.eup %7267  ;;  %v319_v61 = vpop.xlane.xlu1 %318  ;;  %v483_v23 = vmul.f32 %v7266_v28, %v8671_v26  ;;  %v558_v46 = vadd.f32 %v8866_v30, %v520_v0 }
 0x14b   :  { %v322_v45 = vpop.xlane.xlu0 %321  ;;  %7277 = vrsqrt.f32 %v425_v18  ;;  %v395_v10 = vmul.f32 0.0625, %v319_v61  ;;  %v484_v32 = vmul.f32 %v7268_v60, %v8664_v11 }
 0x14c   :  { %v396_v14 = vmul.f32 0.0625, %v322_v45  ;;  %7279 = vrsqrt.f32 %v426_v44  ;;  %v521_v34 = vmul.f32 %v8859_v16, %v483_v23 }
 0x14d   :  { %v7270_v35 = vpop.eup %7269  ;;  %v427_v48 = vadd.f32 1e-05, %v395_v10  ;;  %v522_v51 = vmul.f32 %v8859_v16, %v484_v32 }
 0x14e   :  { %v428_v39 = vadd.f32 1e-05, %v396_v14  ;;  %v7272_v42 = vpop.eup %7271  ;;  %v325_v26 = vpop.xlane.xlu1 %324  ;;  %v559_v36 = vadd.f32 %v8866_v30, %v521_v34  ;;  %v485_v50 = vmul.f32 %v7270_v35, %v8674_v27 }
 0x14f   :  { %v328_v20 = vpop.xlane.xlu0 %327  ;;  %7281 = vrsqrt.f32 %v427_v48  ;;  %v397_v52 = vmul.f32 0.0625, %v325_v26  ;;  %v486_v24 = vmul.f32 %v7272_v42, %v8683_v2  ;;  %v560_v27 = vadd.f32 %v8866_v30, %v522_v51 }
 0x150   :  { %v398_v11 = vmul.f32 0.0625, %v328_v20  ;;  %7283 = vrsqrt.f32 %v428_v39  ;;  %v590_v8 = vpack.c.bf16 %v559_v36, %v558_v46  ;;  %v523_v58 = vmul.f32 %v8859_v16, %v485_v50 }
 0x151   :  { %v7274_v62 = vpop.eup %7273  ;;  %v429_v40 = vadd.f32 1e-05, %v397_v52  ;;  %v524_v44 = vmul.f32 %v8859_v16, %v486_v24 }
 0x152   :  { %v430_v3 = vadd.f32 1e-05, %v398_v11  ;;  %v7276_v4 = vpop.eup %7275  ;;  %v331_v56 = vpop.xlane.xlu1 %330  ;;  %7100 = vmatprep.mubr.msk.bf16.mxu0 %vm96_vm0, %v590_v8  ;;  %v561_v28 = vadd.f32 %v8866_v30, %v523_v58  ;;  %v487_v18 = vmul.f32 %v7274_v62, %v8686_v5 }
 0x153   :  { %v334_v12 = vpop.xlane.xlu0 %333  ;;  %7285 = vrsqrt.f32 %v429_v40  ;;  %v399_v60 = vmul.f32 0.0625, %v331_v56  ;;  %v488_v2 = vmul.f32 %v7276_v4, %v8695_v55  ;;  %v562_v5 = vadd.f32 %v8866_v30, %v524_v44 }
 0x154   :  { %v400_v61 = vmul.f32 0.0625, %v334_v12  ;;  %7287 = vrsqrt.f32 %v430_v3  ;;  %v591_v45 = vpack.c.bf16 %v561_v28, %v560_v27  ;;  %v525_v23 = vmul.f32 %v8859_v16, %v487_v18 }
 0x155   :  { %v7278_v0 = vpop.eup %7277  ;;  %v431_v10 = vadd.f32 1e-05, %v399_v60  ;;  %v526_v55 = vmul.f32 %v8859_v16, %v488_v2 }
 0x156   :  { %v432_v14 = vadd.f32 1e-05, %v400_v61  ;;  %v7280_v32 = vpop.eup %7279  ;;  %v337_v34 = vpop.xlane.xlu1 %336  ;;  %7101 = vmatmul.mubr.msk.bf16.vlgmr.msra.gmra.mrb[0].mxu0 %vm96_vm0, %v591_v45  ;;  %v563_v48 = vadd.f32 %v8866_v30, %v525_v23  ;;  %v489_v39 = vmul.f32 %v7278_v0, %v8698_v9 }
 0x157   :  { %v340_v35 = vpop.xlane.xlu0 %339  ;;  %7289 = vrsqrt.f32 %v431_v10  ;;  %v401_v42 = vmul.f32 0.0625, %v337_v34  ;;  %v490_v36 = vmul.f32 %v7280_v32, %v8707_v7  ;;  %v564_v9 = vadd.f32 %v8866_v30, %v526_v55 }
 0x158   :  { %v402_v26 = vmul.f32 0.0625, %v340_v35  ;;  %7291 = vrsqrt.f32 %v432_v14  ;;  %v592_v20 = vpack.c.bf16 %v563_v48, %v562_v5  ;;  %v527_v46 = vmul.f32 %v8859_v16, %v489_v39 }
 0x159   :  { %v7282_v50 = vpop.eup %7281  ;;  %v433_v51 = vadd.f32 1e-05, %v401_v42  ;;  %v528_v40 = vmul.f32 %v8859_v16, %v490_v36 }
 0x15a   :  { %v434_v52 = vadd.f32 1e-05, %v402_v26  ;;  %v7284_v11 = vpop.eup %7283  ;;  %v343_v8 = vpop.xlane.xlu1 %342  ;;  %7104 = vmatprep.mubr.msk.bf16.mxu0 %vm96_vm0, %v592_v20  ;;  %v565_v24 = vadd.f32 %v8866_v30, %v527_v46  ;;  %v491_v62 = vmul.f32 %v7282_v50, %v8710_v13 }
 0x15b   :  { %v346_v58 = vpop.xlane.xlu0 %345  ;;  %7293 = vrsqrt.f32 %v433_v51  ;;  %v403_v3 = vmul.f32 0.0625, %v343_v8  ;;  %v492_v7 = vmul.f32 %v7284_v11, %v8719_v1  ;;  %v566_v13 = vadd.f32 %v8866_v30, %v528_v40 }
 0x15c   :  { %v404_v4 = vmul.f32 0.0625, %v346_v58  ;;  %7295 = vrsqrt.f32 %v434_v52  ;;  %v593_v56 = vpack.c.bf16 %v565_v24, %v564_v9  ;;  %v529_v12 = vmul.f32 %v8859_v16, %v491_v62 }
 0x15d   :  { %v7286_v27 = vpop.eup %7285  ;;  %v435_v28 = vadd.f32 1e-05, %v403_v3  ;;  %v530_v1 = vmul.f32 %v8859_v16, %v492_v7 }
 0x15e   :  { %v436_v18 = vadd.f32 1e-05, %v404_v4  ;;  %v7288_v44 = vpop.eup %7287  ;;  %v349_v60 = vpop.xlane.xlu1 %348  ;;  %7105 = vmatmul.mubr.msk.bf16.gmra.mrb[4].mxu0 %vm96_vm0, %v593_v56  ;;  %v567_v2 = vadd.f32 %v8866_v30, %v529_v12  ;;  %v493_v45 = vmul.f32 %v7286_v27, %v8722_v15 }
 0x15f   :  { %v352_v61 = vpop.xlane.xlu0 %351  ;;  %7297 = vrsqrt.f32 %v435_v28  ;;  %v405_v23 = vmul.f32 0.0625, %v349_v60  ;;  %v494_v32 = vmul.f32 %v7288_v44, %v8731_v43  ;;  %v568_v15 = vadd.f32 %v8866_v30, %v530_v1 }
 0x160   :  { %v406_v0 = vmul.f32 0.0625, %v352_v61  ;;  %7299 = vrsqrt.f32 %v436_v18  ;;  %v594_v10 = vpack.c.bf16 %v567_v2, %v566_v13  ;;  %v531_v14 = vmul.f32 %v8859_v16, %v493_v45 }
 0x161   :  { %v7290_v34 = vpop.eup %7289  ;;  %v437_v35 = vadd.f32 1e-05, %v405_v23  ;;  %v532_v20 = vmul.f32 %v8859_v16, %v494_v32 }
 0x162   :  { %v438_v5 = vadd.f32 1e-05, %v406_v0  ;;  %v7292_v48 = vpop.eup %7291  ;;  %v355_v39 = vpop.xlane.xlu1 %354  ;;  %7108 = vmatprep.mubr.msk.bf16.mxu0 %vm96_vm0, %v594_v10  ;;  %v569_v42 = vadd.f32 %v8866_v30, %v531_v14  ;;  %v495_v26 = vmul.f32 %v7290_v34, %v8734_v21 }
 0x163   :  { %v358_v55 = vpop.xlane.xlu0 %357  ;;  %7301 = vrsqrt.f32 %v437_v35  ;;  %v407_v46 = vmul.f32 0.0625, %v355_v39  ;;  %v496_v43 = vmul.f32 %v7292_v48, %v8743_v59  ;;  %v570_v21 = vadd.f32 %v8866_v30, %v532_v20 }
 0x164   :  { %v408_v36 = vmul.f32 0.0625, %v358_v55  ;;  %7303 = vrsqrt.f32 %v438_v5  ;;  %v595_v50 = vpack.c.bf16 %v569_v42, %v568_v15  ;;  %v533_v51 = vmul.f32 %v8859_v16, %v495_v26 }
 0x165   :  { %v7294_v52 = vpop.eup %7293  ;;  %v439_v11 = vadd.f32 1e-05, %v407_v46  ;;  %v534_v59 = vmul.f32 %v8859_v16, %v496_v43 }
 0x166   :  { %v440_v8 = vadd.f32 1e-05, %v408_v36  ;;  %v7296_v58 = vpop.eup %7295  ;;  %v361_v9 = vpop.xlane.xlu1 %360  ;;  %7109 = vmatmul.mubr.msk.bf16.gmra.mrb[8].mxu0 %vm96_vm0, %v595_v50  ;;  %v571_v62 = vadd.f32 %v8866_v30, %v533_v51  ;;  %v497_v40 = vmul.f32 %v7294_v52, %v8746_v25 }
 0x167   :  { %v364_v24 = vpop.xlane.xlu0 %363  ;;  %7305 = vrsqrt.f32 %v439_v11  ;;  %v409_v3 = vmul.f32 0.0625, %v361_v9  ;;  %v498_v12 = vmul.f32 %v7296_v58, %v8755_v17  ;;  %v572_v25 = vadd.f32 %v8866_v30, %v534_v59 }
 0x168   :  { %v410_v4 = vmul.f32 0.0625, %v364_v24  ;;  %7307 = vrsqrt.f32 %v440_v8  ;;  %v596_v7 = vpack.c.bf16 %v571_v62, %v570_v21  ;;  %v535_v56 = vmul.f32 %v8859_v16, %v497_v40 }
 0x169   :  { %v7298_v27 = vpop.eup %7297  ;;  %v441_v28 = vadd.f32 1e-05, %v409_v3  ;;  %v536_v45 = vmul.f32 %v8859_v16, %v498_v12 }
 0x16a   :  { %v442_v18 = vadd.f32 1e-05, %v410_v4  ;;  %v7300_v44 = vpop.eup %7299  ;;  %v367_v60 = vpop.xlane.xlu1 %366  ;;  %7112 = vmatprep.mubr.msk.bf16.mxu0 %vm96_vm0, %v596_v7  ;;  %v573_v13 = vadd.f32 %v8866_v30, %v535_v56  ;;  %v499_v2 = vmul.f32 %v7298_v27, %v8758_v29 }
 0x16b   :  { %v370_v61 = vpop.xlane.xlu0 %369  ;;  %7309 = vrsqrt.f32 %v441_v28  ;;  %v411_v1 = vmul.f32 0.0625, %v367_v60  ;;  %v500_v17 = vmul.f32 %v7300_v44, %v8767_v31  ;;  %v574_v29 = vadd.f32 %v8866_v30, %v536_v45 }
 0x16c   :  { %v412_v23 = vmul.f32 0.0625, %v370_v61  ;;  %7311 = vrsqrt.f32 %v442_v18  ;;  %v597_v0 = vpack.c.bf16 %v573_v13, %v572_v25  ;;  %v537_v10 = vmul.f32 %v8859_v16, %v499_v2 }
 0x16d   :  { %v7302_v14 = vpop.eup %7301  ;;  %v443_v32 = vadd.f32 1e-05, %v411_v1  ;;  %v538_v31 = vmul.f32 %v8859_v16, %v500_v17 }
 0x16e   :  { %v444_v34 = vadd.f32 1e-05, %v412_v23  ;;  %v7304_v35 = vpop.eup %7303  ;;  %v373_v5 = vpop.xlane.xlu1 %372  ;;  %7113 = vmatmul.mubr.msk.bf16.gmra.mrb[12].mxu0 %vm96_vm0, %v597_v0  ;;  %v575_v39 = vadd.f32 %v8866_v30, %v537_v10  ;;  %v501_v55 = vmul.f32 %v7302_v14, %v8770_v33 }
 0x16f   :  { %v376_v48 = vpop.xlane.xlu0 %375  ;;  %7313 = vrsqrt.f32 %v443_v32  ;;  %v413_v15 = vmul.f32 0.0625, %v373_v5  ;;  %v502_v46 = vmul.f32 %v7304_v35, %v8779_v47  ;;  %v576_v33 = vadd.f32 %v8866_v30, %v538_v31 }
 0x170   :  { %v414_v42 = vmul.f32 0.0625, %v376_v48  ;;  %7315 = vrsqrt.f32 %v444_v34  ;;  %v598_v26 = vpack.c.bf16 %v575_v39, %v574_v29  ;;  %v539_v20 = vmul.f32 %v8859_v16, %v501_v55 }
 0x171   :  { %v7306_v36 = vpop.eup %7305  ;;  %v445_v43 = vadd.f32 1e-05, %v413_v15  ;;  %v540_v9 = vmul.f32 %v8859_v16, %v502_v46 }
 0x172   :  { %v446_v50 = vadd.f32 1e-05, %v414_v42  ;;  %v7308_v51 = vpop.eup %7307  ;;  %v379_v52 = vpop.xlane.xlu1 %378  ;;  %7116 = vmatprep.mubr.msk.bf16.mxu0 %vm96_vm0, %v598_v26  ;;  %v577_v8 = vadd.f32 %v8866_v30, %v539_v20  ;;  %v503_v58 = vmul.f32 %v7306_v36, %v8782_v37 }
 0x173   :  { %v382_v11 = vpop.xlane.xlu0 %381  ;;  %7317 = vrsqrt.f32 %v445_v43  ;;  %v415_v24 = vmul.f32 0.0625, %v379_v52  ;;  %v504_v47 = vmul.f32 %v7308_v51, %v8791_v63  ;;  %v578_v37 = vadd.f32 %v8866_v30, %v540_v9  ;;  %v919_v9 = vld [vmem:[%s14415_s12 + $0x300] sm:$0xff] }
 0x174   :  { %v416_v21 = vmul.f32 0.0625, %v382_v11  ;;  %7319 = vrsqrt.f32 %v446_v50  ;;  %v599_v62 = vpack.c.bf16 %v577_v8, %v576_v33  ;;  %v541_v40 = vmul.f32 %v8859_v16, %v503_v58  ;;  %v825_v11 = vld [vmem:[%s14415_s12 + $0x10] sm:$0xff]  ;;  %v855_v8 = vld [vmem:[%s14415_s12 + $0x100] sm:$0xff] }
 0x175   :  { %v7310_v59 = vpop.eup %7309  ;;  %v447_v3 = vadd.f32 1e-05, %v415_v24  ;;  %v542_v28 = vmul.f32 %v8859_v16, %v504_v47  ;;  %v889_v33 = vld [vmem:[%s14415_s12 + $0x210] sm:$0xff]  ;;  %v887_v58 = vld [vmem:[%s14415_s12 + $0x200] sm:$0xff]  ;;  %v858_v47 = vld [vmem:[%s14415_s12 + $0x118] sm:$0xff] }
 0x176   :  { %v448_v4 = vadd.f32 1e-05, %v416_v21  ;;  %v7312_v7 = vpop.eup %7311  ;;  %v385_v56 = vpop.xlane.xlu1 %384  ;;  %7117 = vmatmul.mubr.msk.bf16.gmra.mrb[16].mxu0 %vm96_vm0, %v599_v62  ;;  %v579_v12 = vadd.f32 %v8866_v30, %v541_v40  ;;  %v505_v27 = vmul.f32 %v7310_v59, %v8794_v41  ;;  %v826_v21 = vld [vmem:[%s14415_s12 + $0x18] sm:$0xff]  ;;  %v824_v59 = vld [vmem:[%s14415_s12 + $0x8] sm:$0xff] }
 0x177   :  { %7321 = vrsqrt.f32 %v447_v3  ;;  %v417_v63 = vmul.f32 0.0625, %v385_v56  ;;  %v506_v18 = vmul.f32 %v7312_v7, %v8806_v19  ;;  %v580_v2 = vadd.f32 %v8866_v30, %v542_v28  ;;  %v890_v62 = vld [vmem:[%s14415_s12 + $0x218] sm:$0xff]  ;;  %v888_v56 = vld [vmem:[%s14415_s12 + $0x208] sm:$0xff] }
 0x178   :  { %7323 = vrsqrt.f32 %v448_v4  ;;  %v600_v44 = vpack.c.bf16 %v579_v12, %v578_v37  ;;  %v543_v60 = vmul.f32 %v8859_v16, %v505_v27  ;;  %v856_v4 = vld [vmem:[%s14415_s12 + $0x108] sm:$0xff] }
 0x179   :  { %v7314_v61 = vpop.eup %7313  ;;  %v449_v25 = vadd.f32 1e-05, %v417_v63  ;;  %v544_v1 = vmul.f32 %v8859_v16, %v506_v18 }
 0x17a   :  { %v7316_v13 = vpop.eup %7315  ;;  %7120 = vmatprep.mubr.msk.bf16.mxu0 %vm96_vm0, %v600_v44  ;;  %v581_v45 = vadd.f32 %v8866_v30, %v543_v60  ;;  %v507_v41 = vmul.f32 %v7314_v61, %v8809_v22  ;;  %v920_v44 = vld [vmem:[%s14415_s12 + $0x308] sm:$0xff] }
 0x17b   :  { %7325 = vrsqrt.f32 %v449_v25  ;;  %v508_v19 = vmul.f32 %v7316_v13, %v8818_v49  ;;  %v582_v14 = vadd.f32 %v8866_v30, %v544_v1 }
 0x17c   :  { %v601_v23 = vpack.c.bf16 %v581_v45, %v580_v2  ;;  %v545_v17 = vmul.f32 %v8859_v16, %v507_v41  ;;  %v922_v41 = vld [vmem:[%s14415_s12 + $0x318] sm:$0xff] }
 0x17d   :  { %v7318_v0 = vpop.eup %7317  ;;  %v546_v22 = vmul.f32 %v8859_v16, %v508_v19 }
 0x17e   :  { %v7320_v10 = vpop.eup %7319  ;;  %7121 = vmatmul.mubr.msk.bf16.gmra.mrb[20].mxu0 %vm96_vm0, %v601_v23  ;;  %v583_v32 = vadd.f32 %v8866_v30, %v545_v17  ;;  %v509_v34 = vmul.f32 %v7318_v0, %v8821_v38 }
 0x17f   :  { %v510_v35 = vmul.f32 %v7320_v10, %v8830_v54  ;;  %v584_v39 = vadd.f32 %v8866_v30, %v546_v22  ;;  %v829_v10 = vld [vmem:[%s14415_s12 + $0x30] sm:$0xff] }
 0x180   :  { %v602_v5 = vpack.c.bf16 %v583_v32, %v582_v14  ;;  %v547_v49 = vmul.f32 %v8859_v16, %v509_v34  ;;  %v861_v32 = vld [vmem:[%s14415_s12 + $0x130] sm:$0xff] }
 0x181   :  { %v7322_v48 = vpop.eup %7321  ;;  %v548_v15 = vmul.f32 %v8859_v16, %v510_v35 }
 0x182   :  { %v7324_v29 = vpop.eup %7323  ;;  %7124 = vmatprep.mubr.msk.bf16.mxu0 %vm96_vm0, %v602_v5  ;;  %v585_v55 = vadd.f32 %v8866_v30, %v547_v49  ;;  %v511_v31 = vmul.f32 %v7322_v48, %v8833_v53  ;;  %v827_v5 = vld [vmem:[%s14415_s12 + $0x20] sm:$0xff] }
 0x183   :  { %v512_v38 = vmul.f32 %v7324_v29, %v8842_v6  ;;  %v586_v20 = vadd.f32 %v8866_v30, %v548_v15  ;;  %v893_v29 = vld [vmem:[%s14415_s12 + $0x230] sm:$0xff]  ;;  %v891_v15 = vld [vmem:[%s14415_s12 + $0x220] sm:$0xff] }
 0x184   :  { %v603_v42 = vpack.c.bf16 %v585_v55, %v584_v39  ;;  %v549_v54 = vmul.f32 %v8859_v16, %v511_v31  ;;  %v925_v55 = vld [vmem:[%s14415_s12 + $0x330] sm:$0xff]  ;;  %v859_v31 = vld [vmem:[%s14415_s12 + $0x120] sm:$0xff] }
 0x185   :  { %v7326_v26 = vpop.eup %7325  ;;  %v550_v43 = vmul.f32 %v8859_v16, %v512_v38 }
 0x186   :  { %7125 = vmatmul.mubr.msk.bf16.gmra.mrb[24].mxu0 %vm96_vm0, %v603_v42  ;;  %v587_v46 = vadd.f32 %v8866_v30, %v549_v54  ;;  %v513_v36 = vmul.f32 %v7326_v26, %v8845_v57  ;;  %v857_v57 = vld [vmem:[%s14415_s12 + $0x110] sm:$0xff]  ;;  %v923_v42 = vld [vmem:[%s14415_s12 + $0x320] sm:$0xff]  ;;  %v830_v26 = vld [vmem:[%s14415_s12 + $0x38] sm:$0xff] }
 0x187   :  { %v588_v6 = vadd.f32 %v8866_v30, %v550_v43 }
 0x188   :  { %v604_v50 = vpack.c.bf16 %v587_v46, %v586_v20  ;;  %v551_v53 = vmul.f32 %v8859_v16, %v513_v36  ;;  %v823_v16 = vld [vmem:[%s14415_s12] sm:$0xff]  ;;  %v862_v20 = vld [vmem:[%s14415_s12 + $0x138] sm:$0xff] }
 0x189   :  { %v894_v46 = vld [vmem:[%s14415_s12 + $0x238] sm:$0xff] }
 0x18a   :  { %7128 = vmatprep.mubr.msk.bf16.mxu0 %vm96_vm0, %v604_v50  ;;  %v589_v51 = vadd.f32 %v8866_v30, %v551_v53  ;;  %v921_v30 = vld [vmem:[%s14415_s12 + $0x310] sm:$0xff]  ;;  %v828_v50 = vld [vmem:[%s14415_s12 + $0x28] sm:$0xff] }
 0x18c   :  { %v605_v52 = vpack.c.bf16 %v589_v51, %v588_v6  ;;  %v860_v6 = vld [vmem:[%s14415_s12 + $0x128] sm:$0xff] }
 0x18e   :  { %7129 = vmatmul.mubr.msk.bf16.gmra.mrb[28].mxu0 %vm96_vm0, %v605_v52  ;;  %v892_v52 = vld [vmem:[%s14415_s12 + $0x228] sm:$0xff] }
 0x229   :  { %v7102_v24 = vpop.f32.mrb[0].mxu0 }
 0x22a   :  { %v696_v40 = vpop.f32.mrb[1].mxu0  ;;  %v953_v3 = vmul.f32 %v7102_v24, %v825_v11  ;;  %v985_v7 = vmul.f32 %v7102_v24, %v857_v57  ;;  %v1017_v37 = vmul.f32 %v7102_v24, %v889_v33  ;;  %v1049_v12 = vmul.f32 %v7102_v24, %v921_v30 }
 0x22b   :  { %v7103_v27 = vpop.f32.mrb[2].mxu0  ;;  %v951_v28 = vmul.f32 %v823_v16, %v696_v40  ;;  %v983_v63 = vmul.f32 %v855_v8, %v696_v40  ;;  %v1015_v18 = vmul.f32 %v887_v58, %v696_v40  ;;  %v1047_v60 = vmul.f32 %v919_v9, %v696_v40  ;;  %v924_v58 = vld [vmem:[%s14415_s12 + $0x328] sm:$0xff] }
 0x22c   :  { %v699_v61 = vpop.f32.mrb[3].mxu0  ;;  %v9022_v25 = vpack.c.bf16 %v7103_v27, %v7102_v24  ;;  %v954_v13 = vmul.f32 %v7103_v27, %v826_v21  ;;  %v986_v2 = vmul.f32 %v7103_v27, %v858_v47  ;;  %v1018_v45 = vmul.f32 %v7103_v27, %v890_v62 }
 0x22d   :  { %v9027_v1 = vpack.c.bf16 %v699_v61, %v696_v40  ;;  %v952_v19 = vmul.f32 %v824_v59, %v699_v61  ;;  %v984_v23 = vmul.f32 %v856_v4, %v699_v61  ;;  %v1016_v17 = vmul.f32 %v888_v56, %v699_v61  ;;  %v926_v59 = vld [vmem:[%s14415_s12 + $0x338] sm:$0xff] }
 0x22e   :  { %v9029_v0 = vpack.c.bf16 %v954_v13, %v953_v3  ;;  %v9034_v14 = vpack.c.bf16 %v986_v2, %v985_v7  ;;  %v9039_v34 = vpack.c.bf16 %v1018_v45, %v1017_v37  ;;  %v1048_v22 = vmul.f32 %v920_v44, %v699_v61  ;;  %v897_v2 = vld [vmem:[%s14415_s12 + $0x250] sm:$0xff] }
 0x22f   :  { %1431 = vrot.lane.b32.xlu0 %v9027_v1, %s8346_s1  ;;  %v9043_v35 = vpack.c.bf16 %v952_v19, %v951_v28  ;;  %v9048_v49 = vpack.c.bf16 %v984_v23, %v983_v63  ;;  %v9050_v48 = vpack.c.bf16 %v1016_v17, %v1015_v18  ;;  %v1050_v39 = vmul.f32 %v7103_v27, %v922_v41  ;;  %v865_v28 = vld [vmem:[%s14415_s12 + $0x150] sm:$0xff]  ;;  %v863_v19 = vld [vmem:[%s14415_s12 + $0x140] sm:$0xff] }
 0x230   :  { %14727 = vst [vmem:[#allocation5_spill] sm:$0xff] %v9039_v34  ;;  %v9064_v38 = vpack.c.bf16 %v1048_v22, %v1047_v60  ;;  %v831_v60 = vld [vmem:[%s14415_s12 + $0x40] sm:$0xff]  ;;  %v929_v41 = vld [vmem:[%s14415_s12 + $0x350] sm:$0xff]  ;;  %v834_v22 = vld [vmem:[%s14415_s12 + $0x58] sm:$0xff] }
 0x231   :  { %14728 = vst [vmem:[#allocation6_spill] sm:$0xff] %v9050_v48  ;;  %v7106_v54 = vpop.f32.mrb[4].mxu0  ;;  %6916 = vmatprep.mubr.msk.bf16.mxu1 %vm96_vm0, %v9043_v35  ;;  %v9080_v36 = vpack.c.bf16 %v1050_v39, %v1049_v12  ;;  %v833_v12 = vld [vmem:[%s14415_s12 + $0x50] sm:$0xff]  ;;  %v895_v23 = vld [vmem:[%s14415_s12 + $0x240] sm:$0xff] }
 0x232   :  { %14729 = vst [vmem:[#allocation7_spill] sm:$0xff] %v9064_v38  ;;  %v712_v43 = vpop.f32.mrb[5].mxu0  ;;  %v957_v53 = vmul.f32 %v7106_v54, %v829_v10  ;;  %v989_v51 = vmul.f32 %v7106_v54, %v861_v32  ;;  %v1021_v11 = vmul.f32 %v7106_v54, %v893_v29  ;;  %v1053_v57 = vmul.f32 %v7106_v54, %v925_v55  ;;  %v927_v10 = vld [vmem:[%s14415_s12 + $0x340] sm:$0xff]  ;;  %v898_v29 = vld [vmem:[%s14415_s12 + $0x258] sm:$0xff] }
 0x233   :  { %14730 = vst [vmem:[#allocation8_spill] sm:$0xff] %v9080_v36  ;;  %v7107_v16 = vpop.f32.mrb[6].mxu0  ;;  %v955_v33 = vmul.f32 %v827_v5, %v712_v43  ;;  %v987_v30 = vmul.f32 %v859_v31, %v712_v43  ;;  %v1019_v8 = vmul.f32 %v891_v15, %v712_v43  ;;  %v1051_v9 = vmul.f32 %v923_v42, %v712_v43  ;;  %v866_v5 = vld [vmem:[%s14415_s12 + $0x158] sm:$0xff]  ;;  %v832_v31 = vld [vmem:[%s14415_s12 + $0x48] sm:$0xff] }
 0x234   :  { %v715_v24 = vpop.f32.mrb[7].mxu0  ;;  %v9094_v21 = vpack.c.bf16 %v7107_v16, %v7106_v54  ;;  %v958_v47 = vmul.f32 %v7107_v16, %v830_v26  ;;  %v990_v62 = vmul.f32 %v7107_v16, %v862_v20  ;;  %v1022_v40 = vmul.f32 %v7107_v16, %v894_v46  ;;  %v864_v42 = vld [vmem:[%s14415_s12 + $0x148] sm:$0xff] }
 0x235   :  { %v9099_v3 = vpack.c.bf16 %v715_v24, %v712_v43  ;;  %v956_v4 = vmul.f32 %v828_v50, %v715_v24  ;;  %v988_v7 = vmul.f32 %v860_v6, %v715_v24  ;;  %v1020_v56 = vmul.f32 %v892_v52, %v715_v24 }
 0x236   :  { %v9101_v37 = vpack.c.bf16 %v958_v47, %v957_v53  ;;  %v9106_v27 = vpack.c.bf16 %v990_v62, %v989_v51  ;;  %v9111_v63 = vpack.c.bf16 %v1022_v40, %v1021_v11  ;;  %v1052_v18 = vmul.f32 %v924_v58, %v715_v24  ;;  %v896_v53 = vld [vmem:[%s14415_s12 + $0x248] sm:$0xff]  ;;  %v837_v40 = vld [vmem:[%s14415_s12 + $0x70] sm:$0xff] }
 0x237   :  { %1435 = vrot.lane.b32.xlu0 %v9099_v3, %s8346_s1  ;;  %v9115_v44 = vpack.c.bf16 %v956_v4, %v955_v33  ;;  %v9120_v61 = vpack.c.bf16 %v988_v7, %v987_v30  ;;  %v9122_v13 = vpack.c.bf16 %v1020_v56, %v1019_v8  ;;  %v1054_v45 = vmul.f32 %v7107_v16, %v926_v59  ;;  %v928_v30 = vld [vmem:[%s14415_s12 + $0x348] sm:$0xff]  ;;  %v930_v8 = vld [vmem:[%s14415_s12 + $0x358] sm:$0xff]  ;;  %v869_v4 = vld [vmem:[%s14415_s12 + $0x170] sm:$0xff] }
 0x238   :  { %14731 = vst [vmem:[#allocation9_spill] sm:$0xff] %v9111_v63  ;;  %v9136_v17 = vpack.c.bf16 %v1052_v18, %v1051_v9  ;;  %v14418_v47 = vmov 0  }
 0x239   :  { %14732 = vst [vmem:[#allocation10_spill] sm:$0xff] %v9122_v13  ;;  %v7110_v32 = vpop.f32.mrb[8].mxu0  ;;  %v9150_v39 = vpack.c.bf16 %v1054_v45, %v1053_v57  ;;  %4472 = vmatprep.subr.bf16.mxu0 %v14418_v47 }
 0x23a   :  { %14733 = vst [vmem:[#allocation11_spill] sm:$0xff] %v9136_v17  ;;  %v728_v55 = vpop.f32.mrb[9].mxu0  ;;  %v961_v15 = vmul.f32 %v7110_v32, %v833_v12  ;;  %v993_v54 = vmul.f32 %v7110_v32, %v865_v28  ;;  %v1025_v26 = vmul.f32 %v7110_v32, %v897_v2  ;;  %v1057_v20 = vmul.f32 %v7110_v32, %v929_v41  ;;  %v835_v28 = vld [vmem:[%s14415_s12 + $0x60] sm:$0xff]  ;;  %v933_v41 = vld [vmem:[%s14415_s12 + $0x370] sm:$0xff] }
 0x23b   :  { %14734 = vst [vmem:[#allocation12_spill] sm:$0xff] %v9150_v39  ;;  %1437 = vrot.lane.b32.xlu0 %v9094_v21, %s8346_s1  ;;  %v7111_v46 = vpop.f32.mrb[10].mxu0  ;;  %v959_v43 = vmul.f32 %v831_v60, %v728_v55  ;;  %v991_v50 = vmul.f32 %v863_v19, %v728_v55  ;;  %v1023_v6 = vmul.f32 %v895_v23, %v728_v55  ;;  %v901_v60 = vld [vmem:[%s14415_s12 + $0x270] sm:$0xff]  ;;  %v867_v19 = vld [vmem:[%s14415_s12 + $0x160] sm:$0xff] }
 0x23c   :  { %v1055_v51 = vmul.f32 %v927_v10, %v728_v55  ;;  %v731_v52 = vpop.f32.mrb[11].mxu0  ;;  %v9163_v11 = vpack.c.bf16 %v7111_v46, %v7110_v32  ;;  %v962_v57 = vmul.f32 %v7111_v46, %v834_v22  ;;  %v994_v16 = vmul.f32 %v7111_v46, %v866_v5  ;;  %v899_v10 = vld [vmem:[%s14415_s12 + $0x260] sm:$0xff]  ;;  %v838_v5 = vld [vmem:[%s14415_s12 + $0x78] sm:$0xff] }
 0x23d   :  { %v1026_v33 = vmul.f32 %v7111_v46, %v898_v29  ;;  %v9171_v58 = vpack.c.bf16 %v731_v52, %v728_v55  ;;  %v960_v9 = vmul.f32 %v832_v31, %v731_v52  ;;  %v992_v24 = vmul.f32 %v864_v42, %v731_v52  ;;  %v931_v32 = vld [vmem:[%s14415_s12 + $0x360] sm:$0xff]  ;;  %v870_v29 = vld [vmem:[%s14415_s12 + $0x178] sm:$0xff] }
 0x23e   :  { %v9174_v62 = vpack.c.bf16 %v962_v57, %v961_v15  ;;  %v9179_v59 = vpack.c.bf16 %v994_v16, %v993_v54  ;;  %v1024_v7 = vmul.f32 %v896_v53, %v731_v52  ;;  %v1056_v2 = vmul.f32 %v928_v30, %v731_v52  ;;  %v902_v55 = vld [vmem:[%s14415_s12 + $0x278] sm:$0xff]  ;;  %v836_v54 = vld [vmem:[%s14415_s12 + $0x68] sm:$0xff] }
 0x23f   :  { %v9184_v56 = vpack.c.bf16 %v1026_v33, %v1025_v26  ;;  %1439 = vrot.lane.b32.xlu0 %v9171_v58, %s8346_s1  ;;  %v9188_v12 = vpack.c.bf16 %v960_v9, %v959_v43  ;;  %v9193_v18 = vpack.c.bf16 %v992_v24, %v991_v50  ;;  %v1058_v45 = vmul.f32 %v7111_v46, %v930_v8  ;;  %v868_v46 = vld [vmem:[%s14415_s12 + $0x168] sm:$0xff] }
 0x240   :  { %v9204_v23 = vpack.c.bf16 %v1024_v7, %v1023_v6  ;;  %v9221_v31 = vpack.c.bf16 %v1056_v2, %v1055_v51  ;;  %v900_v50 = vld [vmem:[%s14415_s12 + $0x268] sm:$0xff] }
 0x241   :  { %14735 = vst [vmem:[#allocation13_spill] sm:$0xff] %v9184_v56  ;;  %v7114_v22 = vpop.f32.mrb[12].mxu0  ;;  %v9223_v15 = vpack.c.bf16 %v1058_v45, %v1057_v20  ;;  %v932_v16 = vld [vmem:[%s14415_s12 + $0x368] sm:$0xff] }
 0x242   :  { %14736 = vst [vmem:[#allocation14_spill] sm:$0xff] %v9204_v23  ;;  %14737 = vst [vmem:[#allocation15_spill] sm:$0xff] %v9221_v31  ;;  %v744_v42 = vpop.f32.mrb[13].mxu0  ;;  %v965_v26 = vmul.f32 %v7114_v22, %v837_v40  ;;  %v997_v43 = vmul.f32 %v7114_v22, %v869_v4  ;;  %v1029_v53 = vmul.f32 %v7114_v22, %v901_v60  ;;  %v934_v4 = vld [vmem:[%s14415_s12 + $0x378] sm:$0xff] }
 0x243   :  { %14738 = vst [vmem:[#allocation16_spill] sm:$0xff] %v9223_v15  ;;  %v1061_v6 = vmul.f32 %v7114_v22, %v933_v41  ;;  %1441 = vrot.lane.b32.xlu0 %v9163_v11, %s8346_s1  ;;  %v7115_v20 = vpop.f32.mrb[14].mxu0  ;;  %v963_v51 = vmul.f32 %v835_v28, %v744_v42  ;;  %v995_v52 = vmul.f32 %v867_v19, %v744_v42  ;;  %v841_v41 = vld [vmem:[%s14415_s12 + $0x90] sm:$0xff] }
 0x244   :  { %v1027_v57 = vmul.f32 %v899_v10, %v744_v42  ;;  %v1059_v33 = vmul.f32 %v931_v32, %v744_v42  ;;  %v747_v30 = vpop.f32.mrb[15].mxu0  ;;  %v9239_v8 = vpack.c.bf16 %v7115_v20, %v7114_v22  ;;  %v966_v9 = vmul.f32 %v7115_v20, %v838_v5  ;;  %v839_v5 = vld [vmem:[%s14415_s12 + $0x80] sm:$0xff] }
 0x245   :  { %v998_v24 = vmul.f32 %v7115_v20, %v870_v29  ;;  %v1030_v40 = vmul.f32 %v7115_v20, %v902_v55  ;;  %v9244_v7 = vpack.c.bf16 %v747_v30, %v744_v42  ;;  %v964_v28 = vmul.f32 %v836_v54, %v747_v30  ;;  %v873_v55 = vld [vmem:[%s14415_s12 + $0x190] sm:$0xff] }
 0x246   :  { %v996_v60 = vmul.f32 %v868_v46, %v747_v30  ;;  %v1028_v2 = vmul.f32 %v900_v50, %v747_v30  ;;  %v9246_v45 = vpack.c.bf16 %v966_v9, %v965_v26  ;;  %v1060_v32 = vmul.f32 %v932_v16, %v747_v30  ;;  %v905_v54 = vld [vmem:[%s14415_s12 + $0x290] sm:$0xff]  ;;  %v871_v46 = vld [vmem:[%s14415_s12 + $0x180] sm:$0xff]  ;;  %v840_v30 = vld [vmem:[%s14415_s12 + $0x88] sm:$0xff] }
 0x247   :  { %v9251_v19 = vpack.c.bf16 %v998_v24, %v997_v43  ;;  %v9253_v10 = vpack.c.bf16 %v1030_v40, %v1029_v53  ;;  %1443 = vrot.lane.b32.xlu0 %v9244_v7, %s8346_s1  ;;  %v9257_v22 = vpack.c.bf16 %v964_v28, %v963_v51  ;;  %v1062_v26 = vmul.f32 %v7115_v20, %v934_v4  ;;  %v903_v43 = vld [vmem:[%s14415_s12 + $0x280] sm:$0xff]  ;;  %v874_v20 = vld [vmem:[%s14415_s12 + $0x198] sm:$0xff]  ;;  %v872_v24 = vld [vmem:[%s14415_s12 + $0x188] sm:$0xff] }
 0x248   :  { %v9262_v29 = vpack.c.bf16 %v996_v60, %v995_v52  ;;  %v9267_v42 = vpack.c.bf16 %v1028_v2, %v1027_v57  ;;  %v9278_v50 = vpack.c.bf16 %v1060_v32, %v1059_v33  ;;  %v935_v53 = vld [vmem:[%s14415_s12 + $0x380] sm:$0xff]  ;;  %v842_v52 = vld [vmem:[%s14415_s12 + $0x98] sm:$0xff]  ;;  %v904_v4 = vld [vmem:[%s14415_s12 + $0x288] sm:$0xff] }
 0x249   :  { %14739 = vst [vmem:[#allocation17_spill] sm:$0xff] %v9253_v10  ;;  %v7118_v51 = vpop.f32.mrb[16].mxu0  ;;  %v906_v57 = vld [vmem:[%s14415_s12 + $0x298] sm:$0xff]  ;;  %v9292_v16 = vpack.c.bf16 %v1062_v26, %v1061_v6 }
 0x24a   :  { %14740 = vst [vmem:[#allocation18_spill] sm:$0xff] %v9267_v42  ;;  %14741 = vst [vmem:[#allocation19_spill] sm:$0xff] %v9278_v50  ;;  %v760_v33 = vpop.f32.mrb[17].mxu0  ;;  %v969_v9 = vmul.f32 %v7118_v51, %v841_v41  ;;  %v1001_v40 = vmul.f32 %v7118_v51, %v873_v55  ;;  %v1033_v28 = vmul.f32 %v7118_v51, %v905_v54  ;;  %v936_v41 = vld [vmem:[%s14415_s12 + $0x388] sm:$0xff] }
 0x24b   :  { %14742 = vst [vmem:[#allocation20_spill] sm:$0xff] %v9292_v16  ;;  %1445 = vrot.lane.b32.xlu0 %v9239_v8, %s8346_s1  ;;  %v7119_v6 = vpop.f32.mrb[18].mxu0  ;;  %v967_v60 = vmul.f32 %v839_v5, %v760_v33  ;;  %v999_v2 = vmul.f32 %v871_v46, %v760_v33  ;;  %v1031_v32 = vmul.f32 %v903_v43, %v760_v33  ;;  %v937_v5 = vld [vmem:[%s14415_s12 + $0x390] sm:$0xff]  ;;  %v938_v46 = vld [vmem:[%s14415_s12 + $0x398] sm:$0xff] }
 0x24c   :  { %v1063_v26 = vmul.f32 %v935_v53, %v760_v33  ;;  %v763_v47 = vpop.f32.mrb[19].mxu0  ;;  %v9308_v16 = vpack.c.bf16 %v7119_v6, %v7118_v51  ;;  %v970_v55 = vmul.f32 %v7119_v6, %v842_v52  ;;  %v1002_v50 = vmul.f32 %v7119_v6, %v874_v20  ;;  %v845_v53 = vld [vmem:[%s14415_s12 + $0xb0] sm:$0xff] }
 0x24d   :  { %v1034_v15 = vmul.f32 %v7119_v6, %v906_v57  ;;  %v9310_v31 = vpack.c.bf16 %v763_v47, %v760_v33  ;;  %v968_v54 = vmul.f32 %v840_v30, %v763_v47  ;;  %v1000_v39 = vmul.f32 %v872_v24, %v763_v47 }
 0x24e   :  { %v1032_v17 = vmul.f32 %v904_v4, %v763_v47  ;;  %v9318_v43 = vpack.c.bf16 %v970_v55, %v969_v9  ;;  %v9323_v52 = vpack.c.bf16 %v1002_v50, %v1001_v40  ;;  %v1064_v57 = vmul.f32 %v936_v41, %v763_v47  ;;  %v877_v9 = vld [vmem:[%s14415_s12 + $0x1b0] sm:$0xff]  ;;  %v844_v41 = vld [vmem:[%s14415_s12 + $0xa8] sm:$0xff] }
 0x24f   :  { %v9325_v20 = vpack.c.bf16 %v1034_v15, %v1033_v28  ;;  %4424 = vrot.lane.b32.xlu0 %v9027_v1, %s8348_s18  ;;  %1447 = vrot.lane.b32.xlu1 %v9310_v31, %s8346_s1  ;;  %v9331_v33 = vpack.c.bf16 %v968_v54, %v967_v60  ;;  %v9333_v30 = vpack.c.bf16 %v1000_v39, %v999_v2  ;;  %v909_v47 = vld [vmem:[%s14415_s12 + $0x2b0] sm:$0xff]  ;;  %v843_v1 = vld [vmem:[%s14415_s12 + $0xa0] sm:$0xff] }
 0x250   :  { %v9338_v50 = vpack.c.bf16 %v1032_v17, %v1031_v32  ;;  %v875_v15 = vld [vmem:[%s14415_s12 + $0x1a0] sm:$0xff]  ;;  %v9352_v24 = vpack.c.bf16 %v1064_v57, %v1063_v26  ;;  %v1065_v17 = vmul.f32 %v7118_v51, %v937_v5  ;;  %v1066_v40 = vmul.f32 %v7119_v6, %v938_v46  ;;  %v846_v28 = vld [vmem:[%s14415_s12 + $0xb8] sm:$0xff]  ;;  %v876_v6 = vld [vmem:[%s14415_s12 + $0x1a8] sm:$0xff] }
 0x251   :  { %14743 = vst [vmem:[#allocation21_spill] sm:$0xff] %v9325_v20  ;;  %v907_v39 = vld [vmem:[%s14415_s12 + $0x2a0] sm:$0xff]  ;;  %v7122_v4 = vpop.f32.mrb[20].mxu0  ;;  %v878_v60 = vld [vmem:[%s14415_s12 + $0x1b8] sm:$0xff]  ;;  %v908_v55 = vld [vmem:[%s14415_s12 + $0x2a8] sm:$0xff] }
 0x252   :  { %14744 = vst [vmem:[#allocation22_spill] sm:$0xff] %v9338_v50  ;;  %14745 = vst [vmem:[#allocation23_spill] sm:$0xff] %v9352_v24  ;;  %v910_v2 = vld [vmem:[%s14415_s12 + $0x2b8] sm:$0xff]  ;;  %v776_v32 = vpop.f32.mrb[21].mxu0  ;;  %v973_v51 = vmul.f32 %v7122_v4, %v845_v53  ;;  %v1005_v26 = vmul.f32 %v7122_v4, %v877_v9  ;;  %v1037_v54 = vmul.f32 %v7122_v4, %v909_v47 }
 0x253   :  { %v9372_v5 = vpack.c.bf16 %v1066_v40, %v1065_v17  ;;  %4428 = vrot.lane.b32.xlu0 %v9099_v3, %s8348_s18  ;;  %1433 = vrot.lane.b32.xlu1 %v9022_v25, %s8346_s1  ;;  %v7123_v46 = vpop.f32.mrb[22].mxu0  ;;  %v971_v53 = vmul.f32 %v843_v1, %v776_v32  ;;  %v1003_v57 = vmul.f32 %v875_v15, %v776_v32  ;;  %v939_v3 = vld [vmem:[%s14415_s12 + $0x3a0] sm:$0xff]  ;;  %v940_v1 = vld [vmem:[%s14415_s12 + $0x3a8] sm:$0xff] }
 0x254   :  { %v1035_v24 = vmul.f32 %v907_v39, %v776_v32  ;;  %v779_v36 = vpop.f32.mrb[23].mxu0  ;;  %v9378_v38 = vpack.c.bf16 %v7123_v46, %v7122_v4  ;;  %v974_v9 = vmul.f32 %v7123_v46, %v846_v28  ;;  %v1006_v20 = vmul.f32 %v7123_v46, %v878_v60  ;;  %v849_v39 = vld [vmem:[%s14415_s12 + $0xd0] sm:$0xff] }
 0x255   :  { %14746 = vst [vmem:[#allocation24_spill] sm:$0xff] %v9372_v5  ;;  %v1038_v50 = vmul.f32 %v7123_v46, %v910_v2  ;;  %v9380_v10 = vpack.c.bf16 %v779_v36, %v776_v32  ;;  %v972_v47 = vmul.f32 %v844_v41, %v779_v36  ;;  %v1004_v17 = vmul.f32 %v876_v6, %v779_v36  ;;  %v941_v2 = vld [vmem:[%s14415_s12 + $0x3b0] sm:$0xff]  ;;  %v942_v41 = vld [vmem:[%s14415_s12 + $0x3b8] sm:$0xff] }
 0x256   :  { %v1036_v40 = vmul.f32 %v908_v55, %v779_v36  ;;  %v9388_v15 = vpack.c.bf16 %v974_v9, %v973_v51  ;;  %v9393_v28 = vpack.c.bf16 %v1006_v20, %v1005_v26  ;;  %v913_v26 = vld [vmem:[%s14415_s12 + $0x2d0] sm:$0xff]  ;;  %v879_v55 = vld [vmem:[%s14415_s12 + $0x1c0] sm:$0xff]  ;;  %v850_v9 = vld [vmem:[%s14415_s12 + $0xd8] sm:$0xff]  ;;  %v1070_v5 = vmul.f32 %v7123_v46, %v942_v41 }
 0x257   :  { %v9395_v60 = vpack.c.bf16 %v1038_v50, %v1037_v54  ;;  %4432 = vrot.lane.b32.xlu0 %v9171_v58, %s8348_s18  ;;  %1449 = vrot.lane.b32.xlu1 %v9308_v16, %s8346_s1  ;;  %v9407_v51 = vpack.c.bf16 %v972_v47, %v971_v53  ;;  %v9409_v20 = vpack.c.bf16 %v1004_v17, %v1003_v57  ;;  %v881_v50 = vld [vmem:[%s14415_s12 + $0x1d0] sm:$0xff]  ;;  %v847_v58 = vld [vmem:[%s14415_s12 + $0xc0] sm:$0xff] }
 0x258   :  { %14747 = vst [vmem:[#allocation25_spill] sm:$0xff] %v9393_v28  ;;  %v9414_v6 = vpack.c.bf16 %v1036_v40, %v1035_v24  ;;  %v911_v54 = vld [vmem:[%s14415_s12 + $0x2c0] sm:$0xff]  ;;  %v1067_v53 = vmul.f32 %v939_v3, %v776_v32  ;;  %v1068_v57 = vmul.f32 %v940_v1, %v779_v36  ;;  %v882_v47 = vld [vmem:[%s14415_s12 + $0x1d8] sm:$0xff]  ;;  %v1069_v40 = vmul.f32 %v7122_v4, %v941_v2  ;;  %v848_v36 = vld [vmem:[%s14415_s12 + $0xc8] sm:$0xff] }
 0x259   :  { %14748 = vst [vmem:[#allocation26_spill] sm:$0xff] %v9395_v60  ;;  %14749 = vst [vmem:[#allocation27_spill] sm:$0xff] %v9409_v20  ;;  %v7126_v24 = vpop.f32.mrb[24].mxu0  ;;  %v914_v17 = vld [vmem:[%s14415_s12 + $0x2d8] sm:$0xff]  ;;  %v880_v3 = vld [vmem:[%s14415_s12 + $0x1c8] sm:$0xff] }
 0x25a   :  { %14750 = vst [vmem:[#allocation28_spill] sm:$0xff] %v9414_v6  ;;  %v792_v60 = vpop.f32.mrb[25].mxu0  ;;  %v977_v32 = vmul.f32 %v7126_v24, %v849_v39  ;;  %v1009_v1 = vmul.f32 %v7126_v24, %v881_v50  ;;  %v912_v6 = vld [vmem:[%s14415_s12 + $0x2c8] sm:$0xff]  ;;  %v1041_v42 = vmul.f32 %v7126_v24, %v913_v26  ;;  %v9446_v56 = vpack.c.bf16 %v1068_v57, %v1067_v53 }
 0x25b   :  { %4436 = vrot.lane.b32.xlu0 %v9244_v7, %s8348_s18  ;;  %1451 = vrot.lane.b32.xlu1 %v9380_v10, %s8346_s1  ;;  %v7127_v4 = vpop.f32.mrb[26].mxu0  ;;  %v975_v46 = vmul.f32 %v847_v58, %v792_v60  ;;  %v1007_v39 = vmul.f32 %v879_v55, %v792_v60  ;;  %v1039_v2 = vmul.f32 %v911_v54, %v792_v60  ;;  %v943_v7 = vld [vmem:[%s14415_s12 + $0x3c0] sm:$0xff]  ;;  %v944_v58 = vld [vmem:[%s14415_s12 + $0x3c8] sm:$0xff] }
 0x25c   :  { %14751 = vst [vmem:[#allocation29_spill] sm:$0xff] %v9446_v56  ;;  %v795_v41 = vpop.f32.mrb[27].mxu0  ;;  %v9452_v23 = vpack.c.bf16 %v7127_v4, %v7126_v24  ;;  %v978_v50 = vmul.f32 %v7127_v4, %v850_v9  ;;  %v1010_v63 = vmul.f32 %v7127_v4, %v882_v47  ;;  %v1042_v13 = vmul.f32 %v7127_v4, %v914_v17  ;;  %v853_v54 = vld [vmem:[%s14415_s12 + $0xf0] sm:$0xff]  ;;  %v916_v56 = vld [vmem:[%s14415_s12 + $0x2e8] sm:$0xff] }
 0x25d   :  { %v1155_v34 = vpack.c.bf16 %v795_v41, %v792_v60  ;;  %v976_v26 = vmul.f32 %v848_v36, %v795_v41  ;;  %v1008_v53 = vmul.f32 %v880_v3, %v795_v41  ;;  %v1040_v57 = vmul.f32 %v912_v6, %v795_v41  ;;  %v945_v6 = vld [vmem:[%s14415_s12 + $0x3d0] sm:$0xff]  ;;  %v946_v36 = vld [vmem:[%s14415_s12 + $0x3d8] sm:$0xff]  ;;  %v915_v3 = vld [vmem:[%s14415_s12 + $0x2e0] sm:$0xff] }
 0x25e   :  { %v9460_v55 = vpack.c.bf16 %v978_v50, %v977_v32  ;;  %v9465_v9 = vpack.c.bf16 %v1010_v63, %v1009_v1  ;;  %v9467_v47 = vpack.c.bf16 %v1042_v13, %v1041_v42  ;;  %v9469_v17 = vpack.c.bf16 %v1070_v5, %v1069_v40  ;;  %v885_v42 = vld [vmem:[%s14415_s12 + $0x1f0] sm:$0xff]  ;;  %v883_v32 = vld [vmem:[%s14415_s12 + $0x1e0] sm:$0xff]  ;;  %v886_v50 = vld [vmem:[%s14415_s12 + $0x1f8] sm:$0xff] }
 0x25f   :  { %4440 = vrot.lane.b32.xlu0 %v9310_v31, %s8348_s18  ;;  %1453 = vrot.lane.b32.xlu1 %v9378_v38, %s8346_s1  ;;  %v9481_v63 = vpack.c.bf16 %v976_v26, %v975_v46  ;;  %v9483_v13 = vpack.c.bf16 %v1008_v53, %v1007_v39  ;;  %v9488_v5 = vpack.c.bf16 %v1040_v57, %v1039_v2  ;;  %v917_v40 = vld [vmem:[%s14415_s12 + $0x2f0] sm:$0xff]  ;;  %v851_v31 = vld [vmem:[%s14415_s12 + $0xe0] sm:$0xff] }
 0x260   :  { %14752 = vst [vmem:[#allocation30_spill] sm:$0xff] %v9465_v9  ;;  %14753 = vst [vmem:[#allocation31_spill] sm:$0xff] %v9467_v47  ;;  %v1071_v1 = vmul.f32 %v943_v7, %v792_v60  ;;  %v1072_v46 = vmul.f32 %v944_v58, %v795_v41  ;;  %v854_v2 = vld [vmem:[%s14415_s12 + $0xf8] sm:$0xff]  ;;  %v1073_v53 = vmul.f32 %v7126_v24, %v945_v6  ;;  %v852_v60 = vld [vmem:[%s14415_s12 + $0xe8] sm:$0xff] }
 0x261   :  { %14754 = vst [vmem:[#allocation32_spill] sm:$0xff] %v9469_v17  ;;  %14755 = vst [vmem:[#allocation33_spill] sm:$0xff] %v9483_v13  ;;  %v7130_v39 = vpop.f32.mrb[28].mxu0  ;;  %v918_v26 = vld [vmem:[%s14415_s12 + $0x2f8] sm:$0xff]  ;;  %v1074_v57 = vmul.f32 %v7127_v4, %v946_v36  ;;  %v884_v7 = vld [vmem:[%s14415_s12 + $0x1e8] sm:$0xff] }
 0x262   :  { %14756 = vst [vmem:[#allocation34_spill] sm:$0xff] %v9488_v5  ;;  %v808_v17 = vpop.f32.mrb[29].mxu0  ;;  %v981_v41 = vmul.f32 %v7130_v39, %v853_v54  ;;  %v1013_v58 = vmul.f32 %v7130_v39, %v885_v42  ;;  %v1045_v47 = vmul.f32 %v7130_v39, %v917_v40  ;;  %v9520_v5 = vpack.c.bf16 %v1072_v46, %v1071_v1  ;;  %v949_v40 = vld [vmem:[%s14415_s12 + $0x3f0] sm:$0xff] }
 0x263   :  { %4444 = vrot.lane.b32.xlu0 %v9380_v10, %s8348_s18  ;;  %1455 = vrot.lane.b32.xlu1 %v1155_v34, %s8346_s1  ;;  %v7131_v24 = vpop.f32.mrb[30].mxu0  ;;  %v979_v4 = vmul.f32 %v851_v31, %v808_v17  ;;  %v1011_v54 = vmul.f32 %v883_v32, %v808_v17  ;;  %v1043_v6 = vmul.f32 %v915_v3, %v808_v17  ;;  %v947_v31 = vld [vmem:[%s14415_s12 + $0x3e0] sm:$0xff]  ;;  %v948_v32 = vld [vmem:[%s14415_s12 + $0x3e8] sm:$0xff] }
 0x264   :  { %14757 = vst [vmem:[#allocation35_spill] sm:$0xff] %v9520_v5  ;;  %v811_v36 = vpop.f32.mrb[31].mxu0  ;;  %v9525_v48 = vpack.c.bf16 %v7131_v24, %v7130_v39  ;;  %v982_v42 = vmul.f32 %v7131_v24, %v854_v2  ;;  %v1014_v9 = vmul.f32 %v7131_v24, %v886_v50  ;;  %v1046_v13 = vmul.f32 %v7131_v24, %v918_v26  ;;  %v950_v3 = vld [vmem:[%s14415_s12 + $0x3f8] sm:$0xff] }
 0x265   :  { %v9530_v1 = vpack.c.bf16 %v811_v36, %v808_v17  ;;  %v980_v46 = vmul.f32 %v852_v60, %v811_v36  ;;  %v1012_v10 = vmul.f32 %v884_v7, %v811_v36  ;;  %v1044_v5 = vmul.f32 %v916_v56, %v811_v36 }
 0x266   :  { %v9541_v2 = vpack.c.bf16 %v982_v42, %v981_v41  ;;  %v9543_v50 = vpack.c.bf16 %v1014_v9, %v1013_v58  ;;  %v9545_v26 = vpack.c.bf16 %v1046_v13, %v1045_v47  ;;  %v9547_v60 = vpack.c.bf16 %v1074_v57, %v1073_v53 }
 0x267   :  { %4448 = vrot.lane.b32.xlu0 %v1155_v34, %s8348_s18  ;;  %1457 = vrot.lane.b32.xlu1 %v9452_v23, %s8346_s1  ;;  %v9552_v56 = vpack.c.bf16 %v980_v46, %v979_v4  ;;  %v9554_v7 = vpack.c.bf16 %v1012_v10, %v1011_v54  ;;  %v9556_v28 = vpack.c.bf16 %v1044_v5, %v1043_v6 }
 0x268   :  { %14758 = vst [vmem:[#allocation36_spill] sm:$0xff] %v9547_v60  ;;  %v1075_v20 = vmul.f32 %v947_v31, %v808_v17  ;;  %v1076_v41 = vmul.f32 %v948_v32, %v811_v36  ;;  %v1077_v42 = vmul.f32 %v7130_v39, %v949_v40  ;;  %v1078_v9 = vmul.f32 %v7131_v24, %v950_v3 }
 0x26a   :  { %v9558_v58 = vpack.c.bf16 %v1076_v41, %v1075_v20  ;;  %v9560_v47 = vpack.c.bf16 %v1078_v9, %v1077_v42 }
 0x26b   :  { %1459 = vrot.lane.b32.xlu1 %v9530_v1, %s8346_s1 }
 0x26c   :  { %14759 = vst [vmem:[#allocation37_spill] sm:$0xff] %v9558_v58  ;;  %14760 = vst [vmem:[#allocation38_spill] sm:$0xff] %v9560_v47 }
 0x26f   :  { %1461 = vrot.lane.b32.xlu1 %v9525_v48, %s8346_s1 }
 0x273   :  { %4426 = vrot.lane.b32.xlu1 %v9022_v25, %s8348_s18 }
 0x277   :  { %4430 = vrot.lane.b32.xlu1 %v9094_v21, %s8348_s18 }
 0x27b   :  { %4434 = vrot.lane.b32.xlu1 %v9163_v11, %s8348_s18 }
 0x27f   :  { %4438 = vrot.lane.b32.xlu1 %v9239_v8, %s8348_s18  ;;  %v14761_v8 = vmov 0  }
 0x283   :  { %4442 = vrot.lane.b32.xlu1 %v9308_v16, %s8348_s18 }
 0x287   :  { %4446 = vrot.lane.b32.xlu1 %v9378_v38, %s8348_s18 }
 0x2a1   :  { %v1432_v34 = vpop.permute.xlu0 %1431 }
 0x2a2   :  { %v1656_v11 = vsel %vm96_vm0, %v1432_v34, 0 }
 0x2a9   :  { %v1436_v20 = vpop.permute.xlu0 %1435 }
 0x2aa   :  { %v1662_v54 = vsel %vm96_vm0, %v1436_v20, 0 }
 0x2ad   :  { %v1438_v17 = vpop.permute.xlu0 %1437 }
 0x2ae   :  { %v1665_v40 = vsel %vm96_vm0, %v1438_v17, 0 }
 0x2b1   :  { %v1440_v13 = vpop.permute.xlu0 %1439 }
 0x2b2   :  { %v1668_v31 = vsel %vm96_vm0, %v1440_v13, 0 }
 0x2b5   :  { %v1442_v25 = vpop.permute.xlu0 %1441 }
 0x2b6   :  { %v1671_v41 = vsel %vm96_vm0, %v1442_v25, 0 }
 0x2b9   :  { %v1444_v5 = vpop.permute.xlu0 %1443 }
 0x2ba   :  { %v1674_v34 = vsel %vm96_vm0, %v1444_v5, 0 }
 0x2bd   :  { %v1446_v39 = vpop.permute.xlu0 %1445 }
 0x2be   :  { %v1677_v13 = vsel %vm96_vm0, %v1446_v39, 0 }
 0x2c1   :  { %v1448_v21 = vpop.permute.xlu1 %1447  ;;  %v4425_v53 = vpop.permute.xlu0 %4424 }
 0x2c2   :  { %7242 = vmatprep.subr.msk.bf16.mxu1 %vm96_vm0, %v1448_v21  ;;  %4473 = vmatpush1.bf16.msra.mxu0 %v4425_v53 }
 0x2c3   :  { %6901 = vmatpush3.bf16.xpose.msra.mxu1 %v1656_v11  ;;  %4474 = vmatprep.subr.bf16.mxu0 %v14761_v8 }
 0x2c5   :  { %v1434_v16 = vpop.permute.xlu1 %1433  ;;  %v4429_v3 = vpop.permute.xlu0 %4428 }
 0x2c6   :  { %v1659_v38 = vsel %vm96_vm0, %v1434_v16, 0 }
 0x2c9   :  { %v1450_v57 = vpop.permute.xlu1 %1449  ;;  %v4433_v9 = vpop.permute.xlu0 %4432 }
 0x2ca   :  { %7243 = vmatprep.subr.msk.bf16.mxu1 %vm96_vm0, %v1450_v57 }
 0x2cb   :  { %6903 = vmatpush3.bf16.xpose.msra.mxu1 %v1659_v38 }
 0x2cd   :  { %v1452_v24 = vpop.permute.xlu1 %1451  ;;  %v4437_v17 = vpop.permute.xlu0 %4436 }
 0x2ce   :  { %7244 = vmatprep.subr.msk.bf16.mxu1 %vm96_vm0, %v1452_v24 }
 0x2d1   :  { %v1454_v4 = vpop.permute.xlu1 %1453  ;;  %v4441_v5 = vpop.permute.xlu0 %4440 }
 0x2d3   :  { %6905 = vmatpush3.bf16.xpose.msra.mxu1 %v1662_v54 }
 0x2d4   :  { %7245 = vmatprep.subr.msk.bf16.mxu1 %vm96_vm0, %v1454_v4  ;;  %v14765_v4 = vld [vmem:[#allocation30_spill] sm:$0xff] }
 0x2d5   :  { %v1456_v6 = vpop.permute.xlu1 %1455  ;;  %v4445_v39 = vpop.permute.xlu0 %4444 }
 0x2d9   :  { %v1458_v36 = vpop.permute.xlu1 %1457  ;;  %v4449_v53 = vpop.permute.xlu0 %4448 }
 0x2db   :  { %6907 = vmatpush3.bf16.xpose.msra.mxu1 %v1665_v40 }
 0x2dc   :  { %7246 = vmatprep.subr.msk.bf16.mxu1 %vm96_vm0, %v1456_v6 }
 0x2dd   :  { %v1460_v46 = vpop.permute.xlu1 %1459 }
 0x2e1   :  { %v1462_v10 = vpop.permute.xlu1 %1461 }
 0x2e3   :  { %6909 = vmatpush3.bf16.xpose.msra.mxu1 %v1668_v31 }
 0x2e4   :  { %7247 = vmatprep.subr.msk.bf16.mxu1 %vm96_vm0, %v1458_v36  ;;  %v1169_v36 = vld [vmem:[#allocation2 + $0x50] sm:$0xff] }
 0x2e5   :  { %v4427_v32 = vpop.permute.xlu1 %4426 }
 0x2e6   :  { %4475 = vmatpush1.bf16.msra.mxu0 %v4427_v32 }
 0x2e7   :  { %4476 = vmatprep.subr.bf16.mxu0 %v14761_v8 }
 0x2e9   :  { %v4431_v42 = vpop.permute.xlu1 %4430 }
 0x2ea   :  { %4477 = vmatpush1.bf16.msra.mxu0 %v4429_v3 }
 0x2eb   :  { %6911 = vmatpush3.bf16.xpose.msra.mxu1 %v1671_v41  ;;  %4478 = vmatprep.subr.bf16.mxu0 %v14761_v8 }
 0x2ec   :  { %7248 = vmatprep.subr.msk.bf16.mxu1 %vm96_vm0, %v1460_v46  ;;  %v1170_v46 = vld [vmem:[#allocation2 + $0x58] sm:$0xff] }
 0x2ed   :  { %v4435_v20 = vpop.permute.xlu1 %4434 }
 0x2ee   :  { %4479 = vmatpush1.bf16.msra.mxu0 %v4431_v42 }
 0x2ef   :  { %4480 = vmatprep.subr.bf16.mxu0 %v14761_v8 }
 0x2f1   :  { %v4439_v25 = vpop.permute.xlu1 %4438 }
 0x2f2   :  { %4481 = vmatpush1.bf16.msra.mxu0 %v4433_v9  ;;  %v1173_v9 = vld [vmem:[#allocation2 + $0x70] sm:$0xff] }
 0x2f3   :  { %6913 = vmatpush3.bf16.xpose.msra.mxu1 %v1674_v34  ;;  %4482 = vmatprep.subr.bf16.mxu0 %v14761_v8 }
 0x2f4   :  { %7249 = vmatprep.subr.msk.bf16.mxu1 %vm96_vm0, %v1462_v10 }
 0x2f5   :  { %v4443_v21 = vpop.permute.xlu1 %4442 }
 0x2f6   :  { %4483 = vmatpush1.bf16.msra.mxu0 %v4435_v20  ;;  %v1174_v20 = vld [vmem:[#allocation2 + $0x78] sm:$0xff] }
 0x2f7   :  { %4484 = vmatprep.subr.bf16.mxu0 %v14761_v8 }
 0x2fa   :  { %4485 = vmatpush1.bf16.msra.mxu0 %v4437_v17 }
 0x2fb   :  { %6915 = vmatpush3.bf16.xpose.msra.mxu1 %v1677_v13  ;;  %4486 = vmatprep.subr.bf16.mxu0 %v14761_v8 }
 0x2fe   :  { %4487 = vmatpush1.bf16.msra.mxu0 %v4439_v25 }
 0x2ff   :  { %4488 = vmatprep.subr.bf16.mxu0 %v14761_v8 }
 0x302   :  { %6917 = vmatmul.mubr.msk.bf16.vlgmr.msra.gmra.mrb[0].mxu1 %vm96_vm0, %v9043_v35  ;;  %4489 = vmatpush1.bf16.msra.mxu0 %v4441_v5  ;;  %v4447_v35 = vpop.permute.xlu1 %4446 }
 0x303   :  { %6918 = vmatprep.mubr.msk.bf16.mxu1 %vm96_vm0, %v9029_v0  ;;  %4490 = vmatprep.subr.bf16.mxu0 %v14761_v8 }
 0x306   :  { %4491 = vmatpush1.bf16.msra.mxu0 %v4443_v21 }
 0x307   :  { %4492 = vmatprep.subr.bf16.mxu0 %v14761_v8 }
 0x30a   :  { %6919 = vmatmul.mubr.msk.bf16.gmra.mrb[4].mxu1 %vm96_vm0, %v9029_v0  ;;  %4493 = vmatpush1.bf16.msra.mxu0 %v4445_v39  ;;  %v14762_v0 = vld [vmem:[#allocation27_spill] sm:$0xff] }
 0x30b   :  { %6920 = vmatprep.mubr.msk.bf16.mxu1 %vm96_vm0, %v9115_v44  ;;  %4494 = vmatprep.subr.bf16.mxu0 %v14761_v8 }
 0x30e   :  { %4495 = vmatpush1.bf16.msra.mxu0 %v4447_v35 }
 0x30f   :  { %4496 = vmatprep.subr.bf16.mxu0 %v14761_v8 }
 0x312   :  { %6921 = vmatmul.mubr.msk.bf16.gmra.mrb[8].mxu1 %vm96_vm0, %v9115_v44  ;;  %4497 = vmatpush1.bf16.msra.mxu0 %v4449_v53  ;;  %v1161_v44 = vld [vmem:[#allocation2 + $0x10] sm:$0xff] }
 0x313   :  { %6922 = vmatprep.mubr.msk.bf16.mxu1 %vm96_vm0, %v9101_v37  ;;  %4498 = vmatprep.subr.bf16.mxu0 %v14761_v8 }
 0x31a   :  { %6923 = vmatmul.mubr.msk.bf16.gmra.mrb[12].mxu1 %vm96_vm0, %v9101_v37  ;;  %v1160_v37 = vld [vmem:[#allocation2 + $0x8] sm:$0xff] }
 0x31b   :  { %6924 = vmatprep.mubr.msk.bf16.mxu1 %vm96_vm0, %v9188_v12 }
 0x322   :  { %6925 = vmatmul.mubr.msk.bf16.gmra.mrb[16].mxu1 %vm96_vm0, %v9188_v12 }
 0x323   :  { %6926 = vmatprep.mubr.msk.bf16.mxu1 %vm96_vm0, %v9174_v62 }
 0x32a   :  { %6927 = vmatmul.mubr.msk.bf16.gmra.mrb[20].mxu1 %vm96_vm0, %v9174_v62 }
 0x32b   :  { %6928 = vmatprep.mubr.msk.bf16.mxu1 %vm96_vm0, %v9257_v22 }
 0x332   :  { %6929 = vmatmul.mubr.msk.bf16.gmra.mrb[24].mxu1 %vm96_vm0, %v9257_v22 }
 0x333   :  { %6930 = vmatprep.mubr.msk.bf16.mxu1 %vm96_vm0, %v9246_v45 }
 0x33a   :  { %6931 = vmatmul.mubr.msk.bf16.gmra.mrb[28].mxu1 %vm96_vm0, %v9246_v45 }
 0x33b   :  { %6932 = vmatprep.mubr.msk.bf16.mxu1 %vm96_vm0, %v9331_v33 }
 0x342   :  { %6933 = vmatmul.mubr.msk.bf16.gmra.mrb[32].mxu1 %vm96_vm0, %v9331_v33  ;;  %v1163_v33 = vld [vmem:[#allocation2 + $0x20] sm:$0xff] }
 0x343   :  { %6934 = vmatprep.mubr.msk.bf16.mxu1 %vm96_vm0, %v9318_v43 }
 0x34a   :  { %6935 = vmatmul.mubr.msk.bf16.gmra.mrb[36].mxu1 %vm96_vm0, %v9318_v43  ;;  %v14764_v43 = vld [vmem:[#allocation33_spill] sm:$0xff] }
 0x34b   :  { %6936 = vmatprep.mubr.msk.bf16.mxu1 %vm96_vm0, %v9407_v51 }
 0x352   :  { %6937 = vmatmul.mubr.msk.bf16.gmra.mrb[40].mxu1 %vm96_vm0, %v9407_v51 }
 0x353   :  { %6938 = vmatprep.mubr.msk.bf16.mxu1 %vm96_vm0, %v9388_v15 }
 0x35a   :  { %6939 = vmatmul.mubr.msk.bf16.gmra.mrb[44].mxu1 %vm96_vm0, %v9388_v15 }
 0x35b   :  { %6940 = vmatprep.mubr.msk.bf16.mxu1 %vm96_vm0, %v9481_v63 }
 0x362   :  { %6941 = vmatmul.mubr.msk.bf16.gmra.mrb[48].mxu1 %vm96_vm0, %v9481_v63  ;;  %v1165_v63 = vld [vmem:[#allocation2 + $0x30] sm:$0xff] }
 0x363   :  { %6942 = vmatprep.mubr.msk.bf16.mxu1 %vm96_vm0, %v9460_v55 }
 0x36a   :  { %6943 = vmatmul.mubr.msk.bf16.gmra.mrb[52].mxu1 %vm96_vm0, %v9460_v55 }
 0x36b   :  { %6944 = vmatprep.mubr.msk.bf16.mxu1 %vm96_vm0, %v9552_v56 }
 0x372   :  { %6945 = vmatmul.mubr.msk.bf16.gmra.mrb[56].mxu1 %vm96_vm0, %v9552_v56 }
 0x373   :  { %6946 = vmatprep.mubr.msk.bf16.mxu1 %vm96_vm0, %v9541_v2 }
 0x37a   :  { %6947 = vmatmul.mubr.msk.bf16.gmra.mrb[60].mxu1 %vm96_vm0, %v9541_v2  ;;  %v1166_v2 = vld [vmem:[#allocation2 + $0x38] sm:$0xff] }
 0x37b   :  { %6948 = vmatprep.mubr.msk.bf16.mxu1 %vm96_vm0, %v9048_v49 }
 0x382   :  { %6949 = vmatmul.mubr.msk.bf16.gmra.mrb[64].mxu1 %vm96_vm0, %v9048_v49  ;;  %v1159_v49 = vld [vmem:[#allocation2] sm:$0xff] }
 0x383   :  { %6950 = vmatprep.mubr.msk.bf16.mxu1 %vm96_vm0, %v9034_v14 }
 0x38a   :  { %6951 = vmatmul.mubr.msk.bf16.gmra.mrb[68].mxu1 %vm96_vm0, %v9034_v14  ;;  %v14763_v14 = vld [vmem:[#allocation25_spill] sm:$0xff] }
 0x38b   :  { %6952 = vmatprep.mubr.msk.bf16.mxu1 %vm96_vm0, %v9120_v61 }
 0x392   :  { %6953 = vmatmul.mubr.msk.bf16.gmra.mrb[72].mxu1 %vm96_vm0, %v9120_v61 }
 0x393   :  { %6954 = vmatprep.mubr.msk.bf16.mxu1 %vm96_vm0, %v9106_v27 }
 0x39a   :  { %6955 = vmatmul.mubr.msk.bf16.gmra.mrb[76].mxu1 %vm96_vm0, %v9106_v27 }
 0x39b   :  { %6956 = vmatprep.mubr.msk.bf16.mxu1 %vm96_vm0, %v9193_v18 }
 0x3a2   :  { %6957 = vmatmul.mubr.msk.bf16.gmra.mrb[80].mxu1 %vm96_vm0, %v9193_v18 }
 0x3a3   :  { %6958 = vmatprep.mubr.msk.bf16.mxu1 %vm96_vm0, %v9179_v59 }
 0x3aa   :  { %6959 = vmatmul.mubr.msk.bf16.gmra.mrb[84].mxu1 %vm96_vm0, %v9179_v59  ;;  %v1162_v59 = vld [vmem:[#allocation2 + $0x18] sm:$0xff] }
 0x3ab   :  { %6960 = vmatprep.mubr.msk.bf16.mxu1 %vm96_vm0, %v9262_v29 }
 0x3b2   :  { %6961 = vmatmul.mubr.msk.bf16.gmra.mrb[88].mxu1 %vm96_vm0, %v9262_v29 }
 0x3b3   :  { %6962 = vmatprep.mubr.msk.bf16.mxu1 %vm96_vm0, %v9251_v19 }
 0x3ba   :  { %6963 = vmatmul.mubr.msk.bf16.gmra.mrb[92].mxu1 %vm96_vm0, %v9251_v19 }
 0x3bb   :  { %6964 = vmatprep.mubr.msk.bf16.mxu1 %vm96_vm0, %v9333_v30 }
 0x3c2   :  { %6965 = vmatmul.mubr.msk.bf16.gmra.mrb[96].mxu1 %vm96_vm0, %v9333_v30  ;;  %v1164_v30 = vld [vmem:[#allocation2 + $0x28] sm:$0xff] }
 0x3c3   :  { %6966 = vmatprep.mubr.msk.bf16.mxu1 %vm96_vm0, %v9323_v52 }
 0x3ca   :  { %6967 = vmatmul.mubr.msk.bf16.gmra.mrb[100].mxu1 %vm96_vm0, %v9323_v52 }
 0x3cb   :  { %6968 = vmatprep.mubr.msk.bf16.mxu1 %vm96_vm0, %v14762_v0 }
 0x3d2   :  { %6969 = vmatmul.mubr.msk.bf16.gmra.mrb[104].mxu1 %vm96_vm0, %v14762_v0 }
 0x3d3   :  { %6970 = vmatprep.mubr.msk.bf16.mxu1 %vm96_vm0, %v14763_v14 }
 0x3d5   :  { %v1737_v27 = vpop.f32.mrb[0].mxu1 }
 0x3d6   :  { %v1739_v61 = vpop.f32.mrb[1].mxu1  ;;  %v9715_v62 = vadd.f32 %v1737_v27, %v1159_v49 }
 0x3d7   :  { %v1741_v12 = vpop.f32.mrb[2].mxu1  ;;  %v9717_v18 = vadd.f32 %v1739_v61, %v1160_v37 }
 0x3d8   :  { %v1743_v45 = vpop.f32.mrb[3].mxu1  ;;  %v9719_v19 = vadd.f32 %v1741_v12, %v1161_v44  ;;  %v14767_v44 = vld [vmem:[#allocation5_spill] sm:$0xff] }
 0x3d9   :  { %v2376_v22 = vmax.f32 %v9715_v62, %v9717_v18  ;;  %v9723_v29 = vadd.f32 %v1743_v45, %v1162_v59 }
 0x3da   :  { %6971 = vmatmul.mubr.msk.bf16.gmra.mrb[108].mxu1 %vm96_vm0, %v14763_v14  ;;  %v14766_v14 = vld [vmem:[#allocation6_spill] sm:$0xff] }
 0x3db   :  { %6972 = vmatprep.mubr.msk.bf16.mxu1 %vm96_vm0, %v14764_v43  ;;  %2377 = vmax.xlane.f32.xlu0 %v2376_v22  ;;  %v2379_v52 = vmax.f32 %v9719_v19, %v9723_v29 }
 0x3dd   :  { %v1747_v15 = vpop.f32.mrb[4].mxu1  ;;  %2380 = vmax.xlane.f32.xlu1 %v2379_v52 }
 0x3de   :  { %v1749_v51 = vpop.f32.mrb[5].mxu1  ;;  %v9731_v55 = vadd.f32 %v1747_v15, %v1163_v33  ;;  %v1168_v33 = vld [vmem:[#allocation2 + $0x48] sm:$0xff] }
 0x3df   :  { %v1751_v56 = vpop.f32.mrb[6].mxu1  ;;  %v9733_v11 = vadd.f32 %v1749_v51, %v1164_v30  ;;  %v14769_v30 = vld [vmem:[#allocation9_spill] sm:$0xff] }
 0x3e0   :  { %v1753_v16 = vpop.f32.mrb[7].mxu1  ;;  %v9737_v38 = vadd.f32 %v1751_v56, %v1165_v63  ;;  %v1171_v56 = vld [vmem:[#allocation2 + $0x60] sm:$0xff] }
 0x3e1   :  { %v2382_v57 = vmax.f32 %v9731_v55, %v9733_v11  ;;  %v9739_v24 = vadd.f32 %v1753_v16, %v1166_v2  ;;  %v1172_v16 = vld [vmem:[#allocation2 + $0x68] sm:$0xff] }
 0x3e2   :  { %6973 = vmatmul.mubr.msk.bf16.gmra.mrb[112].mxu1 %vm96_vm0, %v14764_v43 }
 0x3e3   :  { %6974 = vmatprep.mubr.msk.bf16.mxu1 %vm96_vm0, %v14765_v4  ;;  %2383 = vmax.xlane.f32.xlu0 %v2382_v57  ;;  %v2385_v6 = vmax.f32 %v9737_v38, %v9739_v24 }
 0x3e5   :  { %v1757_v54 = vpop.f32.mrb[8].mxu1 }
 0x3e6   :  { %v1759_v40 = vpop.f32.mrb[9].mxu1 }
 0x3e7   :  { %v1761_v10 = vpop.f32.mrb[10].mxu1  ;;  %2386 = vmax.xlane.f32.xlu0 %v2385_v6  ;;  %v9807_v63 = vadd.f32 %v1759_v40, %v1168_v33  ;;  %v1175_v40 = vld [vmem:[#allocation2 + $0x80] sm:$0xff]  ;;  %v1184_v33 = vld [vmem:[#allocation2 + $0xc8] sm:$0xff] }
 0x3e8   :  { %v1763_v31 = vpop.f32.mrb[11].mxu1  ;;  %v9747_v32 = vadd.f32 %v1761_v10, %v1169_v36  ;;  %v14770_v10 = vld [vmem:[#allocation14_spill] sm:$0xff] }
 0x3e9   :  { %v9749_v3 = vadd.f32 %v1763_v31, %v1170_v46  ;;  %v1176_v46 = vld [vmem:[#allocation2 + $0x88] sm:$0xff] }
 0x3ea   :  { %6975 = vmatmul.mubr.msk.bf16.gmra.mrb[116].mxu1 %vm96_vm0, %v14765_v4 }
 0x3eb   :  { %6976 = vmatprep.mubr.msk.bf16.mxu1 %vm96_vm0, %v9554_v7  ;;  %v2391_v41 = vmax.f32 %v9747_v32, %v9749_v3 }
 0x3ed   :  { %v1767_v42 = vpop.f32.mrb[12].mxu1  ;;  %2392 = vmax.xlane.f32.xlu1 %v2391_v41 }
 0x3ee   :  { %v1769_v34 = vpop.f32.mrb[13].mxu1  ;;  %v9815_v6 = vadd.f32 %v1767_v42, %v1171_v56 }
 0x3ef   :  { %v1771_v17 = vpop.f32.mrb[14].mxu1  ;;  %v9817_v36 = vadd.f32 %v1769_v34, %v1172_v16 }
 0x3f0   :  { %v9757_v13 = vadd.f32 %v1771_v17, %v1173_v9  ;;  %v1773_v25 = vpop.f32.mrb[15].mxu1  ;;  %v1180_v17 = vld [vmem:[#allocation2 + $0xa8] sm:$0xff] }
 0x3f1   :  { %v9759_v5 = vadd.f32 %v1773_v25, %v1174_v20  ;;  %v2394_v34 = vmax.f32 %v9815_v6, %v9817_v36  ;;  %v1179_v20 = vld [vmem:[#allocation2 + $0xa0] sm:$0xff] }
 0x3f2   :  { %6977 = vmatmul.mubr.msk.bf16.gmra.mrb[120].mxu1 %vm96_vm0, %v9554_v7 }
 0x3f3   :  { %6978 = vmatprep.mubr.msk.bf16.mxu1 %vm96_vm0, %v9543_v50  ;;  %v2397_v21 = vmax.f32 %v9757_v13, %v9759_v5 }
 0x3f5   :  { %v1777_v39 = vpop.f32.mrb[16].mxu1  ;;  %2398 = vmax.xlane.f32.xlu1 %v2397_v21 }
 0x3f6   :  { %v1779_v35 = vpop.f32.mrb[17].mxu1  ;;  %v9827_v41 = vadd.f32 %v1777_v39, %v1175_v40 }
 0x3f7   :  { %v1781_v53 = vpop.f32.mrb[18].mxu1  ;;  %v9829_v42 = vadd.f32 %v1779_v35, %v1176_v46  ;;  %v1183_v35 = vld [vmem:[#allocation2 + $0xc0] sm:$0xff] }
 0x3f8   :  { %v1783_v0 = vpop.f32.mrb[19].mxu1 }
 0x3f9   :  { %v2400_v39 = vmax.f32 %v9827_v41, %v9829_v42 }
 0x3fa   :  { %6979 = vmatmul.mubr.msk.bf16.gmra.mrb[124].mxu1 %vm96_vm0, %v9543_v50 }
 0x3fb   :  { %6980 = vmatprep.mubr.msk.bf16.mxu1 %vm96_vm0, %v14766_v14 }
 0x3fd   :  { %v1787_v49 = vpop.f32.mrb[20].mxu1  ;;  %4450 = vrot.lane.b32.xlu0 %v9452_v23, %s8348_s18  ;;  %v14768_v23 = vld [vmem:[#allocation10_spill] sm:$0xff] }
 0x3fe   :  { %v1789_v7 = vpop.f32.mrb[21].mxu1 }
 0x3ff   :  { %v9773_v37 = vpop.f32.mrb[22].mxu1 }
 0x400   :  { %v9775_v27 = vpop.f32.mrb[23].mxu1 }
 0x402   :  { %6981 = vmatmul.mubr.msk.bf16.gmra.mrb[128].mxu1 %vm96_vm0, %v14766_v14  ;;  %v1177_v14 = vld [vmem:[#allocation2 + $0x90] sm:$0xff] }
 0x403   :  { %6982 = vmatprep.mubr.msk.bf16.mxu1 %vm96_vm0, %v14767_v44  ;;  %v9845_v56 = vadd.f32 %v1781_v53, %v1177_v14 }
 0x405   :  { %v1797_v61 = vpop.f32.mrb[24].mxu1 }
 0x406   :  { %v1799_v50 = vpop.f32.mrb[25].mxu1  ;;  %4452 = vrot.lane.b32.xlu1 %v9530_v1, %s8348_s18  ;;  %v1167_v1 = vld [vmem:[#allocation2 + $0x40] sm:$0xff]  ;;  %v9851_v40 = vadd.f32 %v1797_v61, %v1183_v35 }
 0x407   :  { %v9783_v59 = vpop.f32.mrb[26].mxu1  ;;  %v9805_v51 = vadd.f32 %v1757_v54, %v1167_v1  ;;  %v9837_v1 = vadd.f32 %v1789_v7, %v1180_v17  ;;  %v9853_v46 = vadd.f32 %v1799_v50, %v1184_v33  ;;  %v1188_v17 = vld [vmem:[#allocation2 + $0xe8] sm:$0xff]  ;;  %v1185_v50 = vld [vmem:[#allocation2 + $0xd0] sm:$0xff] }
 0x408   :  { %v9785_v12 = vpop.f32.mrb[27].mxu1 }
 0x409   :  { %v2388_v54 = vmax.f32 %v9805_v51, %v9807_v63 }
 0x40a   :  { %6983 = vmatmul.mubr.msk.bf16.gmra.mrb[132].mxu1 %vm96_vm0, %v14767_v44  ;;  %v1178_v44 = vld [vmem:[#allocation2 + $0x98] sm:$0xff] }
 0x40b   :  { %6984 = vmatprep.mubr.msk.bf16.mxu1 %vm96_vm0, %v14768_v23  ;;  %v9847_v16 = vadd.f32 %v1783_v0, %v1178_v44 }
 0x40d   :  { %v9791_v45 = vpop.f32.mrb[28].mxu1  ;;  %v2403_v61 = vmax.f32 %v9845_v56, %v9847_v16 }
 0x40e   :  { %v9793_v22 = vpop.f32.mrb[29].mxu1 }
 0x40f   :  { %v9795_v43 = vpop.f32.mrb[30].mxu1  ;;  %v9871_v33 = vadd.f32 %v9793_v22, %v1188_v17 }
 0x410   :  { %v9797_v52 = vpop.f32.mrb[31].mxu1 }
 0x412   :  { %6985 = vmatmul.mubr.msk.bf16.gmra.mrb[136].mxu1 %vm96_vm0, %v14768_v23  ;;  %v9835_v23 = vadd.f32 %v1787_v49, %v1179_v20  ;;  %v1181_v49 = vld [vmem:[#allocation2 + $0xb0] sm:$0xff]  ;;  %v1187_v20 = vld [vmem:[#allocation2 + $0xe0] sm:$0xff] }
 0x413   :  { %6986 = vmatprep.mubr.msk.bf16.mxu1 %vm96_vm0, %v14769_v30  ;;  %v9860_v0 = vadd.f32 %v9773_v37, %v1181_v49  ;;  %v9868_v35 = vadd.f32 %v9791_v45, %v1187_v20  ;;  %v2412_v37 = vmax.f32 %v9851_v40, %v9853_v46  ;;  %v1194_v49 = vld [vmem:[#allocation2 + $0x118] sm:$0xff] }
 0x414   :  { %v1190_v20 = vld [vmem:[#allocation2 + $0xf8] sm:$0xff] }
 0x415   :  { %v9803_v15 = vpop.f32.mrb[32].mxu1  ;;  %v9903_v60 = vadd.f32 %v9797_v52, %v1190_v20  ;;  %v1201_v52 = vld [vmem:[#allocation2 + $0x150] sm:$0xff]  ;;  %v14780_v20 = vld [vmem:[#allocation17_spill] sm:$0xff] }
 0x416   :  { %v9809_v2 = vpop.f32.mrb[33].mxu1 }
 0x417   :  { %v9811_v57 = vpop.f32.mrb[34].mxu1  ;;  %14777 = vst [vmem:[#allocation6_spill] sm:$0xff] %v9903_v60 }
 0x418   :  { %v9813_v4 = vpop.f32.mrb[35].mxu1 }
 0x419   :  { %v9893_v47 = vadd.f32 %v9813_v4, %v1194_v49  ;;  %v1192_v49 = vld [vmem:[#allocation2 + $0x108] sm:$0xff] }
 0x41a   :  { %6987 = vmatmul.mubr.msk.bf16.gmra.mrb[140].mxu1 %vm96_vm0, %v14769_v30  ;;  %v14771_v30 = vld [vmem:[#allocation13_spill] sm:$0xff] }
 0x41b   :  { %6988 = vmatprep.mubr.msk.bf16.mxu1 %vm96_vm0, %v14770_v10  ;;  %14776 = vst [vmem:[#allocation30_spill] sm:$0xff] %v9893_v47 }
 0x41c   :  { %2389 = vmax.xlane.f32.xlu0 %v2388_v54  ;;  %v1182_v54 = vld [vmem:[#allocation2 + $0xb8] sm:$0xff] }
 0x41d   :  { %v9825_v31 = vpop.f32.mrb[36].mxu1  ;;  %v9863_v14 = vadd.f32 %v9775_v27, %v1182_v54  ;;  %v1193_v27 = vld [vmem:[#allocation2 + $0x110] sm:$0xff]  ;;  %v14773_v54 = vld [vmem:[#allocation18_spill] sm:$0xff] }
 0x41e   :  { %v9831_v9 = vpop.f32.mrb[37].mxu1 }
 0x41f   :  { %v1831_v25 = vpop.f32.mrb[38].mxu1  ;;  %14772 = vst [vmem:[#allocation27_spill] sm:$0xff] %v9863_v14  ;;  %v2409_v22 = vmax.f32 %v9860_v0, %v9863_v14 }
 0x420   :  { %v1833_v21 = vpop.f32.mrb[39].mxu1  ;;  %2395 = vmax.xlane.f32.xlu0 %v2394_v34  ;;  %v2406_v34 = vmax.f32 %v9835_v23, %v9837_v1 }
 0x422   :  { %6989 = vmatmul.mubr.msk.bf16.gmra.mrb[144].mxu1 %vm96_vm0, %v14770_v10 }
 0x423   :  { %6990 = vmatprep.mubr.msk.bf16.mxu1 %vm96_vm0, %v14771_v30 }
 0x424   :  { %2401 = vmax.xlane.f32.xlu0 %v2400_v39  ;;  %v1186_v39 = vld [vmem:[#allocation2 + $0xd8] sm:$0xff] }
 0x425   :  { %v9849_v7 = vpop.f32.mrb[40].mxu1  ;;  %v9883_v45 = vadd.f32 %v9785_v12, %v1186_v39  ;;  %v1197_v12 = vld [vmem:[#allocation2 + $0x130] sm:$0xff] }
 0x426   :  { %v9855_v10 = vpop.f32.mrb[41].mxu1 }
 0x427   :  { %v1841_v53 = vpop.f32.mrb[42].mxu1  ;;  %14774 = vst [vmem:[#allocation25_spill] sm:$0xff] %v9883_v45 }
 0x428   :  { %v1843_v44 = vpop.f32.mrb[43].mxu1  ;;  %2407 = vmax.xlane.f32.xlu0 %v2406_v34  ;;  %v9880_v34 = vadd.f32 %v9783_v59, %v1185_v50  ;;  %v2418_v59 = vmax.f32 %v9868_v35, %v9871_v33  ;;  %v1198_v50 = vld [vmem:[#allocation2 + $0x138] sm:$0xff] }
 0x429   :  { %v9909_v14 = vadd.f32 %v1833_v21, %v1198_v50 }
 0x42a   :  { %6991 = vmatmul.mubr.msk.bf16.gmra.mrb[148].mxu1 %vm96_vm0, %v14771_v30  ;;  %2404 = vmax.xlane.f32.xlu1 %v2403_v61  ;;  %v1189_v30 = vld [vmem:[#allocation2 + $0xf0] sm:$0xff]  ;;  %v9890_v61 = vadd.f32 %v9811_v57, %v1193_v27  ;;  %v2415_v4 = vmax.f32 %v9880_v34, %v9883_v45  ;;  %v1191_v27 = vld [vmem:[#allocation2 + $0x100] sm:$0xff]  ;;  %v1206_v45 = vld [vmem:[#allocation2 + $0x178] sm:$0xff] }
 0x42b   :  { %6992 = vmatprep.mubr.msk.bf16.mxu1 %vm96_vm0, %v14773_v54  ;;  %14779 = vst [vmem:[#allocation10_spill] sm:$0xff] %v9909_v14 }
 0x42c   :  { %2413 = vmax.xlane.f32.xlu0 %v2412_v37  ;;  %14775 = vst [vmem:[#allocation33_spill] sm:$0xff] %v9890_v61  ;;  %v9900_v37 = vadd.f32 %v9795_v43, %v1189_v30  ;;  %v2427_v43 = vmax.f32 %v9890_v61, %v9893_v47  ;;  %v1202_v30 = vld [vmem:[#allocation2 + $0x158] sm:$0xff] }
 0x42d   :  { %v9887_v17 = vpop.f32.mrb[44].mxu1  ;;  %v9927_v47 = vadd.f32 %v1843_v44, %v1202_v30  ;;  %v1199_v44 = vld [vmem:[#allocation2 + $0x140] sm:$0xff] }
 0x42e   :  { %v9895_v58 = vpop.f32.mrb[45].mxu1  ;;  %2410 = vmax.xlane.f32.xlu1 %v2409_v22  ;;  %v9907_v22 = vadd.f32 %v1831_v25, %v1197_v12  ;;  %v9921_v25 = vadd.f32 %v9809_v2, %v1192_v49  ;;  %v2421_v21 = vmax.f32 %v9900_v37, %v9903_v60  ;;  %v1196_v12 = vld [vmem:[#allocation2 + $0x128] sm:$0xff] }
 0x42f   :  { %v1851_v39 = vpop.f32.mrb[46].mxu1  ;;  %14782 = vst [vmem:[#allocation14_spill] sm:$0xff] %v9927_v47 }
 0x430   :  { %v1853_v57 = vpop.f32.mrb[47].mxu1  ;;  %2419 = vmax.xlane.f32.xlu0 %v2418_v59  ;;  %14778 = vst [vmem:[#allocation5_spill] sm:$0xff] %v9907_v22  ;;  %v9918_v59 = vadd.f32 %v9803_v15, %v1191_v27  ;;  %v2433_v15 = vmax.f32 %v9907_v22, %v9909_v14  ;;  %v1205_v27 = vld [vmem:[#allocation2 + $0x170] sm:$0xff]  ;;  %v1212_v14 = vld [vmem:[#allocation2 + $0x1a8] sm:$0xff] }
 0x431   :  { %v9939_v30 = vadd.f32 %v1851_v39, %v1205_v27 }
 0x432   :  { %6993 = vmatmul.mubr.msk.bf16.gmra.mrb[152].mxu1 %vm96_vm0, %v14773_v54  ;;  %2416 = vmax.xlane.f32.xlu1 %v2415_v4  ;;  %v1195_v54 = vld [vmem:[#allocation2 + $0x120] sm:$0xff]  ;;  %v9925_v4 = vadd.f32 %v1841_v53, %v1201_v52  ;;  %v2424_v53 = vmax.f32 %v9918_v59, %v9921_v25  ;;  %v1200_v52 = vld [vmem:[#allocation2 + $0x148] sm:$0xff] }
 0x433   :  { %6994 = vmatprep.mubr.msk.bf16.mxu1 %vm96_vm0, %v14780_v20  ;;  %v9932_v49 = vadd.f32 %v9825_v31, %v1195_v54  ;;  %14783 = vst [vmem:[#allocation13_spill] sm:$0xff] %v9939_v30  ;;  %v1208_v54 = vld [vmem:[#allocation2 + $0x188] sm:$0xff]  ;;  %v9953_v39 = vadd.f32 %v9855_v10, %v1200_v52 }
 0x434   :  { %2428 = vmax.xlane.f32.xlu0 %v2427_v43  ;;  %14781 = vst [vmem:[#allocation9_spill] sm:$0xff] %v9925_v4  ;;  %v9935_v43 = vadd.f32 %v9831_v9, %v1196_v12  ;;  %v2439_v31 = vmax.f32 %v9925_v4, %v9927_v47  ;;  %v1207_v9 = vld [vmem:[#allocation2 + $0x180] sm:$0xff]  ;;  %v14785_v12 = vld [vmem:[#allocation22_spill] sm:$0xff] }
 0x435   :  { %v1857_v50 = vpop.f32.mrb[48].mxu1 }
 0x436   :  { %v1859_v61 = vpop.f32.mrb[49].mxu1  ;;  %2422 = vmax.xlane.f32.xlu1 %v2421_v21  ;;  %v9941_v21 = vadd.f32 %v1853_v57, %v1206_v45  ;;  %v2430_v45 = vmax.f32 %v9932_v49, %v9935_v43  ;;  %v1203_v57 = vld [vmem:[#allocation2 + $0x160] sm:$0xff] }
 0x437   :  { %v1861_v2 = vpop.f32.mrb[50].mxu1  ;;  %v9959_v47 = vadd.f32 %v1859_v61, %v1208_v54  ;;  %v9964_v52 = vadd.f32 %v9887_v17, %v1203_v57 }
 0x438   :  { %v1863_v60 = vpop.f32.mrb[51].mxu1  ;;  %2434 = vmax.xlane.f32.xlu0 %v2433_v15  ;;  %14784 = vst [vmem:[#allocation18_spill] sm:$0xff] %v9941_v21  ;;  %v9950_v15 = vadd.f32 %v9849_v7, %v1199_v44  ;;  %v2445_v7 = vmax.f32 %v9939_v30, %v9941_v21  ;;  %v1211_v44 = vld [vmem:[#allocation2 + $0x1a0] sm:$0xff]  ;;  %v1218_v21 = vld [vmem:[#allocation2 + $0x1d8] sm:$0xff] }
 0x439   :  { %14787 = vst [vmem:[#allocation22_spill] sm:$0xff] %v9959_v47 }
 0x43a   :  { %6995 = vmatmul.mubr.msk.bf16.gmra.mrb[156].mxu1 %vm96_vm0, %v14780_v20  ;;  %2425 = vmax.xlane.f32.xlu1 %v2424_v53  ;;  %v1204_v20 = vld [vmem:[#allocation2 + $0x168] sm:$0xff]  ;;  %v9957_v53 = vadd.f32 %v1857_v50, %v1207_v9  ;;  %v2436_v61 = vmax.f32 %v9950_v15, %v9953_v39  ;;  %v1209_v50 = vld [vmem:[#allocation2 + $0x190] sm:$0xff]  ;;  %v1210_v9 = vld [vmem:[#allocation2 + $0x198] sm:$0xff] }
 0x43b   :  { %6996 = vmatprep.mubr.msk.bf16.mxu1 %vm96_vm0, %v14785_v12  ;;  %v9981_v57 = vadd.f32 %v1861_v2, %v1209_v50 }
 0x43c   :  { %2440 = vmax.xlane.f32.xlu0 %v2439_v31  ;;  %14786 = vst [vmem:[#allocation17_spill] sm:$0xff] %v9957_v53  ;;  %v9967_v31 = vadd.f32 %v9895_v58, %v1204_v20  ;;  %v2448_v17 = vmax.f32 %v9957_v53, %v9959_v47  ;;  %v14791_v58 = vld [vmem:[#allocation21_spill] sm:$0xff]  ;;  %v9983_v20 = vadd.f32 %v1863_v60, %v1210_v9  ;;  %v1216_v53 = vld [vmem:[#allocation2 + $0x1c8] sm:$0xff] }
 0x43d   :  { %v1867_v27 = vpop.f32.mrb[52].mxu1  ;;  %14792 = vst [vmem:[#allocation21_spill] sm:$0xff] %v9981_v57 }
 0x43e   :  { %v1869_v4 = vpop.f32.mrb[53].mxu1  ;;  %2431 = vmax.xlane.f32.xlu1 %v2430_v45  ;;  %14788 = vst [vmem:[#allocation39_spill] sm:$0xff] %v9967_v31  ;;  %v9971_v54 = vadd.f32 %v1867_v27, %v1211_v44  ;;  %14793 = vst [vmem:[#allocation42_spill] sm:$0xff] %v9983_v20  ;;  %v2442_v27 = vmax.f32 %v9964_v52, %v9967_v31  ;;  %v1217_v44 = vld [vmem:[#allocation2 + $0x1d0] sm:$0xff]  ;;  %v2451_v9 = vmax.f32 %v9981_v57, %v9983_v20 }
 0x43f   :  { %v1871_v10 = vpop.f32.mrb[54].mxu1  ;;  %v9973_v45 = vadd.f32 %v1869_v4, %v1212_v14  ;;  %v1213_v14 = vld [vmem:[#allocation2 + $0x1b0] sm:$0xff]  ;;  %v1214_v4 = vld [vmem:[#allocation2 + $0x1b8] sm:$0xff] }
 0x440   :  { %v1873_v22 = vpop.f32.mrb[55].mxu1  ;;  %2446 = vmax.xlane.f32.xlu0 %v2445_v7  ;;  %14789 = vst [vmem:[#allocation40_spill] sm:$0xff] %v9971_v54  ;;  %v9989_v47 = vadd.f32 %v1871_v10, %v1213_v14 }
 0x441   :  { %14790 = vst [vmem:[#allocation41_spill] sm:$0xff] %v9973_v45  ;;  %v9991_v2 = vadd.f32 %v1873_v22, %v1214_v4  ;;  %v14798_v22 = vld [vmem:[#allocation28_spill] sm:$0xff] }
 0x442   :  { %6997 = vmatmul.mubr.msk.bf16.gmra.mrb[160].mxu1 %vm96_vm0, %v14785_v12  ;;  %2437 = vmax.xlane.f32.xlu1 %v2436_v61  ;;  %v2454_v12 = vmax.f32 %v9971_v54, %v9973_v45  ;;  %14794 = vst [vmem:[#allocation43_spill] sm:$0xff] %v9989_v47 }
 0x443   :  { %6998 = vmatprep.mubr.msk.bf16.mxu1 %vm96_vm0, %v14791_v58  ;;  %14795 = vst [vmem:[#allocation44_spill] sm:$0xff] %v9991_v2 }
 0x444   :  { %2449 = vmax.xlane.f32.xlu0 %v2448_v17  ;;  %v1215_v17 = vld [vmem:[#allocation2 + $0x1c0] sm:$0xff] }
 0x445   :  { %v1877_v7 = vpop.f32.mrb[56].mxu1 }
 0x446   :  { %v1879_v61 = vpop.f32.mrb[57].mxu1  ;;  %2443 = vmax.xlane.f32.xlu1 %v2442_v27  ;;  %v10007_v27 = vadd.f32 %v1877_v7, %v1215_v17  ;;  %v14801_v7 = vld [vmem:[#allocation26_spill] sm:$0xff] }
 0x447   :  { %v1881_v30 = vpop.f32.mrb[58].mxu1  ;;  %v10009_v14 = vadd.f32 %v1879_v61, %v1216_v53  ;;  %v14802_v17 = vld [vmem:[#allocation34_spill] sm:$0xff] }
 0x448   :  { %v9993_v60 = vadd.f32 %v1881_v30, %v1217_v44  ;;  %v1883_v50 = vpop.f32.mrb[59].mxu1  ;;  %2455 = vmax.xlane.f32.xlu0 %v2454_v12  ;;  %v2457_v30 = vmax.f32 %v9989_v47, %v9991_v2  ;;  %14799 = vst [vmem:[#allocation28_spill] sm:$0xff] %v10007_v27 }
 0x449   :  { %v9997_v31 = vadd.f32 %v1883_v50, %v1218_v21  ;;  %14800 = vst [vmem:[#allocation47_spill] sm:$0xff] %v10009_v14  ;;  %v2460_v44 = vmax.f32 %v10007_v27, %v10009_v14 }
 0x44a   :  { %14796 = vst [vmem:[#allocation45_spill] sm:$0xff] %v9993_v60  ;;  %6999 = vmatmul.mubr.msk.bf16.gmra.mrb[164].mxu1 %vm96_vm0, %v14791_v58  ;;  %2452 = vmax.xlane.f32.xlu1 %v2451_v9 }
 0x44b   :  { %14797 = vst [vmem:[#allocation46_spill] sm:$0xff] %v9997_v31  ;;  %v2463_v10 = vmax.f32 %v9993_v60, %v9997_v31  ;;  %7000 = vmatprep.mubr.msk.bf16.mxu1 %vm96_vm0, %v14798_v22  ;;  %v14804_v31 = vld [vmem:[#allocation31_spill] sm:$0xff] }
 0x44d   :  { %v10011_v4 = vpop.f32.mrb[60].mxu1  ;;  %2464 = vmax.xlane.f32.xlu0 %v2463_v10 }
 0x44e   :  { %v10013_v21 = vpop.f32.mrb[61].mxu1  ;;  %2458 = vmax.xlane.f32.xlu1 %v2457_v30 }
 0x44f   :  { %v10015_v58 = vpop.f32.mrb[62].mxu1 }
 0x450   :  { %v10019_v12 = vpop.f32.mrb[63].mxu1 }
 0x452   :  { %7001 = vmatmul.mubr.msk.bf16.gmra.mrb[168].mxu1 %vm96_vm0, %v14798_v22  ;;  %2461 = vmax.xlane.f32.xlu1 %v2460_v44 }
 0x453   :  { %7002 = vmatprep.mubr.msk.bf16.mxu1 %vm96_vm0, %v14801_v7 }
 0x455   :  { %v10025_v53 = vpop.f32.mrb[64].mxu1 }
 0x456   :  { %v10027_v61 = vpop.f32.mrb[65].mxu1 }
 0x457   :  { %v10029_v50 = vpop.f32.mrb[66].mxu1 }
 0x458   :  { %v10031_v9 = vpop.f32.mrb[67].mxu1 }
 0x45a   :  { %7003 = vmatmul.mubr.msk.bf16.gmra.mrb[172].mxu1 %vm96_vm0, %v14801_v7 }
 0x45b   :  { %7004 = vmatprep.mubr.msk.bf16.mxu1 %vm96_vm0, %v14802_v17 }
 0x45d   :  { %v10037_v10 = vpop.f32.mrb[68].mxu1 }
 0x45e   :  { %v10039_v22 = vpop.f32.mrb[69].mxu1 }
 0x45f   :  { %v10041_v30 = vpop.f32.mrb[70].mxu1 }
 0x460   :  { %v10043_v44 = vpop.f32.mrb[71].mxu1 }
 0x461   :  { %14803 = vst [vmem:[#allocation26_spill] sm:$0xff] %v10043_v44 }
 0x462   :  { %7005 = vmatmul.mubr.msk.bf16.gmra.mrb[176].mxu1 %vm96_vm0, %v14802_v17 }
 0x463   :  { %7006 = vmatprep.mubr.msk.bf16.mxu1 %vm96_vm0, %v14804_v31 }
 0x465   :  { %v10049_v60 = vpop.f32.mrb[72].mxu1 }
 0x466   :  { %v10051_v7 = vpop.f32.mrb[73].mxu1 }
 0x467   :  { %v10053_v2 = vpop.f32.mrb[74].mxu1 }
 0x468   :  { %14805 = vst [vmem:[#allocation34_spill] sm:$0xff] %v10053_v2  ;;  %v10055_v47 = vpop.f32.mrb[75].mxu1  ;;  %v2378_v20 = vpop.xlane.xlu0 %2377 }
 0x469   :  { %14806 = vst [vmem:[#allocation31_spill] sm:$0xff] %v10055_v47  ;;  %v2760_v57 = vsub.f32 %v9715_v62, %v2378_v20  ;;  %v2761_v14 = vsub.f32 %v9717_v18, %v2378_v20 }
 0x46a   :  { %7007 = vmatmul.mubr.msk.bf16.gmra.mrb[180].mxu1 %vm96_vm0, %v14804_v31  ;;  %v2381_v17 = vpop.xlane.xlu1 %2380 }
 0x46b   :  { %v3016_v27 = vmul.f32 1.442695, %v2760_v57  ;;  %v3018_v45 = vmul.f32 1.442695, %v2761_v14  ;;  %v2762_v54 = vsub.f32 %v9719_v19, %v2381_v17  ;;  %7008 = vmatprep.mubr.msk.bf16.mxu1 %vm96_vm0, %v9556_v28  ;;  %v2763_v2 = vsub.f32 %v9723_v29, %v2381_v17 }
 0x46d   :  { %7327 = vpow2.f32 %v3016_v27  ;;  %v3020_v47 = vmul.f32 1.442695, %v2762_v54  ;;  %v10065_v44 = vpop.f32.mrb[76].mxu1  ;;  %v3022_v62 = vmul.f32 1.442695, %v2763_v2 }
 0x46e   :  { %7329 = vpow2.f32 %v3018_v45  ;;  %v10067_v18 = vpop.f32.mrb[77].mxu1 }
 0x46f   :  { %7331 = vpow2.f32 %v3020_v47  ;;  %v10069_v31 = vpop.f32.mrb[78].mxu1 }
 0x470   :  { %7333 = vpow2.f32 %v3022_v62  ;;  %v10071_v57 = vpop.f32.mrb[79].mxu1  ;;  %v2384_v19 = vpop.xlane.xlu0 %2383 }
 0x471   :  { %14807 = vst [vmem:[#allocation48_spill] sm:$0xff] %v10071_v57  ;;  %v2764_v20 = vsub.f32 %v9731_v55, %v2384_v19  ;;  %v2765_v14 = vsub.f32 %v9733_v11, %v2384_v19 }
 0x472   :  { %7009 = vmatmul.mubr.msk.bf16.gmra.mrb[184].mxu1 %vm96_vm0, %v9556_v28 }
 0x473   :  { %v3024_v29 = vmul.f32 1.442695, %v2764_v20  ;;  %v3026_v54 = vmul.f32 1.442695, %v2765_v14  ;;  %7010 = vmatprep.mubr.msk.bf16.mxu1 %vm96_vm0, %v9545_v26 }
 0x474   :  { %v2387_v45 = vpop.xlane.xlu0 %2386 }
 0x475   :  { %7335 = vpow2.f32 %v3024_v29  ;;  %v2766_v47 = vsub.f32 %v9737_v38, %v2387_v45  ;;  %v2767_v2 = vsub.f32 %v9739_v24, %v2387_v45  ;;  %v10081_v27 = vpop.f32.mrb[80].mxu1 }
 0x476   :  { %7337 = vpow2.f32 %v3026_v54  ;;  %v10083_v55 = vpop.f32.mrb[81].mxu1  ;;  %v14814_v54 = vld [vmem:[#allocation7_spill] sm:$0xff] }
 0x477   :  { %v10085_v11 = vpop.eup %7327  ;;  %v3028_v17 = vmul.f32 1.442695, %v2766_v47  ;;  %v3030_v28 = vmul.f32 1.442695, %v2767_v2  ;;  %v10087_v62 = vpop.f32.mrb[82].mxu1 }
 0x478   :  { %14808 = vst [vmem:[#allocation49_spill] sm:$0xff] %v10085_v11  ;;  %14809 = vst [vmem:[#allocation50_spill] sm:$0xff] %v10087_v62  ;;  %v10089_v19 = vpop.eup %7329  ;;  %v10091_v20 = vpop.f32.mrb[83].mxu1 }
 0x479   :  { %14810 = vst [vmem:[#allocation51_spill] sm:$0xff] %v10089_v19  ;;  %14811 = vst [vmem:[#allocation52_spill] sm:$0xff] %v10091_v20  ;;  %v4451_v14 = vpop.permute.xlu0 %4450  ;;  %v10093_v29 = vpop.eup %7331  ;;  %7339 = vpow2.f32 %v3028_v17  ;;  %v3528_v38 = vadd.f32 %v10089_v19, %v10085_v11 }
 0x47a   :  { %14812 = vst [vmem:[#allocation53_spill] sm:$0xff] %v10093_v29  ;;  %4499 = vmatpush1.bf16.msra.mxu0 %v4451_v14  ;;  %v10097_v24 = vpop.eup %7333  ;;  %7341 = vpow2.f32 %v3030_v28  ;;  %7011 = vmatmul.mubr.msk.bf16.gmra.mrb[188].mxu1 %vm96_vm0, %v9545_v26  ;;  %v10108_v2 = vpop.xlane.xlu1 %2392 }
 0x47b   :  { %14813 = vst [vmem:[#allocation54_spill] sm:$0xff] %v10097_v24  ;;  %4500 = vmatprep.subr.bf16.mxu0 %v14761_v8  ;;  %3529 = vadd.xlane.f32.xlu1 %v3528_v38  ;;  %v3531_v47 = vadd.f32 %v10097_v24, %v10093_v29 }
 0x47c   :  { %7012 = vmatprep.mubr.msk.bf16.mxu1 %vm96_vm0, %v14814_v54 }
 0x47d   :  { %v10104_v45 = vpop.f32.mrb[84].mxu1 }
 0x47e   :  { %v10110_v17 = vpop.f32.mrb[85].mxu1 }
 0x47f   :  { %v10112_v14 = vpop.eup %7335  ;;  %3532 = vadd.xlane.f32.xlu1 %v3531_v47  ;;  %v10114_v28 = vpop.f32.mrb[86].mxu1  ;;  %v14820_v47 = vld [vmem:[#allocation8_spill] sm:$0xff] }
 0x480   :  { %14815 = vst [vmem:[#allocation7_spill] sm:$0xff] %v10112_v14  ;;  %14816 = vst [vmem:[#allocation55_spill] sm:$0xff] %v10114_v28  ;;  %v10116_v26 = vpop.eup %7337  ;;  %v10118_v38 = vpop.f32.mrb[87].mxu1 }
 0x481   :  { %14817 = vst [vmem:[#allocation56_spill] sm:$0xff] %v10116_v26  ;;  %14818 = vst [vmem:[#allocation57_spill] sm:$0xff] %v10118_v38  ;;  %v3534_v11 = vadd.f32 %v10116_v26, %v10112_v14 }
 0x482   :  { %7013 = vmatmul.mubr.msk.bf16.gmra.mrb[192].mxu1 %vm96_vm0, %v14814_v54  ;;  %v2399_v29 = vpop.xlane.xlu1 %2398 }
 0x483   :  { %v10124_v24 = vpop.eup %7339  ;;  %v2774_v19 = vsub.f32 %v9757_v13, %v2399_v29  ;;  %v2775_v20 = vsub.f32 %v9759_v5, %v2399_v29  ;;  %3535 = vadd.xlane.f32.xlu1 %v3534_v11  ;;  %7014 = vmatprep.mubr.msk.bf16.mxu1 %vm96_vm0, %v14820_v47  ;;  %v14824_v11 = vld [vmem:[#allocation11_spill] sm:$0xff] }
 0x484   :  { %14819 = vst [vmem:[#allocation58_spill] sm:$0xff] %v10124_v24  ;;  %v10130_v28 = vpop.eup %7341 }
 0x485   :  { %14821 = vst [vmem:[#allocation8_spill] sm:$0xff] %v10130_v28  ;;  %v3044_v38 = vmul.f32 1.442695, %v2774_v19  ;;  %v3046_v62 = vmul.f32 1.442695, %v2775_v20  ;;  %v10132_v57 = vpop.f32.mrb[88].mxu1  ;;  %v3537_v54 = vadd.f32 %v10130_v28, %v10124_v24 }
 0x486   :  { %v10136_v14 = vpop.f32.mrb[89].mxu1  ;;  %v4453_v26 = vpop.permute.xlu1 %4452 }
 0x487   :  { %7343 = vpow2.f32 %v3044_v38  ;;  %3538 = vadd.xlane.f32.xlu1 %v3537_v54  ;;  %v10138_v13 = vpop.f32.mrb[90].mxu1  ;;  %4501 = vmatpush1.bf16.msra.mxu0 %v4453_v26 }
 0x488   :  { %14822 = vst [vmem:[#allocation59_spill] sm:$0xff] %v10138_v13  ;;  %7345 = vpow2.f32 %v3046_v62  ;;  %v10140_v5 = vpop.f32.mrb[91].mxu1  ;;  %4502 = vmatprep.subr.bf16.mxu0 %v14761_v8  ;;  %v14829_v8 = vld [vmem:[#allocation12_spill] sm:$0xff] }
 0x489   :  { %14823 = vst [vmem:[#allocation60_spill] sm:$0xff] %v10140_v5 }
 0x48a   :  { %7015 = vmatmul.mubr.msk.bf16.gmra.mrb[196].mxu1 %vm96_vm0, %v14820_v47 }
 0x48b   :  { %7016 = vmatprep.mubr.msk.bf16.mxu1 %vm96_vm0, %v14824_v11 }
 0x48d   :  { %v10147_v19 = vpop.f32.mrb[92].mxu1 }
 0x48e   :  { %v10149_v20 = vpop.f32.mrb[93].mxu1 }
 0x48f   :  { %v10151_v29 = vpop.f32.mrb[94].mxu1 }
 0x490   :  { %14825 = vst [vmem:[#allocation11_spill] sm:$0xff] %v10151_v29  ;;  %v10153_v38 = vpop.f32.mrb[95].mxu1  ;;  %v14833_v29 = vld [vmem:[#allocation15_spill] sm:$0xff] }
 0x491   :  { %14826 = vst [vmem:[#allocation61_spill] sm:$0xff] %v10153_v38  ;;  %v10155_v26 = vpop.eup %7343 }
 0x492   :  { %14827 = vst [vmem:[#allocation62_spill] sm:$0xff] %v10155_v26  ;;  %v10157_v62 = vpop.eup %7345  ;;  %7017 = vmatmul.mubr.msk.bf16.gmra.mrb[200].mxu1 %vm96_vm0, %v14824_v11 }
 0x493   :  { %14828 = vst [vmem:[#allocation63_spill] sm:$0xff] %v10157_v62  ;;  %7018 = vmatprep.mubr.msk.bf16.mxu1 %vm96_vm0, %v14829_v8  ;;  %v3549_v47 = vadd.f32 %v10157_v62, %v10155_v26  ;;  %v14838_v62 = vld [vmem:[#allocation16_spill] sm:$0xff] }
 0x495   :  { %3550 = vadd.xlane.f32.xlu0 %v3549_v47  ;;  %v10165_v54 = vpop.f32.mrb[96].mxu1 }
 0x496   :  { %v10167_v24 = vpop.f32.mrb[97].mxu1 }
 0x497   :  { %14830 = vst [vmem:[#allocation12_spill] sm:$0xff] %v10167_v24  ;;  %v10169_v28 = vpop.f32.mrb[98].mxu1 }
 0x498   :  { %14831 = vst [vmem:[#allocation64_spill] sm:$0xff] %v10169_v28  ;;  %v10171_v38 = vpop.f32.mrb[99].mxu1 }
 0x499   :  { %14832 = vst [vmem:[#allocation65_spill] sm:$0xff] %v10171_v38 }
 0x49a   :  { %7019 = vmatmul.mubr.msk.bf16.gmra.mrb[204].mxu1 %vm96_vm0, %v14829_v8 }
 0x49b   :  { %7020 = vmatprep.mubr.msk.bf16.mxu1 %vm96_vm0, %v14833_v29 }
 0x49d   :  { %v10177_v11 = vpop.f32.mrb[100].mxu1 }
 0x49e   :  { %14834 = vst [vmem:[#allocation15_spill] sm:$0xff] %v10177_v11  ;;  %v10179_v5 = vpop.f32.mrb[101].mxu1 }
 0x49f   :  { %14835 = vst [vmem:[#allocation66_spill] sm:$0xff] %v10179_v5  ;;  %v10181_v26 = vpop.f32.mrb[102].mxu1  ;;  %v2770_v5 = vsub.f32 %v9747_v32, %v10108_v2 }
 0x4a0   :  { %14836 = vst [vmem:[#allocation67_spill] sm:$0xff] %v10181_v26  ;;  %v10183_v47 = vpop.f32.mrb[103].mxu1 }
 0x4a1   :  { %14837 = vst [vmem:[#allocation68_spill] sm:$0xff] %v10183_v47  ;;  %v2771_v47 = vsub.f32 %v9749_v3, %v10108_v2  ;;  %v3036_v32 = vmul.f32 1.442695, %v2770_v5 }
 0x4a2   :  { %7021 = vmatmul.mubr.msk.bf16.gmra.mrb[208].mxu1 %vm96_vm0, %v14833_v29 }
 0x4a3   :  { %7022 = vmatprep.mubr.msk.bf16.mxu1 %vm96_vm0, %v14838_v62  ;;  %v3038_v3 = vmul.f32 1.442695, %v2771_v47 }
 0x4a5   :  { %v10189_v38 = vpop.f32.mrb[104].mxu1 }
 0x4a6   :  { %14839 = vst [vmem:[#allocation16_spill] sm:$0xff] %v10189_v38  ;;  %v10191_v8 = vpop.f32.mrb[105].mxu1 }
 0x4a7   :  { %14840 = vst [vmem:[#allocation69_spill] sm:$0xff] %v10191_v8  ;;  %v10193_v28 = vpop.f32.mrb[106].mxu1 }
 0x4a8   :  { %14841 = vst [vmem:[#allocation70_spill] sm:$0xff] %v10193_v28  ;;  %v10195_v13 = vpop.f32.mrb[107].mxu1  ;;  %v14843_v28 = vld [vmem:[#allocation19_spill] sm:$0xff] }
 0x4a9   :  { %14842 = vst [vmem:[#allocation71_spill] sm:$0xff] %v10195_v13  ;;  %v2390_v26 = vpop.xlane.xlu0 %2389 }
 0x4aa   :  { %v2768_v29 = vsub.f32 %v9805_v51, %v2390_v26  ;;  %v2769_v11 = vsub.f32 %v9807_v63, %v2390_v26  ;;  %7023 = vmatmul.mubr.msk.bf16.gmra.mrb[212].mxu1 %vm96_vm0, %v14838_v62 }
 0x4ab   :  { %4454 = vrot.lane.b32.xlu0 %v9525_v48, %s8348_s18  ;;  %7024 = vmatprep.mubr.msk.bf16.mxu1 %vm96_vm0, %v14843_v28 }
 0x4ac   :  { %v3032_v13 = vmul.f32 1.442695, %v2768_v29  ;;  %v3034_v8 = vmul.f32 1.442695, %v2769_v11 }
 0x4ad   :  { %v10209_v38 = vpop.f32.mrb[108].mxu1  ;;  %v2396_v24 = vpop.xlane.xlu0 %2395 }
 0x4ae   :  { %14844 = vst [vmem:[#allocation19_spill] sm:$0xff] %v10209_v38  ;;  %7347 = vpow2.f32 %v3032_v13  ;;  %v2772_v51 = vsub.f32 %v9815_v6, %v2396_v24  ;;  %v2773_v63 = vsub.f32 %v9817_v36, %v2396_v24  ;;  %v10213_v2 = vpop.f32.mrb[109].mxu1  ;;  %v14848_v13 = vld [vmem:[#allocation20_spill] sm:$0xff] }
 0x4af   :  { %14845 = vst [vmem:[#allocation72_spill] sm:$0xff] %v10213_v2  ;;  %7349 = vpow2.f32 %v3034_v8  ;;  %v10215_v26 = vpop.f32.mrb[110].mxu1 }
 0x4b0   :  { %14846 = vst [vmem:[#allocation73_spill] sm:$0xff] %v10215_v26  ;;  %v10217_v48 = vpop.f32.mrb[111].mxu1  ;;  %7351 = vpow2.f32 %v3036_v32  ;;  %v3040_v62 = vmul.f32 1.442695, %v2772_v51  ;;  %v3042_v5 = vmul.f32 1.442695, %v2773_v63 }
 0x4b1   :  { %14847 = vst [vmem:[#allocation74_spill] sm:$0xff] %v10217_v48  ;;  %v10219_v11 = vpop.xlane.xlu0 %2401  ;;  %7353 = vpow2.f32 %v3038_v3 }
 0x4b2   :  { %7025 = vmatmul.mubr.msk.bf16.gmra.mrb[216].mxu1 %vm96_vm0, %v14843_v28  ;;  %7355 = vpow2.f32 %v3040_v62 }
 0x4b3   :  { %7026 = vmatprep.mubr.msk.bf16.mxu1 %vm96_vm0, %v14848_v13  ;;  %7357 = vpow2.f32 %v3042_v5  ;;  %v14856_v5 = vld [vmem:[#allocation23_spill] sm:$0xff] }
 0x4b5   :  { %v10225_v6 = vpop.f32.mrb[112].mxu1  ;;  %v10227_v36 = vpop.xlane.xlu0 %2407 }
 0x4b6   :  { %14849 = vst [vmem:[#allocation20_spill] sm:$0xff] %v10225_v6  ;;  %v10229_v24 = vpop.f32.mrb[113].mxu1 }
 0x4b7   :  { %14850 = vst [vmem:[#allocation75_spill] sm:$0xff] %v10229_v24  ;;  %v10231_v47 = vpop.f32.mrb[114].mxu1  ;;  %v10233_v8 = vpop.xlane.xlu1 %2404 }
 0x4b8   :  { %14851 = vst [vmem:[#allocation76_spill] sm:$0xff] %v10231_v47  ;;  %v10235_v29 = vpop.eup %7347  ;;  %v10237_v32 = vpop.f32.mrb[115].mxu1 }
 0x4b9   :  { %14852 = vst [vmem:[#allocation77_spill] sm:$0xff] %v10235_v29  ;;  %14853 = vst [vmem:[#allocation78_spill] sm:$0xff] %v10237_v32  ;;  %v10239_v28 = vpop.eup %7349  ;;  %v2414_v3 = vpop.xlane.xlu0 %2413 }
 0x4ba   :  { %14854 = vst [vmem:[#allocation79_spill] sm:$0xff] %v10239_v28  ;;  %v2784_v51 = vsub.f32 %v9851_v40, %v2414_v3  ;;  %v2785_v63 = vsub.f32 %v9853_v46, %v2414_v3  ;;  %7027 = vmatmul.mubr.msk.bf16.gmra.mrb[220].mxu1 %vm96_vm0, %v14848_v13  ;;  %v10245_v62 = vpop.eup %7351  ;;  %v3540_v32 = vadd.f32 %v10239_v28, %v10235_v29 }
 0x4bb   :  { %14855 = vst [vmem:[#allocation80_spill] sm:$0xff] %v10245_v62  ;;  %7028 = vmatprep.mubr.msk.bf16.mxu1 %vm96_vm0, %v14856_v5  ;;  %v10249_v47 = vpop.xlane.xlu1 %2410  ;;  %v10253_v24 = vpop.eup %7353 }
 0x4bc   :  { %14857 = vst [vmem:[#allocation23_spill] sm:$0xff] %v10253_v24  ;;  %v3064_v6 = vmul.f32 1.442695, %v2784_v51  ;;  %v3066_v48 = vmul.f32 1.442695, %v2785_v63  ;;  %3541 = vadd.xlane.f32.xlu1 %v3540_v32  ;;  %v10260_v26 = vpop.eup %7355  ;;  %v3543_v32 = vadd.f32 %v10253_v24, %v10245_v62  ;;  %v1219_v63 = vld [vmem:[#allocation2 + $0x1e0] sm:$0xff] }
 0x4bd   :  { %v10255_v40 = vpop.f32.mrb[116].mxu1  ;;  %v2420_v46 = vpop.xlane.xlu0 %2419  ;;  %v14862_v24 = vld [vmem:[#allocation24_spill] sm:$0xff] }
 0x4be   :  { %14858 = vst [vmem:[#allocation81_spill] sm:$0xff] %v10255_v40  ;;  %7359 = vpow2.f32 %v3064_v6  ;;  %v2788_v13 = vsub.f32 %v9868_v35, %v2420_v46  ;;  %v10258_v3 = vpop.f32.mrb[117].mxu1  ;;  %v2789_v2 = vsub.f32 %v9871_v33, %v2420_v46  ;;  %v10269_v51 = vpop.eup %7357  ;;  %v1220_v6 = vld [vmem:[#allocation2 + $0x1e8] sm:$0xff]  ;;  %v1221_v35 = vld [vmem:[#allocation2 + $0x1f0] sm:$0xff]  ;;  %v2777_v33 = vsub.f32 %v9829_v42, %v10219_v11 }
 0x4bf   :  { %14859 = vst [vmem:[#allocation82_spill] sm:$0xff] %v10258_v3  ;;  %7361 = vpow2.f32 %v3066_v48  ;;  %v10263_v38 = vpop.f32.mrb[118].mxu1  ;;  %v10265_v29 = vpop.xlane.xlu1 %2416  ;;  %v1222_v3 = vld [vmem:[#allocation2 + $0x1f8] sm:$0xff]  ;;  %v2776_v48 = vsub.f32 %v9827_v41, %v10219_v11  ;;  %v10283_v62 = vadd.f32 %v10013_v21, %v1220_v6  ;;  %v3546_v41 = vadd.f32 %v10269_v51, %v10260_v26 }
 0x4c0   :  { %14860 = vst [vmem:[#allocation83_spill] sm:$0xff] %v10263_v38  ;;  %v10271_v40 = vpop.f32.mrb[119].mxu1  ;;  %3544 = vadd.xlane.f32.xlu1 %v3543_v32  ;;  %v3072_v46 = vmul.f32 1.442695, %v2788_v13  ;;  %v10280_v38 = vadd.f32 %v10011_v4, %v1219_v63  ;;  %v10292_v42 = vadd.f32 %v10015_v58, %v1221_v35  ;;  %v10295_v11 = vadd.f32 %v10019_v12, %v1222_v3  ;;  %v1223_v4 = vld [vmem:[#allocation2 + $0x200] sm:$0xff]  ;;  %v1226_v35 = vld [vmem:[#allocation2 + $0x218] sm:$0xff] }
 0x4c1   :  { %14861 = vst [vmem:[#allocation84_spill] sm:$0xff] %v10271_v40  ;;  %v3074_v40 = vmul.f32 1.442695, %v2789_v2  ;;  %v2778_v21 = vsub.f32 %v9845_v56, %v10233_v8  ;;  %v1225_v2 = vld [vmem:[#allocation2 + $0x210] sm:$0xff]  ;;  %v3048_v13 = vmul.f32 1.442695, %v2776_v48  ;;  %v2779_v32 = vsub.f32 %v9847_v16, %v10233_v8 }
 0x4c2   :  { %7029 = vmatmul.mubr.msk.bf16.gmra.mrb[224].mxu1 %vm96_vm0, %v14856_v5  ;;  %v1224_v5 = vld [vmem:[#allocation2 + $0x208] sm:$0xff]  ;;  %v3050_v6 = vmul.f32 1.442695, %v2777_v33  ;;  %7363 = vpow2.f32 %v3072_v46  ;;  %v2466_v12 = vmax.f32 %v10280_v38, %v10283_v62  ;;  %v10308_v3 = vadd.f32 %v10025_v53, %v1223_v4 }
 0x4c3   :  { %7030 = vmatprep.mubr.msk.bf16.mxu1 %vm96_vm0, %v14862_v24  ;;  %v10287_v28 = vpop.xlane.xlu1 %2422  ;;  %v10311_v56 = vadd.f32 %v10027_v61, %v1224_v5  ;;  %7365 = vpow2.f32 %v3074_v40  ;;  %v2469_v33 = vmax.f32 %v10292_v42, %v10295_v11  ;;  %v10320_v46 = vadd.f32 %v10029_v50, %v1225_v2  ;;  %v1232_v40 = vld [vmem:[#allocation2 + $0x248] sm:$0xff] }
 0x4c4   :  { %3547 = vadd.xlane.f32.xlu1 %v3546_v41  ;;  %v1231_v41 = vld [vmem:[#allocation2 + $0x240] sm:$0xff]  ;;  %7367 = vpow2.f32 %v3048_v13  ;;  %v2780_v5 = vsub.f32 %v9835_v23, %v10227_v36  ;;  %v10331_v50 = vadd.f32 %v10031_v9, %v1226_v35 }
 0x4c5   :  { %v10301_v63 = vpop.f32.mrb[120].mxu1  ;;  %7369 = vpow2.f32 %v3050_v6  ;;  %v2472_v2 = vmax.f32 %v10308_v3, %v10311_v56  ;;  %v10340_v23 = vadd.f32 %v10049_v60, %v1231_v41  ;;  %v14869_v9 = vld [vmem:[#allocation29_spill] sm:$0xff] }
 0x4c6   :  { %14863 = vst [vmem:[#allocation24_spill] sm:$0xff] %v10301_v63  ;;  %v10303_v58 = vpop.f32.mrb[121].mxu1  ;;  %v1227_v6 = vld [vmem:[#allocation2 + $0x220] sm:$0xff] }
 0x4c7   :  { %14864 = vst [vmem:[#allocation85_spill] sm:$0xff] %v10303_v58  ;;  %v10313_v48 = vpop.f32.mrb[122].mxu1  ;;  %v2426_v16 = vpop.xlane.xlu1 %2425  ;;  %v3052_v58 = vmul.f32 1.442695, %v2778_v21  ;;  %v10363_v41 = vadd.f32 %v10037_v10, %v1227_v6  ;;  %v1236_v10 = vld [vmem:[#allocation2 + $0x268] sm:$0xff] }
 0x4c8   :  { %14865 = vst [vmem:[#allocation86_spill] sm:$0xff] %v10313_v48  ;;  %v10315_v8 = vpop.eup %7359  ;;  %v2792_v53 = vsub.f32 %v9918_v59, %v2426_v16  ;;  %v10323_v4 = vpop.f32.mrb[123].mxu1  ;;  %v3054_v48 = vmul.f32 1.442695, %v2779_v32  ;;  %v2793_v63 = vsub.f32 %v9921_v25, %v2426_v16  ;;  %2467 = vmax.xlane.f32.xlu1 %v2466_v12  ;;  %v2781_v59 = vsub.f32 %v9837_v1, %v10227_v36  ;;  %v1228_v1 = vld [vmem:[#allocation2 + $0x228] sm:$0xff] }
 0x4c9   :  { %14866 = vst [vmem:[#allocation87_spill] sm:$0xff] %v10315_v8  ;;  %14867 = vst [vmem:[#allocation88_spill] sm:$0xff] %v10323_v4  ;;  %v10325_v61 = vpop.eup %7361  ;;  %v10342_v25 = vpop.xlane.xlu0 %2428  ;;  %v10347_v36 = vadd.f32 %v10051_v7, %v1232_v40  ;;  %7371 = vpow2.f32 %v3052_v58  ;;  %v3056_v12 = vmul.f32 1.442695, %v2780_v5 }
 0x4ca   :  { %14868 = vst [vmem:[#allocation89_spill] sm:$0xff] %v10325_v61  ;;  %v3080_v21 = vmul.f32 1.442695, %v2792_v53  ;;  %2470 = vmax.xlane.f32.xlu0 %v2469_v33  ;;  %7031 = vmatmul.mubr.msk.bf16.gmra.mrb[228].mxu1 %vm96_vm0, %v14862_v24  ;;  %v3082_v13 = vmul.f32 1.442695, %v2793_v63  ;;  %v2782_v24 = vsub.f32 %v9860_v0, %v10249_v47  ;;  %v3564_v60 = vadd.f32 %v10325_v61, %v10315_v8  ;;  %v14870_v63 = vld [vmem:[#allocation27_spill] sm:$0xff] }
 0x4cb   :  { %7032 = vmatprep.mubr.msk.bf16.mxu1 %vm96_vm0, %v14869_v9  ;;  %v2432_v32 = vpop.xlane.xlu1 %2431  ;;  %7373 = vpow2.f32 %v3054_v48  ;;  %v2783_v35 = vsub.f32 %v14870_v63, %v10249_v47  ;;  %v2475_v33 = vmax.f32 %v10320_v46, %v10331_v50  ;;  %v3058_v7 = vmul.f32 1.442695, %v2781_v59  ;;  %v14895_v8 = vld [vmem:[#allocation36_spill] sm:$0xff] }
 0x4cc   :  { %2473 = vmax.xlane.f32.xlu1 %v2472_v2  ;;  %7375 = vpow2.f32 %v3080_v21  ;;  %v2796_v58 = vsub.f32 %v9932_v49, %v2432_v32  ;;  %v10366_v48 = vadd.f32 %v10039_v22, %v1228_v1  ;;  %v2797_v47 = vsub.f32 %v9935_v43, %v2432_v32  ;;  %v10371_v40 = vpop.eup %7363  ;;  %v1235_v49 = vld [vmem:[#allocation2 + $0x260] sm:$0xff] }
 0x4cd   :  { %v10355_v16 = vpop.f32.mrb[124].mxu1  ;;  %7377 = vpow2.f32 %v3082_v13  ;;  %14874 = vst [vmem:[#allocation91_spill] sm:$0xff] %v10371_v40  ;;  %v2484_v5 = vmax.f32 %v10340_v23, %v10347_v36  ;;  %v3060_v59 = vmul.f32 1.442695, %v2782_v24  ;;  %v10377_v2 = vpop.eup %7365  ;;  %v3062_v22 = vmul.f32 1.442695, %v2783_v35 }
 0x4ce   :  { %14871 = vst [vmem:[#allocation29_spill] sm:$0xff] %v10355_v16  ;;  %3565 = vadd.xlane.f32.xlu0 %v3564_v60  ;;  %v10360_v0 = vpop.f32.mrb[125].mxu1  ;;  %14876 = vst [vmem:[#allocation93_spill] sm:$0xff] %v10377_v2  ;;  %7379 = vpow2.f32 %v3056_v12  ;;  %v10379_v6 = vpop.xlane.xlu0 %2434  ;;  %v3088_v43 = vmul.f32 1.442695, %v2796_v58  ;;  %v2478_v32 = vmax.f32 %v10363_v41, %v10366_v48  ;;  %v10388_v1 = vadd.f32 %v10065_v44, %v1235_v49  ;;  %v14877_v12 = vld [vmem:[#allocation32_spill] sm:$0xff] }
 0x4cf   :  { %14872 = vst [vmem:[#allocation27_spill] sm:$0xff] %v10360_v0  ;;  %v10369_v53 = vpop.f32.mrb[126].mxu1  ;;  %7381 = vpow2.f32 %v3058_v7  ;;  %v10383_v13 = vpop.eup %7367  ;;  %v3090_v24 = vmul.f32 1.442695, %v2797_v47  ;;  %v10395_v35 = vadd.f32 %v10067_v18, %v1236_v10  ;;  %v14878_v44 = vld [vmem:[#allocation25_spill] sm:$0xff] }
 0x4d0   :  { %14873 = vst [vmem:[#allocation90_spill] sm:$0xff] %v10369_v53  ;;  %v10375_v21 = vpop.f32.mrb[127].mxu1  ;;  %2476 = vmax.xlane.f32.xlu1 %v2475_v33  ;;  %v2438_v60 = vpop.xlane.xlu1 %2437  ;;  %7383 = vpow2.f32 %v3060_v59  ;;  %v3570_v33 = vadd.f32 %v10377_v2, %v10371_v40  ;;  %v2787_v7 = vsub.f32 %v14878_v44, %v10265_v29 }
 0x4d1   :  { %14875 = vst [vmem:[#allocation92_spill] sm:$0xff] %v10375_v21  ;;  %v10392_v63 = vpop.eup %7369  ;;  %7385 = vpow2.f32 %v3062_v22  ;;  %v2800_v18 = vsub.f32 %v9950_v15, %v2438_v60  ;;  %v2801_v59 = vsub.f32 %v9953_v39, %v2438_v60  ;;  %v2490_v15 = vmax.f32 %v10388_v1, %v10395_v35  ;;  %v1240_v21 = vld [vmem:[#allocation2 + $0x288] sm:$0xff] }
 0x4d2   :  { %2485 = vmax.xlane.f32.xlu0 %v2484_v5  ;;  %7033 = vmatmul.mubr.msk.bf16.gmra.mrb[232].mxu1 %vm96_vm0, %v14869_v9  ;;  %v2786_v9 = vsub.f32 %v9880_v34, %v10265_v29  ;;  %7387 = vpow2.f32 %v3088_v43  ;;  %v10412_v34 = vpop.xlane.xlu0 %2440  ;;  %v3552_v29 = vadd.f32 %v10392_v63, %v10383_v13  ;;  %v1239_v43 = vld [vmem:[#allocation2 + $0x280] sm:$0xff] }
 0x4d3   :  { %7034 = vmatprep.mubr.msk.bf16.mxu1 %vm96_vm0, %v14877_v12  ;;  %v10405_v47 = vpop.eup %7371  ;;  %7389 = vpow2.f32 %v3090_v24  ;;  %v3070_v24 = vmul.f32 1.442695, %v2787_v7  ;;  %v3096_v39 = vmul.f32 1.442695, %v2800_v18  ;;  %v3098_v53 = vmul.f32 1.442695, %v2801_v59 }
 0x4d4   :  { %2479 = vmax.xlane.f32.xlu1 %v2478_v32  ;;  %v3068_v32 = vmul.f32 1.442695, %v2786_v9  ;;  %v2444_v40 = vpop.xlane.xlu1 %2443  ;;  %v14885_v9 = vld [vmem:[#allocation35_spill] sm:$0xff]  ;;  %v10441_v18 = vadd.f32 %v10083_v55, %v1240_v21  ;;  %v14886_v59 = vld [vmem:[#allocation6_spill] sm:$0xff] }
 0x4d5   :  { %v10403_v58 = vpop.f32.mrb[128].mxu1  ;;  %v10410_v49 = vpop.eup %7373  ;;  %v2804_v55 = vsub.f32 %v9964_v52, %v2444_v40 }
 0x4d6   :  { %14879 = vst [vmem:[#allocation32_spill] sm:$0xff] %v10403_v58  ;;  %3571 = vadd.xlane.f32.xlu0 %v3570_v33  ;;  %v10408_v5 = vpop.f32.mrb[129].mxu1  ;;  %v10419_v22 = vpop.eup %7375  ;;  %7391 = vpow2.f32 %v3068_v32  ;;  %v1229_v32 = vld [vmem:[#allocation2 + $0x230] sm:$0xff] }
 0x4d7   :  { %14880 = vst [vmem:[#allocation25_spill] sm:$0xff] %v10408_v5  ;;  %v10415_v10 = vpop.f32.mrb[130].mxu1  ;;  %14882 = vst [vmem:[#allocation95_spill] sm:$0xff] %v10419_v22  ;;  %v10425_v44 = vpop.eup %7377  ;;  %7393 = vpow2.f32 %v3070_v24  ;;  %v14889_v24 = vld [vmem:[#allocation39_spill] sm:$0xff] }
 0x4d8   :  { %14881 = vst [vmem:[#allocation94_spill] sm:$0xff] %v10415_v10  ;;  %v10423_v33 = vpop.f32.mrb[131].mxu1  ;;  %14884 = vst [vmem:[#allocation97_spill] sm:$0xff] %v10425_v44  ;;  %3553 = vadd.xlane.f32.xlu1 %v3552_v29  ;;  %v10429_v60 = vpop.eup %7379  ;;  %v10432_v10 = vadd.f32 %v10081_v27, %v1239_v43  ;;  %v3576_v27 = vadd.f32 %v10425_v44, %v10419_v22  ;;  %v2791_v29 = vsub.f32 %v14886_v59, %v10287_v28  ;;  %v1230_v44 = vld [vmem:[#allocation2 + $0x238] sm:$0xff] }
 0x4d9   :  { %14883 = vst [vmem:[#allocation96_spill] sm:$0xff] %v10423_v33  ;;  %v3555_v33 = vadd.f32 %v10410_v49, %v10405_v47  ;;  %v10438_v7 = vpop.eup %7381  ;;  %7395 = vpow2.f32 %v3096_v39  ;;  %v2805_v22 = vsub.f32 %v14889_v24, %v2444_v40  ;;  %v1243_v39 = vld [vmem:[#allocation2 + $0x2a0] sm:$0xff]  ;;  %v10474_v40 = vadd.f32 %v10041_v30, %v1229_v32 }
 0x4da   :  { %2491 = vmax.xlane.f32.xlu0 %v2490_v15  ;;  %7035 = vmatmul.mubr.msk.bf16.gmra.mrb[236].mxu1 %vm96_vm0, %v14877_v12  ;;  %v2790_v12 = vsub.f32 %v9900_v37, %v10287_v28  ;;  %v10449_v15 = vpop.xlane.xlu0 %2446  ;;  %v10453_v2 = vpop.eup %7383  ;;  %7397 = vpow2.f32 %v3098_v53  ;;  %v2496_v52 = vmax.f32 %v10432_v10, %v10441_v18  ;;  %v1244_v53 = vld [vmem:[#allocation2 + $0x2a8] sm:$0xff]  ;;  %v3078_v4 = vmul.f32 1.442695, %v2791_v29 }
 0x4db   :  { %7036 = vmatprep.mubr.msk.bf16.mxu1 %vm96_vm0, %v14885_v9  ;;  %v10458_v37 = vpop.eup %7385  ;;  %v3104_v24 = vmul.f32 1.442695, %v2804_v55  ;;  %v3106_v58 = vmul.f32 1.442695, %v2805_v22  ;;  %v10489_v29 = vadd.f32 %v10110_v17, %v1244_v53  ;;  %v14897_v55 = vld [vmem:[#allocation33_spill] sm:$0xff]  ;;  %v1233_v53 = vld [vmem:[#allocation2 + $0x250] sm:$0xff] }
 0x4dc   :  { %3556 = vadd.xlane.f32.xlu1 %v3555_v33  ;;  %v3558_v33 = vadd.f32 %v10438_v7, %v10429_v60  ;;  %v10465_v59 = vpop.eup %7387  ;;  %v3561_v30 = vadd.f32 %v10458_v37, %v10453_v2 }
 0x4dd   :  { %v10451_v43 = vpop.f32.mrb[132].mxu1  ;;  %14891 = vst [vmem:[#allocation98_spill] sm:$0xff] %v10465_v59 }
 0x4de   :  { %14887 = vst [vmem:[#allocation35_spill] sm:$0xff] %v10451_v43  ;;  %3577 = vadd.xlane.f32.xlu0 %v3576_v27  ;;  %v10456_v21 = vpop.f32.mrb[133].mxu1  ;;  %v3076_v27 = vmul.f32 1.442695, %v2790_v12  ;;  %v10471_v43 = vpop.eup %7389  ;;  %v10482_v12 = vadd.f32 %v10104_v45, %v1243_v39  ;;  %v14898_v45 = vld [vmem:[#allocation30_spill] sm:$0xff] }
 0x4df   :  { %14888 = vst [vmem:[#allocation6_spill] sm:$0xff] %v10456_v21  ;;  %v10461_v28 = vpop.f32.mrb[134].mxu1  ;;  %14893 = vst [vmem:[#allocation100_spill] sm:$0xff] %v10471_v43  ;;  %v2795_v32 = vsub.f32 %v14898_v45, %v10342_v25 }
 0x4e0   :  { %14890 = vst [vmem:[#allocation39_spill] sm:$0xff] %v10461_v28  ;;  %v10469_v21 = vpop.f32.mrb[135].mxu1  ;;  %3559 = vadd.xlane.f32.xlu1 %v3558_v33  ;;  %v14894_v28 = vld [vmem:[#allocation26_spill] sm:$0xff]  ;;  %7399 = vpow2.f32 %v3076_v27  ;;  %v14901_v33 = vld [vmem:[#allocation17_spill] sm:$0xff] }
 0x4e1   :  { %14892 = vst [vmem:[#allocation99_spill] sm:$0xff] %v10469_v21  ;;  %v10479_v5 = vadd.f32 %v14894_v28, %v1230_v44  ;;  %v2450_v21 = vpop.xlane.xlu0 %2449  ;;  %14896 = vst [vmem:[#allocation26_spill] sm:$0xff] %v10489_v29  ;;  %v3582_v44 = vadd.f32 %v10471_v43, %v10465_v59  ;;  %7401 = vpow2.f32 %v3078_v4  ;;  %v10499_v28 = vpop.eup %7391  ;;  %v3086_v61 = vmul.f32 1.442695, %v2795_v32 }
 0x4e2   :  { %2497 = vmax.xlane.f32.xlu0 %v2496_v52  ;;  %7037 = vmatmul.mubr.msk.bf16.gmra.mrb[240].mxu1 %vm96_vm0, %v14885_v9  ;;  %v2794_v9 = vsub.f32 %v14897_v55, %v10342_v25  ;;  %14900 = vst [vmem:[#allocation33_spill] sm:$0xff] %v10499_v28  ;;  %v2808_v52 = vsub.f32 %v14901_v33, %v2450_v21  ;;  %7403 = vpow2.f32 %v3104_v24  ;;  %v10504_v39 = vpop.eup %7393  ;;  %v14904_v55 = vld [vmem:[#allocation22_spill] sm:$0xff]  ;;  %v10509_v4 = vpop.xlane.xlu1 %2452  ;;  %v1234_v33 = vld [vmem:[#allocation2 + $0x258] sm:$0xff] }
 0x4e3   :  { %7038 = vmatprep.mubr.msk.bf16.mxu1 %vm96_vm0, %v14895_v8  ;;  %14903 = vst [vmem:[#allocation17_spill] sm:$0xff] %v10504_v39  ;;  %v2481_v27 = vmax.f32 %v10474_v40, %v10479_v5  ;;  %v2809_v25 = vsub.f32 %v14904_v55, %v2450_v21  ;;  %7405 = vpow2.f32 %v3106_v58  ;;  %v10513_v45 = vpop.eup %7395  ;;  %v2502_v24 = vmax.f32 %v10482_v12, %v10489_v29  ;;  %v14909_v58 = vld [vmem:[#allocation34_spill] sm:$0xff]  ;;  %v14911_v29 = vld [vmem:[#allocation37_spill] sm:$0xff] }
 0x4e4   :  { %3562 = vadd.xlane.f32.xlu1 %v3561_v30  ;;  %14906 = vst [vmem:[#allocation101_spill] sm:$0xff] %v10513_v45  ;;  %v3084_v59 = vmul.f32 1.442695, %v2794_v9  ;;  %v10522_v21 = vadd.f32 %v14909_v58, %v1233_v53  ;;  %v3112_v55 = vmul.f32 1.442695, %v2808_v52  ;;  %v3567_v32 = vadd.f32 %v10504_v39, %v10499_v28  ;;  %v1237_v58 = vld [vmem:[#allocation2 + $0x270] sm:$0xff] }
 0x4e5   :  { %v10497_v22 = vpop.f32.mrb[136].mxu1  ;;  %v2456_v16 = vpop.xlane.xlu0 %2455 }
 0x4e6   :  { %14899 = vst [vmem:[#allocation36_spill] sm:$0xff] %v10497_v22  ;;  %3583 = vadd.xlane.f32.xlu0 %v3582_v44  ;;  %v10502_v17 = vpop.f32.mrb[137].mxu1  ;;  %v1247_v44 = vld [vmem:[#allocation2 + $0x2c0] sm:$0xff]  ;;  %v1248_v22 = vld [vmem:[#allocation2 + $0x2c8] sm:$0xff]  ;;  %7407 = vpow2.f32 %v3084_v59 }
 0x4e7   :  { %14902 = vst [vmem:[#allocation30_spill] sm:$0xff] %v10502_v17  ;;  %v10511_v30 = vpop.f32.mrb[138].mxu1  ;;  %v10519_v17 = vpop.eup %7397  ;;  %v10530_v9 = vadd.f32 %v10132_v57, %v1247_v44  ;;  %v10537_v52 = vadd.f32 %v10136_v14, %v1248_v22  ;;  %7409 = vpow2.f32 %v3086_v61  ;;  %v14914_v57 = vld [vmem:[#allocation10_spill] sm:$0xff]  ;;  %v14917_v14 = vld [vmem:[#allocation40_spill] sm:$0xff] }
 0x4e8   :  { %14905 = vst [vmem:[#allocation22_spill] sm:$0xff] %v10511_v30  ;;  %v10517_v43 = vpop.f32.mrb[139].mxu1  ;;  %14908 = vst [vmem:[#allocation103_spill] sm:$0xff] %v10519_v17  ;;  %2482 = vmax.xlane.f32.xlu1 %v2481_v27  ;;  %v14910_v30 = vld [vmem:[#allocation31_spill] sm:$0xff]  ;;  %v3588_v53 = vadd.f32 %v10519_v17, %v10513_v45  ;;  %7411 = vpow2.f32 %v3112_v55  ;;  %v2812_v59 = vsub.f32 %v14917_v14, %v2456_v16  ;;  %v1238_v45 = vld [vmem:[#allocation2 + $0x278] sm:$0xff] }
 0x4e9   :  { %14907 = vst [vmem:[#allocation102_spill] sm:$0xff] %v10517_v43  ;;  %v10527_v0 = vadd.f32 %v14910_v30, %v1234_v33  ;;  %v3114_v43 = vmul.f32 1.442695, %v2809_v25  ;;  %14912 = vst [vmem:[#allocation34_spill] sm:$0xff] %v10537_v52  ;;  %v2799_v25 = vsub.f32 %v14914_v57, %v10379_v6  ;;  %v10545_v30 = vpop.xlane.xlu1 %2458  ;;  %v2508_v55 = vmax.f32 %v10530_v9, %v10537_v52  ;;  %v14926_v52 = vld [vmem:[#allocation38_spill] sm:$0xff] }
 0x4ea   :  { %2503 = vmax.xlane.f32.xlu0 %v2502_v24  ;;  %7039 = vmatmul.mubr.msk.bf16.gmra.mrb[244].mxu1 %vm96_vm0, %v14895_v8  ;;  %v14913_v8 = vld [vmem:[#allocation5_spill] sm:$0xff]  ;;  %v10549_v24 = vpop.eup %7399 }
 0x4eb   :  { %7040 = vmatprep.mubr.msk.bf16.mxu1 %vm96_vm0, %v14911_v29  ;;  %v2798_v27 = vsub.f32 %v14913_v8, %v10379_v6  ;;  %14916 = vst [vmem:[#allocation37_spill] sm:$0xff] %v10549_v24  ;;  %v10554_v44 = vpop.eup %7401  ;;  %v2487_v61 = vmax.f32 %v10522_v21, %v10527_v0  ;;  %7413 = vpow2.f32 %v3114_v43  ;;  %v14920_v6 = vld [vmem:[#allocation41_spill] sm:$0xff]  ;;  %v3094_v28 = vmul.f32 1.442695, %v2799_v25 }
 0x4ec   :  { %3568 = vadd.xlane.f32.xlu1 %v3567_v32  ;;  %14919 = vst [vmem:[#allocation10_spill] sm:$0xff] %v10554_v44  ;;  %v2813_v8 = vsub.f32 %v14920_v6, %v2456_v16  ;;  %v10561_v57 = vpop.eup %7403  ;;  %v10570_v43 = vadd.f32 %v10069_v31, %v1237_v58  ;;  %v3120_v16 = vmul.f32 1.442695, %v2812_v59  ;;  %v14925_v6 = vld [vmem:[#allocation48_spill] sm:$0xff]  ;;  %v3573_v31 = vadd.f32 %v10554_v44, %v10549_v24 }
 0x4ed   :  { %v10547_v33 = vpop.f32.mrb[140].mxu1  ;;  %14922 = vst [vmem:[#allocation41_spill] sm:$0xff] %v10561_v57  ;;  %v3092_v14 = vmul.f32 1.442695, %v2798_v27  ;;  %v2462_v39 = vpop.xlane.xlu1 %2461 }
 0x4ee   :  { %14915 = vst [vmem:[#allocation31_spill] sm:$0xff] %v10547_v33  ;;  %3589 = vadd.xlane.f32.xlu0 %v3588_v53  ;;  %v10552_v22 = vpop.f32.mrb[141].mxu1  ;;  %v1251_v53 = vld [vmem:[#allocation2 + $0x2e0] sm:$0xff]  ;;  %v1252_v33 = vld [vmem:[#allocation2 + $0x2e8] sm:$0xff] }
 0x4ef   :  { %14918 = vst [vmem:[#allocation5_spill] sm:$0xff] %v10552_v22  ;;  %v10559_v32 = vpop.f32.mrb[142].mxu1  ;;  %v10567_v22 = vpop.eup %7405  ;;  %v10578_v27 = vadd.f32 %v10147_v19, %v1251_v53  ;;  %v10585_v25 = vadd.f32 %v10149_v20, %v1252_v33  ;;  %7415 = vpow2.f32 %v3092_v14  ;;  %v14928_v19 = vld [vmem:[#allocation14_spill] sm:$0xff] }
 0x4f0   :  { %14921 = vst [vmem:[#allocation40_spill] sm:$0xff] %v10559_v32  ;;  %v10565_v17 = vpop.f32.mrb[143].mxu1  ;;  %14924 = vst [vmem:[#allocation105_spill] sm:$0xff] %v10567_v22  ;;  %2488 = vmax.xlane.f32.xlu1 %v2487_v61  ;;  %v10575_v32 = vadd.f32 %v14925_v6, %v1238_v45  ;;  %v3594_v45 = vadd.f32 %v10567_v22, %v10561_v57  ;;  %7417 = vpow2.f32 %v3094_v28  ;;  %v14934_v28 = vld [vmem:[#allocation47_spill] sm:$0xff]  ;;  %v1255_v22 = vld [vmem:[#allocation2 + $0x300] sm:$0xff] }
 0x4f1   :  { %14923 = vst [vmem:[#allocation104_spill] sm:$0xff] %v10565_v17  ;;  %v3122_v17 = vmul.f32 1.442695, %v2813_v8  ;;  %v2803_v61 = vsub.f32 %v14928_v19, %v10412_v34  ;;  %v10595_v8 = vpop.eup %7407  ;;  %7419 = vpow2.f32 %v3120_v16  ;;  %v2817_v6 = vsub.f32 %v14934_v28, %v2462_v39  ;;  %v1242_v19 = vld [vmem:[#allocation2 + $0x298] sm:$0xff] }
 0x4f2   :  { %2509 = vmax.xlane.f32.xlu0 %v2508_v55  ;;  %7041 = vmatmul.mubr.msk.bf16.gmra.mrb[248].mxu1 %vm96_vm0, %v14911_v29  ;;  %v14927_v29 = vld [vmem:[#allocation9_spill] sm:$0xff]  ;;  %14930 = vst [vmem:[#allocation38_spill] sm:$0xff] %v10595_v8  ;;  %v14931_v55 = vld [vmem:[#allocation28_spill] sm:$0xff]  ;;  %v10600_v53 = vpop.eup %7409  ;;  %v2493_v14 = vmax.f32 %v10570_v43, %v10575_v32  ;;  %v2514_v16 = vmax.f32 %v10578_v27, %v10585_v25 }
 0x4f3   :  { %7042 = vmatprep.mubr.msk.bf16.mxu1 %vm96_vm0, %v14926_v52  ;;  %v2802_v59 = vsub.f32 %v14927_v29, %v10412_v34  ;;  %v2816_v20 = vsub.f32 %v14931_v55, %v2462_v39  ;;  %14933 = vst [vmem:[#allocation14_spill] sm:$0xff] %v10600_v53  ;;  %7421 = vpow2.f32 %v3122_v17  ;;  %v1241_v29 = vld [vmem:[#allocation2 + $0x290] sm:$0xff]  ;;  %v14939_v39 = vld [vmem:[#allocation50_spill] sm:$0xff]  ;;  %v10626_v44 = vadd.f32 %v10165_v54, %v1255_v22 }
 0x4f4   :  { %3574 = vadd.xlane.f32.xlu1 %v3573_v31  ;;  %v10607_v31 = vpop.eup %7411  ;;  %v10618_v28 = vadd.f32 %v14939_v39, %v1241_v29  ;;  %v1246_v39 = vld [vmem:[#allocation2 + $0x2b8] sm:$0xff] }
 0x4f5   :  { %v10593_v58 = vpop.f32.mrb[144].mxu1  ;;  %14936 = vst [vmem:[#allocation47_spill] sm:$0xff] %v10607_v31  ;;  %v10613_v57 = vpop.eup %7413  ;;  %v3128_v17 = vmul.f32 1.442695, %v2816_v20  ;;  %14941 = vst [vmem:[#allocation50_spill] sm:$0xff] %v10626_v44  ;;  %v14944_v20 = vld [vmem:[#allocation13_spill] sm:$0xff] }
 0x4f6   :  { %14929 = vst [vmem:[#allocation48_spill] sm:$0xff] %v10593_v58  ;;  %3595 = vadd.xlane.f32.xlu0 %v3594_v45  ;;  %v10598_v33 = vpop.f32.mrb[145].mxu1  ;;  %v3100_v45 = vmul.f32 1.442695, %v2802_v59  ;;  %14938 = vst [vmem:[#allocation107_spill] sm:$0xff] %v10613_v57  ;;  %v2806_v29 = vsub.f32 %v14944_v20, %v10449_v15  ;;  %v1260_v20 = vld [vmem:[#allocation2 + $0x328] sm:$0xff] }
 0x4f7   :  { %14932 = vst [vmem:[#allocation9_spill] sm:$0xff] %v10598_v33  ;;  %v10605_v34 = vpop.f32.mrb[146].mxu1  ;;  %v1256_v33 = vld [vmem:[#allocation2 + $0x308] sm:$0xff]  ;;  %v3102_v58 = vmul.f32 1.442695, %v2803_v61  ;;  %v14942_v61 = vld [vmem:[#allocation12_spill] sm:$0xff] }
 0x4f8   :  { %14935 = vst [vmem:[#allocation28_spill] sm:$0xff] %v10605_v34  ;;  %v10611_v55 = vpop.f32.mrb[147].mxu1  ;;  %2494 = vmax.xlane.f32.xlu1 %v2493_v14  ;;  %v14940_v34 = vld [vmem:[#allocation52_spill] sm:$0xff]  ;;  %v3130_v59 = vmul.f32 1.442695, %v2817_v6  ;;  %v10629_v14 = vadd.f32 %v14942_v61, %v1256_v33  ;;  %7423 = vpow2.f32 %v3100_v45 }
 0x4f9   :  { %14937 = vst [vmem:[#allocation106_spill] sm:$0xff] %v10611_v55  ;;  %v10621_v24 = vadd.f32 %v14940_v34, %v1242_v19  ;;  %v3579_v55 = vadd.f32 %v10600_v53, %v10595_v8  ;;  %7425 = vpow2.f32 %v3102_v58  ;;  %v10637_v6 = vpop.eup %7415  ;;  %v14947_v19 = vld [vmem:[#allocation18_spill] sm:$0xff]  ;;  %v14956_v8 = vld [vmem:[#allocation15_spill] sm:$0xff] }
 0x4fa   :  { %2515 = vmax.xlane.f32.xlu0 %v2514_v16  ;;  %7043 = vmatmul.mubr.msk.bf16.gmra.mrb[252].mxu1 %vm96_vm0, %v14926_v52  ;;  %14943 = vst [vmem:[#allocation52_spill] sm:$0xff] %v10629_v14  ;;  %v3600_v52 = vadd.f32 %v10613_v57, %v10607_v31  ;;  %14946 = vst [vmem:[#allocation13_spill] sm:$0xff] %v10637_v6  ;;  %v2807_v54 = vsub.f32 %v14947_v19, %v10449_v15  ;;  %7427 = vpow2.f32 %v3128_v17  ;;  %v10643_v33 = vpop.eup %7417 }
 0x4fb   :  { %14949 = vst [vmem:[#allocation108_spill] sm:$0xff] %v10643_v33  ;;  %v2499_v58 = vmax.f32 %v10618_v28, %v10621_v24  ;;  %7429 = vpow2.f32 %v3130_v59  ;;  %v10649_v45 = vpop.eup %7419  ;;  %v2520_v61 = vmax.f32 %v10626_v44, %v10629_v14  ;;  %v3108_v19 = vmul.f32 1.442695, %v2806_v29  ;;  %v14954_v59 = vld [vmem:[#allocation55_spill] sm:$0xff]  ;;  %v14960_v29 = vld [vmem:[#allocation21_spill] sm:$0xff] }
 0x4fc   :  { %3580 = vadd.xlane.f32.xlu1 %v3579_v55  ;;  %14951 = vst [vmem:[#allocation110_spill] sm:$0xff] %v10649_v45  ;;  %v1245_v55 = vld [vmem:[#allocation2 + $0x2b0] sm:$0xff]  ;;  %v3110_v31 = vmul.f32 1.442695, %v2807_v54 }
 0x4fd   :  { %v10635_v34 = vpop.f32.mrb[148].mxu1  ;;  %v10655_v17 = vpop.eup %7421  ;;  %v10658_v57 = vadd.f32 %v14954_v59, %v1245_v55  ;;  %7431 = vpow2.f32 %v3108_v19  ;;  %v1250_v59 = vld [vmem:[#allocation2 + $0x2d8] sm:$0xff] }
 0x4fe   :  { %14945 = vst [vmem:[#allocation12_spill] sm:$0xff] %v10635_v34  ;;  %3601 = vadd.xlane.f32.xlu0 %v3600_v52  ;;  %v10641_v22 = vpop.f32.mrb[149].mxu1  ;;  %14953 = vst [vmem:[#allocation112_spill] sm:$0xff] %v10655_v17  ;;  %v1259_v52 = vld [vmem:[#allocation2 + $0x320] sm:$0xff]  ;;  %v3585_v34 = vadd.f32 %v10643_v33, %v10637_v6  ;;  %v3606_v54 = vadd.f32 %v10655_v17, %v10649_v45  ;;  %7433 = vpow2.f32 %v3110_v31  ;;  %v1264_v17 = vld [vmem:[#allocation2 + $0x348] sm:$0xff] }
 0x4ff   :  { %14948 = vst [vmem:[#allocation18_spill] sm:$0xff] %v10641_v22  ;;  %v10647_v16 = vpop.f32.mrb[150].mxu1  ;;  %v10666_v53 = vadd.f32 %v14956_v8, %v1259_v52  ;;  %v14971_v6 = vld [vmem:[#allocation60_spill] sm:$0xff] }
 0x500   :  { %14950 = vst [vmem:[#allocation109_spill] sm:$0xff] %v10647_v16  ;;  %v10653_v15 = vpop.f32.mrb[151].mxu1  ;;  %2500 = vmax.xlane.f32.xlu1 %v2499_v58  ;;  %v14955_v16 = vld [vmem:[#allocation57_spill] sm:$0xff]  ;;  %v2810_v58 = vsub.f32 %v14960_v29, %v10509_v4  ;;  %v10701_v33 = vadd.f32 %v14971_v6, %v1250_v59 }
 0x501   :  { %14952 = vst [vmem:[#allocation111_spill] sm:$0xff] %v10653_v15  ;;  %v10661_v22 = vadd.f32 %v14955_v16, %v1246_v39  ;;  %14957 = vst [vmem:[#allocation55_spill] sm:$0xff] %v10666_v53  ;;  %v14958_v15 = vld [vmem:[#allocation66_spill] sm:$0xff] }
 0x502   :  { %2521 = vmax.xlane.f32.xlu0 %v2520_v61  ;;  %v10669_v14 = vadd.f32 %v14958_v15, %v1260_v20  ;;  %v10677_v16 = vpop.eup %7423  ;;  %v14963_v39 = vld [vmem:[#allocation42_spill] sm:$0xff]  ;;  %v3116_v29 = vmul.f32 1.442695, %v2810_v58 }
 0x503   :  { %14962 = vst [vmem:[#allocation66_spill] sm:$0xff] %v10677_v16  ;;  %v2811_v8 = vsub.f32 %v14963_v39, %v10509_v4  ;;  %v10683_v15 = vpop.eup %7425  ;;  %v2505_v52 = vmax.f32 %v10658_v57, %v10661_v22  ;;  %v1263_v39 = vld [vmem:[#allocation2 + $0x340] sm:$0xff] }
 0x504   :  { %14959 = vst [vmem:[#allocation57_spill] sm:$0xff] %v10669_v14  ;;  %3586 = vadd.xlane.f32.xlu1 %v3585_v34  ;;  %14965 = vst [vmem:[#allocation42_spill] sm:$0xff] %v10683_v15  ;;  %v10689_v19 = vpop.eup %7427  ;;  %v1249_v34 = vld [vmem:[#allocation2 + $0x2d0] sm:$0xff]  ;;  %v2526_v31 = vmax.f32 %v10666_v53, %v10669_v14  ;;  %v3591_v58 = vadd.f32 %v10683_v15, %v10677_v16  ;;  %v14973_v14 = vld [vmem:[#allocation16_spill] sm:$0xff] }
 0x505   :  { %v10675_v55 = vpop.f32.mrb[152].mxu1  ;;  %14967 = vst [vmem:[#allocation114_spill] sm:$0xff] %v10689_v19  ;;  %v10706_v53 = vadd.f32 %v14973_v14, %v1263_v39  ;;  %v1253_v39 = vld [vmem:[#allocation2 + $0x2f0] sm:$0xff]  ;;  %v14989_v15 = vld [vmem:[#allocation45_spill] sm:$0xff] }
 0x506   :  { %14961 = vst [vmem:[#allocation15_spill] sm:$0xff] %v10675_v55  ;;  %3607 = vadd.xlane.f32.xlu0 %v3606_v54  ;;  %v10681_v61 = vpop.f32.mrb[153].mxu1  ;;  %v10695_v54 = vpop.eup %7429  ;;  %v14970_v55 = vld [vmem:[#allocation59_spill] sm:$0xff] }
 0x507   :  { %14964 = vst [vmem:[#allocation21_spill] sm:$0xff] %v10681_v61  ;;  %v10687_v20 = vpop.f32.mrb[154].mxu1  ;;  %14969 = vst [vmem:[#allocation116_spill] sm:$0xff] %v10695_v54  ;;  %v3118_v61 = vmul.f32 1.442695, %v2811_v8  ;;  %v3612_v8 = vadd.f32 %v10695_v54, %v10689_v19  ;;  %v14987_v19 = vld [vmem:[#allocation61_spill] sm:$0xff] }
 0x508   :  { %14966 = vst [vmem:[#allocation113_spill] sm:$0xff] %v10687_v20  ;;  %v3530_v45 = vpop.xlane.xlu1 %3529  ;;  %v10693_v4 = vpop.f32.mrb[155].mxu1  ;;  %2506 = vmax.xlane.f32.xlu1 %v2505_v52  ;;  %v10698_v20 = vadd.f32 %v14970_v55, %v1249_v34  ;;  %14972 = vst [vmem:[#allocation59_spill] sm:$0xff] %v10701_v33  ;;  %v14977_v55 = vld [vmem:[#allocation43_spill] sm:$0xff] }
 0x509   :  { %14968 = vst [vmem:[#allocation115_spill] sm:$0xff] %v10693_v4  ;;  %7435 = vrcp.f32 %v3530_v45  ;;  %14974 = vst [vmem:[#allocation60_spill] sm:$0xff] %v10706_v53  ;;  %v14975_v4 = vld [vmem:[#allocation69_spill] sm:$0xff]  ;;  %v2814_v34 = vsub.f32 %v14977_v55, %v10545_v30  ;;  %v14979_v45 = vld [vmem:[#allocation44_spill] sm:$0xff] }
 0x50a   :  { %2527 = vmax.xlane.f32.xlu0 %v2526_v31  ;;  %v10709_v44 = vadd.f32 %v14975_v4, %v1264_v17  ;;  %7437 = vpow2.f32 %v3116_v29  ;;  %v2815_v14 = vsub.f32 %v14979_v45, %v10545_v30  ;;  %v10721_v17 = vpop.eup %7431  ;;  %v2511_v31 = vmax.f32 %v10698_v20, %v10701_v33  ;;  %v14999_v33 = vld [vmem:[#allocation64_spill] sm:$0xff] }
 0x50b   :  { %14981 = vst [vmem:[#allocation44_spill] sm:$0xff] %v10721_v17  ;;  %v10727_v4 = vpop.eup %7433  ;;  %v3124_v30 = vmul.f32 1.442695, %v2814_v34 }
 0x50c   :  { %14976 = vst [vmem:[#allocation16_spill] sm:$0xff] %v10709_v44  ;;  %v3533_v52 = vpop.xlane.xlu1 %3532  ;;  %3592 = vadd.xlane.f32.xlu1 %v3591_v58  ;;  %14983 = vst [vmem:[#allocation118_spill] sm:$0xff] %v10727_v4  ;;  %v1254_v58 = vld [vmem:[#allocation2 + $0x2f8] sm:$0xff]  ;;  %v3126_v45 = vmul.f32 1.442695, %v2815_v14  ;;  %v3597_v54 = vadd.f32 %v10727_v4, %v10721_v17  ;;  %v14992_v14 = vld [vmem:[#allocation46_spill] sm:$0xff] }
 0x50d   :  { %7439 = vrcp.f32 %v3533_v52  ;;  %v10715_v6 = vpop.f32.mrb[156].mxu1  ;;  %v14998_v4 = vld [vmem:[#allocation54_spill] sm:$0xff] }
 0x50e   :  { %14978 = vst [vmem:[#allocation69_spill] sm:$0xff] %v10715_v6  ;;  %7441 = vpow2.f32 %v3118_v61  ;;  %3613 = vadd.xlane.f32.xlu0 %v3612_v8  ;;  %v10719_v59 = vpop.f32.mrb[157].mxu1  ;;  %v2532_v61 = vmax.f32 %v10706_v53, %v10709_v44  ;;  %v2465_v8 = vpop.xlane.xlu0 %2464 }
 0x50f   :  { %14980 = vst [vmem:[#allocation43_spill] sm:$0xff] %v10719_v59  ;;  %v10725_v29 = vpop.f32.mrb[158].mxu1  ;;  %v14985_v59 = vld [vmem:[#allocation11_spill] sm:$0xff]  ;;  %v2818_v44 = vsub.f32 %v14989_v15, %v2465_v8  ;;  %7443 = vpow2.f32 %v3124_v30  ;;  %v1258_v30 = vld [vmem:[#allocation2 + $0x318] sm:$0xff] }
 0x510   :  { %14982 = vst [vmem:[#allocation117_spill] sm:$0xff] %v10725_v29  ;;  %v3536_v52 = vpop.xlane.xlu1 %3535  ;;  %v10731_v55 = vpop.f32.mrb[159].mxu1  ;;  %2512 = vmax.xlane.f32.xlu1 %v2511_v31  ;;  %v10734_v6 = vadd.f32 %v14985_v59, %v1253_v39  ;;  %v10737_v29 = vadd.f32 %v14987_v19, %v1254_v58  ;;  %7445 = vpow2.f32 %v3126_v45  ;;  %v1257_v15 = vld [vmem:[#allocation2 + $0x310] sm:$0xff] }
 0x511   :  { %14984 = vst [vmem:[#allocation119_spill] sm:$0xff] %v10731_v55  ;;  %v3132_v45 = vmul.f32 1.442695, %v2818_v44 }
 0x512   :  { %2533 = vmax.xlane.f32.xlu0 %v2532_v61  ;;  %14986 = vst [vmem:[#allocation11_spill] sm:$0xff] %v10734_v6  ;;  %14988 = vst [vmem:[#allocation61_spill] sm:$0xff] %v10737_v29  ;;  %v2819_v61 = vsub.f32 %v14992_v14, %v2465_v8  ;;  %v2517_v39 = vmax.f32 %v10734_v6, %v10737_v29  ;;  %v10760_v29 = vadd.f32 %v14999_v33, %v1257_v15 }
 0x513   :  { %v7436_v16 = vpop.eup %7435 }
 0x514   :  { %v3539_v53 = vpop.xlane.xlu1 %3538  ;;  %3598 = vadd.xlane.f32.xlu1 %v3597_v54  ;;  %v10744_v31 = vpop.eup %7437  ;;  %v3134_v14 = vmul.f32 1.442695, %v2819_v61  ;;  %v1261_v61 = vld [vmem:[#allocation2 + $0x330] sm:$0xff] }
 0x515   :  { %v10742_v34 = vpop.f32.mrb[160].mxu1  ;;  %14991 = vst [vmem:[#allocation120_spill] sm:$0xff] %v10744_v31  ;;  %7447 = vrcp.f32 %v3539_v53 }
 0x516   :  { %14990 = vst [vmem:[#allocation45_spill] sm:$0xff] %v10742_v34  ;;  %v10747_v59 = vpop.f32.mrb[161].mxu1  ;;  %v14997_v34 = vld [vmem:[#allocation51_spill] sm:$0xff]  ;;  %7449 = vrcp.f32 %v3536_v52 }
 0x517   :  { %14993 = vst [vmem:[#allocation46_spill] sm:$0xff] %v10747_v59  ;;  %v7440_v19 = vpop.eup %7439  ;;  %v10751_v58 = vpop.f32.mrb[162].mxu1  ;;  %v4041_v17 = vmul.f32 %v7436_v16, %v14997_v34  ;;  %15000 = vst [vmem:[#allocation51_spill] sm:$0xff] %v10760_v29  ;;  %7451 = vpow2.f32 %v3132_v45  ;;  %v15011_v45 = vld [vmem:[#allocation68_spill] sm:$0xff] }
 0x518   :  { %14994 = vst [vmem:[#allocation121_spill] sm:$0xff] %v10751_v58  ;;  %v10753_v55 = vpop.eup %7441  ;;  %v10755_v54 = vpop.f32.mrb[163].mxu1  ;;  %v4043_v8 = vmul.f32 %v7440_v19, %v14998_v4  ;;  %2518 = vmax.xlane.f32.xlu1 %v2517_v39  ;;  %v15001_v58 = vld [vmem:[#allocation65_spill] sm:$0xff]  ;;  %7453 = vpow2.f32 %v3134_v14  ;;  %v1262_v39 = vld [vmem:[#allocation2 + $0x338] sm:$0xff] }
 0x519   :  { %14995 = vst [vmem:[#allocation122_spill] sm:$0xff] %v10753_v55  ;;  %14996 = vst [vmem:[#allocation123_spill] sm:$0xff] %v10755_v54  ;;  %v10763_v6 = vadd.f32 %v15001_v58, %v1258_v30  ;;  %v3603_v53 = vadd.f32 %v10753_v55, %v10744_v31  ;;  %v10771_v4 = vpop.eup %7443  ;;  %v15009_v30 = vld [vmem:[#allocation67_spill] sm:$0xff]  ;;  %v10785_v14 = vadd.f32 %v15011_v45, %v1262_v39  ;;  %v15015_v31 = vld [vmem:[#allocation8_spill] sm:$0xff] }
 0x51a   :  { %v4297_v59 = vpack.c.bf16 %v4043_v8, %v4041_v17  ;;  %15005 = vst [vmem:[#allocation124_spill] sm:$0xff] %v10771_v4  ;;  %v10777_v52 = vpop.eup %7445  ;;  %v10782_v8 = vadd.f32 %v15009_v30, %v1261_v61  ;;  %v15019_v45 = vld [vmem:[#allocation56_spill] sm:$0xff] }
 0x51b   :  { %15002 = vst [vmem:[#allocation54_spill] sm:$0xff] %v10763_v6  ;;  %v2523_v33 = vmax.f32 %v10760_v29, %v10763_v6  ;;  %15007 = vst [vmem:[#allocation126_spill] sm:$0xff] %v10777_v52 }
 0x51c   :  { %4504 = vmatprep.mubr.bf16.mxu0 %v4297_v59  ;;  %3604 = vadd.xlane.f32.xlu1 %v3603_v53  ;;  %15010 = vst [vmem:[#allocation67_spill] sm:$0xff] %v10782_v8  ;;  %15012 = vst [vmem:[#allocation68_spill] sm:$0xff] %v10785_v14  ;;  %v3609_v53 = vadd.f32 %v10777_v52, %v10771_v4  ;;  %v2529_v39 = vmax.f32 %v10782_v8, %v10785_v14  ;;  %v15022_v52 = vld [vmem:[#allocation71_spill] sm:$0xff] }
 0x51d   :  { %v10767_v34 = vpop.f32.mrb[164].mxu1 }
 0x51e   :  { %15003 = vst [vmem:[#allocation64_spill] sm:$0xff] %v10767_v34  ;;  %v10769_v44 = vpop.f32.mrb[165].mxu1 }
 0x51f   :  { %15004 = vst [vmem:[#allocation65_spill] sm:$0xff] %v10769_v44  ;;  %v10775_v17 = vpop.f32.mrb[166].mxu1  ;;  %v7448_v59 = vpop.eup %7447 }
 0x520   :  { %15006 = vst [vmem:[#allocation125_spill] sm:$0xff] %v10775_v17  ;;  %v10779_v58 = vpop.f32.mrb[167].mxu1  ;;  %2524 = vmax.xlane.f32.xlu1 %v2523_v33  ;;  %v7450_v44 = vpop.eup %7449  ;;  %v15013_v17 = vld [vmem:[#allocation53_spill] sm:$0xff] }
 0x521   :  { %15008 = vst [vmem:[#allocation127_spill] sm:$0xff] %v10779_v58  ;;  %v4042_v34 = vmul.f32 %v7440_v19, %v15013_v17  ;;  %v4047_v58 = vmul.f32 %v7448_v59, %v15015_v31  ;;  %v15016_v33 = vld [vmem:[#allocation49_spill] sm:$0xff]  ;;  %v10796_v61 = vpop.eup %7451  ;;  %v4045_v19 = vmul.f32 %v7450_v44, %v15019_v45  ;;  %v15023_v45 = vld [vmem:[#allocation58_spill] sm:$0xff] }
 0x522   :  { %v3551_v15 = vpop.xlane.xlu0 %3550  ;;  %v4040_v55 = vmul.f32 %v7436_v16, %v15016_v33  ;;  %v10803_v17 = vpop.eup %7453 }
 0x523   :  { %v4299_v33 = vpack.c.bf16 %v4047_v58, %v4045_v19 }
 0x524   :  { %3610 = vadd.xlane.f32.xlu1 %v3609_v53  ;;  %v1265_v53 = vld [vmem:[#allocation2 + $0x350] sm:$0xff]  ;;  %v4296_v16 = vpack.c.bf16 %v4042_v34, %v4040_v55 }
 0x525   :  { %v10790_v54 = vpop.f32.mrb[168].mxu1  ;;  %v15026_v55 = vld [vmem:[#allocation7_spill] sm:$0xff] }
 0x526   :  { %15014 = vst [vmem:[#allocation53_spill] sm:$0xff] %v10790_v54  ;;  %v4455_v6 = vpop.permute.xlu0 %4454  ;;  %v10794_v29 = vpop.f32.mrb[169].mxu1  ;;  %v1266_v54 = vld [vmem:[#allocation2 + $0x358] sm:$0xff]  ;;  %v4044_v34 = vmul.f32 %v7450_v44, %v15026_v55 }
 0x527   :  { %15017 = vst [vmem:[#allocation8_spill] sm:$0xff] %v10794_v29  ;;  %4503 = vmatpush1.bf16.msra.mxu0 %v4455_v6  ;;  %v10800_v30 = vpop.f32.mrb[170].mxu1  ;;  %v15021_v29 = vld [vmem:[#allocation70_spill] sm:$0xff]  ;;  %v10811_v14 = vadd.f32 %v15022_v52, %v1266_v54  ;;  %v3615_v6 = vadd.f32 %v10803_v17, %v10796_v61 }
 0x528   :  { %15018 = vst [vmem:[#allocation49_spill] sm:$0xff] %v10800_v30  ;;  %v10805_v31 = vpop.f32.mrb[171].mxu1  ;;  %2530 = vmax.xlane.f32.xlu1 %v2529_v39  ;;  %v10808_v4 = vadd.f32 %v15021_v29, %v1265_v53  ;;  %v4046_v30 = vmul.f32 %v7448_v59, %v15023_v45 }
 0x529   :  { %15020 = vst [vmem:[#allocation56_spill] sm:$0xff] %v10805_v31 }
 0x52a   :  { %4505 = vmatmul.mubr.bf16.vlgmr.msra.gmra.mrb[32].mxu0 %v4296_v16  ;;  %v2535_v29 = vmax.f32 %v10808_v4, %v10811_v14  ;;  %v4298_v52 = vpack.c.bf16 %v4046_v30, %v4044_v34 }
 0x52b   :  { %4512 = vmatprep.mubr.bf16.mxu0 %v4299_v33 }
 0x52c   :  { %3616 = vadd.xlane.f32.xlu1 %v3615_v6 }
 0x52d   :  { %v10816_v8 = vpop.f32.mrb[172].mxu1 }
 0x52e   :  { %15024 = vst [vmem:[#allocation70_spill] sm:$0xff] %v10816_v8  ;;  %v10818_v31 = vpop.f32.mrb[173].mxu1  ;;  %v15052_v8 = vld [vmem:[#allocation80_spill] sm:$0xff] }
 0x52f   :  { %15025 = vst [vmem:[#allocation71_spill] sm:$0xff] %v10818_v31  ;;  %v10823_v58 = vpop.f32.mrb[174].mxu1 }
 0x530   :  { %15027 = vst [vmem:[#allocation58_spill] sm:$0xff] %v10823_v58  ;;  %v10825_v54 = vpop.f32.mrb[175].mxu1  ;;  %2536 = vmax.xlane.f32.xlu1 %v2535_v29 }
 0x531   :  { %15028 = vst [vmem:[#allocation7_spill] sm:$0xff] %v10825_v54  ;;  %v15049_v54 = vld [vmem:[#allocation79_spill] sm:$0xff] }
 0x532   :  { %4513 = vmatmul.mubr.bf16.gmra.mrb[36].mxu0 %v4298_v52 }
 0x535   :  { %v10827_v39 = vpop.f32.mrb[176].mxu1 }
 0x536   :  { %15029 = vst [vmem:[#allocation128_spill] sm:$0xff] %v10827_v39  ;;  %v10829_v59 = vpop.f32.mrb[177].mxu1 }
 0x537   :  { %15030 = vst [vmem:[#allocation129_spill] sm:$0xff] %v10829_v59  ;;  %v10831_v19 = vpop.f32.mrb[178].mxu1  ;;  %v15050_v59 = vld [vmem:[#allocation77_spill] sm:$0xff] }
 0x538   :  { %15031 = vst [vmem:[#allocation130_spill] sm:$0xff] %v10831_v19  ;;  %v10833_v53 = vpop.f32.mrb[179].mxu1 }
 0x539   :  { %15032 = vst [vmem:[#allocation131_spill] sm:$0xff] %v10833_v53 }
 0x53d   :  { %v10835_v16 = vpop.f32.mrb[180].mxu1 }
 0x53e   :  { %15033 = vst [vmem:[#allocation132_spill] sm:$0xff] %v10835_v16  ;;  %v10837_v44 = vpop.f32.mrb[181].mxu1 }
 0x53f   :  { %15034 = vst [vmem:[#allocation133_spill] sm:$0xff] %v10837_v44  ;;  %v10839_v33 = vpop.f32.mrb[182].mxu1 }
 0x540   :  { %15035 = vst [vmem:[#allocation134_spill] sm:$0xff] %v10839_v33  ;;  %v10841_v6 = vpop.f32.mrb[183].mxu1 }
 0x541   :  { %15036 = vst [vmem:[#allocation135_spill] sm:$0xff] %v10841_v6 }
 0x545   :  { %v10843_v45 = vpop.f32.mrb[184].mxu1 }
 0x546   :  { %15037 = vst [vmem:[#allocation136_spill] sm:$0xff] %v10843_v45  ;;  %v10845_v30 = vpop.f32.mrb[185].mxu1 }
 0x547   :  { %15038 = vst [vmem:[#allocation137_spill] sm:$0xff] %v10845_v30  ;;  %v10847_v55 = vpop.f32.mrb[186].mxu1 }
 0x548   :  { %15039 = vst [vmem:[#allocation138_spill] sm:$0xff] %v10847_v55  ;;  %v10849_v34 = vpop.f32.mrb[187].mxu1 }
 0x549   :  { %15040 = vst [vmem:[#allocation139_spill] sm:$0xff] %v10849_v34  ;;  %v3542_v29 = vpop.xlane.xlu1 %3541 }
 0x54a   :  { %7455 = vrcp.f32 %v3542_v29 }
 0x54d   :  { %v10851_v52 = vpop.f32.mrb[188].mxu1  ;;  %v3545_v53 = vpop.xlane.xlu1 %3544 }
 0x54e   :  { %15041 = vst [vmem:[#allocation140_spill] sm:$0xff] %v10851_v52  ;;  %v10853_v19 = vpop.f32.mrb[189].mxu1  ;;  %7457 = vrcp.f32 %v3545_v53 }
 0x54f   :  { %15042 = vst [vmem:[#allocation141_spill] sm:$0xff] %v10853_v19  ;;  %v10855_v44 = vpop.f32.mrb[190].mxu1  ;;  %7459 = vrcp.f32 %v3551_v15 }
 0x550   :  { %15043 = vst [vmem:[#allocation142_spill] sm:$0xff] %v10855_v44  ;;  %v10857_v33 = vpop.f32.mrb[191].mxu1 }
 0x551   :  { %15044 = vst [vmem:[#allocation143_spill] sm:$0xff] %v10857_v33  ;;  %v3548_v6 = vpop.xlane.xlu1 %3547 }
 0x552   :  { %7461 = vrcp.f32 %v3548_v6 }
 0x554   :  { %v7456_v55 = vpop.eup %7455 }
 0x555   :  { %v10859_v30 = vpop.f32.mrb[192].mxu1  ;;  %v2468_v45 = vpop.xlane.xlu1 %2467  ;;  %v4049_v58 = vmul.f32 %v7456_v55, %v15049_v54 }
 0x556   :  { %15045 = vst [vmem:[#allocation144_spill] sm:$0xff] %v10859_v30  ;;  %v10861_v34 = vpop.f32.mrb[193].mxu1  ;;  %v2820_v29 = vsub.f32 %v10280_v38, %v2468_v45  ;;  %v2821_v52 = vsub.f32 %v10283_v62, %v2468_v45  ;;  %v15051_v62 = vld [vmem:[#allocation23_spill] sm:$0xff] }
 0x557   :  { %15046 = vst [vmem:[#allocation145_spill] sm:$0xff] %v10861_v34  ;;  %v2471_v16 = vpop.xlane.xlu0 %2470  ;;  %v10865_v19 = vpop.f32.mrb[194].mxu1  ;;  %v4048_v34 = vmul.f32 %v7456_v55, %v15050_v59 }
 0x558   :  { %15047 = vst [vmem:[#allocation146_spill] sm:$0xff] %v10865_v19  ;;  %v2822_v53 = vsub.f32 %v10292_v42, %v2471_v16  ;;  %v2823_v33 = vsub.f32 %v10295_v11, %v2471_v16  ;;  %v10869_v15 = vpop.f32.mrb[195].mxu1  ;;  %v7458_v6 = vpop.eup %7457  ;;  %v3136_v44 = vmul.f32 1.442695, %v2820_v29  ;;  %v3138_v30 = vmul.f32 1.442695, %v2821_v52 }
 0x559   :  { %15048 = vst [vmem:[#allocation147_spill] sm:$0xff] %v10869_v15  ;;  %v2474_v31 = vpop.xlane.xlu1 %2473  ;;  %v4051_v45 = vmul.f32 %v7458_v6, %v15051_v62  ;;  %v4050_v19 = vmul.f32 %v7458_v6, %v15052_v8  ;;  %v7460_v29 = vpop.eup %7459 }
 0x55a   :  { %v3140_v39 = vmul.f32 1.442695, %v2822_v53  ;;  %v3142_v38 = vmul.f32 1.442695, %v2823_v33  ;;  %7463 = vpow2.f32 %v3136_v44  ;;  %v2824_v42 = vsub.f32 %v10308_v3, %v2474_v31  ;;  %v15057_v44 = vld [vmem:[#allocation63_spill] sm:$0xff] }
 0x55b   :  { %v2825_v11 = vsub.f32 %v10311_v56, %v2474_v31  ;;  %v10877_v16 = vpop.xlane.xlu0 %3565  ;;  %7465 = vpow2.f32 %v3138_v30  ;;  %v4301_v52 = vpack.c.bf16 %v4051_v45, %v4049_v58  ;;  %v4300_v54 = vpack.c.bf16 %v4050_v19, %v4048_v34 }
 0x55c   :  { %v7462_v15 = vpop.eup %7461  ;;  %7467 = vpow2.f32 %v3140_v39  ;;  %v3144_v59 = vmul.f32 1.442695, %v2824_v42  ;;  %v4055_v30 = vmul.f32 %v7460_v29, %v15057_v44  ;;  %v15058_v42 = vld [vmem:[#allocation62_spill] sm:$0xff] }
 0x55d   :  { %v10879_v33 = vpop.f32.mrb[196].mxu1  ;;  %7469 = vpow2.f32 %v3142_v38  ;;  %v3146_v55 = vmul.f32 1.442695, %v2825_v11  ;;  %v2477_v53 = vpop.xlane.xlu1 %2476  ;;  %4520 = vmatprep.mubr.bf16.mxu0 %v4301_v52  ;;  %v4053_v3 = vmul.f32 %v7462_v15, %v10269_v51  ;;  %v4052_v38 = vmul.f32 %v7462_v15, %v10260_v26  ;;  %v1267_v52 = vld [vmem:[#allocation2 + $0x360] sm:$0xff] }
 0x55e   :  { %15053 = vst [vmem:[#allocation79_spill] sm:$0xff] %v10879_v33  ;;  %v10881_v8 = vpop.f32.mrb[197].mxu1  ;;  %v2826_v56 = vsub.f32 %v10320_v46, %v2477_v53  ;;  %v2827_v31 = vsub.f32 %v10331_v50, %v2477_v53  ;;  %4521 = vmatmul.mubr.bf16.gmra.mrb[40].mxu0 %v4300_v54  ;;  %7471 = vpow2.f32 %v3144_v59  ;;  %v4054_v11 = vmul.f32 %v7460_v29, %v15058_v42  ;;  %v1268_v54 = vld [vmem:[#allocation2 + $0x368] sm:$0xff]  ;;  %v1269_v53 = vld [vmem:[#allocation2 + $0x370] sm:$0xff] }
 0x55f   :  { %15054 = vst [vmem:[#allocation77_spill] sm:$0xff] %v10881_v8  ;;  %v2486_v58 = vpop.xlane.xlu0 %2485  ;;  %v10886_v19 = vpop.f32.mrb[198].mxu1  ;;  %7473 = vpow2.f32 %v3146_v55  ;;  %v4303_v51 = vpack.c.bf16 %v4055_v30, %v4053_v3  ;;  %v15064_v29 = vld [vmem:[#allocation19_spill] sm:$0xff] }
 0x560   :  { %15055 = vst [vmem:[#allocation23_spill] sm:$0xff] %v10886_v19  ;;  %v10888_v39 = vpop.f32.mrb[199].mxu1  ;;  %v3148_v34 = vmul.f32 1.442695, %v2826_v56  ;;  %v3150_v6 = vmul.f32 1.442695, %v2827_v31  ;;  %v4302_v3 = vpack.c.bf16 %v4054_v11, %v4052_v38  ;;  %v10908_v30 = vadd.f32 %v15064_v29, %v1267_v52 }
 0x561   :  { %15056 = vst [vmem:[#allocation80_spill] sm:$0xff] %v10888_v39  ;;  %v2480_v62 = vpop.xlane.xlu1 %2479  ;;  %4528 = vmatprep.mubr.bf16.mxu0 %v4303_v51  ;;  %v2832_v11 = vsub.f32 %v10340_v23, %v2486_v58 }
 0x562   :  { %7475 = vpow2.f32 %v3148_v34  ;;  %v2828_v46 = vsub.f32 %v10363_v41, %v2480_v62  ;;  %v2829_v50 = vsub.f32 %v10366_v48, %v2480_v62  ;;  %v1270_v41 = vld [vmem:[#allocation2 + $0x378] sm:$0xff] }
 0x563   :  { %v10894_v45 = vpop.xlane.xlu0 %3571  ;;  %7477 = vpow2.f32 %v3150_v6  ;;  %v15065_v34 = vld [vmem:[#allocation72_spill] sm:$0xff] }
 0x564   :  { %v10897_v59 = vpop.eup %7463  ;;  %v3152_v26 = vmul.f32 1.442695, %v2828_v46  ;;  %v3154_v15 = vmul.f32 1.442695, %v2829_v50  ;;  %v10911_v6 = vadd.f32 %v15065_v34, %v1268_v54  ;;  %v15068_v50 = vld [vmem:[#allocation73_spill] sm:$0xff]  ;;  %v15070_v54 = vld [vmem:[#allocation74_spill] sm:$0xff] }
 0x565   :  { %15059 = vst [vmem:[#allocation63_spill] sm:$0xff] %v10897_v59  ;;  %v10899_v55 = vpop.f32.mrb[200].mxu1  ;;  %v10901_v56 = vpop.eup %7465  ;;  %v10922_v42 = vadd.f32 %v15068_v50, %v1269_v53  ;;  %v10928_v29 = vadd.f32 %v15070_v54, %v1270_v41  ;;  %v1271_v41 = vld [vmem:[#allocation2 + $0x380] sm:$0xff] }
 0x566   :  { %15060 = vst [vmem:[#allocation62_spill] sm:$0xff] %v10899_v55  ;;  %15061 = vst [vmem:[#allocation148_spill] sm:$0xff] %v10901_v56  ;;  %v3554_v48 = vpop.xlane.xlu1 %3553  ;;  %v10903_v31 = vpop.f32.mrb[201].mxu1  ;;  %4529 = vmatmul.mubr.bf16.gmra.mrb[44].mxu0 %v4302_v3  ;;  %v3618_v62 = vadd.f32 %v10901_v56, %v10897_v59  ;;  %7479 = vpow2.f32 %v3152_v26  ;;  %v2833_v3 = vsub.f32 %v10347_v36, %v2486_v58  ;;  %v1272_v36 = vld [vmem:[#allocation2 + $0x388] sm:$0xff]  ;;  %v3160_v58 = vmul.f32 1.442695, %v2832_v11 }
 0x567   :  { %15062 = vst [vmem:[#allocation149_spill] sm:$0xff] %v10903_v31  ;;  %v10905_v44 = vpop.eup %7467  ;;  %v10915_v51 = vpop.xlane.xlu0 %2491  ;;  %7481 = vpow2.f32 %v3154_v15  ;;  %v2538_v23 = vmax.f32 %v10908_v30, %v10911_v6  ;;  %v15077_v31 = vld [vmem:[#allocation20_spill] sm:$0xff]  ;;  %v15078_v11 = vld [vmem:[#allocation75_spill] sm:$0xff] }
 0x568   :  { %15063 = vst [vmem:[#allocation150_spill] sm:$0xff] %v10905_v44  ;;  %v10917_v38 = vpop.f32.mrb[202].mxu1  ;;  %v10919_v46 = vpop.eup %7469  ;;  %3619 = vadd.xlane.f32.xlu0 %v3618_v62  ;;  %7483 = vrcp.f32 %v3554_v48  ;;  %v2541_v48 = vmax.f32 %v10922_v42, %v10928_v29  ;;  %v1273_v62 = vld [vmem:[#allocation2 + $0x390] sm:$0xff]  ;;  %v3162_v50 = vmul.f32 1.442695, %v2833_v3  ;;  %v10952_v55 = vadd.f32 %v15077_v31, %v1271_v41 }
 0x569   :  { %15066 = vst [vmem:[#allocation19_spill] sm:$0xff] %v10917_v38  ;;  %15067 = vst [vmem:[#allocation72_spill] sm:$0xff] %v10919_v46  ;;  %v10925_v52 = vpop.f32.mrb[203].mxu1  ;;  %v3621_v34 = vadd.f32 %v10919_v46, %v10905_v44  ;;  %v10933_v39 = vpop.eup %7471  ;;  %v10955_v8 = vadd.f32 %v15078_v11, %v1272_v36  ;;  %v2836_v41 = vsub.f32 %v10388_v1, %v10915_v51  ;;  %v1275_v11 = vld [vmem:[#allocation2 + $0x3a0] sm:$0xff]  ;;  %v15086_v46 = vld [vmem:[#allocation82_spill] sm:$0xff] }
 0x56a   :  { %15069 = vst [vmem:[#allocation73_spill] sm:$0xff] %v10925_v52  ;;  %v3557_v38 = vpop.xlane.xlu1 %3556  ;;  %15071 = vst [vmem:[#allocation74_spill] sm:$0xff] %v10933_v39  ;;  %v10939_v26 = vpop.eup %7473 }
 0x56b   :  { %7485 = vrcp.f32 %v3557_v38  ;;  %3622 = vadd.xlane.f32.xlu1 %v3621_v34  ;;  %v10937_v53 = vpop.xlane.xlu0 %3577  ;;  %15072 = vst [vmem:[#allocation151_spill] sm:$0xff] %v10939_v26  ;;  %v1274_v38 = vld [vmem:[#allocation2 + $0x398] sm:$0xff]  ;;  %v3624_v33 = vadd.f32 %v10939_v26, %v10933_v39 }
 0x56c   :  { %v10941_v15 = vpop.eup %7475  ;;  %2539 = vmax.xlane.f32.xlu0 %v2538_v23  ;;  %7487 = vpow2.f32 %v3160_v58 }
 0x56d   :  { %15073 = vst [vmem:[#allocation152_spill] sm:$0xff] %v10941_v15  ;;  %v10945_v54 = vpop.f32.mrb[204].mxu1  ;;  %v10947_v52 = vpop.eup %7477  ;;  %7489 = vpow2.f32 %v3162_v50  ;;  %v1276_v50 = vld [vmem:[#allocation2 + $0x3a8] sm:$0xff] }
 0x56e   :  { %15074 = vst [vmem:[#allocation153_spill] sm:$0xff] %v10945_v54  ;;  %15075 = vst [vmem:[#allocation154_spill] sm:$0xff] %v10947_v52  ;;  %v3560_v34 = vpop.xlane.xlu1 %3559  ;;  %v10949_v19 = vpop.f32.mrb[205].mxu1  ;;  %v15080_v54 = vld [vmem:[#allocation76_spill] sm:$0xff]  ;;  %v3627_v36 = vadd.f32 %v10947_v52, %v10941_v15  ;;  %v10998_v56 = vadd.f32 %v15086_v46, %v1276_v50 }
 0x56f   :  { %15076 = vst [vmem:[#allocation155_spill] sm:$0xff] %v10949_v19  ;;  %2542 = vmax.xlane.f32.xlu1 %v2541_v48  ;;  %v10959_v3 = vpop.xlane.xlu0 %2497  ;;  %v10961_v23 = vpop.f32.mrb[206].mxu1  ;;  %v10964_v44 = vadd.f32 %v15080_v54, %v1273_v62  ;;  %v15082_v19 = vld [vmem:[#allocation78_spill] sm:$0xff]  ;;  %v2837_v62 = vsub.f32 %v10395_v35, %v10915_v51  ;;  %7491 = vrcp.f32 %v3560_v34  ;;  %v3168_v35 = vmul.f32 1.442695, %v2836_v41 }
 0x570   :  { %15079 = vst [vmem:[#allocation20_spill] sm:$0xff] %v10961_v23  ;;  %v10966_v59 = vpop.f32.mrb[207].mxu1  ;;  %v10969_v31 = vadd.f32 %v15082_v19, %v1274_v38  ;;  %3625 = vadd.xlane.f32.xlu0 %v3624_v33  ;;  %v10975_v48 = vpop.eup %7479  ;;  %v2544_v19 = vmax.f32 %v10952_v55, %v10955_v8  ;;  %v15083_v23 = vld [vmem:[#allocation81_spill] sm:$0xff]  ;;  %v2840_v46 = vsub.f32 %v10432_v10, %v10959_v3 }
 0x571   :  { %15081 = vst [vmem:[#allocation75_spill] sm:$0xff] %v10966_v59  ;;  %v10979_v54 = vpop.eup %7481  ;;  %v10988_v15 = vadd.f32 %v15083_v23, %v1275_v11  ;;  %v3170_v34 = vmul.f32 1.442695, %v2837_v62 }
 0x572   :  { %v3563_v58 = vpop.xlane.xlu1 %3562  ;;  %v7484_v33 = vpop.eup %7483  ;;  %v2547_v59 = vmax.f32 %v10964_v44, %v10969_v31  ;;  %v3630_v11 = vadd.f32 %v10979_v54, %v10975_v48 }
 0x573   :  { %7493 = vrcp.f32 %v3563_v58  ;;  %3628 = vadd.xlane.f32.xlu1 %v3627_v36  ;;  %v10983_v1 = vpop.xlane.xlu0 %3583  ;;  %v4057_v36 = vmul.f32 %v7484_v33, %v10392_v63 }
 0x574   :  { %2545 = vmax.xlane.f32.xlu0 %v2544_v19  ;;  %7495 = vpow2.f32 %v3168_v35 }
 0x575   :  { %v7486_v38 = vpop.eup %7485  ;;  %v10990_v51 = vpop.f32.mrb[208].mxu1  ;;  %7497 = vpow2.f32 %v3170_v34  ;;  %v15091_v34 = vld [vmem:[#allocation24_spill] sm:$0xff] }
 0x576   :  { %15084 = vst [vmem:[#allocation76_spill] sm:$0xff] %v10990_v51  ;;  %v2483_v39 = vpop.xlane.xlu1 %2482  ;;  %v10992_v52 = vpop.f32.mrb[209].mxu1  ;;  %v4059_v58 = vmul.f32 %v7486_v38, %v10410_v49  ;;  %v4058_v26 = vmul.f32 %v7486_v38, %v10405_v47  ;;  %v4056_v47 = vmul.f32 %v7484_v33, %v10383_v13  ;;  %v2550_v13 = vmax.f32 %v10988_v15, %v10998_v56  ;;  %v1280_v33 = vld [vmem:[#allocation2 + $0x3c8] sm:$0xff]  ;;  %v1282_v51 = vld [vmem:[#allocation2 + $0x3d8] sm:$0xff] }
 0x577   :  { %15085 = vst [vmem:[#allocation78_spill] sm:$0xff] %v10992_v52  ;;  %v2830_v23 = vsub.f32 %v10474_v40, %v2483_v39  ;;  %v2831_v41 = vsub.f32 %v10479_v5, %v2483_v39  ;;  %2548 = vmax.xlane.f32.xlu1 %v2547_v59  ;;  %v11004_v62 = vpop.xlane.xlu0 %2503  ;;  %v11006_v19 = vpop.f32.mrb[210].mxu1  ;;  %v1279_v39 = vld [vmem:[#allocation2 + $0x3c0] sm:$0xff]  ;;  %v2841_v59 = vsub.f32 %v10441_v18, %v10959_v3  ;;  %v3176_v18 = vmul.f32 1.442695, %v2840_v46 }
 0x578   :  { %15087 = vst [vmem:[#allocation81_spill] sm:$0xff] %v11006_v19  ;;  %v11008_v63 = vpop.f32.mrb[211].mxu1  ;;  %v4305_v49 = vpack.c.bf16 %v4059_v58, %v4057_v36  ;;  %3631 = vadd.xlane.f32.xlu0 %v3630_v11  ;;  %v11013_v5 = vpop.eup %7487  ;;  %v15093_v3 = vld [vmem:[#allocation85_spill] sm:$0xff] }
 0x579   :  { %15088 = vst [vmem:[#allocation82_spill] sm:$0xff] %v11008_v63  ;;  %v3156_v40 = vmul.f32 1.442695, %v2830_v23  ;;  %v3158_v50 = vmul.f32 1.442695, %v2831_v41  ;;  %15089 = vst [vmem:[#allocation156_spill] sm:$0xff] %v11013_v5  ;;  %v4304_v63 = vpack.c.bf16 %v4058_v26, %v4056_v47  ;;  %v11017_v36 = vpop.eup %7489  ;;  %v11024_v23 = vadd.f32 %v15091_v34, %v1279_v39 }
 0x57a   :  { %v3569_v38 = vpop.xlane.xlu1 %3568  ;;  %4536 = vmatprep.mubr.bf16.mxu0 %v4305_v49  ;;  %15090 = vst [vmem:[#allocation157_spill] sm:$0xff] %v11017_v36  ;;  %v7492_v35 = vpop.eup %7491  ;;  %v11030_v41 = vadd.f32 %v15093_v3, %v1280_v33  ;;  %v3178_v11 = vmul.f32 1.442695, %v2841_v59  ;;  %v3636_v46 = vadd.f32 %v11017_v36, %v11013_v5 }
 0x57b   :  { %7499 = vpow2.f32 %v3156_v40  ;;  %v11021_v10 = vpop.xlane.xlu0 %3589  ;;  %4537 = vmatmul.mubr.bf16.gmra.mrb[48].mxu0 %v4304_v63  ;;  %v4061_v33 = vmul.f32 %v7492_v35, %v10438_v7 }
 0x57c   :  { %7501 = vpow2.f32 %v3158_v50  ;;  %2551 = vmax.xlane.f32.xlu0 %v2550_v13  ;;  %v2556_v7 = vmax.f32 %v11024_v23, %v11030_v41 }
 0x57d   :  { %v7494_v58 = vpop.eup %7493  ;;  %7503 = vrcp.f32 %v10877_v16  ;;  %v11027_v26 = vpop.f32.mrb[212].mxu1 }
 0x57e   :  { %15092 = vst [vmem:[#allocation24_spill] sm:$0xff] %v11027_v26  ;;  %v2489_v49 = vpop.xlane.xlu1 %2488  ;;  %v11032_v47 = vpop.f32.mrb[213].mxu1  ;;  %v4063_v40 = vmul.f32 %v7494_v58, %v10458_v37  ;;  %v4062_v63 = vmul.f32 %v7494_v58, %v10453_v2  ;;  %7505 = vrcp.f32 %v3569_v38  ;;  %v4060_v37 = vmul.f32 %v7492_v35, %v10429_v60  ;;  %v1283_v60 = vld [vmem:[#allocation2 + $0x3e0] sm:$0xff]  ;;  %v1284_v35 = vld [vmem:[#allocation2 + $0x3e8] sm:$0xff] }
 0x57f   :  { %15094 = vst [vmem:[#allocation85_spill] sm:$0xff] %v11032_v47  ;;  %v2834_v50 = vsub.f32 %v10522_v21, %v2489_v49  ;;  %v2835_v16 = vsub.f32 %v10527_v0, %v2489_v49  ;;  %v11040_v39 = vpop.xlane.xlu0 %2509  ;;  %v11042_v13 = vpop.f32.mrb[214].mxu1  ;;  %7507 = vpow2.f32 %v3176_v18  ;;  %v2844_v2 = vsub.f32 %v10482_v12, %v11004_v62  ;;  %v15097_v0 = vld [vmem:[#allocation26_spill] sm:$0xff]  ;;  %v15110_v47 = vld [vmem:[#allocation17_spill] sm:$0xff] }
 0x580   :  { %15095 = vst [vmem:[#allocation158_spill] sm:$0xff] %v11042_v13  ;;  %v11044_v59 = vpop.f32.mrb[215].mxu1  ;;  %3637 = vadd.xlane.f32.xlu0 %v3636_v46  ;;  %7509 = vpow2.f32 %v3178_v11  ;;  %v2845_v58 = vsub.f32 %v15097_v0, %v11004_v62  ;;  %v4307_v3 = vpack.c.bf16 %v4063_v40, %v4061_v33  ;;  %v4306_v49 = vpack.c.bf16 %v4062_v63, %v4060_v37  ;;  %v11052_v13 = vpop.eup %7495  ;;  %v1277_v62 = vld [vmem:[#allocation2 + $0x3b0] sm:$0xff]  ;;  %v15101_v46 = vld [vmem:[#allocation29_spill] sm:$0xff] }
 0x581   :  { %15096 = vst [vmem:[#allocation159_spill] sm:$0xff] %v11044_v59  ;;  %v3164_v21 = vmul.f32 1.442695, %v2834_v50  ;;  %v3166_v38 = vmul.f32 1.442695, %v2835_v16  ;;  %15098 = vst [vmem:[#allocation26_spill] sm:$0xff] %v11052_v13  ;;  %v11058_v12 = vpop.eup %7497  ;;  %v11068_v33 = vadd.f32 %v15101_v46, %v1283_v60 }
 0x582   :  { %v3575_v34 = vpop.xlane.xlu1 %3574  ;;  %15099 = vst [vmem:[#allocation160_spill] sm:$0xff] %v11058_v12  ;;  %4544 = vmatprep.mubr.bf16.mxu0 %v4307_v3  ;;  %v1278_v50 = vld [vmem:[#allocation2 + $0x3b8] sm:$0xff]  ;;  %v3184_v40 = vmul.f32 1.442695, %v2844_v2  ;;  %v15102_v37 = vld [vmem:[#allocation27_spill] sm:$0xff] }
 0x583   :  { %7511 = vpow2.f32 %v3164_v21  ;;  %v11056_v18 = vpop.xlane.xlu0 %3595  ;;  %4545 = vmatmul.mubr.bf16.gmra.mrb[52].mxu0 %v4306_v49  ;;  %v11071_v21 = vadd.f32 %v15102_v37, %v1284_v35  ;;  %v3642_v49 = vadd.f32 %v11058_v12, %v11052_v13  ;;  %v15105_v46 = vld [vmem:[#allocation83_spill] sm:$0xff]  ;;  %v15119_v12 = vld [vmem:[#allocation25_spill] sm:$0xff] }
 0x584   :  { %7513 = vpow2.f32 %v3166_v38  ;;  %2557 = vmax.xlane.f32.xlu0 %v2556_v7  ;;  %v3186_v38 = vmul.f32 1.442695, %v2845_v58  ;;  %v11084_v35 = vadd.f32 %v15105_v46, %v1277_v62  ;;  %v15106_v58 = vld [vmem:[#allocation84_spill] sm:$0xff]  ;;  %v15108_v62 = vld [vmem:[#allocation34_spill] sm:$0xff] }
 0x585   :  { %v11060_v11 = vpop.eup %7499  ;;  %7515 = vrcp.f32 %v10894_v45  ;;  %v11063_v63 = vpop.f32.mrb[216].mxu1  ;;  %v11087_v37 = vadd.f32 %v15106_v58, %v1278_v50  ;;  %v2849_v46 = vsub.f32 %v15108_v62, %v11040_v39  ;;  %v15109_v58 = vld [vmem:[#allocation89_spill] sm:$0xff] }
 0x586   :  { %15100 = vst [vmem:[#allocation161_spill] sm:$0xff] %v11063_v63  ;;  %v11065_v16 = vpop.eup %7501  ;;  %v2495_v0 = vpop.xlane.xlu1 %2494  ;;  %7517 = vrcp.f32 %v3575_v34 }
 0x587   :  { %v11073_v3 = vpop.f32.mrb[217].mxu1  ;;  %v7504_v59 = vpop.eup %7503  ;;  %v2838_v45 = vsub.f32 %v10570_v43, %v2495_v0  ;;  %v2839_v2 = vsub.f32 %v10575_v32, %v2495_v0  ;;  %v3633_v34 = vadd.f32 %v11065_v16, %v11060_v11  ;;  %7519 = vpow2.f32 %v3184_v40 }
 0x588   :  { %15103 = vst [vmem:[#allocation29_spill] sm:$0xff] %v11073_v3  ;;  %v11079_v7 = vpop.xlane.xlu0 %2515  ;;  %v11081_v60 = vpop.f32.mrb[218].mxu1  ;;  %v2848_v32 = vsub.f32 %v10530_v9, %v11040_v39  ;;  %3643 = vadd.xlane.f32.xlu0 %v3642_v49  ;;  %7521 = vpow2.f32 %v3186_v38  ;;  %v2562_v40 = vmax.f32 %v11068_v33, %v11071_v21  ;;  %v1288_v9 = vld [vmem:[#allocation2 + $0x408] sm:$0xff]  ;;  %v15113_v38 = vld [vmem:[#allocation33_spill] sm:$0xff] }
 0x589   :  { %15104 = vst [vmem:[#allocation27_spill] sm:$0xff] %v11081_v60  ;;  %v11091_v3 = vpop.f32.mrb[219].mxu1  ;;  %v7506_v43 = vpop.eup %7505  ;;  %v3172_v0 = vmul.f32 1.442695, %v2838_v45  ;;  %v3174_v63 = vmul.f32 1.442695, %v2839_v2  ;;  %3634 = vadd.xlane.f32.xlu1 %v3633_v34  ;;  %v4065_v60 = vmul.f32 %v7504_v59, %v15109_v58  ;;  %v2553_v34 = vmax.f32 %v11084_v35, %v11087_v37 }
 0x58a   :  { %15107 = vst [vmem:[#allocation83_spill] sm:$0xff] %v11091_v3  ;;  %v3581_v50 = vpop.xlane.xlu1 %3580  ;;  %v4067_v26 = vmul.f32 %v7506_v43, %v15110_v47  ;;  %v11099_v19 = vpop.eup %7507  ;;  %v1287_v3 = vld [vmem:[#allocation2 + $0x400] sm:$0xff]  ;;  %v15112_v45 = vld [vmem:[#allocation87_spill] sm:$0xff]  ;;  %v4066_v49 = vmul.f32 %v7506_v43, %v15113_v38  ;;  %v11122_v5 = vadd.f32 %v15119_v12, %v1288_v9 }
 0x58b   :  { %15111 = vst [vmem:[#allocation84_spill] sm:$0xff] %v11099_v19  ;;  %7523 = vpow2.f32 %v3172_v0  ;;  %v4064_v2 = vmul.f32 %v7504_v59, %v15112_v45  ;;  %v11107_v39 = vpop.eup %7509  ;;  %v1281_v58 = vld [vmem:[#allocation2 + $0x3d0] sm:$0xff]  ;;  %v3192_v0 = vmul.f32 1.442695, %v2848_v32  ;;  %v15118_v45 = vld [vmem:[#allocation32_spill] sm:$0xff] }
 0x58c   :  { %v11105_v52 = vpop.xlane.xlu0 %3601  ;;  %15114 = vst [vmem:[#allocation34_spill] sm:$0xff] %v11107_v39  ;;  %7525 = vpow2.f32 %v3174_v63  ;;  %v4309_v47 = vpack.c.bf16 %v4067_v26, %v4065_v60  ;;  %2563 = vmax.xlane.f32.xlu0 %v2562_v40  ;;  %v11119_v38 = vadd.f32 %v15118_v45, %v1287_v3  ;;  %v3194_v26 = vmul.f32 1.442695, %v2849_v46  ;;  %v15122_v46 = vld [vmem:[#allocation86_spill] sm:$0xff] }
 0x58d   :  { %v11111_v62 = vpop.eup %7511  ;;  %7527 = vrcp.f32 %v10937_v53  ;;  %v4308_v13 = vpack.c.bf16 %v4066_v49, %v4064_v2  ;;  %v11114_v59 = vpop.f32.mrb[220].mxu1  ;;  %2554 = vmax.xlane.f32.xlu1 %v2553_v34  ;;  %v3648_v3 = vadd.f32 %v11107_v39, %v11099_v19  ;;  %v11135_v9 = vadd.f32 %v15122_v46, %v1281_v58  ;;  %v15123_v49 = vld [vmem:[#allocation88_spill] sm:$0xff] }
 0x58e   :  { %15115 = vst [vmem:[#allocation89_spill] sm:$0xff] %v11111_v62  ;;  %15116 = vst [vmem:[#allocation17_spill] sm:$0xff] %v11114_v59  ;;  %v11116_v43 = vpop.eup %7513  ;;  %4552 = vmatprep.mubr.bf16.mxu0 %v4309_v47  ;;  %v2501_v63 = vpop.xlane.xlu1 %2500  ;;  %7529 = vrcp.f32 %v3581_v50  ;;  %v11138_v34 = vadd.f32 %v15123_v49, %v1282_v51  ;;  %v2853_v58 = vsub.f32 %v10585_v25, %v11079_v7  ;;  %v15126_v49 = vld [vmem:[#allocation10_spill] sm:$0xff]  ;;  %v1286_v19 = vld [vmem:[#allocation2 + $0x3f8] sm:$0xff] }
 0x58f   :  { %15117 = vst [vmem:[#allocation87_spill] sm:$0xff] %v11116_v43  ;;  %v11124_v60 = vpop.f32.mrb[221].mxu1  ;;  %v7516_v53 = vpop.eup %7515  ;;  %4553 = vmatmul.mubr.bf16.gmra.mrb[56].mxu0 %v4308_v13  ;;  %v2842_v32 = vsub.f32 %v10618_v28, %v2501_v63  ;;  %v2843_v40 = vsub.f32 %v10621_v24, %v2501_v63  ;;  %v3639_v13 = vadd.f32 %v11116_v43, %v11111_v62  ;;  %7531 = vpow2.f32 %v3192_v0  ;;  %v15125_v63 = vld [vmem:[#allocation93_spill] sm:$0xff]  ;;  %v15135_v62 = vld [vmem:[#allocation6_spill] sm:$0xff] }
 0x590   :  { %15120 = vst [vmem:[#allocation33_spill] sm:$0xff] %v11124_v60  ;;  %v11130_v2 = vpop.xlane.xlu0 %2521  ;;  %v11132_v12 = vpop.f32.mrb[222].mxu1  ;;  %v2852_v24 = vsub.f32 %v10578_v27, %v11079_v7  ;;  %3649 = vadd.xlane.f32.xlu0 %v3648_v3  ;;  %7533 = vpow2.f32 %v3194_v26  ;;  %v4069_v46 = vmul.f32 %v7516_v53, %v15125_v63  ;;  %v2568_v0 = vmax.f32 %v11119_v38, %v11122_v5  ;;  %v1292_v27 = vld [vmem:[#allocation2 + $0x428] sm:$0xff]  ;;  %v15129_v26 = vld [vmem:[#allocation37_spill] sm:$0xff] }
 0x591   :  { %15121 = vst [vmem:[#allocation32_spill] sm:$0xff] %v11132_v12  ;;  %v11142_v50 = vpop.f32.mrb[223].mxu1  ;;  %v7518_v28 = vpop.eup %7517  ;;  %v3180_v47 = vmul.f32 1.442695, %v2842_v32  ;;  %v3182_v45 = vmul.f32 1.442695, %v2843_v40  ;;  %3640 = vadd.xlane.f32.xlu1 %v3639_v13  ;;  %v2559_v7 = vmax.f32 %v11135_v9, %v11138_v34  ;;  %v11173_v43 = vadd.f32 %v15135_v62, %v1292_v27 }
 0x592   :  { %15124 = vst [vmem:[#allocation25_spill] sm:$0xff] %v11142_v50  ;;  %v3587_v51 = vpop.xlane.xlu1 %3586  ;;  %v4071_v12 = vmul.f32 %v7518_v28, %v15126_v49  ;;  %v11150_v60 = vpop.eup %7519  ;;  %v1291_v50 = vld [vmem:[#allocation2 + $0x420] sm:$0xff]  ;;  %v15128_v32 = vld [vmem:[#allocation91_spill] sm:$0xff]  ;;  %v4070_v3 = vmul.f32 %v7518_v28, %v15129_v26  ;;  %v15138_v62 = vld [vmem:[#allocation90_spill] sm:$0xff] }
 0x593   :  { %15127 = vst [vmem:[#allocation86_spill] sm:$0xff] %v11150_v60  ;;  %7535 = vpow2.f32 %v3180_v47  ;;  %v4068_v40 = vmul.f32 %v7516_v53, %v15128_v32  ;;  %v11158_v25 = vpop.eup %7521  ;;  %v1285_v49 = vld [vmem:[#allocation2 + $0x3f0] sm:$0xff]  ;;  %v3200_v47 = vmul.f32 1.442695, %v2852_v24 }
 0x594   :  { %v11156_v59 = vpop.xlane.xlu0 %3607  ;;  %15130 = vst [vmem:[#allocation88_spill] sm:$0xff] %v11158_v25  ;;  %7537 = vpow2.f32 %v3182_v45  ;;  %v4311_v13 = vpack.c.bf16 %v4071_v12, %v4069_v46  ;;  %2569 = vmax.xlane.f32.xlu0 %v2568_v0  ;;  %v15134_v32 = vld [vmem:[#allocation35_spill] sm:$0xff]  ;;  %v3202_v12 = vmul.f32 1.442695, %v2853_v58  ;;  %v11184_v27 = vadd.f32 %v15138_v62, %v1285_v49  ;;  %v15140_v58 = vld [vmem:[#allocation92_spill] sm:$0xff]  ;;  %v15145_v62 = vld [vmem:[#allocation97_spill] sm:$0xff] }
 0x595   :  { %v11162_v63 = vpop.eup %7523  ;;  %7539 = vrcp.f32 %v10983_v1  ;;  %v4310_v39 = vpack.c.bf16 %v4070_v3, %v4068_v40  ;;  %v11165_v53 = vpop.f32.mrb[224].mxu1  ;;  %v11170_v26 = vadd.f32 %v15134_v32, %v1291_v50  ;;  %2560 = vmax.xlane.f32.xlu1 %v2559_v7  ;;  %v3654_v50 = vadd.f32 %v11158_v25, %v11150_v60 }
 0x596   :  { %15131 = vst [vmem:[#allocation93_spill] sm:$0xff] %v11162_v63  ;;  %15132 = vst [vmem:[#allocation10_spill] sm:$0xff] %v11165_v53  ;;  %v11167_v28 = vpop.eup %7525  ;;  %4560 = vmatprep.mubr.bf16.mxu0 %v4311_v13  ;;  %v2507_v45 = vpop.xlane.xlu1 %2506  ;;  %7541 = vrcp.f32 %v3587_v51  ;;  %v11187_v3 = vadd.f32 %v15140_v58, %v1286_v19  ;;  %v15144_v19 = vld [vmem:[#allocation52_spill] sm:$0xff] }
 0x597   :  { %15133 = vst [vmem:[#allocation91_spill] sm:$0xff] %v11167_v28  ;;  %v11175_v46 = vpop.f32.mrb[225].mxu1  ;;  %v7528_v1 = vpop.eup %7527  ;;  %4561 = vmatmul.mubr.bf16.gmra.mrb[60].mxu0 %v4310_v39  ;;  %v2846_v24 = vsub.f32 %v10658_v57, %v2507_v45  ;;  %v2847_v0 = vsub.f32 %v10661_v22, %v2507_v45  ;;  %15139 = vst [vmem:[#allocation6_spill] sm:$0xff] %v11184_v27  ;;  %7543 = vrcp.f32 %v11021_v10  ;;  %v15143_v22 = vld [vmem:[#allocation50_spill] sm:$0xff] }
 0x598   :  { %15136 = vst [vmem:[#allocation37_spill] sm:$0xff] %v11175_v46  ;;  %v11181_v40 = vpop.f32.mrb[226].mxu1  ;;  %15141 = vst [vmem:[#allocation90_spill] sm:$0xff] %v11187_v3  ;;  %v3645_v39 = vadd.f32 %v11167_v28, %v11162_v63  ;;  %v7530_v57 = vpop.eup %7529  ;;  %7545 = vpow2.f32 %v3200_v47  ;;  %v2856_v7 = vsub.f32 %v15143_v22, %v11130_v2  ;;  %3655 = vadd.xlane.f32.xlu0 %v3654_v50  ;;  %v15148_v50 = vld [vmem:[#allocation95_spill] sm:$0xff] }
 0x599   :  { %15137 = vst [vmem:[#allocation35_spill] sm:$0xff] %v11181_v40  ;;  %v11192_v51 = vpop.f32.mrb[227].mxu1  ;;  %v3188_v13 = vmul.f32 1.442695, %v2846_v24  ;;  %v3190_v32 = vmul.f32 1.442695, %v2847_v0  ;;  %v11196_v49 = vpop.xlane.xlu0 %2527  ;;  %7547 = vpow2.f32 %v3202_v12  ;;  %v2857_v45 = vsub.f32 %v15144_v19, %v11130_v2 }
 0x59a   :  { %15142 = vst [vmem:[#allocation92_spill] sm:$0xff] %v11192_v51  ;;  %3646 = vadd.xlane.f32.xlu1 %v3645_v39  ;;  %v3593_v10 = vpop.xlane.xlu1 %3592  ;;  %v4073_v58 = vmul.f32 %v7528_v1, %v15145_v62  ;;  %v15146_v40 = vld [vmem:[#allocation14_spill] sm:$0xff]  ;;  %v11202_v46 = vpop.eup %7531  ;;  %v2574_v47 = vmax.f32 %v11170_v26, %v11173_v43  ;;  %v1295_v24 = vld [vmem:[#allocation2 + $0x440] sm:$0xff]  ;;  %v4072_v22 = vmul.f32 %v7528_v1, %v15148_v50  ;;  %v1289_v19 = vld [vmem:[#allocation2 + $0x410] sm:$0xff]  ;;  %v3208_v25 = vmul.f32 1.442695, %v2856_v7 }
 0x59b   :  { %v4075_v51 = vmul.f32 %v7530_v57, %v15146_v40  ;;  %15147 = vst [vmem:[#allocation50_spill] sm:$0xff] %v11202_v46  ;;  %v1296_v0 = vld [vmem:[#allocation2 + $0x448] sm:$0xff]  ;;  %7549 = vpow2.f32 %v3188_v13  ;;  %v11208_v60 = vpop.eup %7533  ;;  %v2565_v2 = vmax.f32 %v11184_v27, %v11187_v3  ;;  %v1290_v62 = vld [vmem:[#allocation2 + $0x418] sm:$0xff]  ;;  %v3210_v3 = vmul.f32 1.442695, %v2857_v45 }
 0x59c   :  { %v15149_v12 = vld [vmem:[#allocation38_spill] sm:$0xff]  ;;  %15150 = vst [vmem:[#allocation52_spill] sm:$0xff] %v11208_v60  ;;  %7551 = vpow2.f32 %v3190_v32  ;;  %2575 = vmax.xlane.f32.xlu0 %v2574_v47  ;;  %v15154_v1 = vld [vmem:[#allocation36_spill] sm:$0xff]  ;;  %v15159_v47 = vld [vmem:[#allocation59_spill] sm:$0xff] }
 0x59d   :  { %v4074_v53 = vmul.f32 %v7530_v57, %v15149_v12  ;;  %v4313_v39 = vpack.c.bf16 %v4075_v51, %v4073_v58  ;;  %v11212_v40 = vpop.eup %7535  ;;  %v11214_v28 = vpop.f32.mrb[228].mxu1  ;;  %v11219_v57 = vadd.f32 %v15154_v1, %v1295_v24  ;;  %v15156_v50 = vld [vmem:[#allocation30_spill] sm:$0xff]  ;;  %7553 = vrcp.f32 %v3593_v10 }
 0x59e   :  { %15151 = vst [vmem:[#allocation97_spill] sm:$0xff] %v11212_v40  ;;  %15152 = vst [vmem:[#allocation14_spill] sm:$0xff] %v11214_v28  ;;  %v11216_v13 = vpop.eup %7537  ;;  %v11222_v12 = vadd.f32 %v15156_v50, %v1296_v0  ;;  %2566 = vmax.xlane.f32.xlu1 %v2565_v2  ;;  %v2513_v51 = vpop.xlane.xlu1 %2512  ;;  %v3660_v24 = vadd.f32 %v11208_v60, %v11202_v46  ;;  %v15161_v45 = vld [vmem:[#allocation94_spill] sm:$0xff]  ;;  %v15162_v2 = vld [vmem:[#allocation96_spill] sm:$0xff]  ;;  %7555 = vrcp.f32 %v11056_v18 }
 0x59f   :  { %v4312_v63 = vpack.c.bf16 %v4074_v53, %v4072_v22  ;;  %15153 = vst [vmem:[#allocation95_spill] sm:$0xff] %v11216_v13  ;;  %15155 = vst [vmem:[#allocation38_spill] sm:$0xff] %v11219_v57  ;;  %4568 = vmatprep.mubr.bf16.mxu0 %v4313_v39  ;;  %v11224_v32 = vpop.f32.mrb[229].mxu1  ;;  %v7540_v58 = vpop.eup %7539  ;;  %v2850_v7 = vsub.f32 %v10698_v20, %v2513_v51  ;;  %v2851_v22 = vsub.f32 %v15159_v47, %v2513_v51  ;;  %v15165_v50 = vld [vmem:[#allocation55_spill] sm:$0xff]  ;;  %v15168_v46 = vld [vmem:[#allocation108_spill] sm:$0xff] }
 0x5a0   :  { %15157 = vst [vmem:[#allocation36_spill] sm:$0xff] %v11222_v12  ;;  %15158 = vst [vmem:[#allocation30_spill] sm:$0xff] %v11224_v32  ;;  %v11226_v53 = vpop.xlane.xlu0 %3613  ;;  %v11232_v0 = vpop.f32.mrb[230].mxu1  ;;  %v11235_v39 = vadd.f32 %v15161_v45, %v1289_v19  ;;  %v11238_v1 = vadd.f32 %v15162_v2, %v1290_v62  ;;  %7557 = vpow2.f32 %v3208_v25  ;;  %v2860_v51 = vsub.f32 %v15165_v50, %v11196_v49  ;;  %v1293_v45 = vld [vmem:[#allocation2 + $0x430] sm:$0xff]  ;;  %v15166_v62 = vld [vmem:[#allocation57_spill] sm:$0xff] }
 0x5a1   :  { %4569 = vmatmul.mubr.bf16.gmra.mrb[64].mxu0 %v4312_v63  ;;  %15160 = vst [vmem:[#allocation59_spill] sm:$0xff] %v11232_v0  ;;  %v3651_v63 = vadd.f32 %v11216_v13, %v11212_v40  ;;  %v11243_v10 = vpop.f32.mrb[231].mxu1  ;;  %v7542_v20 = vpop.eup %7541  ;;  %v3196_v47 = vmul.f32 1.442695, %v2850_v7  ;;  %v3198_v0 = vmul.f32 1.442695, %v2851_v22  ;;  %3661 = vadd.xlane.f32.xlu0 %v3660_v24  ;;  %7559 = vpow2.f32 %v3210_v3 }
 0x5a2   :  { %15163 = vst [vmem:[#allocation94_spill] sm:$0xff] %v11238_v1  ;;  %15164 = vst [vmem:[#allocation96_spill] sm:$0xff] %v11243_v10  ;;  %v7544_v19 = vpop.eup %7543  ;;  %v2861_v2 = vsub.f32 %v15166_v62, %v11196_v49  ;;  %v3599_v18 = vpop.xlane.xlu1 %3598  ;;  %v15167_v32 = vld [vmem:[#allocation100_spill] sm:$0xff]  ;;  %v4079_v10 = vmul.f32 %v7542_v20, %v15168_v46  ;;  %v2580_v7 = vmax.f32 %v11219_v57, %v11222_v12  ;;  %v1299_v22 = vld [vmem:[#allocation2 + $0x460] sm:$0xff]  ;;  %v3216_v12 = vmul.f32 1.442695, %v2860_v51 }
 0x5a3   :  { %3652 = vadd.xlane.f32.xlu1 %v3651_v63  ;;  %v4077_v28 = vmul.f32 %v7540_v58, %v15167_v32  ;;  %v11251_v60 = vpop.eup %7545  ;;  %v1294_v25 = vld [vmem:[#allocation2 + $0x438] sm:$0xff]  ;;  %v1300_v24 = vld [vmem:[#allocation2 + $0x468] sm:$0xff]  ;;  %7561 = vpow2.f32 %v3196_v47  ;;  %v15171_v40 = vld [vmem:[#allocation13_spill] sm:$0xff]  ;;  %v2571_v32 = vmax.f32 %v11235_v39, %v11238_v1 }
 0x5a4   :  { %15169 = vst [vmem:[#allocation55_spill] sm:$0xff] %v11251_v60  ;;  %v15170_v50 = vld [vmem:[#allocation98_spill] sm:$0xff]  ;;  %v4078_v13 = vmul.f32 %v7542_v20, %v15171_v40  ;;  %v11257_v49 = vpop.eup %7547  ;;  %7563 = vpow2.f32 %v3198_v0  ;;  %v15174_v62 = vld [vmem:[#allocation39_spill] sm:$0xff]  ;;  %v2534_v57 = vpop.xlane.xlu0 %2533 }
 0x5a5   :  { %v4076_v3 = vmul.f32 %v7540_v58, %v15170_v50  ;;  %15172 = vst [vmem:[#allocation57_spill] sm:$0xff] %v11257_v49  ;;  %v4315_v46 = vpack.c.bf16 %v4079_v10, %v4077_v28  ;;  %v11261_v63 = vpop.eup %7549  ;;  %v11264_v27 = vadd.f32 %v15174_v62, %v1293_v45  ;;  %2581 = vmax.xlane.f32.xlu0 %v2580_v7  ;;  %v11266_v47 = vpop.f32.mrb[232].mxu1  ;;  %v15177_v40 = vld [vmem:[#allocation99_spill] sm:$0xff]  ;;  %v15179_v28 = vld [vmem:[#allocation5_spill] sm:$0xff]  ;;  %v3218_v10 = vmul.f32 1.442695, %v2861_v2 }
 0x5a6   :  { %15173 = vst [vmem:[#allocation100_spill] sm:$0xff] %v11261_v63  ;;  %15175 = vst [vmem:[#allocation108_spill] sm:$0xff] %v11266_v47  ;;  %v11268_v58 = vpop.eup %7551  ;;  %v11271_v20 = vadd.f32 %v15177_v40, %v1294_v25  ;;  %v15178_v50 = vld [vmem:[#allocation31_spill] sm:$0xff]  ;;  %v11277_v0 = vadd.f32 %v15179_v28, %v1300_v24  ;;  %v2519_v51 = vpop.xlane.xlu1 %2518  ;;  %7565 = vrcp.f32 %v3599_v18  ;;  %v3666_v25 = vadd.f32 %v11257_v49, %v11251_v60  ;;  %v15186_v18 = vld [vmem:[#allocation101_spill] sm:$0xff] }
 0x5a7   :  { %v4314_v36 = vpack.c.bf16 %v4078_v13, %v4076_v3  ;;  %15176 = vst [vmem:[#allocation98_spill] sm:$0xff] %v11268_v58  ;;  %v11274_v1 = vadd.f32 %v15178_v50, %v1299_v22  ;;  %4576 = vmatprep.mubr.bf16.mxu0 %v4315_v46  ;;  %2572 = vmax.xlane.f32.xlu1 %v2571_v32  ;;  %v11279_v45 = vpop.f32.mrb[233].mxu1  ;;  %v15181_v13 = vld [vmem:[#allocation11_spill] sm:$0xff]  ;;  %v15182_v3 = vld [vmem:[#allocation61_spill] sm:$0xff]  ;;  %7567 = vrcp.f32 %v11105_v52  ;;  %v7554_v40 = vpop.eup %7553  ;;  %v15187_v50 = vld [vmem:[#allocation60_spill] sm:$0xff] }
 0x5a8   :  { %15180 = vst [vmem:[#allocation13_spill] sm:$0xff] %v11279_v45  ;;  %v2854_v7 = vsub.f32 %v15181_v13, %v2519_v51  ;;  %v2855_v62 = vsub.f32 %v15182_v3, %v2519_v51  ;;  %v11285_v22 = vpop.f32.mrb[234].mxu1  ;;  %v3657_v2 = vadd.f32 %v11268_v58, %v11261_v63  ;;  %v15185_v32 = vld [vmem:[#allocation103_spill] sm:$0xff]  ;;  %7569 = vpow2.f32 %v3216_v12  ;;  %v7556_v3 = vpop.eup %7555  ;;  %v15189_v47 = vld [vmem:[#allocation42_spill] sm:$0xff]  ;;  %v15197_v63 = vld [vmem:[#allocation9_spill] sm:$0xff] }
 0x5a9   :  { %4577 = vmatmul.mubr.bf16.gmra.mrb[68].mxu0 %v4314_v36  ;;  %15183 = vst [vmem:[#allocation39_spill] sm:$0xff] %v11285_v22  ;;  %v11290_v24 = vpop.f32.mrb[235].mxu1  ;;  %v4081_v46 = vmul.f32 %v7544_v19, %v15185_v32  ;;  %v4080_v36 = vmul.f32 %v7544_v19, %v15186_v18  ;;  %v2864_v28 = vsub.f32 %v15187_v50, %v2534_v57  ;;  %7571 = vpow2.f32 %v3218_v10  ;;  %v15188_v22 = vld [vmem:[#allocation16_spill] sm:$0xff]  ;;  %v1303_v19 = vld [vmem:[#allocation2 + $0x480] sm:$0xff]  ;;  %v1304_v18 = vld [vmem:[#allocation2 + $0x488] sm:$0xff] }
 0x5aa   :  { %15184 = vst [vmem:[#allocation99_spill] sm:$0xff] %v11290_v24  ;;  %v3204_v51 = vmul.f32 1.442695, %v2854_v7  ;;  %v3206_v13 = vmul.f32 1.442695, %v2855_v62  ;;  %3667 = vadd.xlane.f32.xlu0 %v3666_v25  ;;  %v2865_v52 = vsub.f32 %v15188_v22, %v2534_v57  ;;  %v3605_v45 = vpop.xlane.xlu1 %3604  ;;  %v4083_v60 = vmul.f32 %v7554_v40, %v15189_v47  ;;  %v15190_v24 = vld [vmem:[#allocation66_spill] sm:$0xff]  ;;  %v11298_v32 = vpop.eup %7557 }
 0x5ab   :  { %3658 = vadd.xlane.f32.xlu1 %v3657_v2  ;;  %v4082_v49 = vmul.f32 %v7554_v40, %v15190_v24  ;;  %15191 = vst [vmem:[#allocation31_spill] sm:$0xff] %v11298_v32  ;;  %v2586_v12 = vmax.f32 %v11274_v1, %v11277_v0  ;;  %v11302_v7 = vpop.eup %7559  ;;  %v2577_v10 = vmax.f32 %v11264_v27, %v11271_v20  ;;  %v1297_v47 = vld [vmem:[#allocation2 + $0x450] sm:$0xff]  ;;  %v1298_v22 = vld [vmem:[#allocation2 + $0x458] sm:$0xff]  ;;  %v3224_v2 = vmul.f32 1.442695, %v2864_v28 }
 0x5ac   :  { %7573 = vpow2.f32 %v3204_v51  ;;  %15192 = vst [vmem:[#allocation5_spill] sm:$0xff] %v11302_v7  ;;  %v4317_v57 = vpack.c.bf16 %v4083_v60, %v4081_v46  ;;  %v15196_v50 = vld [vmem:[#allocation48_spill] sm:$0xff]  ;;  %v11316_v58 = vadd.f32 %v15197_v63, %v1304_v18  ;;  %v15200_v46 = vld [vmem:[#allocation51_spill] sm:$0xff]  ;;  %v15203_v63 = vld [vmem:[#allocation22_spill] sm:$0xff] }
 0x5ad   :  { %7575 = vpow2.f32 %v3206_v13  ;;  %v4316_v62 = vpack.c.bf16 %v4082_v49, %v4080_v36  ;;  %v11306_v25 = vpop.eup %7561  ;;  %v11308_v24 = vpop.f32.mrb[236].mxu1  ;;  %v11313_v51 = vadd.f32 %v15196_v50, %v1303_v19  ;;  %v3226_v13 = vmul.f32 1.442695, %v2865_v52  ;;  %v15201_v36 = vld [vmem:[#allocation54_spill] sm:$0xff] }
 0x5ae   :  { %15193 = vst [vmem:[#allocation11_spill] sm:$0xff] %v11306_v25  ;;  %7577 = vrcp.f32 %v3605_v45  ;;  %2587 = vmax.xlane.f32.xlu0 %v2586_v12  ;;  %15194 = vst [vmem:[#allocation61_spill] sm:$0xff] %v11308_v24  ;;  %v11310_v40 = vpop.eup %7563  ;;  %4584 = vmatprep.mubr.bf16.mxu0 %v4317_v57  ;;  %v2525_v60 = vpop.xlane.xlu1 %2524  ;;  %v3672_v19 = vadd.f32 %v11302_v7, %v11298_v32  ;;  %v11329_v52 = vadd.f32 %v15203_v63, %v1297_v47  ;;  %v15205_v18 = vld [vmem:[#allocation102_spill] sm:$0xff]  ;;  %v15210_v32 = vld [vmem:[#allocation41_spill] sm:$0xff] }
 0x5af   :  { %15195 = vst [vmem:[#allocation103_spill] sm:$0xff] %v11310_v40  ;;  %15198 = vst [vmem:[#allocation101_spill] sm:$0xff] %v11316_v58  ;;  %2578 = vmax.xlane.f32.xlu1 %v2577_v10  ;;  %v11318_v49 = vpop.f32.mrb[237].mxu1  ;;  %v2858_v45 = vsub.f32 %v15200_v46, %v2525_v60  ;;  %v2859_v28 = vsub.f32 %v15201_v36, %v2525_v60  ;;  %v3663_v12 = vadd.f32 %v11310_v40, %v11306_v25  ;;  %v15208_v36 = vld [vmem:[#allocation105_spill] sm:$0xff]  ;;  %v15209_v47 = vld [vmem:[#allocation118_spill] sm:$0xff] }
 0x5b0   :  { %15199 = vst [vmem:[#allocation60_spill] sm:$0xff] %v11318_v49  ;;  %v11326_v50 = vpop.f32.mrb[238].mxu1  ;;  %15204 = vst [vmem:[#allocation42_spill] sm:$0xff] %v11329_v52  ;;  %v11332_v10 = vadd.f32 %v15205_v18, %v1298_v22  ;;  %7579 = vrcp.f32 %v11156_v59  ;;  %v4085_v49 = vmul.f32 %v7556_v3, %v15208_v36  ;;  %v4084_v22 = vmul.f32 %v7556_v3, %v15210_v32  ;;  %v15211_v18 = vld [vmem:[#allocation44_spill] sm:$0xff] }
 0x5b1   :  { %4585 = vmatmul.mubr.bf16.gmra.mrb[72].mxu0 %v4316_v62  ;;  %15202 = vst [vmem:[#allocation16_spill] sm:$0xff] %v11326_v50  ;;  %v11335_v57 = vpop.f32.mrb[239].mxu1  ;;  %v7566_v62 = vpop.eup %7565  ;;  %7581 = vpow2.f32 %v3224_v2  ;;  %v3212_v60 = vmul.f32 1.442695, %v2858_v45  ;;  %v3214_v46 = vmul.f32 1.442695, %v2859_v28  ;;  %v2592_v2 = vmax.f32 %v11313_v51, %v11316_v58 }
 0x5b2   :  { %15206 = vst [vmem:[#allocation66_spill] sm:$0xff] %v11332_v10  ;;  %15207 = vst [vmem:[#allocation48_spill] sm:$0xff] %v11335_v57  ;;  %3673 = vadd.xlane.f32.xlu0 %v3672_v19  ;;  %v7568_v24 = vpop.eup %7567  ;;  %7583 = vpow2.f32 %v3226_v13  ;;  %v3611_v50 = vpop.xlane.xlu1 %3610  ;;  %v4087_v63 = vmul.f32 %v7566_v62, %v15209_v47  ;;  %v4086_v7 = vmul.f32 %v7566_v62, %v15211_v18  ;;  %v1301_v57 = vld [vmem:[#allocation2 + $0x470] sm:$0xff]  ;;  %v1307_v45 = vld [vmem:[#allocation2 + $0x4a0] sm:$0xff] }
 0x5b3   :  { %3664 = vadd.xlane.f32.xlu1 %v3663_v12  ;;  %v11341_v59 = vpop.eup %7569  ;;  %v1308_v28 = vld [vmem:[#allocation2 + $0x4a8] sm:$0xff]  ;;  %7585 = vpow2.f32 %v3212_v60  ;;  %v2583_v13 = vmax.f32 %v11329_v52, %v11332_v10  ;;  %v1302_v32 = vld [vmem:[#allocation2 + $0x478] sm:$0xff] }
 0x5b4   :  { %15212 = vst [vmem:[#allocation9_spill] sm:$0xff] %v11341_v59  ;;  %v11345_v19 = vpop.eup %7571  ;;  %7587 = vpow2.f32 %v3214_v46  ;;  %v4319_v12 = vpack.c.bf16 %v4087_v63, %v4085_v49  ;;  %v4318_v36 = vpack.c.bf16 %v4086_v7, %v4084_v22  ;;  %v15217_v18 = vld [vmem:[#allocation40_spill] sm:$0xff]  ;;  %v15219_v58 = vld [vmem:[#allocation18_spill] sm:$0xff]  ;;  %v15221_v46 = vld [vmem:[#allocation67_spill] sm:$0xff] }
 0x5b5   :  { %15213 = vst [vmem:[#allocation51_spill] sm:$0xff] %v11345_v19  ;;  %7589 = vrcp.f32 %v3611_v50  ;;  %v11351_v62 = vpop.f32.mrb[240].mxu1  ;;  %v11356_v25 = vadd.f32 %v15217_v18, %v1301_v57  ;;  %v15218_v60 = vld [vmem:[#allocation12_spill] sm:$0xff]  ;;  %v11362_v10 = vadd.f32 %v15219_v58, %v1308_v28 }
 0x5b6   :  { %v11349_v3 = vpop.eup %7573  ;;  %2593 = vmax.xlane.f32.xlu0 %v2592_v2  ;;  %15215 = vst [vmem:[#allocation22_spill] sm:$0xff] %v11351_v62  ;;  %v11359_v40 = vadd.f32 %v15218_v60, %v1307_v45  ;;  %4592 = vmatprep.mubr.bf16.mxu0 %v4319_v12  ;;  %v2531_v7 = vpop.xlane.xlu1 %2530  ;;  %v15222_v22 = vld [vmem:[#allocation68_spill] sm:$0xff]  ;;  %v3678_v45 = vadd.f32 %v11345_v19, %v11341_v59  ;;  %v15226_v12 = vld [vmem:[#allocation107_spill] sm:$0xff]  ;;  %7591 = vrcp.f32 %v11226_v53  ;;  %v1312_v59 = vld [vmem:[#allocation2 + $0x4c8] sm:$0xff] }
 0x5b7   :  { %15214 = vst [vmem:[#allocation54_spill] sm:$0xff] %v11349_v3  ;;  %v11353_v47 = vpop.eup %7575  ;;  %2584 = vmax.xlane.f32.xlu1 %v2583_v13  ;;  %v11364_v49 = vpop.f32.mrb[241].mxu1  ;;  %v2862_v63 = vsub.f32 %v15221_v46, %v2531_v7  ;;  %v2863_v2 = vsub.f32 %v15222_v22, %v2531_v7  ;;  %v15224_v58 = vld [vmem:[#allocation104_spill] sm:$0xff]  ;;  %v4089_v60 = vmul.f32 %v7568_v24, %v15226_v12 }
 0x5b8   :  { %15216 = vst [vmem:[#allocation102_spill] sm:$0xff] %v11353_v47  ;;  %15220 = vst [vmem:[#allocation105_spill] sm:$0xff] %v11364_v49  ;;  %v7578_v50 = vpop.eup %7577  ;;  %v3669_v57 = vadd.f32 %v11353_v47, %v11349_v3  ;;  %v11372_v18 = vpop.f32.mrb[242].mxu1  ;;  %v11375_v28 = vadd.f32 %v15224_v58, %v1302_v32  ;;  %v15228_v46 = vld [vmem:[#allocation120_spill] sm:$0xff]  ;;  %v15229_v3 = vld [vmem:[#allocation47_spill] sm:$0xff]  ;;  %v2598_v12 = vmax.f32 %v11359_v40, %v11362_v10 }
 0x5b9   :  { %4593 = vmatmul.mubr.bf16.gmra.mrb[76].mxu0 %v4318_v36  ;;  %15223 = vst [vmem:[#allocation118_spill] sm:$0xff] %v11372_v18  ;;  %v11377_v13 = vpop.f32.mrb[243].mxu1  ;;  %v15227_v36 = vld [vmem:[#allocation122_spill] sm:$0xff]  ;;  %v4090_v62 = vmul.f32 %v7578_v50, %v15228_v46  ;;  %v3220_v7 = vmul.f32 1.442695, %v2862_v63  ;;  %v4088_v47 = vmul.f32 %v7568_v24, %v15229_v3  ;;  %v1306_v3 = vld [vmem:[#allocation2 + $0x498] sm:$0xff] }
 0x5ba   :  { %15225 = vst [vmem:[#allocation41_spill] sm:$0xff] %v11377_v13  ;;  %v4091_v49 = vmul.f32 %v7578_v50, %v15227_v36  ;;  %v3222_v22 = vmul.f32 1.442695, %v2863_v2  ;;  %3679 = vadd.xlane.f32.xlu0 %v3678_v45  ;;  %v7580_v52 = vpop.eup %7579  ;;  %v3617_v18 = vpop.xlane.xlu1 %3616  ;;  %v1305_v13 = vld [vmem:[#allocation2 + $0x490] sm:$0xff]  ;;  %v1311_v36 = vld [vmem:[#allocation2 + $0x4c0] sm:$0xff]  ;;  %v2589_v24 = vmax.f32 %v11356_v25, %v11375_v28 }
 0x5bb   :  { %3670 = vadd.xlane.f32.xlu1 %v3669_v57  ;;  %v11384_v58 = vpop.eup %7581  ;;  %7593 = vpow2.f32 %v3220_v7  ;;  %v4320_v50 = vpack.c.bf16 %v4090_v62, %v4088_v47  ;;  %v15234_v57 = vld [vmem:[#allocation28_spill] sm:$0xff]  ;;  %v15235_v62 = vld [vmem:[#allocation15_spill] sm:$0xff] }
 0x5bc   :  { %v4321_v32 = vpack.c.bf16 %v4091_v49, %v4089_v60  ;;  %15230 = vst [vmem:[#allocation44_spill] sm:$0xff] %v11384_v58  ;;  %v11388_v63 = vpop.eup %7583  ;;  %7595 = vpow2.f32 %v3222_v22  ;;  %v11399_v45 = vadd.f32 %v15234_v57, %v1305_v13  ;;  %v11402_v47 = vadd.f32 %v15235_v62, %v1311_v36  ;;  %v15236_v60 = vld [vmem:[#allocation21_spill] sm:$0xff] }
 0x5bd   :  { %v11392_v53 = vpop.eup %7585  ;;  %7597 = vrcp.f32 %v3617_v18  ;;  %v11394_v49 = vpop.f32.mrb[244].mxu1  ;;  %v11405_v46 = vadd.f32 %v15236_v60, %v1312_v59  ;;  %v3684_v36 = vadd.f32 %v11388_v63, %v11384_v58  ;;  %v15239_v59 = vld [vmem:[#allocation106_spill] sm:$0xff]  ;;  %v15241_v60 = vld [vmem:[#allocation112_spill] sm:$0xff] }
 0x5be   :  { %4600 = vmatprep.mubr.bf16.mxu0 %v4321_v32  ;;  %15231 = vst [vmem:[#allocation40_spill] sm:$0xff] %v11392_v53  ;;  %2599 = vmax.xlane.f32.xlu0 %v2598_v12  ;;  %15232 = vst [vmem:[#allocation12_spill] sm:$0xff] %v11394_v49  ;;  %v11396_v2 = vpop.eup %7587  ;;  %v2537_v7 = vpop.xlane.xlu1 %2536  ;;  %v11418_v62 = vadd.f32 %v15239_v59, %v1306_v3 }
 0x5bf   :  { %15233 = vst [vmem:[#allocation18_spill] sm:$0xff] %v11396_v2  ;;  %2590 = vmax.xlane.f32.xlu1 %v2589_v24  ;;  %v11407_v22 = vpop.f32.mrb[245].mxu1  ;;  %v7590_v32 = vpop.eup %7589  ;;  %v2866_v18 = vsub.f32 %v10808_v4, %v2537_v7  ;;  %v2867_v12 = vsub.f32 %v10811_v14, %v2537_v7  ;;  %v3675_v13 = vadd.f32 %v11396_v2, %v11392_v53  ;;  %v15243_v4 = vld [vmem:[#allocation124_spill] sm:$0xff]  ;;  %v15244_v53 = vld [vmem:[#allocation110_spill] sm:$0xff] }
 0x5c0   :  { %15237 = vst [vmem:[#allocation67_spill] sm:$0xff] %v11407_v22  ;;  %v11415_v57 = vpop.f32.mrb[246].mxu1  ;;  %v4093_v22 = vmul.f32 %v7580_v52, %v15241_v60  ;;  %v4094_v19 = vmul.f32 %v7590_v32, %v15243_v4  ;;  %v4092_v2 = vmul.f32 %v7580_v52, %v15244_v53  ;;  %v7592_v59 = vpop.eup %7591  ;;  %v2595_v60 = vmax.f32 %v11399_v45, %v11418_v62 }
 0x5c1   :  { %4601 = vmatmul.mubr.bf16.gmra.mrb[80].mxu0 %v4320_v50  ;;  %15238 = vst [vmem:[#allocation68_spill] sm:$0xff] %v11415_v57  ;;  %v11420_v24 = vpop.f32.mrb[247].mxu1  ;;  %v15242_v50 = vld [vmem:[#allocation126_spill] sm:$0xff]  ;;  %v3228_v14 = vmul.f32 1.442695, %v2866_v18  ;;  %v2604_v57 = vmax.f32 %v11402_v47, %v11405_v46  ;;  %v1310_v18 = vld [vmem:[#allocation2 + $0x4b8] sm:$0xff] }
 0x5c2   :  { %15240 = vst [vmem:[#allocation104_spill] sm:$0xff] %v11420_v24  ;;  %v4095_v49 = vmul.f32 %v7590_v32, %v15242_v50  ;;  %v3230_v7 = vmul.f32 1.442695, %v2867_v12  ;;  %3685 = vadd.xlane.f32.xlu0 %v3684_v36  ;;  %v4322_v3 = vpack.c.bf16 %v4094_v19, %v4092_v2  ;;  %v1309_v24 = vld [vmem:[#allocation2 + $0x4b0] sm:$0xff]  ;;  %v15247_v19 = vld [vmem:[#allocation109_spill] sm:$0xff]  ;;  %v15251_v50 = vld [vmem:[#allocation116_spill] sm:$0xff] }
 0x5c3   :  { %3676 = vadd.xlane.f32.xlu1 %v3675_v13  ;;  %7599 = vpow2.f32 %v3228_v14  ;;  %v11439_v2 = vadd.f32 %v15247_v19, %v1309_v24  ;;  %v15249_v13 = vld [vmem:[#allocation111_spill] sm:$0xff]  ;;  %v4097_v4 = vmul.f32 %v7592_v59, %v15251_v50 }
 0x5c4   :  { %v4323_v58 = vpack.c.bf16 %v4095_v49, %v4093_v22  ;;  %7601 = vpow2.f32 %v3230_v7  ;;  %v11446_v36 = vadd.f32 %v15249_v13, %v1310_v18  ;;  %v1313_v18 = vld [vmem:[#allocation2 + $0x4d0] sm:$0xff]  ;;  %v1314_v13 = vld [vmem:[#allocation2 + $0x4d8] sm:$0xff] }
 0x5c5   :  { %v11430_v32 = vpop.eup %7593  ;;  %v11432_v12 = vpop.f32.mrb[248].mxu1 }
 0x5c6   :  { %4608 = vmatprep.mubr.bf16.mxu0 %v4323_v58  ;;  %2605 = vmax.xlane.f32.xlu0 %v2604_v57  ;;  %15245 = vst [vmem:[#allocation107_spill] sm:$0xff] %v11432_v12  ;;  %v11434_v52 = vpop.eup %7595  ;;  %v11436_v53 = vpop.f32.mrb[249].mxu1 }
 0x5c7   :  { %2596 = vmax.xlane.f32.xlu1 %v2595_v60  ;;  %15246 = vst [vmem:[#allocation122_spill] sm:$0xff] %v11436_v53  ;;  %v7598_v49 = vpop.eup %7597  ;;  %v3681_v22 = vadd.f32 %v11434_v52, %v11430_v32  ;;  %v11443_v58 = vpop.f32.mrb[250].mxu1  ;;  %v15252_v60 = vld [vmem:[#allocation114_spill] sm:$0xff]  ;;  %v2601_v53 = vmax.f32 %v11439_v2, %v11446_v36 }
 0x5c8   :  { %15248 = vst [vmem:[#allocation120_spill] sm:$0xff] %v11443_v58  ;;  %v11448_v57 = vpop.f32.mrb[251].mxu1  ;;  %v4099_v14 = vmul.f32 %v7598_v49, %v10803_v17  ;;  %v4098_v7 = vmul.f32 %v7598_v49, %v10796_v61  ;;  %v4096_v24 = vmul.f32 %v7592_v59, %v15252_v60  ;;  %v15258_v49 = vld [vmem:[#allocation113_spill] sm:$0xff] }
 0x5c9   :  { %4609 = vmatmul.mubr.bf16.gmra.mrb[84].mxu0 %v4322_v3  ;;  %15250 = vst [vmem:[#allocation47_spill] sm:$0xff] %v11448_v57 }
 0x5ca   :  { %v4325_v3 = vpack.c.bf16 %v4099_v14, %v4097_v4  ;;  %v4324_v19 = vpack.c.bf16 %v4098_v7, %v4096_v24  ;;  %v15259_v4 = vld [vmem:[#allocation115_spill] sm:$0xff] }
 0x5cb   :  { %3682 = vadd.xlane.f32.xlu1 %v3681_v22  ;;  %v11469_v22 = vadd.f32 %v15258_v49, %v1313_v18  ;;  %v11472_v14 = vadd.f32 %v15259_v4, %v1314_v13 }
 0x5cc   :  { %4616 = vmatprep.mubr.bf16.mxu0 %v4325_v3 }
 0x5cd   :  { %v11456_v58 = vpop.eup %7599  ;;  %v11458_v57 = vpop.f32.mrb[252].mxu1 }
 0x5ce   :  { %15253 = vst [vmem:[#allocation28_spill] sm:$0xff] %v11456_v58  ;;  %15254 = vst [vmem:[#allocation15_spill] sm:$0xff] %v11458_v57  ;;  %v11460_v50 = vpop.eup %7601  ;;  %v11462_v17 = vpop.f32.mrb[253].mxu1 }
 0x5cf   :  { %15255 = vst [vmem:[#allocation21_spill] sm:$0xff] %v11460_v50  ;;  %2602 = vmax.xlane.f32.xlu1 %v2601_v53  ;;  %15256 = vst [vmem:[#allocation106_spill] sm:$0xff] %v11462_v17  ;;  %v3687_v61 = vadd.f32 %v11460_v50, %v11456_v58  ;;  %v11466_v59 = vpop.f32.mrb[254].mxu1  ;;  %v2607_v53 = vmax.f32 %v11469_v22, %v11472_v14  ;;  %v1316_v50 = vld [vmem:[#allocation2 + $0x4e8] sm:$0xff] }
 0x5d0   :  { %15257 = vst [vmem:[#allocation112_spill] sm:$0xff] %v11466_v59  ;;  %v11474_v7 = vpop.f32.mrb[255].mxu1 }
 0x5d1   :  { %4617 = vmatmul.mubr.bf16.gmra.mrb[88].mxu0 %v4324_v19  ;;  %15260 = vst [vmem:[#allocation126_spill] sm:$0xff] %v11474_v7 }
 0x5d3   :  { %3688 = vadd.xlane.f32.xlu1 %v3687_v61 }
 0x5d7   :  { %2608 = vmax.xlane.f32.xlu1 %v2607_v53 }
 0x5f5   :  { %v3620_v60 = vpop.xlane.xlu0 %3619 }
 0x5f6   :  { %7603 = vrcp.f32 %v3620_v60 }
 0x5f8   :  { %v3623_v24 = vpop.xlane.xlu1 %3622 }
 0x5f9   :  { %7605 = vrcp.f32 %v3623_v24  ;;  %v2540_v3 = vpop.xlane.xlu0 %2539 }
 0x5fa   :  { %v2868_v19 = vsub.f32 %v10908_v30, %v2540_v3  ;;  %v2869_v18 = vsub.f32 %v10911_v6, %v2540_v3 }
 0x5fc   :  { %v2543_v49 = vpop.xlane.xlu1 %2542  ;;  %v3232_v59 = vmul.f32 1.442695, %v2868_v19  ;;  %v3234_v13 = vmul.f32 1.442695, %v2869_v18  ;;  %v15263_v18 = vld [vmem:[#allocation148_spill] sm:$0xff] }
 0x5fd   :  { %v2870_v4 = vsub.f32 %v10922_v42, %v2543_v49  ;;  %v2871_v61 = vsub.f32 %v10928_v29, %v2543_v49  ;;  %v11482_v7 = vpop.f32.mrb[32].mxu0  ;;  %v3626_v17 = vpop.xlane.xlu0 %3625 }
 0x5fe   :  { %15261 = vst [vmem:[#allocation124_spill] sm:$0xff] %v11482_v7  ;;  %v4508_v53 = vpop.f32.mrb[33].mxu0  ;;  %7607 = vpow2.f32 %v3232_v59 }
 0x5ff   :  { %v3236_v60 = vmul.f32 1.442695, %v2870_v4  ;;  %v3238_v57 = vmul.f32 1.442695, %v2871_v61  ;;  %v11484_v24 = vpop.f32.mrb[34].mxu0  ;;  %7609 = vpow2.f32 %v3234_v13  ;;  %v15264_v4 = vld [vmem:[#allocation72_spill] sm:$0xff] }
 0x600   :  { %15262 = vst [vmem:[#allocation110_spill] sm:$0xff] %v11484_v24  ;;  %v3629_v30 = vpop.xlane.xlu1 %3628  ;;  %v4511_v12 = vpop.f32.mrb[35].mxu0  ;;  %v15265_v53 = vld [vmem:[#allocation63_spill] sm:$0xff]  ;;  %v15266_v24 = vld [vmem:[#allocation150_spill] sm:$0xff] }
 0x601   :  { %v7604_v6 = vpop.eup %7603  ;;  %7611 = vpow2.f32 %v3236_v60  ;;  %v2546_v3 = vpop.xlane.xlu0 %2545 }
 0x602   :  { %7613 = vpow2.f32 %v3238_v57  ;;  %v2872_v42 = vsub.f32 %v10952_v55, %v2546_v3  ;;  %v2873_v29 = vsub.f32 %v10955_v8, %v2546_v3  ;;  %v4101_v49 = vmul.f32 %v7604_v6, %v15263_v18  ;;  %v1315_v55 = vld [vmem:[#allocation2 + $0x4e0] sm:$0xff] }
 0x603   :  { %v7606_v19 = vpop.eup %7605  ;;  %7615 = vrcp.f32 %v3626_v17  ;;  %v4100_v13 = vmul.f32 %v7604_v6, %v15265_v53 }
 0x604   :  { %7617 = vrcp.f32 %v3629_v30  ;;  %v2549_v59 = vpop.xlane.xlu1 %2548  ;;  %v4103_v61 = vmul.f32 %v7606_v19, %v15264_v4  ;;  %v4102_v12 = vmul.f32 %v7606_v19, %v15266_v24  ;;  %v3240_v7 = vmul.f32 1.442695, %v2872_v42  ;;  %v15271_v42 = vld [vmem:[#allocation69_spill] sm:$0xff] }
 0x605   :  { %v3242_v60 = vmul.f32 1.442695, %v2873_v29  ;;  %v2874_v57 = vsub.f32 %v10964_v44, %v2549_v59  ;;  %v2875_v17 = vsub.f32 %v10969_v31, %v2549_v59  ;;  %v11494_v58 = vpop.f32.mrb[36].mxu0  ;;  %v11496_v8 = vpop.xlane.xlu0 %3631  ;;  %v1317_v31 = vld [vmem:[#allocation2 + $0x4f0] sm:$0xff]  ;;  %v11505_v29 = vadd.f32 %v15271_v42, %v1315_v55 }
 0x606   :  { %15267 = vst [vmem:[#allocation109_spill] sm:$0xff] %v11494_v58  ;;  %v4516_v3 = vpop.f32.mrb[37].mxu0  ;;  %v4327_v30 = vpack.c.bf16 %v4103_v61, %v4101_v49  ;;  %v4326_v18 = vpack.c.bf16 %v4102_v12, %v4100_v13  ;;  %7619 = vpow2.f32 %v3240_v7  ;;  %v15272_v49 = vld [vmem:[#allocation43_spill] sm:$0xff]  ;;  %v1318_v7 = vld [vmem:[#allocation2 + $0x4f8] sm:$0xff] }
 0x607   :  { %v3244_v4 = vmul.f32 1.442695, %v2874_v57  ;;  %v3246_v6 = vmul.f32 1.442695, %v2875_v17  ;;  %v11498_v53 = vpop.f32.mrb[38].mxu0  ;;  %7621 = vpow2.f32 %v3242_v60  ;;  %v11508_v59 = vadd.f32 %v15272_v49, %v1316_v50  ;;  %v15276_v3 = vld [vmem:[#allocation117_spill] sm:$0xff] }
 0x608   :  { %15268 = vst [vmem:[#allocation111_spill] sm:$0xff] %v11498_v53  ;;  %4624 = vmatprep.mubr.bf16.mxu0 %v4327_v30  ;;  %v4519_v24 = vpop.f32.mrb[39].mxu0  ;;  %v11500_v44 = vpop.eup %7607  ;;  %v11519_v55 = vadd.f32 %v15276_v3, %v1317_v31  ;;  %v15277_v50 = vld [vmem:[#allocation119_spill] sm:$0xff]  ;;  %v1319_v53 = vld [vmem:[#allocation2 + $0x500] sm:$0xff]  ;;  %v1320_v31 = vld [vmem:[#allocation2 + $0x508] sm:$0xff] }
 0x609   :  { %15269 = vst [vmem:[#allocation116_spill] sm:$0xff] %v11500_v44  ;;  %7623 = vpow2.f32 %v3244_v4  ;;  %4625 = vmatmul.mubr.bf16.gmra.mrb[92].mxu0 %v4326_v18  ;;  %v11502_v19 = vpop.eup %7609  ;;  %15273 = vst [vmem:[#allocation113_spill] sm:$0xff] %v11508_v59  ;;  %v2552_v61 = vpop.xlane.xlu0 %2551  ;;  %v11522_v18 = vadd.f32 %v15277_v50, %v1318_v7  ;;  %v15278_v49 = vld [vmem:[#allocation151_spill] sm:$0xff]  ;;  %v15279_v3 = vld [vmem:[#allocation154_spill] sm:$0xff] }
 0x60a   :  { %15270 = vst [vmem:[#allocation114_spill] sm:$0xff] %v11502_v19  ;;  %7625 = vpow2.f32 %v3246_v6  ;;  %v2876_v12 = vsub.f32 %v10988_v15, %v2552_v61  ;;  %v2877_v60 = vsub.f32 %v10998_v56, %v2552_v61  ;;  %v3690_v57 = vadd.f32 %v11502_v19, %v11500_v44  ;;  %v15280_v50 = vld [vmem:[#allocation74_spill] sm:$0xff]  ;;  %v1321_v44 = vld [vmem:[#allocation2 + $0x510] sm:$0xff] }
 0x60b   :  { %v11510_v13 = vpop.eup %7611  ;;  %v2610_v56 = vmax.f32 %v11505_v29, %v11508_v59 }
 0x60c   :  { %15274 = vst [vmem:[#allocation115_spill] sm:$0xff] %v11510_v13  ;;  %v11516_v17 = vpop.eup %7613  ;;  %v3248_v4 = vmul.f32 1.442695, %v2876_v12  ;;  %v3250_v6 = vmul.f32 1.442695, %v2877_v60  ;;  %3691 = vadd.xlane.f32.xlu0 %v3690_v57  ;;  %v15281_v60 = vld [vmem:[#allocation152_spill] sm:$0xff] }
 0x60d   :  { %15275 = vst [vmem:[#allocation148_spill] sm:$0xff] %v11516_v17  ;;  %v7616_v30 = vpop.eup %7615  ;;  %v3693_v15 = vadd.f32 %v11516_v17, %v11510_v13  ;;  %v3638_v42 = vpop.xlane.xlu0 %3637  ;;  %v2613_v13 = vmax.f32 %v11519_v55, %v11522_v18 }
 0x60e   :  { %v7618_v24 = vpop.eup %7617  ;;  %v4105_v61 = vmul.f32 %v7616_v30, %v15278_v49  ;;  %7627 = vpow2.f32 %v3248_v4  ;;  %v4104_v12 = vmul.f32 %v7616_v30, %v15280_v50  ;;  %v15282_v4 = vld [vmem:[#allocation45_spill] sm:$0xff]  ;;  %v1322_v30 = vld [vmem:[#allocation2 + $0x518] sm:$0xff] }
 0x60f   :  { %3694 = vadd.xlane.f32.xlu1 %v3693_v15  ;;  %v4107_v7 = vmul.f32 %v7618_v24, %v15279_v3  ;;  %v4106_v57 = vmul.f32 %v7618_v24, %v15281_v60  ;;  %7629 = vpow2.f32 %v3250_v6  ;;  %v11539_v15 = vadd.f32 %v15282_v4, %v1319_v53  ;;  %v15283_v3 = vld [vmem:[#allocation46_spill] sm:$0xff]  ;;  %v15285_v53 = vld [vmem:[#allocation121_spill] sm:$0xff] }
 0x610   :  { %v11532_v58 = vpop.eup %7619  ;;  %2611 = vmax.xlane.f32.xlu0 %v2610_v56  ;;  %v11542_v59 = vadd.f32 %v15283_v3, %v1320_v31  ;;  %v15286_v31 = vld [vmem:[#allocation123_spill] sm:$0xff]  ;;  %7631 = vrcp.f32 %v11496_v8  ;;  %v15289_v8 = vld [vmem:[#allocation64_spill] sm:$0xff] }
 0x611   :  { %v4329_v17 = vpack.c.bf16 %v4107_v7, %v4105_v61  ;;  %v4328_v49 = vpack.c.bf16 %v4106_v57, %v4104_v12  ;;  %v11536_v19 = vpop.eup %7621  ;;  %v2558_v24 = vpop.xlane.xlu0 %2557  ;;  %v11553_v12 = vadd.f32 %v15285_v53, %v1321_v44  ;;  %v11556_v60 = vadd.f32 %v15286_v31, %v1322_v30 }
 0x612   :  { %v2880_v50 = vsub.f32 %v11024_v23, %v2558_v24  ;;  %v2881_v56 = vsub.f32 %v11030_v41, %v2558_v24  ;;  %v3696_v61 = vadd.f32 %v11536_v19, %v11532_v58 }
 0x613   :  { %v11544_v6 = vpop.eup %7623  ;;  %4632 = vmatprep.mubr.bf16.mxu0 %v4329_v17  ;;  %2614 = vmax.xlane.f32.xlu1 %v2613_v13  ;;  %v2616_v13 = vmax.f32 %v11539_v15, %v11542_v59  ;;  %v1323_v17 = vld [vmem:[#allocation2 + $0x520] sm:$0xff]  ;;  %v2619_v30 = vmax.f32 %v11553_v12, %v11556_v60 }
 0x614   :  { %15284 = vst [vmem:[#allocation72_spill] sm:$0xff] %v11544_v6  ;;  %v11550_v7 = vpop.eup %7625  ;;  %4633 = vmatmul.mubr.bf16.gmra.mrb[96].mxu0 %v4328_v49  ;;  %v3256_v57 = vmul.f32 1.442695, %v2880_v50  ;;  %v3258_v4 = vmul.f32 1.442695, %v2881_v56  ;;  %3697 = vadd.xlane.f32.xlu0 %v3696_v61  ;;  %v1324_v49 = vld [vmem:[#allocation2 + $0x528] sm:$0xff]  ;;  %v11570_v50 = vadd.f32 %v15289_v8, %v1323_v17 }
 0x615   :  { %v3699_v23 = vadd.f32 %v11550_v7, %v11544_v6  ;;  %v3644_v41 = vpop.xlane.xlu0 %3643  ;;  %v15290_v61 = vld [vmem:[#allocation65_spill] sm:$0xff] }
 0x616   :  { %7633 = vpow2.f32 %v3256_v57  ;;  %v3635_v44 = vpop.xlane.xlu1 %3634  ;;  %v11573_v53 = vadd.f32 %v15290_v61, %v1324_v49 }
 0x617   :  { %3700 = vadd.xlane.f32.xlu1 %v3699_v23  ;;  %7635 = vpow2.f32 %v3258_v4 }
 0x618   :  { %v11563_v3 = vpop.eup %7627  ;;  %7637 = vrcp.f32 %v3635_v44  ;;  %2617 = vmax.xlane.f32.xlu0 %v2616_v13 }
 0x619   :  { %15287 = vst [vmem:[#allocation63_spill] sm:$0xff] %v11563_v3  ;;  %v11567_v24 = vpop.eup %7629  ;;  %v2564_v56 = vpop.xlane.xlu0 %2563  ;;  %7639 = vrcp.f32 %v3638_v42  ;;  %v15293_v42 = vld [vmem:[#allocation53_spill] sm:$0xff] }
 0x61a   :  { %15288 = vst [vmem:[#allocation150_spill] sm:$0xff] %v11567_v24  ;;  %v2555_v31 = vpop.xlane.xlu1 %2554  ;;  %v2884_v57 = vsub.f32 %v11068_v33, %v2564_v56  ;;  %v2885_v4 = vsub.f32 %v11071_v21, %v2564_v56  ;;  %v3702_v23 = vadd.f32 %v11567_v24, %v11563_v3  ;;  %v2622_v33 = vmax.f32 %v11570_v50, %v11573_v53  ;;  %v1328_v21 = vld [vmem:[#allocation2 + $0x548] sm:$0xff]  ;;  %v7632_v3 = vpop.eup %7631 }
 0x61b   :  { %2620 = vmax.xlane.f32.xlu1 %v2619_v30  ;;  %v2878_v13 = vsub.f32 %v11084_v35, %v2555_v31  ;;  %v2879_v44 = vsub.f32 %v11087_v37, %v2555_v31  ;;  %v1327_v30 = vld [vmem:[#allocation2 + $0x540] sm:$0xff] }
 0x61c   :  { %v3264_v6 = vmul.f32 1.442695, %v2884_v57  ;;  %3703 = vadd.xlane.f32.xlu0 %v3702_v23  ;;  %v3266_v49 = vmul.f32 1.442695, %v2885_v4  ;;  %v11590_v31 = vadd.f32 %v15293_v42, %v1327_v30  ;;  %v15295_v57 = vld [vmem:[#allocation8_spill] sm:$0xff]  ;;  %v4109_v42 = vmul.f32 %v7632_v3, %v10979_v54 }
 0x61d   :  { %v3252_v17 = vmul.f32 1.442695, %v2878_v13  ;;  %v3254_v8 = vmul.f32 1.442695, %v2879_v44  ;;  %v11581_v61 = vpop.xlane.xlu0 %3649  ;;  %v11593_v4 = vadd.f32 %v15295_v57, %v1328_v21 }
 0x61e   :  { %7641 = vpow2.f32 %v3264_v6  ;;  %v3641_v56 = vpop.xlane.xlu1 %3640  ;;  %15294 = vst [vmem:[#allocation117_spill] sm:$0xff] %v11590_v31 }
 0x61f   :  { %7643 = vpow2.f32 %v3252_v17  ;;  %15296 = vst [vmem:[#allocation119_spill] sm:$0xff] %v11593_v4  ;;  %v2628_v54 = vmax.f32 %v11590_v31, %v11593_v4  ;;  %v1336_v31 = vld [vmem:[#allocation2 + $0x588] sm:$0xff] }
 0x620   :  { %v11585_v35 = vpop.eup %7633  ;;  %7645 = vpow2.f32 %v3254_v8  ;;  %2623 = vmax.xlane.f32.xlu0 %v2622_v33 }
 0x621   :  { %15291 = vst [vmem:[#allocation69_spill] sm:$0xff] %v11585_v35  ;;  %v11587_v37 = vpop.eup %7635  ;;  %7647 = vpow2.f32 %v3266_v49  ;;  %v2570_v23 = vpop.xlane.xlu0 %2569  ;;  %v1325_v49 = vld [vmem:[#allocation2 + $0x530] sm:$0xff] }
 0x622   :  { %15292 = vst [vmem:[#allocation43_spill] sm:$0xff] %v11587_v37  ;;  %v7638_v13 = vpop.eup %7637  ;;  %7649 = vrcp.f32 %v3641_v56  ;;  %v2561_v6 = vpop.xlane.xlu1 %2560  ;;  %v2888_v44 = vsub.f32 %v11119_v38, %v2570_v23  ;;  %v2889_v17 = vsub.f32 %v11122_v5, %v2570_v23  ;;  %v3708_v8 = vadd.f32 %v11587_v37, %v11585_v35 }
 0x623   :  { %v2882_v33 = vsub.f32 %v11135_v9, %v2561_v6  ;;  %v2883_v30 = vsub.f32 %v11138_v34, %v2561_v6  ;;  %v4111_v21 = vmul.f32 %v7638_v13, %v11065_v16  ;;  %7651 = vrcp.f32 %v3644_v41  ;;  %v1326_v9 = vld [vmem:[#allocation2 + $0x538] sm:$0xff]  ;;  %v1331_v34 = vld [vmem:[#allocation2 + $0x560] sm:$0xff]  ;;  %v1332_v16 = vld [vmem:[#allocation2 + $0x568] sm:$0xff] }
 0x624   :  { %v3272_v57 = vmul.f32 1.442695, %v2888_v44  ;;  %3709 = vadd.xlane.f32.xlu0 %v3708_v8  ;;  %v4108_v56 = vmul.f32 %v7632_v3, %v10975_v48  ;;  %v4110_v38 = vmul.f32 %v7638_v13, %v11060_v11  ;;  %v3274_v24 = vmul.f32 1.442695, %v2889_v17  ;;  %v7640_v44 = vpop.eup %7639  ;;  %v15298_v11 = vld [vmem:[#allocation125_spill] sm:$0xff]  ;;  %v15300_v17 = vld [vmem:[#allocation127_spill] sm:$0xff] }
 0x625   :  { %v3260_v5 = vmul.f32 1.442695, %v2882_v33  ;;  %v3262_v23 = vmul.f32 1.442695, %v2883_v30  ;;  %v4331_v35 = vpack.c.bf16 %v4111_v21, %v4109_v42  ;;  %v11605_v37 = vpop.xlane.xlu0 %3655  ;;  %v11612_v3 = vadd.f32 %v15298_v11, %v1325_v49  ;;  %v15302_v33 = vld [vmem:[#allocation70_spill] sm:$0xff]  ;;  %v15304_v42 = vld [vmem:[#allocation71_spill] sm:$0xff] }
 0x626   :  { %7653 = vpow2.f32 %v3272_v57  ;;  %v4330_v6 = vpack.c.bf16 %v4110_v38, %v4108_v56  ;;  %v11617_v8 = vadd.f32 %v15300_v17, %v1326_v9  ;;  %v11620_v30 = vadd.f32 %v15302_v33, %v1331_v34 }
 0x627   :  { %v3647_v41 = vpop.xlane.xlu1 %3646  ;;  %7655 = vpow2.f32 %v3260_v5  ;;  %4640 = vmatprep.mubr.bf16.mxu0 %v4331_v35  ;;  %v11623_v21 = vadd.f32 %v15304_v42, %v1332_v16  ;;  %v15307_v5 = vld [vmem:[#allocation157_spill] sm:$0xff]  ;;  %v15311_v16 = vld [vmem:[#allocation156_spill] sm:$0xff]  ;;  %v1329_v42 = vld [vmem:[#allocation2 + $0x550] sm:$0xff] }
 0x628   :  { %v11609_v48 = vpop.eup %7641  ;;  %7657 = vpow2.f32 %v3262_v23  ;;  %4641 = vmatmul.mubr.bf16.gmra.mrb[100].mxu0 %v4330_v6  ;;  %2629 = vmax.xlane.f32.xlu0 %v2628_v54  ;;  %15301 = vst [vmem:[#allocation74_spill] sm:$0xff] %v11617_v8  ;;  %15303 = vst [vmem:[#allocation152_spill] sm:$0xff] %v11620_v30  ;;  %v4113_v23 = vmul.f32 %v7640_v44, %v15307_v5  ;;  %v15309_v54 = vld [vmem:[#allocation6_spill] sm:$0xff]  ;;  %v4112_v17 = vmul.f32 %v7640_v44, %v15311_v16  ;;  %v1330_v44 = vld [vmem:[#allocation2 + $0x558] sm:$0xff] }
 0x629   :  { %15297 = vst [vmem:[#allocation151_spill] sm:$0xff] %v11609_v48  ;;  %v11614_v13 = vpop.eup %7643  ;;  %15305 = vst [vmem:[#allocation45_spill] sm:$0xff] %v11623_v21  ;;  %7659 = vpow2.f32 %v3274_v24  ;;  %v2576_v35 = vpop.xlane.xlu0 %2575  ;;  %v15310_v6 = vld [vmem:[#allocation90_spill] sm:$0xff]  ;;  %v1335_v16 = vld [vmem:[#allocation2 + $0x580] sm:$0xff] }
 0x62a   :  { %15299 = vst [vmem:[#allocation154_spill] sm:$0xff] %v11614_v13  ;;  %v11625_v57 = vpop.eup %7645  ;;  %7661 = vrcp.f32 %v3647_v41  ;;  %v2892_v56 = vsub.f32 %v11170_v26, %v2576_v35  ;;  %v2893_v38 = vsub.f32 %v11173_v43, %v2576_v35 }
 0x62b   :  { %15306 = vst [vmem:[#allocation46_spill] sm:$0xff] %v11625_v57  ;;  %v2567_v49 = vpop.xlane.xlu1 %2566  ;;  %v11630_v9 = vpop.eup %7647  ;;  %v3705_v24 = vadd.f32 %v11625_v57, %v11614_v13  ;;  %7663 = vrcp.f32 %v11581_v61 }
 0x62c   :  { %15308 = vst [vmem:[#allocation121_spill] sm:$0xff] %v11630_v9  ;;  %v2886_v34 = vsub.f32 %v15309_v54, %v2567_v49  ;;  %v2887_v11 = vsub.f32 %v15310_v6, %v2567_v49  ;;  %v7650_v33 = vpop.eup %7649  ;;  %v3280_v41 = vmul.f32 1.442695, %v2892_v56  ;;  %v3282_v26 = vmul.f32 1.442695, %v2893_v38  ;;  %v15312_v54 = vld [vmem:[#allocation87_spill] sm:$0xff] }
 0x62d   :  { %v3714_v43 = vadd.f32 %v11630_v9, %v11609_v48  ;;  %3706 = vadd.xlane.f32.xlu1 %v3705_v24  ;;  %v4115_v4 = vmul.f32 %v7650_v33, %v15312_v54  ;;  %v15313_v6 = vld [vmem:[#allocation89_spill] sm:$0xff]  ;;  %v7652_v57 = vpop.eup %7651  ;;  %v2625_v56 = vmax.f32 %v11612_v3, %v11617_v8  ;;  %v15318_v48 = vld [vmem:[#allocation128_spill] sm:$0xff] }
 0x62e   :  { %v3268_v35 = vmul.f32 1.442695, %v2886_v34  ;;  %v3270_v5 = vmul.f32 1.442695, %v2887_v11  ;;  %v11641_v49 = vpop.xlane.xlu0 %3661  ;;  %v4114_v13 = vmul.f32 %v7650_v33, %v15313_v6  ;;  %7665 = vpow2.f32 %v3280_v41  ;;  %v15315_v24 = vld [vmem:[#allocation49_spill] sm:$0xff]  ;;  %v15317_v41 = vld [vmem:[#allocation56_spill] sm:$0xff] }
 0x62f   :  { %3715 = vadd.xlane.f32.xlu0 %v3714_v43  ;;  %v4333_v38 = vpack.c.bf16 %v4115_v4, %v4113_v23  ;;  %v11649_v54 = vadd.f32 %v15315_v24, %v1329_v42  ;;  %v2634_v33 = vmax.f32 %v11620_v30, %v11623_v21  ;;  %v11656_v43 = vadd.f32 %v15317_v41, %v1330_v44  ;;  %v15323_v24 = vld [vmem:[#allocation36_spill] sm:$0xff]  ;;  %v1339_v8 = vld [vmem:[#allocation2 + $0x5a0] sm:$0xff] }
 0x630   :  { %v3653_v61 = vpop.xlane.xlu1 %3652  ;;  %7667 = vpow2.f32 %v3268_v35  ;;  %v4332_v34 = vpack.c.bf16 %v4114_v13, %v4112_v17  ;;  %v11646_v11 = vpop.eup %7653  ;;  %v11659_v9 = vadd.f32 %v15318_v48, %v1335_v16  ;;  %v15319_v35 = vld [vmem:[#allocation129_spill] sm:$0xff]  ;;  %v15324_v41 = vld [vmem:[#allocation160_spill] sm:$0xff] }
 0x631   :  { %15314 = vst [vmem:[#allocation123_spill] sm:$0xff] %v11646_v11  ;;  %7669 = vpow2.f32 %v3270_v5  ;;  %v11653_v6 = vpop.eup %7655  ;;  %v11662_v4 = vadd.f32 %v15319_v35, %v1336_v31  ;;  %4648 = vmatprep.mubr.bf16.mxu0 %v4333_v38  ;;  %2626 = vmax.xlane.f32.xlu1 %v2625_v56  ;;  %v11664_v23 = vpop.f32.mrb[40].mxu0  ;;  %v15322_v5 = vld [vmem:[#allocation38_spill] sm:$0xff]  ;;  %v4117_v31 = vmul.f32 %v7652_v57, %v15324_v41  ;;  %v1333_v41 = vld [vmem:[#allocation2 + $0x570] sm:$0xff] }
 0x632   :  { %15316 = vst [vmem:[#allocation64_spill] sm:$0xff] %v11653_v6  ;;  %7671 = vpow2.f32 %v3282_v26  ;;  %v2582_v13 = vpop.xlane.xlu0 %2581  ;;  %15320 = vst [vmem:[#allocation65_spill] sm:$0xff] %v11664_v23  ;;  %v11666_v17 = vpop.eup %7657  ;;  %4649 = vmatmul.mubr.bf16.gmra.mrb[104].mxu0 %v4332_v34  ;;  %v15326_v56 = vld [vmem:[#allocation94_spill] sm:$0xff] }
 0x633   :  { %15321 = vst [vmem:[#allocation53_spill] sm:$0xff] %v11666_v17  ;;  %7673 = vrcp.f32 %v3653_v61  ;;  %2635 = vmax.xlane.f32.xlu0 %v2634_v33  ;;  %v2896_v44 = vsub.f32 %v15322_v5, %v2582_v13  ;;  %v2897_v48 = vsub.f32 %v15323_v24, %v2582_v13  ;;  %v4524_v16 = vpop.f32.mrb[41].mxu0  ;;  %v11671_v35 = vpop.eup %7659  ;;  %v3711_v23 = vadd.f32 %v11666_v17, %v11653_v6  ;;  %v15328_v34 = vld [vmem:[#allocation26_spill] sm:$0xff] }
 0x634   :  { %v2573_v42 = vpop.xlane.xlu1 %2572  ;;  %15325 = vst [vmem:[#allocation8_spill] sm:$0xff] %v11671_v35  ;;  %v11677_v61 = vpop.f32.mrb[42].mxu0  ;;  %v4116_v33 = vmul.f32 %v7652_v57, %v15328_v34  ;;  %7675 = vrcp.f32 %v11605_v37  ;;  %v3720_v24 = vadd.f32 %v11671_v35, %v11646_v11  ;;  %v1334_v34 = vld [vmem:[#allocation2 + $0x578] sm:$0xff]  ;;  %v1340_v37 = vld [vmem:[#allocation2 + $0x5a8] sm:$0xff] }
 0x635   :  { %v2890_v26 = vsub.f32 %v11235_v39, %v2573_v42  ;;  %v2891_v38 = vsub.f32 %v15326_v56, %v2573_v42  ;;  %15327 = vst [vmem:[#allocation125_spill] sm:$0xff] %v11677_v61  ;;  %v7662_v21 = vpop.eup %7661  ;;  %v3288_v13 = vmul.f32 1.442695, %v2896_v44  ;;  %v3290_v5 = vmul.f32 1.442695, %v2897_v48  ;;  %v4527_v16 = vpop.f32.mrb[43].mxu0  ;;  %3712 = vadd.xlane.f32.xlu1 %v3711_v23 }
 0x636   :  { %v15329_v42 = vld [vmem:[#allocation91_spill] sm:$0xff]  ;;  %v15330_v61 = vld [vmem:[#allocation93_spill] sm:$0xff]  ;;  %v7664_v57 = vpop.eup %7663  ;;  %v2631_v48 = vmax.f32 %v11649_v54, %v11656_v43  ;;  %v15332_v16 = vld [vmem:[#allocation58_spill] sm:$0xff] }
 0x637   :  { %v3276_v39 = vmul.f32 1.442695, %v2890_v26  ;;  %v3278_v30 = vmul.f32 1.442695, %v2891_v38  ;;  %v4119_v56 = vmul.f32 %v7662_v21, %v15329_v42  ;;  %v11684_v6 = vpop.xlane.xlu0 %3667  ;;  %v4118_v17 = vmul.f32 %v7662_v21, %v15330_v61  ;;  %3721 = vadd.xlane.f32.xlu0 %v3720_v24  ;;  %v15336_v11 = vld [vmem:[#allocation132_spill] sm:$0xff] }
 0x638   :  { %7677 = vpow2.f32 %v3288_v13  ;;  %v3659_v44 = vpop.xlane.xlu1 %3658  ;;  %v11689_v23 = vpop.eup %7665  ;;  %v11692_v42 = vadd.f32 %v15332_v16, %v1333_v41  ;;  %v2640_v21 = vmax.f32 %v11659_v9, %v11662_v4  ;;  %v15334_v13 = vld [vmem:[#allocation7_spill] sm:$0xff]  ;;  %v11702_v35 = vadd.f32 %v15336_v11, %v1339_v8 }
 0x639   :  { %7679 = vpow2.f32 %v3276_v39  ;;  %v4335_v26 = vpack.c.bf16 %v4119_v56, %v4117_v31  ;;  %v4334_v38 = vpack.c.bf16 %v4118_v17, %v4116_v33  ;;  %15331 = vst [vmem:[#allocation127_spill] sm:$0xff] %v11689_v23  ;;  %v11699_v24 = vadd.f32 %v15334_v13, %v1334_v34  ;;  %v15338_v39 = vld [vmem:[#allocation133_spill] sm:$0xff]  ;;  %2632 = vmax.xlane.f32.xlu1 %v2631_v48  ;;  %v11707_v33 = vpop.f32.mrb[44].mxu0  ;;  %v15342_v34 = vld [vmem:[#allocation34_spill] sm:$0xff] }
 0x63a   :  { %7681 = vpow2.f32 %v3278_v30  ;;  %v11696_v61 = vpop.eup %7667  ;;  %15337 = vst [vmem:[#allocation157_spill] sm:$0xff] %v11702_v35  ;;  %v11705_v31 = vadd.f32 %v15338_v39, %v1340_v37  ;;  %15340 = vst [vmem:[#allocation90_spill] sm:$0xff] %v11707_v33  ;;  %v4532_v11 = vpop.f32.mrb[45].mxu0  ;;  %v4121_v37 = vmul.f32 %v7664_v57, %v15342_v34 }
 0x63b   :  { %15333 = vst [vmem:[#allocation70_spill] sm:$0xff] %v11696_v61  ;;  %15335 = vst [vmem:[#allocation71_spill] sm:$0xff] %v11699_v24  ;;  %7683 = vpow2.f32 %v3290_v5  ;;  %4656 = vmatprep.mubr.bf16.mxu0 %v4335_v26  ;;  %v2588_v17 = vpop.xlane.xlu0 %2587  ;;  %v11709_v41 = vpop.eup %7669  ;;  %2641 = vmax.xlane.f32.xlu0 %v2640_v21  ;;  %v1337_v11 = vld [vmem:[#allocation2 + $0x590] sm:$0xff] }
 0x63c   :  { %15339 = vst [vmem:[#allocation6_spill] sm:$0xff] %v11705_v31  ;;  %15341 = vst [vmem:[#allocation156_spill] sm:$0xff] %v11709_v41  ;;  %7685 = vrcp.f32 %v3659_v44  ;;  %4657 = vmatmul.mubr.bf16.gmra.mrb[108].mxu0 %v4334_v38  ;;  %v2579_v30 = vpop.xlane.xlu1 %2578  ;;  %v2900_v56 = vsub.f32 %v11274_v1, %v2588_v17  ;;  %v2901_v8 = vsub.f32 %v11277_v0, %v2588_v17  ;;  %v11714_v16 = vpop.eup %7671  ;;  %v15345_v38 = vld [vmem:[#allocation84_spill] sm:$0xff] }
 0x63d   :  { %15343 = vst [vmem:[#allocation87_spill] sm:$0xff] %v11714_v16  ;;  %v2894_v5 = vsub.f32 %v11264_v27, %v2579_v30  ;;  %v2895_v48 = vsub.f32 %v11271_v20, %v2579_v30  ;;  %v3717_v26 = vadd.f32 %v11709_v41, %v11696_v61  ;;  %v11720_v44 = vpop.f32.mrb[46].mxu0  ;;  %v4120_v21 = vmul.f32 %v7664_v57, %v15345_v38  ;;  %v7674_v13 = vpop.eup %7673  ;;  %v15346_v20 = vld [vmem:[#allocation95_spill] sm:$0xff]  ;;  %v1338_v38 = vld [vmem:[#allocation2 + $0x598] sm:$0xff]  ;;  %v1343_v41 = vld [vmem:[#allocation2 + $0x5c0] sm:$0xff] }
 0x63e   :  { %15344 = vst [vmem:[#allocation89_spill] sm:$0xff] %v11720_v44  ;;  %7687 = vrcp.f32 %v11641_v49  ;;  %v3296_v1 = vmul.f32 1.442695, %v2900_v56  ;;  %v3298_v0 = vmul.f32 1.442695, %v2901_v8  ;;  %v3726_v39 = vadd.f32 %v11714_v16, %v11689_v23  ;;  %v4535_v17 = vpop.f32.mrb[47].mxu0  ;;  %v7676_v57 = vpop.eup %7675 }
 0x63f   :  { %v3284_v27 = vmul.f32 1.442695, %v2894_v5  ;;  %v3286_v34 = vmul.f32 1.442695, %v2895_v48  ;;  %3718 = vadd.xlane.f32.xlu1 %v3717_v26  ;;  %v4123_v30 = vmul.f32 %v7674_v13, %v15346_v20  ;;  %v11727_v33 = vpop.xlane.xlu0 %3673  ;;  %v15347_v44 = vld [vmem:[#allocation97_spill] sm:$0xff]  ;;  %v1344_v49 = vld [vmem:[#allocation2 + $0x5c8] sm:$0xff]  ;;  %v2637_v8 = vmax.f32 %v11692_v42, %v11699_v24 }
 0x640   :  { %v4122_v61 = vmul.f32 %v7674_v13, %v15347_v44  ;;  %7689 = vpow2.f32 %v3296_v1  ;;  %3727 = vadd.xlane.f32.xlu0 %v3726_v39  ;;  %v3665_v56 = vpop.xlane.xlu1 %3664  ;;  %v15349_v17 = vld [vmem:[#allocation130_spill] sm:$0xff]  ;;  %v2646_v44 = vmax.f32 %v11702_v35, %v11705_v31  ;;  %v15351_v1 = vld [vmem:[#allocation131_spill] sm:$0xff]  ;;  %v15352_v23 = vld [vmem:[#allocation136_spill] sm:$0xff] }
 0x641   :  { %7691 = vpow2.f32 %v3284_v27  ;;  %v4337_v5 = vpack.c.bf16 %v4123_v30, %v4121_v37  ;;  %v11735_v20 = vadd.f32 %v15349_v17, %v1337_v11  ;;  %v11742_v39 = vadd.f32 %v15351_v1, %v1338_v38  ;;  %v15353_v27 = vld [vmem:[#allocation137_spill] sm:$0xff]  ;;  %v15356_v17 = vld [vmem:[#allocation88_spill] sm:$0xff]  ;;  %v1348_v24 = vld [vmem:[#allocation2 + $0x5e8] sm:$0xff] }
 0x642   :  { %v4336_v48 = vpack.c.bf16 %v4122_v61, %v4120_v21  ;;  %v11732_v26 = vpop.eup %7677  ;;  %7693 = vpow2.f32 %v3286_v34  ;;  %v11745_v16 = vadd.f32 %v15352_v23, %v1343_v41  ;;  %v11748_v37 = vadd.f32 %v15353_v27, %v1344_v49  ;;  %v15355_v30 = vld [vmem:[#allocation101_spill] sm:$0xff]  ;;  %v15358_v49 = vld [vmem:[#allocation42_spill] sm:$0xff] }
 0x643   :  { %15348 = vst [vmem:[#allocation49_spill] sm:$0xff] %v11732_v26  ;;  %v11739_v13 = vpop.eup %7679  ;;  %7695 = vpow2.f32 %v3298_v0  ;;  %4664 = vmatprep.mubr.bf16.mxu0 %v4337_v5  ;;  %2638 = vmax.xlane.f32.xlu1 %v2637_v8  ;;  %v2594_v61 = vpop.xlane.xlu0 %2593  ;;  %v4125_v23 = vmul.f32 %v7676_v57, %v15356_v17  ;;  %v15359_v0 = vld [vmem:[#allocation66_spill] sm:$0xff] }
 0x644   :  { %15350 = vst [vmem:[#allocation56_spill] sm:$0xff] %v11739_v13  ;;  %v11750_v21 = vpop.eup %7681  ;;  %7697 = vrcp.f32 %v3665_v56  ;;  %4665 = vmatmul.mubr.bf16.gmra.mrb[112].mxu0 %v4336_v48  ;;  %2647 = vmax.xlane.f32.xlu0 %v2646_v44  ;;  %v2585_v11 = vpop.xlane.xlu1 %2584  ;;  %v2904_v34 = vsub.f32 %v11313_v51, %v2594_v61  ;;  %v2905_v38 = vsub.f32 %v15355_v30, %v2594_v61  ;;  %v15360_v27 = vld [vmem:[#allocation86_spill] sm:$0xff]  ;;  %v1341_v30 = vld [vmem:[#allocation2 + $0x5b0] sm:$0xff] }
 0x645   :  { %15354 = vst [vmem:[#allocation128_spill] sm:$0xff] %v11750_v21  ;;  %v11755_v41 = vpop.eup %7683  ;;  %v2898_v1 = vsub.f32 %v15358_v49, %v2585_v11  ;;  %v2899_v5 = vsub.f32 %v15359_v0, %v2585_v11  ;;  %v3723_v8 = vadd.f32 %v11750_v21, %v11739_v13  ;;  %v4124_v56 = vmul.f32 %v7676_v57, %v15360_v27  ;;  %v15361_v49 = vld [vmem:[#allocation98_spill] sm:$0xff]  ;;  %v15362_v0 = vld [vmem:[#allocation100_spill] sm:$0xff]  ;;  %v1347_v27 = vld [vmem:[#allocation2 + $0x5e0] sm:$0xff] }
 0x646   :  { %15357 = vst [vmem:[#allocation129_spill] sm:$0xff] %v11755_v41  ;;  %v7686_v48 = vpop.eup %7685  ;;  %7699 = vrcp.f32 %v11684_v6  ;;  %v3304_v44 = vmul.f32 1.442695, %v2904_v34  ;;  %v3306_v51 = vmul.f32 1.442695, %v2905_v38  ;;  %v3732_v61 = vadd.f32 %v11755_v41, %v11732_v26  ;;  %v1342_v57 = vld [vmem:[#allocation2 + $0x5b8] sm:$0xff] }
 0x647   :  { %v3292_v17 = vmul.f32 1.442695, %v2898_v1  ;;  %v3294_v31 = vmul.f32 1.442695, %v2899_v5  ;;  %3724 = vadd.xlane.f32.xlu1 %v3723_v8  ;;  %v4127_v35 = vmul.f32 %v7686_v48, %v15361_v49  ;;  %v11766_v11 = vpop.xlane.xlu0 %3679  ;;  %v4126_v13 = vmul.f32 %v7686_v48, %v15362_v0  ;;  %v15364_v8 = vld [vmem:[#allocation134_spill] sm:$0xff]  ;;  %v15367_v26 = vld [vmem:[#allocation140_spill] sm:$0xff] }
 0x648   :  { %v7688_v21 = vpop.eup %7687  ;;  %7701 = vpow2.f32 %v3304_v44  ;;  %3733 = vadd.xlane.f32.xlu0 %v3732_v61  ;;  %v3671_v6 = vpop.xlane.xlu1 %3670  ;;  %v2643_v34 = vmax.f32 %v11735_v20, %v11742_v39  ;;  %v11774_v49 = vadd.f32 %v15364_v8, %v1341_v30  ;;  %v2652_v48 = vmax.f32 %v11745_v16, %v11748_v37  ;;  %v15366_v44 = vld [vmem:[#allocation135_spill] sm:$0xff] }
 0x649   :  { %7703 = vpow2.f32 %v3292_v17  ;;  %v4339_v38 = vpack.c.bf16 %v4127_v35, %v4125_v23  ;;  %v4338_v1 = vpack.c.bf16 %v4126_v13, %v4124_v56  ;;  %v11781_v61 = vadd.f32 %v15366_v44, %v1342_v57  ;;  %v15368_v17 = vld [vmem:[#allocation141_spill] sm:$0xff]  ;;  %v15370_v57 = vld [vmem:[#allocation52_spill] sm:$0xff] }
 0x64a   :  { %v11771_v5 = vpop.eup %7689  ;;  %7705 = vpow2.f32 %v3294_v31  ;;  %v11784_v41 = vadd.f32 %v15367_v26, %v1347_v27  ;;  %v11787_v35 = vadd.f32 %v15368_v17, %v1348_v24  ;;  %v4129_v26 = vmul.f32 %v7688_v21, %v15370_v57 }
 0x64b   :  { %15363 = vst [vmem:[#allocation38_spill] sm:$0xff] %v11771_v5  ;;  %v11778_v0 = vpop.eup %7691  ;;  %7707 = vpow2.f32 %v3306_v51  ;;  %4672 = vmatprep.mubr.bf16.mxu0 %v4339_v38  ;;  %2644 = vmax.xlane.f32.xlu1 %v2643_v34  ;;  %v2600_v13 = vpop.xlane.xlu0 %2599  ;;  %v15372_v38 = vld [vmem:[#allocation50_spill] sm:$0xff] }
 0x64c   :  { %15365 = vst [vmem:[#allocation36_spill] sm:$0xff] %v11778_v0  ;;  %v11789_v23 = vpop.eup %7693  ;;  %7709 = vrcp.f32 %v3671_v6  ;;  %4673 = vmatmul.mubr.bf16.gmra.mrb[116].mxu0 %v4338_v1  ;;  %2653 = vmax.xlane.f32.xlu0 %v2652_v48  ;;  %v2591_v31 = vpop.xlane.xlu1 %2590  ;;  %v2908_v56 = vsub.f32 %v11359_v40, %v2600_v13  ;;  %v2909_v30 = vsub.f32 %v11362_v10, %v2600_v13  ;;  %v1345_v48 = vld [vmem:[#allocation2 + $0x5d0] sm:$0xff] }
 0x64d   :  { %15369 = vst [vmem:[#allocation160_spill] sm:$0xff] %v11789_v23  ;;  %v11794_v27 = vpop.eup %7695  ;;  %v2902_v24 = vsub.f32 %v11356_v25, %v2591_v31  ;;  %v2903_v51 = vsub.f32 %v11375_v28, %v2591_v31  ;;  %v3729_v34 = vadd.f32 %v11789_v23, %v11778_v0  ;;  %v4128_v6 = vmul.f32 %v7688_v21, %v15372_v38  ;;  %v15373_v25 = vld [vmem:[#allocation103_spill] sm:$0xff]  ;;  %v1346_v21 = vld [vmem:[#allocation2 + $0x5d8] sm:$0xff]  ;;  %v1351_v38 = vld [vmem:[#allocation2 + $0x600] sm:$0xff] }
 0x64e   :  { %15371 = vst [vmem:[#allocation94_spill] sm:$0xff] %v11794_v27  ;;  %v7698_v1 = vpop.eup %7697  ;;  %7711 = vrcp.f32 %v11727_v33  ;;  %v3312_v8 = vmul.f32 1.442695, %v2908_v56  ;;  %v3314_v40 = vmul.f32 1.442695, %v2909_v30  ;;  %v3738_v10 = vadd.f32 %v11794_v27, %v11771_v5  ;;  %v15374_v31 = vld [vmem:[#allocation11_spill] sm:$0xff] }
 0x64f   :  { %v3300_v44 = vmul.f32 1.442695, %v2902_v24  ;;  %v3302_v17 = vmul.f32 1.442695, %v2903_v51  ;;  %3730 = vadd.xlane.f32.xlu1 %v3729_v34  ;;  %v4131_v13 = vmul.f32 %v7698_v1, %v15373_v25  ;;  %v11805_v28 = vpop.xlane.xlu0 %3685  ;;  %v4130_v57 = vmul.f32 %v7698_v1, %v15374_v31  ;;  %v1352_v23 = vld [vmem:[#allocation2 + $0x608] sm:$0xff]  ;;  %v11808_v56 = vpop.f32.mrb[48].mxu0 }
 0x650   :  { %v7700_v0 = vpop.eup %7699  ;;  %7713 = vpow2.f32 %v3312_v8  ;;  %3739 = vadd.xlane.f32.xlu0 %v3738_v10  ;;  %v3677_v33 = vpop.xlane.xlu1 %3676  ;;  %15375 = vst [vmem:[#allocation26_spill] sm:$0xff] %v11808_v56  ;;  %v2649_v30 = vmax.f32 %v11774_v49, %v11781_v61  ;;  %v15377_v5 = vld [vmem:[#allocation138_spill] sm:$0xff]  ;;  %v2658_v31 = vmax.f32 %v11784_v41, %v11787_v35  ;;  %v15380_v56 = vld [vmem:[#allocation139_spill] sm:$0xff] }
 0x651   :  { %7715 = vpow2.f32 %v3300_v44  ;;  %v4341_v24 = vpack.c.bf16 %v4131_v13, %v4129_v26  ;;  %v4340_v51 = vpack.c.bf16 %v4130_v57, %v4128_v6  ;;  %v4540_v34 = vpop.f32.mrb[49].mxu0  ;;  %v11815_v1 = vadd.f32 %v15377_v5, %v1345_v48  ;;  %v15381_v44 = vld [vmem:[#allocation144_spill] sm:$0xff]  ;;  %v15382_v6 = vld [vmem:[#allocation145_spill] sm:$0xff] }
 0x652   :  { %v11812_v25 = vpop.eup %7701  ;;  %7717 = vpow2.f32 %v3302_v17  ;;  %v11819_v8 = vpop.f32.mrb[50].mxu0  ;;  %v11824_v27 = vadd.f32 %v15380_v56, %v1346_v21  ;;  %v11827_v26 = vadd.f32 %v15381_v44, %v1351_v38  ;;  %v11830_v13 = vadd.f32 %v15382_v6, %v1352_v23  ;;  %v15383_v38 = vld [vmem:[#allocation57_spill] sm:$0xff] }
 0x653   :  { %15376 = vst [vmem:[#allocation91_spill] sm:$0xff] %v11812_v25  ;;  %15378 = vst [vmem:[#allocation93_spill] sm:$0xff] %v11819_v8  ;;  %v11821_v10 = vpop.eup %7703  ;;  %7719 = vpow2.f32 %v3314_v40  ;;  %4680 = vmatprep.mubr.bf16.mxu0 %v4341_v24  ;;  %2650 = vmax.xlane.f32.xlu1 %v2649_v30  ;;  %v4543_v5 = vpop.f32.mrb[51].mxu0  ;;  %v4133_v34 = vmul.f32 %v7700_v0, %v15383_v38  ;;  %v15385_v24 = vld [vmem:[#allocation55_spill] sm:$0xff]  ;;  %v15387_v38 = vld [vmem:[#allocation54_spill] sm:$0xff] }
 0x654   :  { %15379 = vst [vmem:[#allocation58_spill] sm:$0xff] %v11821_v10  ;;  %v2606_v48 = vpop.xlane.xlu0 %2605  ;;  %v11832_v57 = vpop.eup %7705  ;;  %7721 = vrcp.f32 %v3677_v33  ;;  %4681 = vmatmul.mubr.bf16.gmra.mrb[120].mxu0 %v4340_v51  ;;  %2659 = vmax.xlane.f32.xlu0 %v2658_v31  ;;  %v4132_v33 = vmul.f32 %v7700_v0, %v15385_v24  ;;  %v2655_v0 = vmax.f32 %v11815_v1, %v11824_v27 }
 0x655   :  { %v2597_v17 = vpop.xlane.xlu1 %2596  ;;  %v2912_v21 = vsub.f32 %v11402_v47, %v2606_v48  ;;  %v2913_v56 = vsub.f32 %v11405_v46, %v2606_v48  ;;  %v11837_v44 = vpop.eup %7707  ;;  %v3735_v30 = vadd.f32 %v11832_v57, %v11821_v10  ;;  %7723 = vrcp.f32 %v11766_v11  ;;  %v15386_v48 = vld [vmem:[#allocation102_spill] sm:$0xff]  ;;  %v1349_v11 = vld [vmem:[#allocation2 + $0x5f0] sm:$0xff] }
 0x656   :  { %15384 = vst [vmem:[#allocation7_spill] sm:$0xff] %v11837_v44  ;;  %v2906_v23 = vsub.f32 %v11399_v45, %v2597_v17  ;;  %v2907_v40 = vsub.f32 %v11418_v62, %v2597_v17  ;;  %v7710_v51 = vpop.eup %7709  ;;  %v3744_v46 = vadd.f32 %v11837_v44, %v11812_v25  ;;  %v11851_v24 = vpop.f32.mrb[52].mxu0 }
 0x657   :  { %v3320_v31 = vmul.f32 1.442695, %v2912_v21  ;;  %v3322_v47 = vmul.f32 1.442695, %v2913_v56  ;;  %3736 = vadd.xlane.f32.xlu1 %v3735_v30  ;;  %v4135_v45 = vmul.f32 %v7710_v51, %v15386_v48  ;;  %v4134_v62 = vmul.f32 %v7710_v51, %v15387_v38  ;;  %v1350_v21 = vld [vmem:[#allocation2 + $0x5f8] sm:$0xff]  ;;  %15388 = vst [vmem:[#allocation132_spill] sm:$0xff] %v11851_v24 }
 0x658   :  { %v3308_v6 = vmul.f32 1.442695, %v2906_v23  ;;  %v3310_v5 = vmul.f32 1.442695, %v2907_v40  ;;  %v7712_v17 = vpop.eup %7711  ;;  %3745 = vadd.xlane.f32.xlu0 %v3744_v46  ;;  %v2664_v30 = vmax.f32 %v11827_v26, %v11830_v13  ;;  %v1355_v51 = vld [vmem:[#allocation2 + $0x620] sm:$0xff]  ;;  %v1356_v48 = vld [vmem:[#allocation2 + $0x628] sm:$0xff] }
 0x659   :  { %7725 = vpow2.f32 %v3320_v31  ;;  %v3683_v8 = vpop.xlane.xlu1 %3682  ;;  %v4343_v56 = vpack.c.bf16 %v4135_v45, %v4133_v34  ;;  %v4342_v23 = vpack.c.bf16 %v4134_v62, %v4132_v33  ;;  %v4548_v31 = vpop.f32.mrb[53].mxu0  ;;  %v15394_v45 = vld [vmem:[#allocation143_spill] sm:$0xff] }
 0x65a   :  { %7727 = vpow2.f32 %v3308_v6  ;;  %v11853_v40 = vpop.eup %7713  ;;  %v11859_v38 = vpop.f32.mrb[54].mxu0  ;;  %v15393_v6 = vld [vmem:[#allocation142_spill] sm:$0xff]  ;;  %v11867_v62 = vadd.f32 %v15394_v45, %v1350_v21  ;;  %v15397_v21 = vld [vmem:[#allocation77_spill] sm:$0xff] }
 0x65b   :  { %15389 = vst [vmem:[#allocation133_spill] sm:$0xff] %v11853_v40  ;;  %7729 = vpow2.f32 %v3310_v5  ;;  %v11857_v46 = vpop.eup %7715  ;;  %4688 = vmatprep.mubr.bf16.mxu0 %v4343_v56  ;;  %2656 = vmax.xlane.f32.xlu1 %v2655_v0  ;;  %15391 = vst [vmem:[#allocation84_spill] sm:$0xff] %v11859_v38  ;;  %v11864_v33 = vadd.f32 %v15393_v6, %v1349_v11  ;;  %v4551_v5 = vpop.f32.mrb[55].mxu0  ;;  %v11879_v45 = vadd.f32 %v15397_v21, %v1356_v48 }
 0x65c   :  { %15390 = vst [vmem:[#allocation34_spill] sm:$0xff] %v11857_v46  ;;  %7731 = vpow2.f32 %v3322_v47  ;;  %v11861_v34 = vpop.eup %7717  ;;  %4689 = vmatmul.mubr.bf16.gmra.mrb[124].mxu0 %v4342_v23  ;;  %2665 = vmax.xlane.f32.xlu0 %v2664_v30  ;;  %v15396_v47 = vld [vmem:[#allocation79_spill] sm:$0xff]  ;;  %v15398_v23 = vld [vmem:[#allocation5_spill] sm:$0xff] }
 0x65d   :  { %15392 = vst [vmem:[#allocation95_spill] sm:$0xff] %v11861_v34  ;;  %7733 = vrcp.f32 %v3683_v8  ;;  %v2603_v31 = vpop.xlane.xlu1 %2602  ;;  %v11869_v24 = vpop.eup %7719  ;;  %v11872_v56 = vadd.f32 %v15396_v47, %v1355_v51  ;;  %v3741_v11 = vadd.f32 %v11861_v34, %v11857_v46  ;;  %v4137_v30 = vmul.f32 %v7712_v17, %v15398_v23  ;;  %v15399_v5 = vld [vmem:[#allocation31_spill] sm:$0xff] }
 0x65e   :  { %15395 = vst [vmem:[#allocation97_spill] sm:$0xff] %v11869_v24  ;;  %v2910_v0 = vsub.f32 %v11439_v2, %v2603_v31  ;;  %v2911_v38 = vsub.f32 %v11446_v36, %v2603_v31  ;;  %v7722_v6 = vpop.eup %7721  ;;  %v3750_v8 = vadd.f32 %v11869_v24, %v11853_v40  ;;  %v4136_v25 = vmul.f32 %v7712_v17, %v15399_v5  ;;  %v15400_v2 = vld [vmem:[#allocation18_spill] sm:$0xff]  ;;  %v15401_v36 = vld [vmem:[#allocation40_spill] sm:$0xff]  ;;  %v1353_v40 = vld [vmem:[#allocation2 + $0x610] sm:$0xff] }
 0x65f   :  { %3742 = vadd.xlane.f32.xlu1 %v3741_v11  ;;  %v4139_v44 = vmul.f32 %v7722_v6, %v15400_v2  ;;  %v4138_v31 = vmul.f32 %v7722_v6, %v15401_v36  ;;  %v7724_v10 = vpop.eup %7723  ;;  %7735 = vrcp.f32 %v11805_v28  ;;  %v2661_v21 = vmax.f32 %v11864_v33, %v11867_v62  ;;  %v1354_v24 = vld [vmem:[#allocation2 + $0x618] sm:$0xff]  ;;  %v1359_v11 = vld [vmem:[#allocation2 + $0x640] sm:$0xff]  ;;  %v1360_v28 = vld [vmem:[#allocation2 + $0x648] sm:$0xff] }
 0x660   :  { %v3316_v51 = vmul.f32 1.442695, %v2910_v0  ;;  %v3318_v47 = vmul.f32 1.442695, %v2911_v38  ;;  %3751 = vadd.xlane.f32.xlu0 %v3750_v8  ;;  %v2670_v38 = vmax.f32 %v11872_v56, %v11879_v45 }
 0x661   :  { %v3689_v48 = vpop.xlane.xlu1 %3688  ;;  %v4345_v23 = vpack.c.bf16 %v4139_v44, %v4137_v30  ;;  %v4344_v17 = vpack.c.bf16 %v4138_v31, %v4136_v25  ;;  %v15405_v25 = vld [vmem:[#allocation147_spill] sm:$0xff]  ;;  %v15407_v31 = vld [vmem:[#allocation62_spill] sm:$0xff] }
 0x662   :  { %7737 = vpow2.f32 %v3316_v51  ;;  %v11896_v8 = vpop.f32.mrb[56].mxu0  ;;  %v15404_v51 = vld [vmem:[#allocation146_spill] sm:$0xff]  ;;  %v11904_v30 = vadd.f32 %v15405_v25, %v1354_v24 }
 0x663   :  { %v11890_v0 = vpop.eup %7725  ;;  %7739 = vpow2.f32 %v3318_v47  ;;  %4696 = vmatprep.mubr.bf16.mxu0 %v4345_v23  ;;  %15403 = vst [vmem:[#allocation131_spill] sm:$0xff] %v11896_v8  ;;  %2662 = vmax.xlane.f32.xlu1 %v2661_v21  ;;  %v11901_v44 = vadd.f32 %v15404_v51, %v1353_v40  ;;  %v4556_v2 = vpop.f32.mrb[57].mxu0  ;;  %v15409_v51 = vld [vmem:[#allocation149_spill] sm:$0xff] }
 0x664   :  { %15402 = vst [vmem:[#allocation130_spill] sm:$0xff] %v11890_v0  ;;  %v11894_v6 = vpop.eup %7727  ;;  %7741 = vrcp.f32 %v3689_v48  ;;  %4697 = vmatmul.mubr.bf16.gmra.mrb[128].mxu0 %v4344_v17  ;;  %2671 = vmax.xlane.f32.xlu0 %v2670_v38  ;;  %v11909_v48 = vadd.f32 %v15407_v31, %v1359_v11  ;;  %v11911_v23 = vpop.f32.mrb[58].mxu0  ;;  %v11918_v17 = vadd.f32 %v15409_v51, %v1360_v28  ;;  %v15410_v2 = vld [vmem:[#allocation51_spill] sm:$0xff]  ;;  %v15411_v31 = vld [vmem:[#allocation9_spill] sm:$0xff] }
 0x665   :  { %v11898_v5 = vpop.eup %7729  ;;  %v2609_v47 = vpop.xlane.xlu1 %2608  ;;  %15408 = vst [vmem:[#allocation137_spill] sm:$0xff] %v11911_v23  ;;  %v4141_v11 = vmul.f32 %v7724_v10, %v15410_v2  ;;  %v4140_v46 = vmul.f32 %v7724_v10, %v15411_v31  ;;  %v2667_v28 = vmax.f32 %v11901_v44, %v11904_v30 }
 0x666   :  { %v11906_v36 = vpop.eup %7731  ;;  %v2914_v21 = vsub.f32 %v11469_v22, %v2609_v47  ;;  %v2915_v8 = vsub.f32 %v11472_v14, %v2609_v47  ;;  %v3747_v40 = vadd.f32 %v11898_v5, %v11894_v6  ;;  %v4559_v38 = vpop.f32.mrb[59].mxu0  ;;  %v2676_v10 = vmax.f32 %v11909_v48, %v11918_v17 }
 0x667   :  { %15406 = vst [vmem:[#allocation136_spill] sm:$0xff] %v11906_v36  ;;  %v7734_v24 = vpop.eup %7733  ;;  %v3756_v25 = vadd.f32 %v11906_v36, %v11890_v0  ;;  %v1357_v0 = vld [vmem:[#allocation2 + $0x630] sm:$0xff]  ;;  %v1358_v36 = vld [vmem:[#allocation2 + $0x638] sm:$0xff] }
 0x668   :  { %v3324_v23 = vmul.f32 1.442695, %v2914_v21  ;;  %v3326_v34 = vmul.f32 1.442695, %v2915_v8  ;;  %3748 = vadd.xlane.f32.xlu1 %v3747_v40  ;;  %v4143_v22 = vmul.f32 %v7734_v24, %v11434_v52  ;;  %v4142_v14 = vmul.f32 %v7734_v24, %v11430_v32  ;;  %v15415_v24 = vld [vmem:[#allocation80_spill] sm:$0xff] }
 0x669   :  { %3757 = vadd.xlane.f32.xlu0 %v3756_v25  ;;  %v7736_v38 = vpop.eup %7735  ;;  %v11940_v25 = vadd.f32 %v15415_v24, %v1358_v36  ;;  %v1362_v24 = vld [vmem:[#allocation2 + $0x658] sm:$0xff] }
 0x66a   :  { %7743 = vpow2.f32 %v3324_v23  ;;  %v4347_v47 = vpack.c.bf16 %v4143_v22, %v4141_v11  ;;  %v4346_v51 = vpack.c.bf16 %v4142_v14, %v4140_v46  ;;  %v11932_v52 = vpop.f32.mrb[60].mxu0  ;;  %v15414_v46 = vld [vmem:[#allocation23_spill] sm:$0xff]  ;;  %v4145_v31 = vmul.f32 %v7736_v38, %v11388_v63  ;;  %v15417_v22 = vld [vmem:[#allocation21_spill] sm:$0xff] }
 0x66b   :  { %7745 = vpow2.f32 %v3326_v34  ;;  %15413 = vst [vmem:[#allocation88_spill] sm:$0xff] %v11932_v52  ;;  %v4564_v21 = vpop.f32.mrb[61].mxu0  ;;  %v11937_v40 = vadd.f32 %v15414_v46, %v1357_v0  ;;  %v1361_v46 = vld [vmem:[#allocation2 + $0x650] sm:$0xff] }
 0x66c   :  { %v11930_v8 = vpop.eup %7737  ;;  %4704 = vmatprep.mubr.bf16.mxu0 %v4347_v47  ;;  %2668 = vmax.xlane.f32.xlu1 %v2667_v28  ;;  %v11942_v2 = vpop.f32.mrb[62].mxu0  ;;  %v15418_v28 = vld [vmem:[#allocation44_spill] sm:$0xff] }
 0x66d   :  { %15412 = vst [vmem:[#allocation101_spill] sm:$0xff] %v11930_v8  ;;  %v11934_v32 = vpop.eup %7739  ;;  %4705 = vmatmul.mubr.bf16.gmra.mrb[132].mxu0 %v4346_v51  ;;  %2677 = vmax.xlane.f32.xlu0 %v2676_v10  ;;  %15416 = vst [vmem:[#allocation42_spill] sm:$0xff] %v11942_v2  ;;  %v4567_v11 = vpop.f32.mrb[63].mxu0  ;;  %v4144_v47 = vmul.f32 %v7736_v38, %v15418_v28  ;;  %v15419_v51 = vld [vmem:[#allocation28_spill] sm:$0xff]  ;;  %v2673_v36 = vmax.f32 %v11937_v40, %v11940_v25 }
 0x66e   :  { %v7742_v23 = vpop.eup %7741  ;;  %v3753_v34 = vadd.f32 %v11934_v32, %v11930_v8 }
 0x66f   :  { %v4147_v14 = vmul.f32 %v7742_v23, %v15417_v22  ;;  %v4146_v10 = vmul.f32 %v7742_v23, %v15419_v51  ;;  %v15423_v22 = vld [vmem:[#allocation19_spill] sm:$0xff] }
 0x670   :  { %3754 = vadd.xlane.f32.xlu1 %v3753_v34  ;;  %v11959_v23 = vadd.f32 %v15423_v22, %v1361_v46  ;;  %v15424_v34 = vld [vmem:[#allocation73_spill] sm:$0xff] }
 0x671   :  { %v4349_v0 = vpack.c.bf16 %v4147_v14, %v4145_v31  ;;  %v4348_v21 = vpack.c.bf16 %v4146_v10, %v4144_v47  ;;  %v11962_v31 = vadd.f32 %v15424_v34, %v1362_v24 }
 0x673   :  { %4712 = vmatprep.mubr.bf16.mxu0 %v4349_v0  ;;  %v2679_v51 = vmax.f32 %v11959_v23, %v11962_v31 }
 0x674   :  { %v11952_v2 = vpop.eup %7743  ;;  %v11954_v11 = vpop.f32.mrb[64].mxu0  ;;  %2674 = vmax.xlane.f32.xlu1 %v2673_v36 }
 0x675   :  { %15420 = vst [vmem:[#allocation66_spill] sm:$0xff] %v11952_v2  ;;  %15421 = vst [vmem:[#allocation86_spill] sm:$0xff] %v11954_v11  ;;  %v11956_v63 = vpop.eup %7745  ;;  %4713 = vmatmul.mubr.bf16.gmra.mrb[136].mxu0 %v4348_v21  ;;  %v4572_v38 = vpop.f32.mrb[65].mxu0 }
 0x676   :  { %15422 = vst [vmem:[#allocation98_spill] sm:$0xff] %v11956_v63  ;;  %v11964_v14 = vpop.f32.mrb[66].mxu0  ;;  %v3759_v28 = vadd.f32 %v11956_v63, %v11952_v2 }
 0x677   :  { %15425 = vst [vmem:[#allocation100_spill] sm:$0xff] %v11964_v14  ;;  %v4575_v47 = vpop.f32.mrb[67].mxu0 }
 0x678   :  { %3760 = vadd.xlane.f32.xlu1 %v3759_v28 }
 0x67c   :  { %v11970_v10 = vpop.f32.mrb[68].mxu0  ;;  %2680 = vmax.xlane.f32.xlu1 %v2679_v51 }
 0x67d   :  { %15426 = vst [vmem:[#allocation134_spill] sm:$0xff] %v11970_v10  ;;  %v4580_v0 = vpop.f32.mrb[69].mxu0 }
 0x67e   :  { %v11972_v21 = vpop.f32.mrb[70].mxu0 }
 0x67f   :  { %15427 = vst [vmem:[#allocation135_spill] sm:$0xff] %v11972_v21  ;;  %v4583_v36 = vpop.f32.mrb[71].mxu0 }
 0x684   :  { %v11974_v46 = vpop.f32.mrb[72].mxu0 }
 0x685   :  { %15428 = vst [vmem:[#allocation140_spill] sm:$0xff] %v11974_v46  ;;  %v4588_v24 = vpop.f32.mrb[73].mxu0 }
 0x686   :  { %v11976_v38 = vpop.f32.mrb[74].mxu0 }
 0x687   :  { %15429 = vst [vmem:[#allocation141_spill] sm:$0xff] %v11976_v38  ;;  %v4591_v22 = vpop.f32.mrb[75].mxu0 }
 0x68c   :  { %v11978_v34 = vpop.f32.mrb[76].mxu0 }
 0x68d   :  { %15430 = vst [vmem:[#allocation52_spill] sm:$0xff] %v11978_v34  ;;  %v4596_v47 = vpop.f32.mrb[77].mxu0 }
 0x68e   :  { %v11980_v28 = vpop.f32.mrb[78].mxu0 }
 0x68f   :  { %15431 = vst [vmem:[#allocation50_spill] sm:$0xff] %v11980_v28  ;;  %v4599_v14 = vpop.f32.mrb[79].mxu0 }
 0x690   :  { %v15436_v14 = vld [vmem:[#allocation113_spill] sm:$0xff] }
 0x694   :  { %v11982_v11 = vpop.f32.mrb[80].mxu0 }
 0x695   :  { %15432 = vst [vmem:[#allocation103_spill] sm:$0xff] %v11982_v11  ;;  %v4604_v10 = vpop.f32.mrb[81].mxu0 }
 0x696   :  { %v11984_v51 = vpop.f32.mrb[82].mxu0 }
 0x697   :  { %15433 = vst [vmem:[#allocation11_spill] sm:$0xff] %v11984_v51  ;;  %v4607_v0 = vpop.f32.mrb[83].mxu0 }
 0x699   :  { %v3692_v36 = vpop.xlane.xlu0 %3691 }
 0x69a   :  { %7747 = vrcp.f32 %v3692_v36 }
 0x69c   :  { %v11986_v21 = vpop.f32.mrb[84].mxu0  ;;  %v3695_v22 = vpop.xlane.xlu1 %3694 }
 0x69d   :  { %15434 = vst [vmem:[#allocation138_spill] sm:$0xff] %v11986_v21  ;;  %v4612_v46 = vpop.f32.mrb[85].mxu0  ;;  %7749 = vrcp.f32 %v3695_v22  ;;  %v2612_v47 = vpop.xlane.xlu0 %2611 }
 0x69e   :  { %v11988_v24 = vpop.f32.mrb[86].mxu0  ;;  %v2916_v28 = vsub.f32 %v11505_v29, %v2612_v47  ;;  %v2917_v34 = vsub.f32 %v15436_v14, %v2612_v47 }
 0x69f   :  { %15435 = vst [vmem:[#allocation139_spill] sm:$0xff] %v11988_v24  ;;  %v4615_v38 = vpop.f32.mrb[87].mxu0 }
 0x6a0   :  { %v2615_v11 = vpop.xlane.xlu1 %2614  ;;  %v3328_v10 = vmul.f32 1.442695, %v2916_v28  ;;  %v3330_v52 = vmul.f32 1.442695, %v2917_v34 }
 0x6a1   :  { %v2918_v0 = vsub.f32 %v11519_v55, %v2615_v11  ;;  %v2919_v21 = vsub.f32 %v11522_v18, %v2615_v11  ;;  %v3698_v46 = vpop.xlane.xlu0 %3697  ;;  %v15439_v11 = vld [vmem:[#allocation114_spill] sm:$0xff] }
 0x6a2   :  { %7751 = vpow2.f32 %v3328_v10  ;;  %v15440_v10 = vld [vmem:[#allocation148_spill] sm:$0xff] }
 0x6a3   :  { %v3332_v36 = vmul.f32 1.442695, %v2918_v0  ;;  %v3334_v24 = vmul.f32 1.442695, %v2919_v21  ;;  %7753 = vpow2.f32 %v3330_v52  ;;  %v15441_v0 = vld [vmem:[#allocation116_spill] sm:$0xff] }
 0x6a4   :  { %v11994_v51 = vpop.f32.mrb[88].mxu0  ;;  %v3701_v29 = vpop.xlane.xlu1 %3700 }
 0x6a5   :  { %15437 = vst [vmem:[#allocation144_spill] sm:$0xff] %v11994_v51  ;;  %v4620_v38 = vpop.f32.mrb[89].mxu0  ;;  %v7748_v2 = vpop.eup %7747  ;;  %7755 = vpow2.f32 %v3332_v36 }
 0x6a6   :  { %v11996_v22 = vpop.f32.mrb[90].mxu0  ;;  %7757 = vpow2.f32 %v3334_v24  ;;  %v2618_v34 = vpop.xlane.xlu0 %2617  ;;  %v4149_v14 = vmul.f32 %v7748_v2, %v15439_v11  ;;  %v4148_v38 = vmul.f32 %v7748_v2, %v15441_v0  ;;  %v1364_v11 = vld [vmem:[#allocation2 + $0x668] sm:$0xff] }
 0x6a7   :  { %15438 = vst [vmem:[#allocation145_spill] sm:$0xff] %v11996_v22  ;;  %v4623_v47 = vpop.f32.mrb[91].mxu0  ;;  %v7750_v28 = vpop.eup %7749  ;;  %7759 = vrcp.f32 %v3698_v46  ;;  %v2920_v55 = vsub.f32 %v11539_v15, %v2618_v34  ;;  %v2921_v18 = vsub.f32 %v11542_v59, %v2618_v34  ;;  %v15442_v22 = vld [vmem:[#allocation115_spill] sm:$0xff]  ;;  %v1363_v34 = vld [vmem:[#allocation2 + $0x660] sm:$0xff] }
 0x6a8   :  { %7761 = vrcp.f32 %v3701_v29  ;;  %v2621_v21 = vpop.xlane.xlu1 %2620  ;;  %v4151_v52 = vmul.f32 %v7750_v28, %v15440_v10  ;;  %v4150_v51 = vmul.f32 %v7750_v28, %v15442_v22  ;;  %v1365_v22 = vld [vmem:[#allocation2 + $0x670] sm:$0xff] }
 0x6a9   :  { %v3336_v36 = vmul.f32 1.442695, %v2920_v55  ;;  %v3338_v47 = vmul.f32 1.442695, %v2921_v18  ;;  %v2922_v24 = vsub.f32 %v11553_v12, %v2621_v21  ;;  %v2923_v46 = vsub.f32 %v11556_v60, %v2621_v21  ;;  %v15444_v12 = vld [vmem:[#allocation153_spill] sm:$0xff]  ;;  %v15445_v55 = vld [vmem:[#allocation155_spill] sm:$0xff] }
 0x6aa   :  { %v12006_v63 = vpop.xlane.xlu0 %3703  ;;  %v4351_v15 = vpack.c.bf16 %v4151_v52, %v4149_v14  ;;  %v4350_v59 = vpack.c.bf16 %v4150_v51, %v4148_v38  ;;  %v12013_v60 = vadd.f32 %v15444_v12, %v1363_v34  ;;  %v12016_v18 = vadd.f32 %v15445_v55, %v1364_v11  ;;  %v1366_v51 = vld [vmem:[#allocation2 + $0x678] sm:$0xff]  ;;  %v1368_v12 = vld [vmem:[#allocation2 + $0x688] sm:$0xff] }
 0x6ab   :  { %7763 = vpow2.f32 %v3336_v36  ;;  %v3340_v29 = vmul.f32 1.442695, %v2922_v24  ;;  %v3342_v8 = vmul.f32 1.442695, %v2923_v46  ;;  %v15448_v36 = vld [vmem:[#allocation20_spill] sm:$0xff]  ;;  %v15449_v46 = vld [vmem:[#allocation75_spill] sm:$0xff] }
 0x6ac   :  { %7765 = vpow2.f32 %v3338_v47  ;;  %4720 = vmatprep.mubr.bf16.mxu0 %v4351_v15  ;;  %v12008_v2 = vpop.eup %7751  ;;  %v12027_v47 = vadd.f32 %v15448_v36, %v1365_v22  ;;  %v12030_v15 = vadd.f32 %v15449_v46, %v1366_v51  ;;  %v1367_v22 = vld [vmem:[#allocation2 + $0x680] sm:$0xff]  ;;  %v1369_v36 = vld [vmem:[#allocation2 + $0x690] sm:$0xff] }
 0x6ad   :  { %15443 = vst [vmem:[#allocation57_spill] sm:$0xff] %v12008_v2  ;;  %7767 = vpow2.f32 %v3340_v29  ;;  %4721 = vmatmul.mubr.bf16.gmra.mrb[140].mxu0 %v4350_v59  ;;  %v12010_v28 = vpop.eup %7753 }
 0x6ae   :  { %7769 = vpow2.f32 %v3342_v8  ;;  %v2624_v14 = vpop.xlane.xlu0 %2623  ;;  %v3762_v0 = vadd.f32 %v12010_v28, %v12008_v2  ;;  %v15459_v2 = vld [vmem:[#allocation119_spill] sm:$0xff] }
 0x6af   :  { %v12018_v21 = vpop.eup %7755  ;;  %v2924_v10 = vsub.f32 %v11570_v50, %v2624_v14  ;;  %v2925_v52 = vsub.f32 %v11573_v53, %v2624_v14  ;;  %v2682_v53 = vmax.f32 %v12013_v60, %v12016_v18  ;;  %v15450_v14 = vld [vmem:[#allocation72_spill] sm:$0xff] }
 0x6b0   :  { %15446 = vst [vmem:[#allocation55_spill] sm:$0xff] %v12018_v21  ;;  %v12024_v38 = vpop.eup %7757  ;;  %3763 = vadd.xlane.f32.xlu0 %v3762_v0  ;;  %v2685_v0 = vmax.f32 %v12027_v47, %v12030_v15 }
 0x6b1   :  { %15447 = vst [vmem:[#allocation102_spill] sm:$0xff] %v12024_v38  ;;  %v7760_v24 = vpop.eup %7759  ;;  %v3344_v8 = vmul.f32 1.442695, %v2924_v10  ;;  %v3346_v59 = vmul.f32 1.442695, %v2925_v52  ;;  %v3765_v50 = vadd.f32 %v12024_v38, %v12018_v21 }
 0x6b2   :  { %v7762_v34 = vpop.eup %7761  ;;  %v12036_v11 = vpop.xlane.xlu0 %3709  ;;  %v4153_v29 = vmul.f32 %v7760_v24, %v11536_v19  ;;  %v4152_v51 = vmul.f32 %v7760_v24, %v11532_v58  ;;  %v1370_v58 = vld [vmem:[#allocation2 + $0x698] sm:$0xff] }
 0x6b3   :  { %7771 = vpow2.f32 %v3344_v8  ;;  %3766 = vadd.xlane.f32.xlu1 %v3765_v50  ;;  %v4155_v55 = vmul.f32 %v7762_v34, %v11550_v7  ;;  %v4154_v10 = vmul.f32 %v7762_v34, %v15450_v14  ;;  %v15453_v8 = vld [vmem:[#allocation76_spill] sm:$0xff]  ;;  %v15455_v7 = vld [vmem:[#allocation78_spill] sm:$0xff]  ;;  %v15458_v34 = vld [vmem:[#allocation117_spill] sm:$0xff] }
 0x6b4   :  { %7773 = vpow2.f32 %v3346_v59  ;;  %2683 = vmax.xlane.f32.xlu0 %v2682_v53  ;;  %v12049_v50 = vadd.f32 %v15453_v8, %v1367_v22  ;;  %v12052_v38 = vadd.f32 %v15455_v7, %v1368_v12  ;;  %v15461_v22 = vld [vmem:[#allocation81_spill] sm:$0xff]  ;;  %v15463_v12 = vld [vmem:[#allocation82_spill] sm:$0xff] }
 0x6b5   :  { %v12042_v52 = vpop.eup %7763  ;;  %v4353_v46 = vpack.c.bf16 %v4155_v55, %v4153_v29  ;;  %v4352_v19 = vpack.c.bf16 %v4154_v10, %v4152_v51  ;;  %v12063_v51 = vadd.f32 %v15461_v22, %v1369_v36  ;;  %v12066_v10 = vadd.f32 %v15463_v12, %v1370_v58  ;;  %v1371_v36 = vld [vmem:[#allocation2 + $0x6a0] sm:$0xff] }
 0x6b6   :  { %15451 = vst [vmem:[#allocation54_spill] sm:$0xff] %v12042_v52  ;;  %v12046_v21 = vpop.eup %7765  ;;  %15454 = vst [vmem:[#allocation143_spill] sm:$0xff] %v12049_v50  ;;  %v2630_v24 = vpop.xlane.xlu0 %2629  ;;  %7775 = vrcp.f32 %v12006_v63  ;;  %v7257_v58 = vld [vmem:[%s14405_s2] sm:$0xff]  }
 0x6b7   :  { %15452 = vst [vmem:[#allocation142_spill] sm:$0xff] %v12046_v21  ;;  %15456 = vst [vmem:[#allocation79_spill] sm:$0xff] %v12052_v38  ;;  %v12054_v59 = vpop.eup %7767  ;;  %4728 = vmatprep.mubr.bf16.mxu0 %v4353_v46  ;;  %2686 = vmax.xlane.f32.xlu1 %v2685_v0  ;;  %v2928_v14 = vsub.f32 %v15458_v34, %v2630_v24  ;;  %v2929_v53 = vsub.f32 %v15459_v2, %v2630_v24  ;;  %v1372_v24 = vld [vmem:[#allocation2 + $0x6a8] sm:$0xff]  ;;  %v15469_v22 = vld [vmem:[#allocation85_spill] sm:$0xff] }
 0x6b8   :  { %15457 = vst [vmem:[#allocation77_spill] sm:$0xff] %v12054_v59  ;;  %v3768_v29 = vadd.f32 %v12046_v21, %v12042_v52  ;;  %v12060_v55 = vpop.eup %7769  ;;  %15462 = vst [vmem:[#allocation31_spill] sm:$0xff] %v12063_v51  ;;  %4729 = vmatmul.mubr.bf16.gmra.mrb[144].mxu0 %v4352_v19  ;;  %v2688_v2 = vmax.f32 %v12049_v50, %v12052_v38  ;;  %7132 = vmatprep.subr.bf16.mxu0 %v7257_v58  ;;  %v15472_v52 = vld [vmem:[#allocation152_spill] sm:$0xff]  ;;  %v15473_v21 = vld [vmem:[#allocation45_spill] sm:$0xff] }
 0x6b9   :  { %15460 = vst [vmem:[#allocation5_spill] sm:$0xff] %v12060_v55  ;;  %15464 = vst [vmem:[#allocation18_spill] sm:$0xff] %v12066_v10  ;;  %v3352_v8 = vmul.f32 1.442695, %v2928_v14  ;;  %v3354_v7 = vmul.f32 1.442695, %v2929_v53  ;;  %v3771_v0 = vadd.f32 %v12060_v55, %v12054_v59  ;;  %v2691_v14 = vmax.f32 %v12063_v51, %v12066_v10  ;;  %7240 = vmatprep.subr.bf16.mxu1 %v7257_v58 }
 0x6ba   :  { %3769 = vadd.xlane.f32.xlu0 %v3768_v29  ;;  %v3707_v46 = vpop.xlane.xlu1 %3706  ;;  %v15467_v53 = vld [vmem:[#allocation24_spill] sm:$0xff]  ;;  %v12086_v12 = vadd.f32 %v15469_v22, %v1372_v24  ;;  %7133 = vmatpush3.bf16.msra.mxu0 %v7257_v58  ;;  %v1375_v22 = vld [vmem:[#allocation2 + $0x6c0] sm:$0xff]  ;;  %v1376_v10 = vld [vmem:[#allocation2 + $0x6c8] sm:$0xff] }
 0x6bb   :  { %7777 = vpow2.f32 %v3352_v8  ;;  %3772 = vadd.xlane.f32.xlu1 %v3771_v0  ;;  %v12083_v29 = vadd.f32 %v15467_v53, %v1371_v36  ;;  %7241 = vmatpush3.bf16.msra.mxu1 %v7257_v58  ;;  %v1379_v50 = vld [vmem:[#allocation2 + $0x6e0] sm:$0xff] }
 0x6bc   :  { %7779 = vpow2.f32 %v3354_v7  ;;  %v3716_v19 = vpop.xlane.xlu0 %3715  ;;  %15470 = vst [vmem:[#allocation62_spill] sm:$0xff] %v12086_v12 }
 0x6bd   :  { %v12076_v34 = vpop.eup %7771  ;;  %7781 = vrcp.f32 %v3707_v46  ;;  %15468 = vst [vmem:[#allocation147_spill] sm:$0xff] %v12083_v29  ;;  %v15471_v46 = vld [vmem:[#allocation74_spill] sm:$0xff] }
 0x6be   :  { %15465 = vst [vmem:[#allocation40_spill] sm:$0xff] %v12076_v34  ;;  %2689 = vmax.xlane.f32.xlu0 %v2688_v2  ;;  %v12080_v63 = vpop.eup %7773  ;;  %v2627_v8 = vpop.xlane.xlu1 %2626  ;;  %7783 = vrcp.f32 %v12036_v11 }
 0x6bf   :  { %15466 = vst [vmem:[#allocation146_spill] sm:$0xff] %v12080_v63  ;;  %2692 = vmax.xlane.f32.xlu1 %v2691_v14  ;;  %v3774_v7 = vadd.f32 %v12080_v63, %v12076_v34  ;;  %v2926_v0 = vsub.f32 %v11612_v3, %v2627_v8  ;;  %v2927_v2 = vsub.f32 %v15471_v46, %v2627_v8 }
 0x6c0   :  { %v2636_v59 = vpop.xlane.xlu0 %2635  ;;  %v2694_v14 = vmax.f32 %v12083_v29, %v12086_v12  ;;  %v7776_v8 = vpop.eup %7775  ;;  %v15483_v29 = vld [vmem:[#allocation154_spill] sm:$0xff] }
 0x6c1   :  { %v2932_v55 = vsub.f32 %v15472_v52, %v2636_v59  ;;  %v2933_v36 = vsub.f32 %v15473_v21, %v2636_v59  ;;  %v3348_v53 = vmul.f32 1.442695, %v2926_v0  ;;  %v3350_v24 = vmul.f32 1.442695, %v2927_v2  ;;  %v15476_v59 = vld [vmem:[#allocation161_spill] sm:$0xff] }
 0x6c2   :  { %3775 = vadd.xlane.f32.xlu0 %v3774_v7  ;;  %v3713_v63 = vpop.xlane.xlu1 %3712  ;;  %v12104_v7 = vadd.f32 %v15476_v59, %v1375_v22  ;;  %v15478_v0 = vld [vmem:[#allocation29_spill] sm:$0xff]  ;;  %v15481_v22 = vld [vmem:[#allocation46_spill] sm:$0xff] }
 0x6c3   :  { %v3360_v34 = vmul.f32 1.442695, %v2932_v55  ;;  %v3362_v3 = vmul.f32 1.442695, %v2933_v36  ;;  %7785 = vpow2.f32 %v3348_v53  ;;  %v12107_v46 = vadd.f32 %v15478_v0, %v1376_v10  ;;  %v15480_v36 = vld [vmem:[#allocation150_spill] sm:$0xff] }
 0x6c4   :  { %v12097_v58 = vpop.xlane.xlu0 %3721  ;;  %7787 = vpow2.f32 %v3350_v24  ;;  %15477 = vst [vmem:[#allocation9_spill] sm:$0xff] %v12104_v7  ;;  %v4157_v53 = vmul.f32 %v7776_v8, %v15480_v36 }
 0x6c5   :  { %v12099_v52 = vpop.eup %7777  ;;  %15479 = vst [vmem:[#allocation23_spill] sm:$0xff] %v12107_v46  ;;  %7789 = vpow2.f32 %v3360_v34  ;;  %v2700_v36 = vmax.f32 %v12104_v7, %v12107_v46 }
 0x6c6   :  { %15474 = vst [vmem:[#allocation149_spill] sm:$0xff] %v12099_v52  ;;  %2695 = vmax.xlane.f32.xlu0 %v2694_v14  ;;  %v12101_v21 = vpop.eup %7779  ;;  %7791 = vpow2.f32 %v3362_v3  ;;  %v2633_v55 = vpop.xlane.xlu1 %2632  ;;  %v15482_v3 = vld [vmem:[#allocation63_spill] sm:$0xff] }
 0x6c7   :  { %15475 = vst [vmem:[#allocation51_spill] sm:$0xff] %v12101_v21  ;;  %v7782_v11 = vpop.eup %7781  ;;  %v3780_v2 = vadd.f32 %v12101_v21, %v12099_v52  ;;  %7793 = vrcp.f32 %v3713_v63  ;;  %v2930_v24 = vsub.f32 %v11649_v54, %v2633_v55  ;;  %v2931_v14 = vsub.f32 %v11656_v43, %v2633_v55  ;;  %v1373_v21 = vld [vmem:[#allocation2 + $0x6b0] sm:$0xff] }
 0x6c8   :  { %v2642_v12 = vpop.xlane.xlu0 %2641  ;;  %v4159_v59 = vmul.f32 %v7782_v11, %v15481_v22  ;;  %v4156_v0 = vmul.f32 %v7776_v8, %v15482_v3  ;;  %v4158_v51 = vmul.f32 %v7782_v11, %v15483_v29  ;;  %7795 = vrcp.f32 %v3716_v19  ;;  %v7784_v29 = vpop.eup %7783  ;;  %v15485_v11 = vld [vmem:[#allocation158_spill] sm:$0xff] }
 0x6c9   :  { %v2936_v10 = vsub.f32 %v11659_v9, %v2642_v12  ;;  %v2937_v34 = vsub.f32 %v11662_v4, %v2642_v12  ;;  %v3356_v63 = vmul.f32 1.442695, %v2930_v24  ;;  %v3358_v52 = vmul.f32 1.442695, %v2931_v14  ;;  %v1374_v9 = vld [vmem:[#allocation2 + $0x6b8] sm:$0xff]  ;;  %v1380_v4 = vld [vmem:[#allocation2 + $0x6e8] sm:$0xff] }
 0x6ca   :  { %3781 = vadd.xlane.f32.xlu0 %v3780_v2  ;;  %v4355_v54 = vpack.c.bf16 %v4159_v59, %v4157_v53  ;;  %v4354_v38 = vpack.c.bf16 %v4158_v51, %v4156_v0  ;;  %v12126_v2 = vadd.f32 %v15485_v11, %v1373_v21  ;;  %v15488_v51 = vld [vmem:[#allocation159_spill] sm:$0xff]  ;;  %v15490_v24 = vld [vmem:[#allocation17_spill] sm:$0xff] }
 0x6cb   :  { %v3368_v43 = vmul.f32 1.442695, %v2936_v10  ;;  %v3370_v55 = vmul.f32 1.442695, %v2937_v34  ;;  %7797 = vpow2.f32 %v3356_v63  ;;  %v12131_v53 = vadd.f32 %v15488_v51, %v1374_v9  ;;  %v15491_v59 = vld [vmem:[#allocation33_spill] sm:$0xff]  ;;  %v15493_v34 = vld [vmem:[#allocation71_spill] sm:$0xff] }
 0x6cc   :  { %v3719_v22 = vpop.xlane.xlu1 %3718  ;;  %4736 = vmatprep.mubr.bf16.mxu0 %v4355_v54  ;;  %7799 = vpow2.f32 %v3358_v52  ;;  %15486 = vst [vmem:[#allocation21_spill] sm:$0xff] %v12126_v2  ;;  %v12134_v14 = vadd.f32 %v15490_v24, %v1379_v50  ;;  %v12137_v10 = vadd.f32 %v15491_v59, %v1380_v4  ;;  %v15495_v50 = vld [vmem:[#allocation157_spill] sm:$0xff]  ;;  %v15497_v4 = vld [vmem:[#allocation43_spill] sm:$0xff] }
 0x6cd   :  { %v12121_v12 = vpop.xlane.xlu0 %3727  ;;  %4737 = vmatmul.mubr.bf16.gmra.mrb[148].mxu0 %v4354_v38  ;;  %v12123_v8 = vpop.eup %7785  ;;  %7801 = vpow2.f32 %v3368_v43  ;;  %15489 = vst [vmem:[#allocation28_spill] sm:$0xff] %v12131_v53  ;;  %v15496_v43 = vld [vmem:[#allocation6_spill] sm:$0xff]  ;;  %v15498_v11 = vld [vmem:[#allocation69_spill] sm:$0xff] }
 0x6ce   :  { %2701 = vmax.xlane.f32.xlu0 %v2700_v36  ;;  %15484 = vst [vmem:[#allocation80_spill] sm:$0xff] %v12123_v8  ;;  %v12128_v19 = vpop.eup %7787  ;;  %7803 = vpow2.f32 %v3370_v55  ;;  %v4161_v55 = vmul.f32 %v7784_v29, %v15497_v4  ;;  %v4160_v51 = vmul.f32 %v7784_v29, %v15498_v11  ;;  %v15500_v4 = vld [vmem:[#allocation64_spill] sm:$0xff]  ;;  %v2697_v29 = vmax.f32 %v12126_v2, %v12131_v53 }
 0x6cf   :  { %15487 = vst [vmem:[#allocation44_spill] sm:$0xff] %v12128_v19  ;;  %v12139_v52 = vpop.eup %7789  ;;  %7805 = vrcp.f32 %v3719_v22  ;;  %v3777_v36 = vadd.f32 %v12128_v19, %v12123_v8  ;;  %v1377_v22 = vld [vmem:[#allocation2 + $0x6d0] sm:$0xff]  ;;  %v1382_v11 = vld [vmem:[#allocation2 + $0x6f8] sm:$0xff]  ;;  %v2706_v53 = vmax.f32 %v12134_v14, %v12137_v10 }
 0x6d0   :  { %v2639_v38 = vpop.xlane.xlu1 %2638  ;;  %15492 = vst [vmem:[#allocation19_spill] sm:$0xff] %v12139_v52  ;;  %v12145_v63 = vpop.eup %7791  ;;  %7807 = vrcp.f32 %v12097_v58  ;;  %v1381_v8 = vld [vmem:[#allocation2 + $0x6f0] sm:$0xff]  ;;  %v1383_v58 = vld [vmem:[#allocation2 + $0x700] sm:$0xff]  ;;  %v15505_v2 = vld [vmem:[#allocation32_spill] sm:$0xff] }
 0x6d1   :  { %v2934_v21 = vsub.f32 %v11692_v42, %v2639_v38  ;;  %v2935_v3 = vsub.f32 %v15493_v34, %v2639_v38  ;;  %v2648_v0 = vpop.xlane.xlu0 %2647  ;;  %15494 = vst [vmem:[#allocation73_spill] sm:$0xff] %v12145_v63  ;;  %v7794_v24 = vpop.eup %7793  ;;  %3778 = vadd.xlane.f32.xlu1 %v3777_v36  ;;  %v3786_v38 = vadd.f32 %v12145_v63, %v12139_v52  ;;  %v1378_v34 = vld [vmem:[#allocation2 + $0x6d8] sm:$0xff]  ;;  %v15501_v52 = vld [vmem:[#allocation27_spill] sm:$0xff] }
 0x6d2   :  { %v2940_v54 = vsub.f32 %v15495_v50, %v2648_v0  ;;  %v2941_v9 = vsub.f32 %v15496_v43, %v2648_v0  ;;  %v15499_v0 = vld [vmem:[#allocation53_spill] sm:$0xff]  ;;  %v4162_v7 = vmul.f32 %v7794_v24, %v15500_v4  ;;  %v7796_v36 = vpop.eup %7795  ;;  %v12161_v63 = vadd.f32 %v15501_v52, %v1377_v22 }
 0x6d3   :  { %v3364_v42 = vmul.f32 1.442695, %v2934_v21  ;;  %v3366_v59 = vmul.f32 1.442695, %v2935_v3  ;;  %v4163_v43 = vmul.f32 %v7794_v24, %v15499_v0  ;;  %v1384_v21 = vld [vmem:[#allocation2 + $0x708] sm:$0xff]  ;;  %3787 = vadd.xlane.f32.xlu0 %v3786_v38  ;;  %v15503_v24 = vld [vmem:[#allocation83_spill] sm:$0xff] }
 0x6d4   :  { %v3376_v19 = vmul.f32 1.442695, %v2940_v54  ;;  %v3378_v50 = vmul.f32 1.442695, %v2941_v9  ;;  %v3725_v46 = vpop.xlane.xlu1 %3724  ;;  %v4356_v9 = vpack.c.bf16 %v4162_v7, %v4160_v51  ;;  %v12166_v4 = vadd.f32 %v15503_v24, %v1378_v34  ;;  %v15507_v52 = vld [vmem:[#allocation25_spill] sm:$0xff]  ;;  %v15515_v24 = vld [vmem:[#allocation151_spill] sm:$0xff] }
 0x6d5   :  { %7809 = vpow2.f32 %v3364_v42  ;;  %v12158_v3 = vpop.xlane.xlu0 %3733  ;;  %v4357_v54 = vpack.c.bf16 %v4163_v43, %v4161_v55  ;;  %v12163_v0 = vpop.eup %7797  ;;  %v12171_v42 = vadd.f32 %v15505_v2, %v1381_v8  ;;  %2698 = vmax.xlane.f32.xlu1 %v2697_v29  ;;  %v12176_v22 = vadd.f32 %v15507_v52, %v1382_v11  ;;  %v15508_v55 = vld [vmem:[#allocation10_spill] sm:$0xff]  ;;  %v15510_v51 = vld [vmem:[#allocation37_spill] sm:$0xff] }
 0x6d6   :  { %7811 = vpow2.f32 %v3366_v59  ;;  %15502 = vst [vmem:[#allocation113_spill] sm:$0xff] %v12163_v0  ;;  %15504 = vst [vmem:[#allocation114_spill] sm:$0xff] %v12166_v4  ;;  %v12173_v38 = vpop.eup %7799  ;;  %v12179_v7 = vadd.f32 %v15508_v55, %v1383_v58  ;;  %v12182_v59 = vadd.f32 %v15510_v51, %v1384_v21  ;;  %v15514_v21 = vld [vmem:[#allocation121_spill] sm:$0xff]  ;;  %v1386_v55 = vld [vmem:[#allocation2 + $0x718] sm:$0xff] }
 0x6d7   :  { %7813 = vpow2.f32 %v3376_v19  ;;  %15506 = vst [vmem:[#allocation148_spill] sm:$0xff] %v12173_v38  ;;  %4744 = vmatprep.mubr.bf16.mxu0 %v4357_v54  ;;  %v12184_v43 = vpop.eup %7801  ;;  %2707 = vmax.xlane.f32.xlu0 %v2706_v53  ;;  %v3783_v29 = vadd.f32 %v12173_v38, %v12163_v0  ;;  %v4165_v54 = vmul.f32 %v7796_v36, %v15514_v21  ;;  %v1385_v53 = vld [vmem:[#allocation2 + $0x710] sm:$0xff]  ;;  %v1387_v51 = vld [vmem:[#allocation2 + $0x720] sm:$0xff]  ;;  %v15517_v21 = vld [vmem:[#allocation70_spill] sm:$0xff] }
 0x6d8   :  { %15509 = vst [vmem:[#allocation116_spill] sm:$0xff] %v12179_v7  ;;  %15511 = vst [vmem:[#allocation115_spill] sm:$0xff] %v12182_v59  ;;  %7815 = vpow2.f32 %v3378_v50  ;;  %v2645_v34 = vpop.xlane.xlu1 %2644  ;;  %4745 = vmatmul.mubr.bf16.gmra.mrb[152].mxu0 %v4356_v9  ;;  %v12190_v11 = vpop.eup %7803 }
 0x6d9   :  { %15512 = vst [vmem:[#allocation153_spill] sm:$0xff] %v12184_v43  ;;  %7817 = vrcp.f32 %v3725_v46  ;;  %v2938_v8 = vsub.f32 %v11735_v20, %v2645_v34  ;;  %v2939_v2 = vsub.f32 %v11742_v39, %v2645_v34  ;;  %v2654_v19 = vpop.xlane.xlu0 %2653  ;;  %15513 = vst [vmem:[#allocation155_spill] sm:$0xff] %v12190_v11  ;;  %v4164_v46 = vmul.f32 %v7796_v36, %v15515_v24  ;;  %v7806_v9 = vpop.eup %7805 }
 0x6da   :  { %v2944_v58 = vsub.f32 %v11745_v16, %v2654_v19  ;;  %v2945_v50 = vsub.f32 %v11748_v37, %v2654_v19  ;;  %7819 = vrcp.f32 %v12121_v12  ;;  %3784 = vadd.xlane.f32.xlu1 %v3783_v29  ;;  %v3792_v52 = vadd.f32 %v12190_v11, %v12184_v43  ;;  %v15516_v37 = vld [vmem:[#allocation156_spill] sm:$0xff]  ;;  %v7808_v36 = vpop.eup %7807  ;;  %v15520_v43 = vld [vmem:[#allocation35_spill] sm:$0xff] }
 0x6db   :  { %v3372_v20 = vmul.f32 1.442695, %v2938_v8  ;;  %v3374_v39 = vmul.f32 1.442695, %v2939_v2  ;;  %v4167_v19 = vmul.f32 %v7806_v9, %v15516_v37  ;;  %v4166_v38 = vmul.f32 %v7806_v9, %v15517_v21  ;;  %v1388_v8 = vld [vmem:[#allocation2 + $0x728] sm:$0xff]  ;;  %v15521_v12 = vld [vmem:[#allocation92_spill] sm:$0xff] }
 0x6dc   :  { %v3384_v34 = vmul.f32 1.442695, %v2944_v58  ;;  %v3386_v16 = vmul.f32 1.442695, %v2945_v50  ;;  %v3731_v0 = vpop.xlane.xlu1 %3730  ;;  %v2703_v24 = vmax.f32 %v12161_v63, %v12166_v4  ;;  %3793 = vadd.xlane.f32.xlu0 %v3792_v52  ;;  %v12207_v29 = vpop.f32.mrb[92].mxu0  ;;  %v2712_v58 = vmax.f32 %v12179_v7, %v12182_v59 }
 0x6dd   :  { %7821 = vpow2.f32 %v3372_v20  ;;  %v12205_v2 = vpop.xlane.xlu0 %3739  ;;  %15518 = vst [vmem:[#allocation20_spill] sm:$0xff] %v12207_v29  ;;  %v4359_v50 = vpack.c.bf16 %v4167_v19, %v4165_v54  ;;  %v4358_v9 = vpack.c.bf16 %v4166_v38, %v4164_v46  ;;  %v4628_v37 = vpop.f32.mrb[93].mxu0  ;;  %v12214_v11 = vadd.f32 %v15520_v43, %v1385_v53  ;;  %v15522_v20 = vld [vmem:[#allocation14_spill] sm:$0xff]  ;;  %v8159_v43 = vld [vmem:[%s14415_s12] sm:$0xff]  ;;  %v15527_v46 = vld [vmem:[#allocation124_spill] sm:$0xff] }
 0x6de   :  { %7823 = vpow2.f32 %v3374_v39  ;;  %v12217_v4 = vadd.f32 %v15521_v12, %v1386_v55  ;;  %v12220_v52 = vadd.f32 %v15522_v20, %v1387_v51  ;;  %2704 = vmax.xlane.f32.xlu1 %v2703_v24  ;;  %v12222_v29 = vpop.f32.mrb[94].mxu0  ;;  %v15525_v54 = vld [vmem:[#allocation30_spill] sm:$0xff]  ;;  %v5017_v53 = vmul.f32 %v8159_v43, %v15527_v46  ;;  %v1389_v43 = vld [vmem:[#allocation2 + $0x730] sm:$0xff]  ;;  %v15531_v46 = vld [vmem:[#allocation8_spill] sm:$0xff] }
 0x6df   :  { %v12211_v21 = vpop.eup %7809  ;;  %7825 = vpow2.f32 %v3384_v34  ;;  %15523 = vst [vmem:[#allocation72_spill] sm:$0xff] %v12222_v29  ;;  %v12227_v38 = vadd.f32 %v15525_v54, %v1388_v8  ;;  %v8160_v39 = vld [vmem:[%s14415_s12 + $0x8] sm:$0xff]  ;;  %4752 = vmatprep.mubr.bf16.mxu0 %v4359_v50  ;;  %v4631_v19 = vpop.f32.mrb[95].mxu0 }
 0x6e0   :  { %15519 = vst [vmem:[#allocation75_spill] sm:$0xff] %v12211_v21  ;;  %v12224_v59 = vpop.eup %7811  ;;  %v15528_v55 = vld [vmem:[#allocation110_spill] sm:$0xff]  ;;  %7827 = vpow2.f32 %v3386_v16  ;;  %v2651_v34 = vpop.xlane.xlu1 %2650  ;;  %4753 = vmatmul.mubr.bf16.gmra.mrb[156].mxu0 %v4358_v9  ;;  %2713 = vmax.xlane.f32.xlu0 %v2712_v58  ;;  %v1391_v19 = vld [vmem:[#allocation2 + $0x740] sm:$0xff] }
 0x6e1   :  { %15524 = vst [vmem:[#allocation76_spill] sm:$0xff] %v12224_v59  ;;  %15526 = vst [vmem:[#allocation78_spill] sm:$0xff] %v12227_v38  ;;  %v5018_v51 = vmul.f32 %v8160_v39, %v15528_v55  ;;  %v12237_v24 = vpop.eup %7813  ;;  %7829 = vrcp.f32 %v3731_v0  ;;  %v2942_v12 = vsub.f32 %v11774_v49, %v2651_v34  ;;  %v2943_v8 = vsub.f32 %v11781_v61, %v2651_v34  ;;  %v2660_v37 = vpop.xlane.xlu0 %2659  ;;  %v15532_v0 = vld [vmem:[#allocation123_spill] sm:$0xff]  ;;  %v1390_v55 = vld [vmem:[#allocation2 + $0x738] sm:$0xff] }
 0x6e2   :  { %15529 = vst [vmem:[#allocation117_spill] sm:$0xff] %v12237_v24  ;;  %v3789_v20 = vadd.f32 %v12224_v59, %v12211_v21  ;;  %v12243_v54 = vpop.eup %7815  ;;  %v2948_v16 = vsub.f32 %v11784_v41, %v2660_v37  ;;  %v2949_v50 = vsub.f32 %v11787_v35, %v2660_v37  ;;  %v4169_v39 = vmul.f32 %v7808_v36, %v15531_v46  ;;  %v1392_v29 = vld [vmem:[#allocation2 + $0x748] sm:$0xff]  ;;  %v15533_v35 = vld [vmem:[#allocation128_spill] sm:$0xff] }
 0x6e3   :  { %15530 = vst [vmem:[#allocation119_spill] sm:$0xff] %v12243_v54  ;;  %v4168_v9 = vmul.f32 %v7808_v36, %v15532_v0  ;;  %v7818_v58 = vpop.eup %7817  ;;  %7831 = vrcp.f32 %v12158_v3  ;;  %v3380_v49 = vmul.f32 1.442695, %v2942_v12  ;;  %v3382_v61 = vmul.f32 1.442695, %v2943_v8  ;;  %v15534_v46 = vld [vmem:[#allocation56_spill] sm:$0xff] }
 0x6e4   :  { %3790 = vadd.xlane.f32.xlu1 %v3789_v20  ;;  %v3798_v34 = vadd.f32 %v12243_v54, %v12237_v24  ;;  %v3392_v21 = vmul.f32 1.442695, %v2948_v16  ;;  %v3394_v41 = vmul.f32 1.442695, %v2949_v50  ;;  %v3737_v59 = vpop.xlane.xlu1 %3736  ;;  %v4171_v37 = vmul.f32 %v7818_v58, %v15533_v35  ;;  %v7820_v36 = vpop.eup %7819  ;;  %v15535_v12 = vld [vmem:[#allocation59_spill] sm:$0xff]  ;;  %v15536_v16 = vld [vmem:[#allocation96_spill] sm:$0xff] }
 0x6e5   :  { %v4170_v7 = vmul.f32 %v7818_v58, %v15534_v46  ;;  %v2718_v3 = vmax.f32 %v12220_v52, %v12227_v38  ;;  %v12259_v8 = vadd.f32 %v15535_v12, %v1389_v43  ;;  %7833 = vpow2.f32 %v3380_v49  ;;  %v12261_v20 = vpop.xlane.xlu0 %3745  ;;  %v15538_v24 = vld [vmem:[#allocation108_spill] sm:$0xff]  ;;  %v15539_v54 = vld [vmem:[#allocation13_spill] sm:$0xff] }
 0x6e6   :  { %3799 = vadd.xlane.f32.xlu0 %v3798_v34  ;;  %v12264_v50 = vadd.f32 %v15536_v16, %v1390_v55  ;;  %7835 = vpow2.f32 %v3382_v61  ;;  %v4361_v35 = vpack.c.bf16 %v4171_v37, %v4169_v39  ;;  %v12269_v0 = vadd.f32 %v15538_v24, %v1391_v19  ;;  %v15542_v24 = vld [vmem:[#allocation87_spill] sm:$0xff] }
 0x6e7   :  { %v4360_v58 = vpack.c.bf16 %v4170_v7, %v4168_v9  ;;  %v12266_v46 = vpop.eup %7821  ;;  %v12272_v38 = vadd.f32 %v15539_v54, %v1392_v29  ;;  %7837 = vpow2.f32 %v3392_v21  ;;  %v15540_v43 = vmax.f32 %v12171_v42, %v12176_v22  ;;  %v4634_v7 = vpop.f32.mrb[96].mxu0  ;;  %v15543_v34 = vld [vmem:[#allocation127_spill] sm:$0xff] }
 0x6e8   :  { %15537 = vst [vmem:[#allocation81_spill] sm:$0xff] %v12266_v46  ;;  %v5145_v49 = vsel %vm96_vm0, %v5017_v53, 0.0  ;;  %v12278_v55 = vpop.eup %7823  ;;  %7839 = vpow2.f32 %v3394_v41  ;;  %4760 = vmatprep.mubr.bf16.mxu0 %v4361_v35  ;;  %v2657_v39 = vpop.xlane.xlu1 %2656  ;;  %v5152_v9 = vsel %vm96_vm0, %v5018_v51, 0.0  ;;  %v4173_v61 = vmul.f32 %v7820_v36, %v15542_v24  ;;  %v8161_v53 = vld [vmem:[%s14415_s12 + $0x100] sm:$0xff] }
 0x6e9   :  { %2710 = vmax.xlane.f32.xlu1 %v15540_v43  ;;  %15541 = vst [vmem:[#allocation82_spill] sm:$0xff] %v12278_v55  ;;  %v12283_v29 = vmul.f32 %v7820_v36, %v15543_v34  ;;  %v12285_v21 = vpop.eup %7825  ;;  %7841 = vrcp.f32 %v3737_v59  ;;  %4761 = vmatmul.mubr.bf16.gmra.mrb[160].mxu0 %v4360_v58  ;;  %v5049_v54 = vmul.f32 %v8161_v53, %v4634_v7  ;;  %v4636_v51 = vpop.f32.mrb[97].mxu0  ;;  %v1393_v36 = vld [vmem:[#allocation2 + $0x750] sm:$0xff]  ;;  %v8162_v7 = vld [vmem:[%s14415_s12 + $0x108] sm:$0xff] }
 0x6ea   :  { %15544 = vst [vmem:[#allocation24_spill] sm:$0xff] %v12285_v21  ;;  %2719 = vmax.xlane.f32.xlu0 %v2718_v3  ;;  %v2946_v19 = vsub.f32 %v11815_v1, %v2657_v39  ;;  %v2947_v41 = vsub.f32 %v11824_v27, %v2657_v39  ;;  %v2666_v37 = vpop.xlane.xlu0 %2665  ;;  %v12292_v12 = vpop.eup %7827  ;;  %7843 = vrcp.f32 %v12205_v2  ;;  %v3795_v35 = vadd.f32 %v12278_v55, %v12266_v46  ;;  %v1394_v2 = vld [vmem:[#allocation2 + $0x758] sm:$0xff] }
 0x6eb   :  { %v2952_v59 = vsub.f32 %v11827_v26, %v2666_v37  ;;  %v2953_v3 = vsub.f32 %v11830_v13, %v2666_v37  ;;  %v4637_v16 = vpop.f32.mrb[98].mxu0  ;;  %v7830_v58 = vpop.eup %7829  ;;  %v5146_v1 = vsel %vm96_vm0, %v5049_v54, 0.0  ;;  %v3804_v53 = vadd.f32 %v12292_v12, %v12285_v21  ;;  %v1395_v54 = vld [vmem:[#allocation2 + $0x760] sm:$0xff]  ;;  %v15546_v46 = vld [vmem:[#allocation160_spill] sm:$0xff] }
 0x6ec   :  { %v3388_v43 = vmul.f32 1.442695, %v2946_v19  ;;  %v3390_v27 = vmul.f32 1.442695, %v2947_v41  ;;  %v5050_v39 = vmul.f32 %v8162_v7, %v4637_v16  ;;  %v4639_v24 = vpop.f32.mrb[99].mxu0  ;;  %v12303_v34 = vadd.f32 %v5146_v1, %v5145_v49  ;;  %v3743_v51 = vpop.xlane.xlu1 %3742  ;;  %v1396_v19 = vld [vmem:[#allocation2 + $0x768] sm:$0xff] }
 0x6ed   :  { %v3400_v26 = vmul.f32 1.442695, %v2952_v59  ;;  %v3402_v13 = vmul.f32 1.442695, %v2953_v3  ;;  %3796 = vadd.xlane.f32.xlu1 %v3795_v35  ;;  %v7832_v37 = vpop.eup %7831  ;;  %v4175_v55 = vmul.f32 %v7830_v58, %v15546_v46  ;;  %v15547_v7 = vld [vmem:[#allocation36_spill] sm:$0xff]  ;;  %v2724_v59 = vmax.f32 %v12269_v0, %v12272_v38  ;;  %v15548_v3 = vld [vmem:[#allocation39_spill] sm:$0xff] }
 0x6ee   :  { %15545 = vst [vmem:[#allocation85_spill] sm:$0xff] %v12303_v34  ;;  %7845 = vpow2.f32 %v3388_v43  ;;  %v5153_v41 = vsel %vm96_vm0, %v5050_v39, 0.0  ;;  %v12309_v16 = vpop.xlane.xlu0 %3751  ;;  %v4174_v49 = vmul.f32 %v7830_v58, %v15547_v7  ;;  %v12315_v35 = vadd.f32 %v15548_v3, %v1393_v36  ;;  %3805 = vadd.xlane.f32.xlu0 %v3804_v53  ;;  %v15550_v43 = vld [vmem:[#allocation99_spill] sm:$0xff]  ;;  %v15551_v7 = vld [vmem:[#allocation61_spill] sm:$0xff]  ;;  %v15552_v36 = vld [vmem:[#allocation60_spill] sm:$0xff] }
 0x6ef   :  { %7847 = vpow2.f32 %v3390_v27  ;;  %v12317_v1 = vadd.f32 %v5153_v41, %v5152_v9  ;;  %v12319_v24 = vpop.eup %7833  ;;  %v12322_v39 = vadd.f32 %v15550_v43, %v1394_v2  ;;  %v4363_v46 = vpack.c.bf16 %v4175_v55, %v4173_v61  ;;  %v15554_v2 = vld [vmem:[#allocation129_spill] sm:$0xff] }
 0x6f0   :  { %7849 = vpow2.f32 %v3400_v26  ;;  %v4362_v34 = vpack.c.bf16 %v4174_v49, %v12283_v29  ;;  %v12325_v58 = vpop.eup %7835  ;;  %v12328_v21 = vadd.f32 %v15551_v7, %v1395_v54  ;;  %v12331_v3 = vadd.f32 %v15552_v36, %v1396_v19  ;;  %v2663_v27 = vpop.xlane.xlu1 %2662  ;;  %v15557_v49 = vld [vmem:[#allocation49_spill] sm:$0xff] }
 0x6f1   :  { %15549 = vst [vmem:[#allocation74_spill] sm:$0xff] %v12317_v1  ;;  %7851 = vpow2.f32 %v3402_v13  ;;  %v15553_v9 = vmax.f32 %v12214_v11, %v12217_v4  ;;  %v4177_v53 = vmul.f32 %v7832_v37, %v15554_v2  ;;  %v12337_v26 = vpop.eup %7837  ;;  %4768 = vmatprep.mubr.bf16.mxu0 %v4363_v46  ;;  %v2950_v55 = vsub.f32 %v11864_v33, %v2663_v27  ;;  %v1399_v36 = vld [vmem:[#allocation2 + $0x780] sm:$0xff]  ;;  %v1400_v2 = vld [vmem:[#allocation2 + $0x788] sm:$0xff] }
 0x6f2   :  { %15555 = vst [vmem:[#allocation152_spill] sm:$0xff] %v12337_v26  ;;  %7853 = vrcp.f32 %v3743_v51  ;;  %v2951_v61 = vsub.f32 %v11867_v62, %v2663_v27  ;;  %v2672_v29 = vpop.xlane.xlu0 %2671  ;;  %v3801_v54 = vadd.f32 %v12325_v58, %v12319_v24  ;;  %v12343_v13 = vpop.eup %7839  ;;  %4769 = vmatmul.mubr.bf16.gmra.mrb[164].mxu0 %v4362_v34  ;;  %2725 = vmax.xlane.f32.xlu0 %v2724_v59  ;;  %v15558_v59 = vld [vmem:[#allocation58_spill] sm:$0xff] }
 0x6f3   :  { %2716 = vmax.xlane.f32.xlu1 %v15553_v9  ;;  %15556 = vst [vmem:[#allocation45_spill] sm:$0xff] %v12343_v13  ;;  %v2956_v19 = vsub.f32 %v11872_v56, %v2672_v29  ;;  %v2957_v41 = vsub.f32 %v11879_v45, %v2672_v29  ;;  %v4176_v43 = vmul.f32 %v7832_v37, %v15557_v49  ;;  %v7842_v51 = vpop.eup %7841  ;;  %7855 = vrcp.f32 %v12261_v20  ;;  %v1404_v1 = vld [vmem:[#allocation2 + $0x7a8] sm:$0xff] }
 0x6f4   :  { %v3396_v33 = vmul.f32 1.442695, %v2950_v55  ;;  %v3398_v46 = vmul.f32 1.442695, %v2951_v61  ;;  %v3810_v62 = vadd.f32 %v12343_v13, %v12337_v26  ;;  %v7844_v7 = vpop.eup %7843  ;;  %v4179_v56 = vmul.f32 %v7842_v51, %v11832_v57 }
 0x6f5   :  { %v3408_v9 = vmul.f32 1.442695, %v2956_v19  ;;  %v3410_v27 = vmul.f32 1.442695, %v2957_v41  ;;  %v3749_v34 = vpop.xlane.xlu1 %3748  ;;  %v4178_v45 = vmul.f32 %v7842_v51, %v15558_v59  ;;  %v2721_v20 = vmax.f32 %v12259_v8, %v12264_v50  ;;  %v15560_v19 = vld [vmem:[#allocation22_spill] sm:$0xff]  ;;  %v15561_v51 = vld [vmem:[#allocation105_spill] sm:$0xff] }
 0x6f6   :  { %7857 = vpow2.f32 %v3396_v33  ;;  %v12353_v37 = vpop.xlane.xlu0 %3757  ;;  %3811 = vadd.xlane.f32.xlu0 %v3810_v62  ;;  %v4365_v55 = vpack.c.bf16 %v4179_v56, %v4177_v53  ;;  %v2730_v57 = vmax.f32 %v12328_v21, %v12331_v3  ;;  %v12364_v41 = vadd.f32 %v15560_v19, %v1399_v36  ;;  %v8163_v53 = vld [vmem:[%s14415_s12 + $0x10] sm:$0xff]  ;;  %v15563_v56 = vld [vmem:[#allocation94_spill] sm:$0xff] }
 0x6f7   :  { %3802 = vadd.xlane.f32.xlu1 %v3801_v54  ;;  %7859 = vpow2.f32 %v3398_v46  ;;  %v4364_v61 = vpack.c.bf16 %v4178_v45, %v4176_v43  ;;  %v12369_v33 = vadd.f32 %v15561_v51, %v1400_v2  ;;  %v15562_v43 = vld [vmem:[#allocation109_spill] sm:$0xff]  ;;  %v4181_v59 = vmul.f32 %v7844_v7, %v15563_v56 }
 0x6f8   :  { %v12357_v29 = vpop.eup %7845  ;;  %7861 = vpow2.f32 %v3408_v9  ;;  %v5019_v46 = vmul.f32 %v8163_v53, %v15562_v43  ;;  %4776 = vmatprep.mubr.bf16.mxu0 %v4365_v55  ;;  %v1397_v53 = vld [vmem:[#allocation2 + $0x770] sm:$0xff]  ;;  %v15566_v43 = vld [vmem:[#allocation38_spill] sm:$0xff]  ;;  %v1403_v54 = vld [vmem:[#allocation2 + $0x7a0] sm:$0xff] }
 0x6f9   :  { %15559 = vst [vmem:[#allocation161_spill] sm:$0xff] %v12357_v29  ;;  %v12366_v49 = vpop.eup %7847  ;;  %7863 = vpow2.f32 %v3410_v27  ;;  %v2669_v62 = vpop.xlane.xlu1 %2668  ;;  %v1398_v27 = vld [vmem:[#allocation2 + $0x778] sm:$0xff] }
 0x6fa   :  { %v12376_v36 = vpop.eup %7849  ;;  %7865 = vrcp.f32 %v3749_v34  ;;  %v2954_v9 = vsub.f32 %v11901_v44, %v2669_v62  ;;  %v2955_v45 = vsub.f32 %v11904_v30, %v2669_v62  ;;  %v2678_v2 = vpop.xlane.xlu0 %2677  ;;  %v3807_v19 = vadd.f32 %v12366_v49, %v12357_v29  ;;  %4777 = vmatmul.mubr.bf16.gmra.mrb[168].mxu0 %v4364_v61  ;;  %2731 = vmax.xlane.f32.xlu0 %v2730_v57  ;;  %v15567_v57 = vld [vmem:[#allocation95_spill] sm:$0xff]  ;;  %v15568_v29 = vld [vmem:[#allocation34_spill] sm:$0xff] }
 0x6fb   :  { %2722 = vmax.xlane.f32.xlu1 %v2721_v20  ;;  %15564 = vst [vmem:[#allocation29_spill] sm:$0xff] %v12376_v36  ;;  %v12382_v51 = vpop.eup %7851  ;;  %v2960_v20 = vsub.f32 %v11909_v48, %v2678_v2  ;;  %v2961_v55 = vsub.f32 %v11918_v17, %v2678_v2  ;;  %v4180_v34 = vmul.f32 %v7844_v7, %v15566_v43  ;;  %7867 = vrcp.f32 %v12309_v16  ;;  %v15569_v7 = vld [vmem:[#allocation16_spill] sm:$0xff] }
 0x6fc   :  { %15565 = vst [vmem:[#allocation150_spill] sm:$0xff] %v12382_v51  ;;  %v7854_v56 = vpop.eup %7853  ;;  %v3404_v44 = vmul.f32 1.442695, %v2954_v9  ;;  %v3406_v30 = vmul.f32 1.442695, %v2955_v45  ;;  %v3816_v62 = vadd.f32 %v12382_v51, %v12376_v36  ;;  %v12393_v43 = vadd.f32 %v15569_v7, %v1397_v53  ;;  %v15570_v16 = vld [vmem:[#allocation48_spill] sm:$0xff] }
 0x6fd   :  { %v3416_v26 = vmul.f32 1.442695, %v2960_v20  ;;  %v3418_v13 = vmul.f32 1.442695, %v2961_v55  ;;  %v3755_v61 = vpop.xlane.xlu1 %3754  ;;  %v4183_v48 = vmul.f32 %v7854_v56, %v15567_v57  ;;  %v4182_v17 = vmul.f32 %v7854_v56, %v15568_v29  ;;  %v7856_v2 = vpop.eup %7855  ;;  %v8164_v45 = vld [vmem:[%s14415_s12 + $0x18] sm:$0xff]  ;;  %v15571_v36 = vld [vmem:[#allocation111_spill] sm:$0xff] }
 0x6fe   :  { %v12396_v9 = vadd.f32 %v15570_v16, %v1398_v27  ;;  %v5020_v20 = vmul.f32 %v8164_v45, %v15571_v36  ;;  %7869 = vpow2.f32 %v3404_v44  ;;  %3817 = vadd.xlane.f32.xlu0 %v3816_v62  ;;  %v8165_v29 = vld [vmem:[%s14415_s12 + $0x110] sm:$0xff]  ;;  %v2736_v7 = vmax.f32 %v12364_v41, %v12369_v33  ;;  %v15572_v16 = vld [vmem:[#allocation12_spill] sm:$0xff] }
 0x6ff   :  { %3808 = vadd.xlane.f32.xlu1 %v3807_v19  ;;  %v4642_v19 = vpop.f32.mrb[100].mxu0  ;;  %7871 = vpow2.f32 %v3406_v30  ;;  %v4367_v55 = vpack.c.bf16 %v4183_v48, %v4181_v59  ;;  %v4366_v56 = vpack.c.bf16 %v4182_v17, %v4180_v34  ;;  %v12410_v51 = vadd.f32 %v15572_v16, %v1403_v54  ;;  %v15573_v36 = vld [vmem:[#allocation67_spill] sm:$0xff]  ;;  %v8166_v54 = vld [vmem:[%s14415_s12 + $0x118] sm:$0xff] }
 0x700   :  { %v5051_v53 = vmul.f32 %v8165_v29, %v4642_v19  ;;  %v4644_v57 = vpop.f32.mrb[101].mxu0  ;;  %v12405_v27 = vpop.eup %7857  ;;  %v12413_v44 = vadd.f32 %v15573_v36, %v1404_v1  ;;  %7873 = vpow2.f32 %v3416_v26  ;;  %v5159_v34 = vsel %vm96_vm0, %v5019_v46, 0.0  ;;  %v15578_v16 = vld [vmem:[#allocation7_spill] sm:$0xff] }
 0x701   :  { %v4645_v59 = vpop.f32.mrb[102].mxu0  ;;  %v12415_v30 = vpop.eup %7859  ;;  %7875 = vpow2.f32 %v3418_v13  ;;  %4784 = vmatprep.mubr.bf16.mxu0 %v4367_v55  ;;  %v15574_v48 = vmax.f32 %v12315_v35, %v12322_v39  ;;  %v5166_v29 = vsel %vm96_vm0, %v5020_v20, 0.0  ;;  %v4185_v36 = vmul.f32 %v7856_v2, %v15578_v16 }
 0x702   :  { %v5160_v62 = vsel %vm96_vm0, %v5051_v53, 0.0  ;;  %v5052_v1 = vmul.f32 %v8166_v54, %v4645_v59  ;;  %v2675_v17 = vpop.xlane.xlu1 %2674  ;;  %v4647_v26 = vpop.f32.mrb[103].mxu0  ;;  %7877 = vrcp.f32 %v3755_v61  ;;  %4785 = vmatmul.mubr.bf16.gmra.mrb[172].mxu0 %v4366_v56  ;;  %2737 = vmax.xlane.f32.xlu0 %v2736_v7  ;;  %v3813_v57 = vadd.f32 %v12415_v30, %v12405_v27  ;;  %v1402_v56 = vld [vmem:[#allocation2 + $0x798] sm:$0xff] }
 0x703   :  { %2728 = vmax.xlane.f32.xlu1 %v15574_v48  ;;  %v12425_v45 = vpop.eup %7861  ;;  %v12427_v13 = vadd.f32 %v5160_v62, %v5159_v34  ;;  %v2958_v46 = vsub.f32 %v11937_v40, %v2675_v17  ;;  %v2959_v19 = vsub.f32 %v11940_v25, %v2675_v17  ;;  %v1401_v62 = vld [vmem:[#allocation2 + $0x790] sm:$0xff]  ;;  %7879 = vrcp.f32 %v12353_v37 }
 0x704   :  { %15575 = vst [vmem:[#allocation46_spill] sm:$0xff] %v12425_v45  ;;  %v12431_v55 = vpop.eup %7863  ;;  %v5167_v53 = vsel %vm96_vm0, %v5052_v1, 0.0  ;;  %v15580_v48 = vld [vmem:[#allocation91_spill] sm:$0xff]  ;;  %v2733_v26 = vmax.f32 %v12393_v43, %v12396_v9 }
 0x705   :  { %15576 = vst [vmem:[#allocation63_spill] sm:$0xff] %v12427_v13  ;;  %15577 = vst [vmem:[#allocation154_spill] sm:$0xff] %v12431_v55  ;;  %v7866_v61 = vpop.eup %7865  ;;  %v12438_v59 = vadd.f32 %v5167_v53, %v5166_v29  ;;  %v3412_v34 = vmul.f32 1.442695, %v2958_v46  ;;  %v3414_v40 = vmul.f32 1.442695, %v2959_v19  ;;  %v3822_v25 = vadd.f32 %v12431_v55, %v12425_v45 }
 0x706   :  { %v3761_v20 = vpop.xlane.xlu1 %3760  ;;  %v4187_v7 = vmul.f32 %v7866_v61, %v11898_v5  ;;  %v4184_v54 = vmul.f32 %v7856_v2, %v15580_v48  ;;  %v4186_v1 = vmul.f32 %v7866_v61, %v11894_v6  ;;  %v7868_v17 = vpop.eup %7867  ;;  %v1407_v46 = vld [vmem:[#allocation2 + $0x7c0] sm:$0xff]  ;;  %v1408_v19 = vld [vmem:[#allocation2 + $0x7c8] sm:$0xff] }
 0x707   :  { %15579 = vst [vmem:[#allocation158_spill] sm:$0xff] %v12438_v59  ;;  %3814 = vadd.xlane.f32.xlu1 %v3813_v57  ;;  %v8167_v29 = vld [vmem:[%s14415_s12 + $0x20] sm:$0xff]  ;;  %7881 = vpow2.f32 %v3412_v34  ;;  %v8168_v5 = vld [vmem:[%s14415_s12 + $0x28] sm:$0xff]  ;;  %3823 = vadd.xlane.f32.xlu0 %v3822_v25  ;;  %v2742_v34 = vmax.f32 %v12410_v51, %v12413_v44 }
 0x708   :  { %v15581_v53 = vld [vmem:[#allocation65_spill] sm:$0xff]  ;;  %7883 = vpow2.f32 %v3414_v40  ;;  %v4369_v6 = vpack.c.bf16 %v4187_v7, %v4185_v36  ;;  %v4368_v16 = vpack.c.bf16 %v4186_v1, %v4184_v54  ;;  %v12456_v61 = vpop.eup %7869  ;;  %v15583_v48 = vld [vmem:[#allocation118_spill] sm:$0xff] }
 0x709   :  { %v5021_v37 = vmul.f32 %v8167_v29, %v15581_v53  ;;  %v15582_v2 = vld [vmem:[#allocation125_spill] sm:$0xff]  ;;  %v12459_v59 = vadd.f32 %v15583_v48, %v1401_v62  ;;  %7885 = vrcp.f32 %v3761_v20  ;;  %v4650_v29 = vpop.f32.mrb[104].mxu0  ;;  %v12466_v53 = vpop.eup %7871  ;;  %v15586_v36 = vld [vmem:[#allocation122_spill] sm:$0xff] }
 0x70a   :  { %v5022_v57 = vmul.f32 %v8168_v5, %v15582_v2  ;;  %v15584_v13 = vld [vmem:[#allocation41_spill] sm:$0xff]  ;;  %v15585_v5 = vld [vmem:[#allocation107_spill] sm:$0xff]  ;;  %v12472_v25 = vadd.f32 %v15586_v36, %v1408_v19  ;;  %4792 = vmatprep.mubr.bf16.mxu0 %v4369_v6  ;;  %v2681_v7 = vpop.xlane.xlu1 %2680  ;;  %v12477_v54 = vpop.eup %7873  ;;  %v3819_v19 = vadd.f32 %v12466_v53, %v12456_v61 }
 0x70b   :  { %v12462_v45 = vadd.f32 %v15584_v13, %v1402_v56  ;;  %v12469_v40 = vadd.f32 %v15585_v5, %v1407_v46  ;;  %v8169_v62 = vld [vmem:[%s14415_s12 + $0x120] sm:$0xff]  ;;  %2734 = vmax.xlane.f32.xlu1 %v2733_v26  ;;  %v4652_v56 = vpop.f32.mrb[105].mxu0  ;;  %15587 = vst [vmem:[#allocation159_spill] sm:$0xff] %v12477_v54  ;;  %v5173_v20 = vsel %vm96_vm0, %v5021_v37, 0.0  ;;  %v2962_v46 = vsub.f32 %v11959_v23, %v2681_v7  ;;  %v12484_v6 = vpop.eup %7875  ;;  %v8170_v26 = vld [vmem:[%s14415_s12 + $0x128] sm:$0xff] }
 0x70c   :  { %v5053_v13 = vmul.f32 %v8169_v62, %v4650_v29  ;;  %v4653_v1 = vpop.f32.mrb[106].mxu0  ;;  %v2963_v2 = vsub.f32 %v11962_v31, %v2681_v7  ;;  %15588 = vst [vmem:[#allocation17_spill] sm:$0xff] %v12484_v6  ;;  %4793 = vmatmul.mubr.bf16.gmra.mrb[176].mxu0 %v4368_v16  ;;  %2743 = vmax.xlane.f32.xlu0 %v2742_v34  ;;  %v5180_v37 = vsel %vm96_vm0, %v5022_v57, 0.0  ;;  %v15589_v23 = vld [vmem:[#allocation97_spill] sm:$0xff]  ;;  %v7878_v31 = vpop.eup %7877  ;;  %v1405_v16 = vld [vmem:[#allocation2 + $0x7b0] sm:$0xff] }
 0x70d   :  { %v5054_v29 = vmul.f32 %v8170_v26, %v4653_v1  ;;  %v4655_v5 = vpop.f32.mrb[107].mxu0  ;;  %v4189_v36 = vmul.f32 %v7868_v17, %v15589_v23  ;;  %v3420_v56 = vmul.f32 1.442695, %v2962_v46  ;;  %v4191_v55 = vmul.f32 %v7878_v31, %v11934_v32  ;;  %v15591_v1 = vld [vmem:[#allocation133_spill] sm:$0xff]  ;;  %v7880_v23 = vpop.eup %7879 }
 0x70e   :  { %v5174_v48 = vsel %vm96_vm0, %v5053_v13, 0.0  ;;  %v3422_v7 = vmul.f32 1.442695, %v2963_v2  ;;  %v3828_v13 = vadd.f32 %v12484_v6, %v12477_v54  ;;  %v4188_v26 = vmul.f32 %v7868_v17, %v15591_v1  ;;  %v15592_v57 = vld [vmem:[#allocation101_spill] sm:$0xff] }
 0x70f   :  { %v12492_v62 = vadd.f32 %v5174_v48, %v5173_v20  ;;  %v5181_v34 = vsel %vm96_vm0, %v5054_v29, 0.0  ;;  %3820 = vadd.xlane.f32.xlu1 %v3819_v19  ;;  %v4190_v5 = vmul.f32 %v7878_v31, %v15592_v57  ;;  %v8171_v20 = vld [vmem:[%s14415_s12 + $0x30] sm:$0xff]  ;;  %v15593_v48 = vld [vmem:[#allocation90_spill] sm:$0xff]  ;;  %7887 = vpow2.f32 %v3420_v56  ;;  %v1406_v19 = vld [vmem:[#allocation2 + $0x7b8] sm:$0xff] }
 0x710   :  { %v5023_v46 = vmul.f32 %v8171_v20, %v15593_v48  ;;  %v12504_v2 = vadd.f32 %v5181_v34, %v5180_v37  ;;  %v2739_v29 = vmax.f32 %v12459_v59, %v12462_v45  ;;  %7889 = vpow2.f32 %v3422_v7  ;;  %3829 = vadd.xlane.f32.xlu0 %v3828_v13  ;;  %v15596_v31 = vld [vmem:[#allocation68_spill] sm:$0xff]  ;;  %v15598_v34 = vld [vmem:[#allocation89_spill] sm:$0xff] }
 0x711   :  { %15590 = vst [vmem:[#allocation33_spill] sm:$0xff] %v12492_v62  ;;  %v4371_v32 = vpack.c.bf16 %v4191_v55, %v4189_v36  ;;  %v4370_v17 = vpack.c.bf16 %v4190_v5, %v4188_v26  ;;  %v12508_v1 = vpop.eup %7881  ;;  %v12511_v57 = vadd.f32 %v15596_v31, %v1405_v16  ;;  %v4658_v62 = vpop.f32.mrb[108].mxu0  ;;  %v2748_v37 = vmax.f32 %v12469_v40, %v12472_v25  ;;  %v8172_v56 = vld [vmem:[%s14415_s12 + $0x38] sm:$0xff]  ;;  %v8173_v55 = vld [vmem:[%s14415_s12 + $0x130] sm:$0xff] }
 0x712   :  { %15594 = vst [vmem:[#allocation71_spill] sm:$0xff] %v12504_v2  ;;  %15595 = vst [vmem:[#allocation157_spill] sm:$0xff] %v12508_v1  ;;  %v12513_v54 = vpop.eup %7883  ;;  %v5024_v7 = vmul.f32 %v8172_v56, %v15598_v34  ;;  %v5055_v36 = vmul.f32 %v8173_v55, %v4658_v62  ;;  %v4660_v13 = vpop.f32.mrb[109].mxu0  ;;  %v15599_v26 = vld [vmem:[#allocation104_spill] sm:$0xff]  ;;  %v5187_v20 = vsel %vm96_vm0, %v5023_v46, 0.0 }
 0x713   :  { %15597 = vst [vmem:[#allocation6_spill] sm:$0xff] %v12513_v54  ;;  %4800 = vmatprep.mubr.bf16.mxu0 %v4371_v32  ;;  %2740 = vmax.xlane.f32.xlu1 %v2739_v29  ;;  %v7886_v16 = vpop.eup %7885  ;;  %v12525_v5 = vadd.f32 %v15599_v26, %v1406_v19  ;;  %v4661_v48 = vpop.f32.mrb[110].mxu0  ;;  %v3825_v31 = vadd.f32 %v12513_v54, %v12508_v1  ;;  %v15600_v2 = vld [vmem:[#allocation136_spill] sm:$0xff]  ;;  %v15601_v19 = vld [vmem:[#allocation98_spill] sm:$0xff] }
 0x714   :  { %v4193_v56 = vmul.f32 %v7880_v23, %v15600_v2  ;;  %v5188_v32 = vsel %vm96_vm0, %v5055_v36, 0.0  ;;  %4801 = vmatmul.mubr.bf16.gmra.mrb[180].mxu0 %v4370_v17  ;;  %2749 = vmax.xlane.f32.xlu0 %v2748_v37  ;;  %v8174_v62 = vld [vmem:[%s14415_s12 + $0x138] sm:$0xff]  ;;  %v4663_v34 = vpop.f32.mrb[111].mxu0  ;;  %v4195_v55 = vmul.f32 %v7886_v16, %v15601_v19  ;;  %v15602_v13 = vld [vmem:[#allocation66_spill] sm:$0xff]  ;;  %v5194_v6 = vsel %vm96_vm0, %v5024_v7, 0.0 }
 0x715   :  { %v5056_v29 = vmul.f32 %v8174_v62, %v4661_v48  ;;  %v4194_v46 = vmul.f32 %v7886_v16, %v15602_v13  ;;  %v12537_v26 = vadd.f32 %v5188_v32, %v5187_v20  ;;  %v15604_v17 = vld [vmem:[#allocation130_spill] sm:$0xff]  ;;  %v2745_v48 = vmax.f32 %v12511_v57, %v12525_v5  ;;  %v1409_v62 = vld [vmem:[#allocation2 + $0x7d0] sm:$0xff]  ;;  %v8175_v16 = vld [vmem:[%s14415_s12 + $0x40] sm:$0xff] }
 0x716   :  { %v4373_v36 = vpack.c.bf16 %v4195_v55, %v4193_v56  ;;  %v4192_v37 = vmul.f32 %v7880_v23, %v15604_v17  ;;  %v15606_v20 = vld [vmem:[#allocation26_spill] sm:$0xff]  ;;  %v15609_v23 = vld [vmem:[#allocation93_spill] sm:$0xff] }
 0x717   :  { %15603 = vst [vmem:[#allocation43_spill] sm:$0xff] %v12537_v26  ;;  %v5195_v2 = vsel %vm96_vm0, %v5056_v29, 0.0  ;;  %3826 = vadd.xlane.f32.xlu1 %v3825_v31  ;;  %v5025_v32 = vmul.f32 %v8175_v16, %v15606_v20  ;;  %v1410_v31 = vld [vmem:[#allocation2 + $0x7d8] sm:$0xff]  ;;  %v4666_v56 = vpop.f32.mrb[112].mxu0  ;;  %v8177_v55 = vld [vmem:[%s14415_s12 + $0x140] sm:$0xff]  ;;  %v15611_v16 = vld [vmem:[#allocation47_spill] sm:$0xff] }
 0x718   :  { %v12542_v1 = vadd.f32 %v5195_v2, %v5194_v6  ;;  %4808 = vmatprep.mubr.bf16.mxu0 %v4373_v36  ;;  %v4372_v7 = vpack.c.bf16 %v4194_v46, %v4192_v37  ;;  %v8176_v6 = vld [vmem:[%s14415_s12 + $0x48] sm:$0xff]  ;;  %v5057_v13 = vmul.f32 %v8177_v55, %v4666_v56  ;;  %v4668_v2 = vpop.f32.mrb[113].mxu0  ;;  %v15610_v46 = vld [vmem:[#allocation120_spill] sm:$0xff]  ;;  %v12567_v20 = vadd.f32 %v15611_v16, %v1410_v31 }
 0x719   :  { %v12550_v34 = vpop.eup %7887  ;;  %v5026_v19 = vmul.f32 %v8176_v6, %v15609_v23  ;;  %v12562_v36 = vadd.f32 %v15610_v46, %v1409_v62  ;;  %v4669_v17 = vpop.f32.mrb[114].mxu0 }
 0x71a   :  { %15605 = vst [vmem:[#allocation69_spill] sm:$0xff] %v12542_v1  ;;  %15607 = vst [vmem:[#allocation53_spill] sm:$0xff] %v12550_v34  ;;  %v12552_v29 = vpop.eup %7889  ;;  %v5201_v1 = vsel %vm96_vm0, %v5025_v32, 0.0  ;;  %v5202_v6 = vsel %vm96_vm0, %v5057_v13, 0.0  ;;  %v4671_v23 = vpop.f32.mrb[115].mxu0  ;;  %v15615_v13 = vld [vmem:[#allocation132_spill] sm:$0xff] }
 0x71b   :  { %15608 = vst [vmem:[#allocation64_spill] sm:$0xff] %v12552_v29  ;;  %2746 = vmax.xlane.f32.xlu1 %v2745_v48  ;;  %v3831_v37 = vadd.f32 %v12552_v29, %v12550_v34  ;;  %15612 = vst [vmem:[#allocation27_spill] sm:$0xff] %v12567_v20  ;;  %v8178_v48 = vld [vmem:[%s14415_s12 + $0x148] sm:$0xff]  ;;  %v12574_v62 = vadd.f32 %v5202_v6, %v5201_v1  ;;  %v5208_v55 = vsel %vm96_vm0, %v5026_v19, 0.0  ;;  %v8180_v1 = vld [vmem:[%s14415_s12 + $0x58] sm:$0xff] }
 0x71c   :  { %4809 = vmatmul.mubr.bf16.gmra.mrb[184].mxu0 %v4372_v7  ;;  %v5058_v56 = vmul.f32 %v8178_v48, %v4669_v17  ;;  %v2751_v32 = vmax.f32 %v12562_v36, %v12567_v20  ;;  %v8179_v7 = vld [vmem:[%s14415_s12 + $0x50] sm:$0xff]  ;;  %v15616_v19 = vld [vmem:[#allocation84_spill] sm:$0xff]  ;;  %v1412_v20 = vld [vmem:[#allocation2 + $0x7e8] sm:$0xff] }
 0x71d   :  { %15613 = vst [vmem:[#allocation83_spill] sm:$0xff] %v12574_v62  ;;  %v5027_v46 = vmul.f32 %v8179_v7, %v15615_v13  ;;  %v5028_v16 = vmul.f32 %v8180_v1, %v15616_v19 }
 0x71e   :  { %v5209_v2 = vsel %vm96_vm0, %v5058_v56, 0.0 }
 0x71f   :  { %3832 = vadd.xlane.f32.xlu1 %v3831_v37  ;;  %v12578_v31 = vadd.f32 %v5209_v2, %v5208_v55  ;;  %v4674_v17 = vpop.f32.mrb[116].mxu0  ;;  %v8181_v37 = vld [vmem:[%s14415_s12 + $0x150] sm:$0xff]  ;;  %v5215_v23 = vsel %vm96_vm0, %v5027_v46, 0.0  ;;  %v8182_v2 = vld [vmem:[%s14415_s12 + $0x158] sm:$0xff]  ;;  %v5222_v1 = vsel %vm96_vm0, %v5028_v16, 0.0  ;;  %v8185_v16 = vld [vmem:[%s14415_s12 + $0x160] sm:$0xff] }
 0x720   :  { %v5059_v6 = vmul.f32 %v8181_v37, %v4674_v17  ;;  %v4676_v48 = vpop.f32.mrb[117].mxu0  ;;  %v15619_v46 = vld [vmem:[#allocation131_spill] sm:$0xff] }
 0x721   :  { %15614 = vst [vmem:[#allocation32_spill] sm:$0xff] %v12578_v31  ;;  %v4677_v56 = vpop.f32.mrb[118].mxu0  ;;  %v8184_v48 = vld [vmem:[%s14415_s12 + $0x68] sm:$0xff] }
 0x722   :  { %v5216_v55 = vsel %vm96_vm0, %v5059_v6, 0.0  ;;  %v5060_v7 = vmul.f32 %v8182_v2, %v4677_v56  ;;  %v4679_v13 = vpop.f32.mrb[119].mxu0  ;;  %v15620_v56 = vld [vmem:[#allocation137_spill] sm:$0xff] }
 0x723   :  { %2752 = vmax.xlane.f32.xlu1 %v2751_v32  ;;  %v12598_v31 = vadd.f32 %v5216_v55, %v5215_v23  ;;  %v8183_v32 = vld [vmem:[%s14415_s12 + $0x60] sm:$0xff]  ;;  %v5030_v23 = vmul.f32 %v8184_v48, %v15620_v56 }
 0x724   :  { %v5223_v19 = vsel %vm96_vm0, %v5060_v7, 0.0  ;;  %v5029_v37 = vmul.f32 %v8183_v32, %v15619_v46 }
 0x725   :  { %15617 = vst [vmem:[#allocation25_spill] sm:$0xff] %v12598_v31  ;;  %v12602_v17 = vadd.f32 %v5223_v19, %v5222_v1  ;;  %v8186_v19 = vld [vmem:[%s14415_s12 + $0x168] sm:$0xff]  ;;  %v5236_v48 = vsel %vm96_vm0, %v5030_v23, 0.0  ;;  %v8189_v23 = vld [vmem:[%s14415_s12 + $0x170] sm:$0xff] }
 0x726   :  { %v5229_v13 = vsel %vm96_vm0, %v5029_v37, 0.0  ;;  %v8187_v37 = vld [vmem:[%s14415_s12 + $0x70] sm:$0xff] }
 0x727   :  { %15618 = vst [vmem:[#allocation10_spill] sm:$0xff] %v12602_v17  ;;  %v4682_v6 = vpop.f32.mrb[120].mxu0 }
 0x728   :  { %v5061_v55 = vmul.f32 %v8185_v16, %v4682_v6  ;;  %v4684_v2 = vpop.f32.mrb[121].mxu0  ;;  %v15623_v6 = vld [vmem:[#allocation88_spill] sm:$0xff] }
 0x729   :  { %v4685_v7 = vpop.f32.mrb[122].mxu0  ;;  %v5031_v16 = vmul.f32 %v8187_v37, %v15623_v6  ;;  %v8188_v2 = vld [vmem:[%s14415_s12 + $0x78] sm:$0xff] }
 0x72a   :  { %v5230_v1 = vsel %vm96_vm0, %v5061_v55, 0.0  ;;  %v5062_v32 = vmul.f32 %v8186_v19, %v4685_v7  ;;  %v4687_v46 = vpop.f32.mrb[123].mxu0  ;;  %v15624_v7 = vld [vmem:[#allocation42_spill] sm:$0xff] }
 0x72b   :  { %v12620_v17 = vadd.f32 %v5230_v1, %v5229_v13  ;;  %v5032_v13 = vmul.f32 %v8188_v2, %v15624_v7  ;;  %v5243_v46 = vsel %vm96_vm0, %v5031_v16, 0.0  ;;  %v8191_v16 = vld [vmem:[%s14415_s12 + $0x80] sm:$0xff] }
 0x72c   :  { %v5237_v56 = vsel %vm96_vm0, %v5062_v32, 0.0 }
 0x72d   :  { %15621 = vst [vmem:[#allocation37_spill] sm:$0xff] %v12620_v17  ;;  %v12624_v31 = vadd.f32 %v5237_v56, %v5236_v48  ;;  %v8190_v56 = vld [vmem:[%s14415_s12 + $0x178] sm:$0xff]  ;;  %v5250_v2 = vsel %vm96_vm0, %v5032_v13, 0.0  ;;  %v8193_v13 = vld [vmem:[%s14415_s12 + $0x180] sm:$0xff] }
 0x72f   :  { %15622 = vst [vmem:[#allocation121_spill] sm:$0xff] %v12624_v31  ;;  %v4690_v55 = vpop.f32.mrb[124].mxu0 }
 0x730   :  { %v5063_v1 = vmul.f32 %v8189_v23, %v4690_v55  ;;  %v4692_v19 = vpop.f32.mrb[125].mxu0  ;;  %v15627_v55 = vld [vmem:[#allocation86_spill] sm:$0xff] }
 0x731   :  { %v4693_v32 = vpop.f32.mrb[126].mxu0  ;;  %v5033_v23 = vmul.f32 %v8191_v16, %v15627_v55  ;;  %v8192_v19 = vld [vmem:[%s14415_s12 + $0x88] sm:$0xff] }
 0x732   :  { %v5244_v48 = vsel %vm96_vm0, %v5063_v1, 0.0  ;;  %v5064_v37 = vmul.f32 %v8190_v56, %v4693_v32  ;;  %v4695_v6 = vpop.f32.mrb[127].mxu0  ;;  %v15628_v32 = vld [vmem:[#allocation100_spill] sm:$0xff] }
 0x733   :  { %v12642_v31 = vadd.f32 %v5244_v48, %v5243_v46  ;;  %v5034_v46 = vmul.f32 %v8192_v19, %v15628_v32  ;;  %v5257_v6 = vsel %vm96_vm0, %v5033_v23, 0.0  ;;  %v8195_v23 = vld [vmem:[%s14415_s12 + $0x90] sm:$0xff] }
 0x734   :  { %v5251_v7 = vsel %vm96_vm0, %v5064_v37, 0.0 }
 0x735   :  { %15625 = vst [vmem:[#allocation151_spill] sm:$0xff] %v12642_v31  ;;  %v12646_v17 = vadd.f32 %v5251_v7, %v5250_v2  ;;  %v8194_v7 = vld [vmem:[%s14415_s12 + $0x188] sm:$0xff]  ;;  %v5264_v19 = vsel %vm96_vm0, %v5034_v46, 0.0  ;;  %v8197_v46 = vld [vmem:[%s14415_s12 + $0x190] sm:$0xff] }
 0x737   :  { %15626 = vst [vmem:[#allocation156_spill] sm:$0xff] %v12646_v17  ;;  %v4698_v1 = vpop.f32.mrb[128].mxu0 }
 0x738   :  { %v5065_v48 = vmul.f32 %v8193_v13, %v4698_v1  ;;  %v4700_v56 = vpop.f32.mrb[129].mxu0  ;;  %v15631_v1 = vld [vmem:[#allocation134_spill] sm:$0xff] }
 0x739   :  { %v4701_v37 = vpop.f32.mrb[130].mxu0  ;;  %v5035_v13 = vmul.f32 %v8195_v23, %v15631_v1  ;;  %v8198_v1 = vld [vmem:[%s14415_s12 + $0x198] sm:$0xff] }
 0x73a   :  { %v5258_v2 = vsel %vm96_vm0, %v5065_v48, 0.0  ;;  %v5066_v16 = vmul.f32 %v8194_v7, %v4701_v37  ;;  %v4703_v55 = vpop.f32.mrb[131].mxu0  ;;  %v8196_v37 = vld [vmem:[%s14415_s12 + $0x98] sm:$0xff] }
 0x73b   :  { %v12664_v17 = vadd.f32 %v5258_v2, %v5257_v6  ;;  %v15632_v6 = vld [vmem:[#allocation135_spill] sm:$0xff] }
 0x73c   :  { %v5265_v32 = vsel %vm96_vm0, %v5066_v16, 0.0  ;;  %v5036_v2 = vmul.f32 %v8196_v37, %v15632_v6 }
 0x73d   :  { %15629 = vst [vmem:[#allocation70_spill] sm:$0xff] %v12664_v17  ;;  %v12668_v31 = vadd.f32 %v5265_v32, %v5264_v19  ;;  %v3764_v56 = vpop.xlane.xlu0 %3763  ;;  %v5271_v32 = vsel %vm96_vm0, %v5035_v13, 0.0 }
 0x73e   :  { %7891 = vrcp.f32 %v3764_v56 }
 0x73f   :  { %15630 = vst [vmem:[#allocation35_spill] sm:$0xff] %v12668_v31 }
 0x740   :  { %v4706_v48 = vpop.f32.mrb[132].mxu0  ;;  %v3767_v19 = vpop.xlane.xlu1 %3766 }
 0x741   :  { %v5067_v7 = vmul.f32 %v8197_v46, %v4706_v48  ;;  %v4708_v16 = vpop.f32.mrb[133].mxu0  ;;  %7893 = vrcp.f32 %v3767_v19  ;;  %v2684_v6 = vpop.xlane.xlu0 %2683  ;;  %v5278_v48 = vsel %vm96_vm0, %v5036_v2, 0.0 }
 0x742   :  { %v4709_v55 = vpop.f32.mrb[134].mxu0  ;;  %v2964_v46 = vsub.f32 %v12013_v60, %v2684_v6  ;;  %v2965_v13 = vsub.f32 %v12016_v18, %v2684_v6  ;;  %v15634_v16 = vld [vmem:[#allocation140_spill] sm:$0xff] }
 0x743   :  { %v5272_v23 = vsel %vm96_vm0, %v5067_v7, 0.0  ;;  %v5068_v31 = vmul.f32 %v8198_v1, %v4709_v55  ;;  %v4711_v17 = vpop.f32.mrb[135].mxu0  ;;  %v8199_v7 = vld [vmem:[%s14415_s12 + $0xa0] sm:$0xff] }
 0x744   :  { %v12686_v37 = vadd.f32 %v5272_v23, %v5271_v32  ;;  %v5037_v62 = vmul.f32 %v8199_v7, %v15634_v16  ;;  %v8200_v17 = vld [vmem:[%s14415_s12 + $0xa8] sm:$0xff]  ;;  %v15635_v55 = vld [vmem:[#allocation141_spill] sm:$0xff]  ;;  %v2687_v2 = vpop.xlane.xlu1 %2686  ;;  %v3426_v23 = vmul.f32 1.442695, %v2965_v13 }
 0x745   :  { %v5279_v56 = vsel %vm96_vm0, %v5068_v31, 0.0  ;;  %v5038_v19 = vmul.f32 %v8200_v17, %v15635_v55  ;;  %v3424_v31 = vmul.f32 1.442695, %v2964_v46  ;;  %v2966_v60 = vsub.f32 %v12027_v47, %v2687_v2  ;;  %v8201_v16 = vld [vmem:[%s14415_s12 + $0x1a0] sm:$0xff] }
 0x746   :  { %15633 = vst [vmem:[#allocation92_spill] sm:$0xff] %v12686_v37  ;;  %v12700_v32 = vadd.f32 %v5279_v56, %v5278_v48  ;;  %v2967_v18 = vsub.f32 %v12030_v15, %v2687_v2  ;;  %v5285_v48 = vsel %vm96_vm0, %v5037_v62, 0.0  ;;  %v8202_v15 = vld [vmem:[%s14415_s12 + $0x1a8] sm:$0xff] }
 0x747   :  { %v3770_v6 = vpop.xlane.xlu0 %3769  ;;  %7895 = vpow2.f32 %v3424_v31  ;;  %v3428_v37 = vmul.f32 1.442695, %v2966_v60  ;;  %v5292_v2 = vsel %vm96_vm0, %v5038_v19, 0.0 }
 0x748   :  { %15636 = vst [vmem:[#allocation14_spill] sm:$0xff] %v12700_v32  ;;  %v4714_v1 = vpop.f32.mrb[136].mxu0  ;;  %v3430_v7 = vmul.f32 1.442695, %v2967_v18  ;;  %7897 = vpow2.f32 %v3426_v23  ;;  %v3773_v46 = vpop.xlane.xlu1 %3772  ;;  %v15638_v18 = vld [vmem:[#allocation57_spill] sm:$0xff]  ;;  %v15640_v32 = vld [vmem:[#allocation79_spill] sm:$0xff] }
 0x749   :  { %v5069_v26 = vmul.f32 %v8201_v16, %v4714_v1  ;;  %v4716_v17 = vpop.f32.mrb[137].mxu0  ;;  %v7892_v13 = vpop.eup %7891  ;;  %7899 = vpow2.f32 %v3428_v37 }
 0x74a   :  { %v4717_v56 = vpop.f32.mrb[138].mxu0  ;;  %7901 = vpow2.f32 %v3430_v7  ;;  %v4197_v62 = vmul.f32 %v7892_v13, %v12010_v28  ;;  %v4196_v1 = vmul.f32 %v7892_v13, %v15638_v18  ;;  %v15642_v7 = vld [vmem:[#allocation102_spill] sm:$0xff] }
 0x74b   :  { %v5286_v47 = vsel %vm96_vm0, %v5069_v26, 0.0  ;;  %v5070_v55 = vmul.f32 %v8202_v15, %v4717_v56  ;;  %v4719_v31 = vpop.f32.mrb[139].mxu0  ;;  %v2690_v23 = vpop.xlane.xlu0 %2689  ;;  %7903 = vrcp.f32 %v3770_v6  ;;  %v15639_v26 = vld [vmem:[#allocation143_spill] sm:$0xff]  ;;  %v15645_v18 = vld [vmem:[#allocation18_spill] sm:$0xff] }
 0x74c   :  { %v12713_v60 = vadd.f32 %v5286_v47, %v5285_v48  ;;  %v7894_v16 = vpop.eup %7893  ;;  %v2968_v17 = vsub.f32 %v15639_v26, %v2690_v23  ;;  %v2969_v34 = vsub.f32 %v15640_v32, %v2690_v23  ;;  %7905 = vrcp.f32 %v3773_v46  ;;  %v2693_v19 = vpop.xlane.xlu1 %2692  ;;  %v15643_v47 = vld [vmem:[#allocation55_spill] sm:$0xff]  ;;  %v1411_v26 = vld [vmem:[#allocation2 + $0x7e0] sm:$0xff] }
 0x74d   :  { %v5293_v37 = vsel %vm96_vm0, %v5070_v55, 0.0  ;;  %v4199_v48 = vmul.f32 %v7894_v16, %v15642_v7  ;;  %v4198_v15 = vmul.f32 %v7894_v16, %v15643_v47  ;;  %v2971_v29 = vsub.f32 %v15645_v18, %v2693_v19  ;;  %v1413_v23 = vld [vmem:[#allocation2 + $0x7f0] sm:$0xff] }
 0x74e   :  { %15637 = vst [vmem:[#allocation30_spill] sm:$0xff] %v12713_v60  ;;  %v12720_v56 = vadd.f32 %v5293_v37, %v5292_v2  ;;  %v3432_v31 = vmul.f32 1.442695, %v2968_v17  ;;  %v3434_v28 = vmul.f32 1.442695, %v2969_v34  ;;  %v15644_v60 = vld [vmem:[#allocation31_spill] sm:$0xff] }
 0x74f   :  { %v2970_v13 = vsub.f32 %v15644_v60, %v2693_v19  ;;  %v3776_v55 = vpop.xlane.xlu0 %3775  ;;  %v4375_v6 = vpack.c.bf16 %v4199_v48, %v4197_v62  ;;  %v4374_v54 = vpack.c.bf16 %v4198_v15, %v4196_v1  ;;  %v3438_v2 = vmul.f32 1.442695, %v2971_v29  ;;  %v15648_v60 = vld [vmem:[#allocation15_spill] sm:$0xff]  ;;  %v15649_v37 = vld [vmem:[#allocation106_spill] sm:$0xff]  ;;  %v1414_v1 = vld [vmem:[#allocation2 + $0x7f8] sm:$0xff] }
 0x750   :  { %15641 = vst [vmem:[#allocation124_spill] sm:$0xff] %v12720_v56  ;;  %7907 = vpow2.f32 %v3432_v31  ;;  %v12731_v16 = vadd.f32 %v15648_v60, %v1411_v26  ;;  %v12734_v62 = vadd.f32 %v15649_v37, %v1412_v20  ;;  %v15651_v29 = vld [vmem:[#allocation147_spill] sm:$0xff]  ;;  %v15652_v48 = vld [vmem:[#allocation62_spill] sm:$0xff]  ;;  %v15654_v31 = vld [vmem:[#allocation112_spill] sm:$0xff] }
 0x751   :  { %v3436_v32 = vmul.f32 1.442695, %v2970_v13  ;;  %7909 = vpow2.f32 %v3434_v28  ;;  %4816 = vmatprep.mubr.bf16.mxu0 %v4375_v6  ;;  %v12726_v46 = vpop.eup %7895  ;;  %v12745_v28 = vadd.f32 %v15654_v31, %v1413_v23  ;;  %v15655_v20 = vld [vmem:[#allocation126_spill] sm:$0xff]  ;;  %v15657_v23 = vld [vmem:[#allocation5_spill] sm:$0xff] }
 0x752   :  { %15646 = vst [vmem:[#allocation110_spill] sm:$0xff] %v12726_v46  ;;  %4817 = vmatmul.mubr.bf16.gmra.mrb[188].mxu0 %v4374_v54  ;;  %v12728_v34 = vpop.eup %7897  ;;  %v12748_v18 = vadd.f32 %v15655_v20, %v1414_v1  ;;  %v2754_v60 = vmax.f32 %v12731_v16, %v12734_v62  ;;  %v15658_v31 = vld [vmem:[#allocation54_spill] sm:$0xff]  ;;  %v15659_v20 = vld [vmem:[#allocation77_spill] sm:$0xff] }
 0x753   :  { %7911 = vpow2.f32 %v3436_v32  ;;  %15647 = vst [vmem:[#allocation8_spill] sm:$0xff] %v12728_v34  ;;  %v2696_v17 = vpop.xlane.xlu0 %2695  ;;  %v12736_v19 = vpop.eup %7899  ;;  %v3834_v54 = vadd.f32 %v12728_v34, %v12726_v46  ;;  %v15677_v46 = vld [vmem:[#allocation116_spill] sm:$0xff] }
 0x754   :  { %7913 = vpow2.f32 %v3438_v2  ;;  %15650 = vst [vmem:[#allocation123_spill] sm:$0xff] %v12736_v19  ;;  %v2972_v7 = vsub.f32 %v15651_v29, %v2696_v17  ;;  %v2973_v47 = vsub.f32 %v15652_v48, %v2696_v17  ;;  %v12742_v15 = vpop.eup %7901  ;;  %v15656_v17 = vld [vmem:[#allocation142_spill] sm:$0xff] }
 0x755   :  { %15653 = vst [vmem:[#allocation128_spill] sm:$0xff] %v12742_v15  ;;  %v7904_v13 = vpop.eup %7903  ;;  %3835 = vadd.xlane.f32.xlu0 %v3834_v54  ;;  %v3837_v32 = vadd.f32 %v12742_v15, %v12736_v19  ;;  %v2757_v54 = vmax.f32 %v12745_v28, %v12748_v18 }
 0x756   :  { %v3440_v6 = vmul.f32 1.442695, %v2972_v7  ;;  %v3442_v26 = vmul.f32 1.442695, %v2973_v47  ;;  %v7906_v2 = vpop.eup %7905  ;;  %v4201_v29 = vmul.f32 %v7904_v13, %v15656_v17  ;;  %v4200_v1 = vmul.f32 %v7904_v13, %v15658_v31 }
 0x757   :  { %v3782_v37 = vpop.xlane.xlu0 %3781  ;;  %3838 = vadd.xlane.f32.xlu1 %v3837_v32  ;;  %v4203_v48 = vmul.f32 %v7906_v2, %v15657_v23  ;;  %v4202_v7 = vmul.f32 %v7906_v2, %v15659_v20  ;;  %v15663_v32 = vld [vmem:[#allocation9_spill] sm:$0xff]  ;;  %v15664_v23 = vld [vmem:[#allocation23_spill] sm:$0xff] }
 0x758   :  { %7915 = vpow2.f32 %v3440_v6 }
 0x759   :  { %7917 = vpow2.f32 %v3442_v26  ;;  %2755 = vmax.xlane.f32.xlu0 %v2754_v60  ;;  %v4377_v56 = vpack.c.bf16 %v4203_v48, %v4201_v29  ;;  %v4376_v19 = vpack.c.bf16 %v4202_v7, %v4200_v1 }
 0x75a   :  { %v12758_v47 = vpop.eup %7907  ;;  %7919 = vrcp.f32 %v3776_v55 }
 0x75b   :  { %15660 = vst [vmem:[#allocation56_spill] sm:$0xff] %v12758_v47  ;;  %v12762_v15 = vpop.eup %7909  ;;  %v2702_v17 = vpop.xlane.xlu0 %2701  ;;  %4824 = vmatprep.mubr.bf16.mxu0 %v4377_v56  ;;  %2758 = vmax.xlane.f32.xlu1 %v2757_v54 }
 0x75c   :  { %15661 = vst [vmem:[#allocation59_spill] sm:$0xff] %v12762_v15  ;;  %v2976_v13 = vsub.f32 %v15663_v32, %v2702_v17  ;;  %v2977_v2 = vsub.f32 %v15664_v23, %v2702_v17  ;;  %v3840_v26 = vadd.f32 %v12762_v15, %v12758_v47  ;;  %4825 = vmatmul.mubr.bf16.gmra.mrb[192].mxu0 %v4376_v19  ;;  %v15668_v17 = vld [vmem:[#allocation21_spill] sm:$0xff] }
 0x75d   :  { %v12764_v6 = vpop.eup %7911 }
 0x75e   :  { %15662 = vst [vmem:[#allocation96_spill] sm:$0xff] %v12764_v6  ;;  %v12770_v31 = vpop.eup %7913  ;;  %v3448_v60 = vmul.f32 1.442695, %v2976_v13  ;;  %v3450_v29 = vmul.f32 1.442695, %v2977_v2  ;;  %3841 = vadd.xlane.f32.xlu0 %v3840_v26  ;;  %v3779_v56 = vpop.xlane.xlu1 %3778  ;;  %v15669_v13 = vld [vmem:[#allocation28_spill] sm:$0xff] }
 0x75f   :  { %15665 = vst [vmem:[#allocation108_spill] sm:$0xff] %v12770_v31  ;;  %v3843_v48 = vadd.f32 %v12770_v31, %v12764_v6 }
 0x760   :  { %7921 = vpow2.f32 %v3448_v60  ;;  %v3788_v20 = vpop.xlane.xlu0 %3787 }
 0x761   :  { %3844 = vadd.xlane.f32.xlu1 %v3843_v48  ;;  %7923 = vpow2.f32 %v3450_v29 }
 0x762   :  { %v12774_v1 = vpop.eup %7915  ;;  %7925 = vrcp.f32 %v3779_v56  ;;  %v2699_v54 = vpop.xlane.xlu1 %2698 }
 0x763   :  { %15666 = vst [vmem:[#allocation13_spill] sm:$0xff] %v12774_v1  ;;  %v12776_v7 = vpop.eup %7917  ;;  %v2974_v32 = vsub.f32 %v15668_v17, %v2699_v54  ;;  %v2975_v23 = vsub.f32 %v15669_v13, %v2699_v54  ;;  %7927 = vrcp.f32 %v3782_v37  ;;  %v15672_v37 = vld [vmem:[#allocation114_spill] sm:$0xff]  ;;  %v15673_v13 = vld [vmem:[#allocation44_spill] sm:$0xff] }
 0x764   :  { %15667 = vst [vmem:[#allocation87_spill] sm:$0xff] %v12776_v7  ;;  %v3846_v19 = vadd.f32 %v12776_v7, %v12774_v1  ;;  %v2708_v2 = vpop.xlane.xlu0 %2707  ;;  %v7920_v56 = vpop.eup %7919 }
 0x765   :  { %v3444_v55 = vmul.f32 1.442695, %v2974_v32  ;;  %v3446_v26 = vmul.f32 1.442695, %v2975_v23  ;;  %v2980_v60 = vsub.f32 %v12134_v14, %v2708_v2  ;;  %v2981_v29 = vsub.f32 %v12137_v10, %v2708_v2 }
 0x766   :  { %3847 = vadd.xlane.f32.xlu0 %v3846_v19 }
 0x767   :  { %v3785_v48 = vpop.xlane.xlu1 %3784  ;;  %7929 = vpow2.f32 %v3444_v55  ;;  %v3456_v6 = vmul.f32 1.442695, %v2980_v60  ;;  %v3458_v47 = vmul.f32 1.442695, %v2981_v29  ;;  %v15674_v55 = vld [vmem:[#allocation146_spill] sm:$0xff]  ;;  %v15675_v60 = vld [vmem:[#allocation40_spill] sm:$0xff] }
 0x768   :  { %7931 = vpow2.f32 %v3446_v26  ;;  %v4205_v26 = vmul.f32 %v7920_v56, %v15674_v55  ;;  %v4204_v29 = vmul.f32 %v7920_v56, %v15675_v60 }
 0x769   :  { %v3794_v17 = vpop.xlane.xlu0 %3793  ;;  %7933 = vpow2.f32 %v3456_v6  ;;  %v15676_v6 = vld [vmem:[#allocation80_spill] sm:$0xff] }
 0x76a   :  { %v12784_v31 = vpop.eup %7921  ;;  %7935 = vpow2.f32 %v3458_v47 }
 0x76b   :  { %15670 = vst [vmem:[#allocation127_spill] sm:$0xff] %v12784_v31  ;;  %v12786_v1 = vpop.eup %7923  ;;  %v2705_v19 = vpop.xlane.xlu1 %2704  ;;  %7937 = vrcp.f32 %v3785_v48 }
 0x76c   :  { %15671 = vst [vmem:[#allocation160_spill] sm:$0xff] %v12786_v1  ;;  %v7926_v54 = vpop.eup %7925  ;;  %v3852_v14 = vadd.f32 %v12786_v1, %v12784_v31  ;;  %v2978_v10 = vsub.f32 %v12161_v63, %v2705_v19  ;;  %v2979_v32 = vsub.f32 %v15672_v37, %v2705_v19  ;;  %v15678_v31 = vld [vmem:[#allocation115_spill] sm:$0xff]  ;;  %7939 = vrcp.f32 %v3788_v20 }
 0x76d   :  { %v4207_v23 = vmul.f32 %v7926_v54, %v15673_v13  ;;  %v2714_v2 = vpop.xlane.xlu0 %2713  ;;  %v4206_v7 = vmul.f32 %v7926_v54, %v15676_v6 }
 0x76e   :  { %3853 = vadd.xlane.f32.xlu0 %v3852_v14  ;;  %v3452_v47 = vmul.f32 1.442695, %v2978_v10  ;;  %v3454_v15 = vmul.f32 1.442695, %v2979_v32  ;;  %v2984_v34 = vsub.f32 %v15677_v46, %v2714_v2  ;;  %v2985_v48 = vsub.f32 %v15678_v31, %v2714_v2  ;;  %v7928_v14 = vpop.eup %7927  ;;  %v15680_v10 = vld [vmem:[#allocation51_spill] sm:$0xff] }
 0x76f   :  { %v4379_v1 = vpack.c.bf16 %v4207_v23, %v4205_v26  ;;  %v4378_v19 = vpack.c.bf16 %v4206_v7, %v4204_v29  ;;  %v4209_v32 = vmul.f32 %v7928_v14, %v15680_v10  ;;  %v15681_v23 = vld [vmem:[#allocation149_spill] sm:$0xff] }
 0x770   :  { %7941 = vpow2.f32 %v3452_v47  ;;  %v3464_v37 = vmul.f32 1.442695, %v2984_v34  ;;  %v3466_v13 = vmul.f32 1.442695, %v2985_v48  ;;  %v4208_v2 = vmul.f32 %v7928_v14, %v15681_v23  ;;  %v15682_v47 = vld [vmem:[#allocation78_spill] sm:$0xff] }
 0x771   :  { %v3791_v63 = vpop.xlane.xlu1 %3790  ;;  %7943 = vpow2.f32 %v3454_v15  ;;  %4832 = vmatprep.mubr.bf16.mxu0 %v4379_v1  ;;  %v12798_v56 = vpop.eup %7929 }
 0x772   :  { %7945 = vpow2.f32 %v3464_v37  ;;  %4833 = vmatmul.mubr.bf16.gmra.mrb[196].mxu0 %v4378_v19  ;;  %v12800_v54 = vpop.eup %7931  ;;  %v15684_v19 = vld [vmem:[#allocation113_spill] sm:$0xff] }
 0x773   :  { %v3800_v55 = vpop.xlane.xlu0 %3799  ;;  %7947 = vpow2.f32 %v3466_v13  ;;  %v12802_v31 = vpop.eup %7933  ;;  %v3849_v15 = vadd.f32 %v12800_v54, %v12798_v56 }
 0x774   :  { %15679 = vst [vmem:[#allocation36_spill] sm:$0xff] %v12802_v31  ;;  %7949 = vrcp.f32 %v3791_v63  ;;  %v12808_v1 = vpop.eup %7935 }
 0x775   :  { %v7938_v26 = vpop.eup %7937  ;;  %3850 = vadd.xlane.f32.xlu1 %v3849_v15  ;;  %7951 = vrcp.f32 %v3794_v17 }
 0x776   :  { %v2711_v46 = vpop.xlane.xlu1 %2710  ;;  %v4210_v37 = vmul.f32 %v7938_v26, %v15684_v19  ;;  %v7940_v10 = vpop.eup %7939 }
 0x777   :  { %v2982_v20 = vsub.f32 %v12171_v42, %v2711_v46  ;;  %v2983_v34 = vsub.f32 %v12176_v22, %v2711_v46  ;;  %v2720_v7 = vpop.xlane.xlu0 %2719  ;;  %v3858_v42 = vadd.f32 %v12808_v1, %v12802_v31  ;;  %v15683_v22 = vld [vmem:[#allocation148_spill] sm:$0xff] }
 0x778   :  { %v2988_v6 = vsub.f32 %v12220_v52, %v2720_v7  ;;  %v2989_v48 = vsub.f32 %v15682_v47, %v2720_v7  ;;  %v4211_v63 = vmul.f32 %v7938_v26, %v15683_v22  ;;  %v4380_v52 = vpack.c.bf16 %v4210_v37, %v4208_v2  ;;  %v15686_v47 = vld [vmem:[#allocation52_spill] sm:$0xff]  ;;  %v15687_v22 = vld [vmem:[#allocation50_spill] sm:$0xff] }
 0x779   :  { %v3460_v60 = vmul.f32 1.442695, %v2982_v20  ;;  %v3462_v29 = vmul.f32 1.442695, %v2983_v34  ;;  %3859 = vadd.xlane.f32.xlu0 %v3858_v42  ;;  %v8204_v42 = vld [vmem:[%s14415_s12 + $0xb8] sm:$0xff] }
 0x77a   :  { %v3472_v13 = vmul.f32 1.442695, %v2988_v6  ;;  %v3474_v46 = vmul.f32 1.442695, %v2989_v48  ;;  %v3797_v14 = vpop.xlane.xlu1 %3796  ;;  %v4381_v20 = vpack.c.bf16 %v4211_v63, %v4209_v32  ;;  %v12818_v34 = vpop.eup %7941  ;;  %v8203_v6 = vld [vmem:[%s14415_s12 + $0xb0] sm:$0xff]  ;;  %v5040_v63 = vmul.f32 %v8204_v42, %v15687_v22 }
 0x77b   :  { %7953 = vpow2.f32 %v3460_v60  ;;  %v12820_v17 = vpop.xlane.xlu0 %3805  ;;  %v12822_v15 = vpop.eup %7943  ;;  %v5039_v48 = vmul.f32 %v8203_v6, %v15686_v47  ;;  %v15690_v47 = vld [vmem:[#allocation19_spill] sm:$0xff] }
 0x77c   :  { %7955 = vpow2.f32 %v3462_v29  ;;  %4840 = vmatprep.mubr.bf16.mxu0 %v4381_v20  ;;  %v12824_v7 = vpop.eup %7945  ;;  %v3855_v26 = vadd.f32 %v12822_v15, %v12818_v34  ;;  %v15688_v20 = vld [vmem:[#allocation73_spill] sm:$0xff]  ;;  %v4212_v42 = vmul.f32 %v7940_v10, %v15690_v47 }
 0x77d   :  { %7957 = vpow2.f32 %v3472_v13  ;;  %4841 = vmatmul.mubr.bf16.gmra.mrb[200].mxu0 %v4380_v52  ;;  %v12828_v60 = vpop.eup %7947  ;;  %v4213_v52 = vmul.f32 %v7940_v10, %v15688_v20 }
 0x77e   :  { %7959 = vpow2.f32 %v3474_v46  ;;  %15685 = vst [vmem:[#allocation39_spill] sm:$0xff] %v12828_v60  ;;  %v7950_v29 = vpop.eup %7949  ;;  %3856 = vadd.xlane.f32.xlu1 %v3855_v26 }
 0x77f   :  { %7961 = vrcp.f32 %v3797_v14  ;;  %v2726_v19 = vpop.xlane.xlu0 %2725  ;;  %v7952_v31 = vpop.eup %7951 }
 0x780   :  { %v2717_v23 = vpop.xlane.xlu1 %2716  ;;  %7963 = vrcp.f32 %v3800_v55  ;;  %v2992_v13 = vsub.f32 %v12269_v0, %v2726_v19  ;;  %v2993_v46 = vsub.f32 %v12272_v38, %v2726_v19  ;;  %v15691_v55 = vld [vmem:[#allocation75_spill] sm:$0xff]  ;;  %v4722_v26 = vpop.f32.mrb[140].mxu0 }
 0x781   :  { %v2986_v32 = vsub.f32 %v12214_v11, %v2717_v23  ;;  %v2987_v2 = vsub.f32 %v12217_v4, %v2717_v23  ;;  %v3864_v11 = vadd.f32 %v12828_v60, %v12824_v7  ;;  %v15689_v23 = vld [vmem:[#allocation76_spill] sm:$0xff]  ;;  %v4214_v22 = vmul.f32 %v7950_v29, %v15691_v55  ;;  %v8205_v0 = vld [vmem:[%s14415_s12 + $0x1b0] sm:$0xff] }
 0x782   :  { %v4215_v6 = vmul.f32 %v7950_v29, %v15689_v23  ;;  %v3480_v60 = vmul.f32 1.442695, %v2992_v13  ;;  %v5071_v38 = vmul.f32 %v8205_v0, %v4722_v26 }
 0x783   :  { %v3468_v4 = vmul.f32 1.442695, %v2986_v32  ;;  %v3470_v37 = vmul.f32 1.442695, %v2987_v2  ;;  %3865 = vadd.xlane.f32.xlu0 %v3864_v11  ;;  %v3482_v32 = vmul.f32 1.442695, %v2993_v46  ;;  %v12854_v10 = vpop.xlane.xlu0 %3811  ;;  %v4382_v29 = vpack.c.bf16 %v4214_v22, %v4212_v42 }
 0x784   :  { %v3803_v14 = vpop.xlane.xlu1 %3802  ;;  %v4724_v2 = vpop.f32.mrb[141].mxu0  ;;  %v5299_v11 = vsel %vm96_vm0, %v5039_v48, 0.0  ;;  %v4383_v20 = vpack.c.bf16 %v4215_v6, %v4213_v52  ;;  %v5300_v13 = vsel %vm96_vm0, %v5071_v38, 0.0  ;;  %v8206_v46 = vld [vmem:[%s14415_s12 + $0x1b8] sm:$0xff]  ;;  %v15692_v52 = vld [vmem:[#allocation103_spill] sm:$0xff] }
 0x785   :  { %7965 = vpow2.f32 %v3468_v4  ;;  %v12851_v19 = vpop.eup %7953  ;;  %v4725_v23 = vpop.f32.mrb[142].mxu0  ;;  %v5306_v4 = vsel %vm96_vm0, %v5040_v63, 0.0  ;;  %v12869_v63 = vadd.f32 %v5300_v13, %v5299_v11  ;;  %v15694_v11 = vld [vmem:[#allocation11_spill] sm:$0xff] }
 0x786   :  { %7967 = vpow2.f32 %v3470_v37  ;;  %v12856_v47 = vpop.eup %7955  ;;  %v5072_v55 = vmul.f32 %v8206_v46, %v4725_v23  ;;  %v4727_v26 = vpop.f32.mrb[143].mxu0  ;;  %v8207_v37 = vld [vmem:[%s14415_s12 + $0xc0] sm:$0xff]  ;;  %4848 = vmatprep.mubr.bf16.mxu0 %v4383_v20 }
 0x787   :  { %7969 = vpow2.f32 %v3480_v60  ;;  %v12863_v48 = vpop.eup %7957  ;;  %v5041_v6 = vmul.f32 %v8207_v37, %v15692_v52  ;;  %15693 = vst [vmem:[#allocation99_spill] sm:$0xff] %v12869_v63  ;;  %v3861_v42 = vadd.f32 %v12856_v47, %v12851_v19  ;;  %4849 = vmatmul.mubr.bf16.gmra.mrb[204].mxu0 %v4382_v29  ;;  %v2732_v13 = vpop.xlane.xlu0 %2731  ;;  %v15696_v29 = vld [vmem:[#allocation155_spill] sm:$0xff] }
 0x788   :  { %7971 = vpow2.f32 %v3482_v32  ;;  %v2723_v60 = vpop.xlane.xlu1 %2722  ;;  %v12873_v22 = vpop.eup %7959  ;;  %v5307_v2 = vsel %vm96_vm0, %v5072_v55, 0.0  ;;  %v8208_v32 = vld [vmem:[%s14415_s12 + $0xc8] sm:$0xff]  ;;  %v2996_v55 = vsub.f32 %v12328_v21, %v2732_v13  ;;  %v2997_v37 = vsub.f32 %v12331_v3, %v2732_v13 }
 0x789   :  { %7973 = vrcp.f32 %v3803_v14  ;;  %v2990_v0 = vsub.f32 %v12259_v8, %v2723_v60  ;;  %v2991_v38 = vsub.f32 %v12264_v50, %v2723_v60  ;;  %v7962_v23 = vpop.eup %7961  ;;  %v5042_v20 = vmul.f32 %v8208_v32, %v15694_v11  ;;  %3862 = vadd.xlane.f32.xlu1 %v3861_v42  ;;  %v15697_v32 = vld [vmem:[#allocation82_spill] sm:$0xff]  ;;  %v15699_v11 = vld [vmem:[#allocation81_spill] sm:$0xff] }
 0x78a   :  { %v12882_v46 = vadd.f32 %v5307_v2, %v5306_v4  ;;  %v3870_v14 = vadd.f32 %v12873_v22, %v12863_v48  ;;  %v4217_v8 = vmul.f32 %v7952_v31, %v15696_v29  ;;  %v7964_v52 = vpop.eup %7963  ;;  %7975 = vrcp.f32 %v12820_v17  ;;  %v15698_v2 = vld [vmem:[#allocation153_spill] sm:$0xff] }
 0x78b   :  { %v3476_v26 = vmul.f32 1.442695, %v2990_v0  ;;  %v3478_v50 = vmul.f32 1.442695, %v2991_v38  ;;  %v4219_v4 = vmul.f32 %v7962_v23, %v15697_v32  ;;  %v4216_v42 = vmul.f32 %v7952_v31, %v15698_v2  ;;  %v12893_v38 = vpop.xlane.xlu0 %3817  ;;  %v4730_v13 = vpop.f32.mrb[144].mxu0 }
 0x78c   :  { %15695 = vst [vmem:[#allocation61_spill] sm:$0xff] %v12882_v46  ;;  %3871 = vadd.xlane.f32.xlu0 %v3870_v14  ;;  %v3809_v60 = vpop.xlane.xlu1 %3808  ;;  %v4218_v46 = vmul.f32 %v7962_v23, %v15699_v11  ;;  %v3488_v63 = vmul.f32 1.442695, %v2996_v55  ;;  %v3490_v29 = vmul.f32 1.442695, %v2997_v37  ;;  %v5313_v17 = vsel %vm96_vm0, %v5041_v6, 0.0 }
 0x78d   :  { %7977 = vpow2.f32 %v3476_v26  ;;  %v4385_v0 = vpack.c.bf16 %v4219_v4, %v4217_v8  ;;  %v5320_v31 = vsel %vm96_vm0, %v5042_v20, 0.0  ;;  %v8209_v23 = vld [vmem:[%s14415_s12 + $0x1c0] sm:$0xff] }
 0x78e   :  { %7979 = vpow2.f32 %v3478_v50  ;;  %v4384_v21 = vpack.c.bf16 %v4218_v46, %v4216_v42  ;;  %v5073_v8 = vmul.f32 %v8209_v23, %v4730_v13  ;;  %v4732_v50 = vpop.f32.mrb[145].mxu0  ;;  %v15700_v46 = vld [vmem:[#allocation119_spill] sm:$0xff] }
 0x78f   :  { %v12895_v3 = vpop.eup %7965  ;;  %7981 = vpow2.f32 %v3488_v63  ;;  %4856 = vmatprep.mubr.bf16.mxu0 %v4385_v0  ;;  %v4221_v55 = vmul.f32 %v7964_v52, %v15700_v46  ;;  %v4733_v20 = vpop.f32.mrb[146].mxu0 }
 0x790   :  { %v12898_v14 = vpop.eup %7967  ;;  %7983 = vpow2.f32 %v3490_v29  ;;  %v2729_v26 = vpop.xlane.xlu1 %2728  ;;  %4857 = vmatmul.mubr.bf16.gmra.mrb[208].mxu0 %v4384_v21  ;;  %v5314_v2 = vsel %vm96_vm0, %v5073_v8, 0.0 }
 0x791   :  { %v12905_v37 = vpop.eup %7969  ;;  %7985 = vrcp.f32 %v3809_v60  ;;  %v2994_v6 = vsub.f32 %v12315_v35, %v2729_v26  ;;  %v2995_v63 = vsub.f32 %v12322_v39, %v2729_v26  ;;  %v3867_v32 = vadd.f32 %v12898_v14, %v12895_v3  ;;  %v2738_v42 = vpop.xlane.xlu0 %2737  ;;  %v8210_v60 = vld [vmem:[%s14415_s12 + $0x1c8] sm:$0xff]  ;;  %v15701_v35 = vld [vmem:[#allocation117_spill] sm:$0xff] }
 0x792   :  { %v12911_v4 = vpop.eup %7971  ;;  %7987 = vrcp.f32 %v12854_v10  ;;  %v5074_v11 = vmul.f32 %v8210_v60, %v4733_v20  ;;  %v4735_v29 = vpop.f32.mrb[147].mxu0  ;;  %v4220_v0 = vmul.f32 %v7964_v52, %v15701_v35  ;;  %v12919_v21 = vadd.f32 %v5314_v2, %v5313_v17 }
 0x793   :  { %v7974_v39 = vpop.eup %7973  ;;  %v3484_v13 = vmul.f32 1.442695, %v2994_v6  ;;  %v3486_v23 = vmul.f32 1.442695, %v2995_v63  ;;  %v3000_v26 = vsub.f32 %v12364_v41, %v2738_v42  ;;  %3868 = vadd.xlane.f32.xlu1 %v3867_v32  ;;  %v3001_v10 = vsub.f32 %v12369_v33, %v2738_v42 }
 0x794   :  { %v5321_v8 = vsel %vm96_vm0, %v5074_v11, 0.0  ;;  %v3876_v50 = vadd.f32 %v12911_v4, %v12905_v37  ;;  %v3815_v46 = vpop.xlane.xlu1 %3814  ;;  %v4223_v20 = vmul.f32 %v7974_v39, %v12325_v58  ;;  %v4222_v17 = vmul.f32 %v7974_v39, %v12319_v24  ;;  %v7976_v6 = vpop.eup %7975  ;;  %v15702_v39 = vld [vmem:[#allocation24_spill] sm:$0xff] }
 0x795   :  { %7989 = vpow2.f32 %v3484_v13  ;;  %v3496_v52 = vmul.f32 1.442695, %v3000_v26  ;;  %v12927_v60 = vadd.f32 %v5321_v8, %v5320_v31  ;;  %v3498_v41 = vmul.f32 1.442695, %v3001_v10  ;;  %v12930_v33 = vpop.xlane.xlu0 %3823 }
 0x796   :  { %7991 = vpow2.f32 %v3486_v23  ;;  %3877 = vadd.xlane.f32.xlu0 %v3876_v50  ;;  %v4387_v63 = vpack.c.bf16 %v4223_v20, %v4221_v55  ;;  %v4386_v2 = vpack.c.bf16 %v4222_v17, %v4220_v0  ;;  %v4225_v0 = vmul.f32 %v7976_v6, %v12292_v12  ;;  %v15703_v12 = vld [vmem:[#allocation161_spill] sm:$0xff] }
 0x797   :  { %v12932_v32 = vpop.eup %7977  ;;  %7993 = vpow2.f32 %v3496_v52  ;;  %v4224_v13 = vmul.f32 %v7976_v6, %v15702_v39 }
 0x798   :  { %v12934_v42 = vpop.eup %7979  ;;  %7995 = vpow2.f32 %v3498_v41  ;;  %4864 = vmatprep.mubr.bf16.mxu0 %v4387_v63  ;;  %v2735_v58 = vpop.xlane.xlu1 %2734 }
 0x799   :  { %v12936_v31 = vpop.eup %7981  ;;  %7997 = vrcp.f32 %v3815_v46  ;;  %4865 = vmatmul.mubr.bf16.gmra.mrb[212].mxu0 %v4386_v2  ;;  %v2998_v24 = vsub.f32 %v12393_v43, %v2735_v58  ;;  %v2999_v11 = vsub.f32 %v12396_v9, %v2735_v58  ;;  %v3873_v55 = vadd.f32 %v12934_v42, %v12932_v32  ;;  %v2744_v35 = vpop.xlane.xlu0 %2743 }
 0x79a   :  { %v12942_v29 = vpop.eup %7983  ;;  %v3004_v8 = vsub.f32 %v12410_v51, %v2744_v35  ;;  %v3005_v50 = vsub.f32 %v12413_v44, %v2744_v35  ;;  %7999 = vrcp.f32 %v12893_v38  ;;  %v8211_v35 = vld [vmem:[%s14415_s12 + $0xd0] sm:$0xff] }
 0x79b   :  { %v7986_v23 = vpop.eup %7985  ;;  %v3492_v26 = vmul.f32 1.442695, %v2998_v24  ;;  %v3494_v10 = vmul.f32 1.442695, %v2999_v11  ;;  %3874 = vadd.xlane.f32.xlu1 %v3873_v55  ;;  %v3882_v9 = vadd.f32 %v12942_v29, %v12936_v31 }
 0x79c   :  { %v7988_v43 = vpop.eup %7987  ;;  %v3821_v46 = vpop.xlane.xlu1 %3820  ;;  %v4227_v20 = vmul.f32 %v7986_v23, %v12366_v49  ;;  %v4226_v52 = vmul.f32 %v7986_v23, %v15703_v12  ;;  %v3504_v17 = vmul.f32 1.442695, %v3004_v8  ;;  %v3506_v6 = vmul.f32 1.442695, %v3005_v50  ;;  %v15705_v23 = vld [vmem:[#allocation139_spill] sm:$0xff]  ;;  %v15707_v8 = vld [vmem:[#allocation152_spill] sm:$0xff] }
 0x79d   :  { %8001 = vpow2.f32 %v3492_v26  ;;  %3883 = vadd.xlane.f32.xlu0 %v3882_v9  ;;  %v12953_v41 = vpop.xlane.xlu0 %3829  ;;  %v4228_v50 = vmul.f32 %v7988_v43, %v15707_v8 }
 0x79e   :  { %8003 = vpow2.f32 %v3494_v10  ;;  %v4389_v51 = vpack.c.bf16 %v4227_v20, %v4225_v0  ;;  %v4388_v44 = vpack.c.bf16 %v4226_v52, %v4224_v13  ;;  %v15704_v0 = vld [vmem:[#allocation138_spill] sm:$0xff]  ;;  %v8212_v13 = vld [vmem:[%s14415_s12 + $0xd8] sm:$0xff]  ;;  %v15706_v10 = vld [vmem:[#allocation45_spill] sm:$0xff] }
 0x79f   :  { %v12955_v63 = vpop.eup %7989  ;;  %8005 = vpow2.f32 %v3504_v17  ;;  %v5043_v39 = vmul.f32 %v8211_v35, %v15704_v0  ;;  %v5044_v26 = vmul.f32 %v8212_v13, %v15705_v23  ;;  %v8214_v23 = vld [vmem:[%s14415_s12 + $0x1d8] sm:$0xff] }
 0x7a0   :  { %v12957_v38 = vpop.eup %7991  ;;  %8007 = vpow2.f32 %v3506_v6  ;;  %4872 = vmatprep.mubr.bf16.mxu0 %v4389_v51  ;;  %v2741_v2 = vpop.xlane.xlu1 %2740 }
 0x7a1   :  { %v12959_v49 = vpop.eup %7993  ;;  %8009 = vrcp.f32 %v3821_v46  ;;  %4873 = vmatmul.mubr.bf16.gmra.mrb[216].mxu0 %v4388_v44  ;;  %v3002_v58 = vsub.f32 %v12459_v59, %v2741_v2  ;;  %v3003_v24 = vsub.f32 %v12462_v45, %v2741_v2  ;;  %v3879_v11 = vadd.f32 %v12957_v38, %v12955_v63  ;;  %v2750_v59 = vpop.xlane.xlu0 %2749 }
 0x7a2   :  { %v12965_v55 = vpop.eup %7995  ;;  %v4229_v45 = vmul.f32 %v7988_v43, %v15706_v10  ;;  %v3008_v12 = vsub.f32 %v12469_v40, %v2750_v59  ;;  %v3009_v52 = vsub.f32 %v12472_v25, %v2750_v59  ;;  %8011 = vrcp.f32 %v12930_v33  ;;  %v4738_v44 = vpop.f32.mrb[148].mxu0  ;;  %v8213_v40 = vld [vmem:[%s14415_s12 + $0x1d0] sm:$0xff] }
 0x7a3   :  { %v7998_v9 = vpop.eup %7997  ;;  %v3500_v46 = vmul.f32 1.442695, %v3002_v58  ;;  %v3502_v20 = vmul.f32 1.442695, %v3003_v24  ;;  %3880 = vadd.xlane.f32.xlu1 %v3879_v11  ;;  %v3888_v17 = vadd.f32 %v12965_v55, %v12959_v49  ;;  %v5075_v25 = vmul.f32 %v8213_v40, %v4738_v44  ;;  %v4740_v24 = vpop.f32.mrb[149].mxu0  ;;  %v15709_v40 = vld [vmem:[#allocation29_spill] sm:$0xff] }
 0x7a4   :  { %v3827_v6 = vpop.xlane.xlu1 %3826  ;;  %v4231_v51 = vmul.f32 %v7998_v9, %v12415_v30  ;;  %v4230_v2 = vmul.f32 %v7998_v9, %v12405_v27  ;;  %v3512_v43 = vmul.f32 1.442695, %v3008_v12  ;;  %v3514_v58 = vmul.f32 1.442695, %v3009_v52  ;;  %v8000_v11 = vpop.eup %7999 }
 0x7a5   :  { %8013 = vpow2.f32 %v3500_v46  ;;  %3889 = vadd.xlane.f32.xlu0 %v3888_v17  ;;  %v4741_v0 = vpop.f32.mrb[150].mxu0  ;;  %v5327_v30 = vsel %vm96_vm0, %v5043_v39, 0.0  ;;  %v5328_v27 = vsel %vm96_vm0, %v5075_v25, 0.0  ;;  %v5334_v9 = vsel %vm96_vm0, %v5044_v26, 0.0 }
 0x7a6   :  { %8015 = vpow2.f32 %v3502_v20  ;;  %v4391_v33 = vpack.c.bf16 %v4231_v51, %v4229_v45  ;;  %v4390_v35 = vpack.c.bf16 %v4230_v2, %v4228_v50  ;;  %v5076_v59 = vmul.f32 %v8214_v23, %v4741_v0  ;;  %v4743_v10 = vpop.f32.mrb[151].mxu0 }
 0x7a7   :  { %v12987_v13 = vpop.eup %8001  ;;  %8017 = vpow2.f32 %v3512_v43  ;;  %v12997_v45 = vadd.f32 %v5328_v27, %v5327_v30  ;;  %v15708_v43 = vld [vmem:[#allocation150_spill] sm:$0xff]  ;;  %v4232_v25 = vmul.f32 %v8000_v11, %v15709_v40  ;;  %v15711_v27 = vld [vmem:[#allocation145_spill] sm:$0xff] }
 0x7a8   :  { %v12994_v8 = vpop.eup %8003  ;;  %8019 = vpow2.f32 %v3514_v58  ;;  %4880 = vmatprep.mubr.bf16.mxu0 %v4391_v33  ;;  %v2747_v50 = vpop.xlane.xlu1 %2746  ;;  %v5335_v39 = vsel %vm96_vm0, %v5076_v59, 0.0  ;;  %v4233_v58 = vmul.f32 %v8000_v11, %v15708_v43  ;;  %v8215_v33 = vld [vmem:[%s14415_s12 + $0xe0] sm:$0xff]  ;;  %v8218_v40 = vld [vmem:[%s14415_s12 + $0x1e8] sm:$0xff] }
 0x7a9   :  { %v12999_v46 = vpop.eup %8005  ;;  %8021 = vrcp.f32 %v3827_v6  ;;  %4881 = vmatmul.mubr.bf16.gmra.mrb[220].mxu0 %v4390_v35  ;;  %v3006_v20 = vsub.f32 %v12511_v57, %v2747_v50  ;;  %v3007_v12 = vsub.f32 %v12525_v5, %v2747_v50  ;;  %v13006_v17 = vadd.f32 %v5335_v39, %v5334_v9  ;;  %v15710_v35 = vld [vmem:[#allocation144_spill] sm:$0xff]  ;;  %v8217_v9 = vld [vmem:[%s14415_s12 + $0x1e0] sm:$0xff] }
 0x7aa   :  { %v13004_v52 = vpop.eup %8007  ;;  %v3885_v26 = vadd.f32 %v12994_v8, %v12987_v13  ;;  %8023 = vrcp.f32 %v12953_v41  ;;  %v5045_v0 = vmul.f32 %v8215_v33, %v15710_v35  ;;  %v8216_v41 = vld [vmem:[%s14415_s12 + $0xe8] sm:$0xff] }
 0x7ab   :  { %v8010_v51 = vpop.eup %8009  ;;  %v3508_v44 = vmul.f32 1.442695, %v3006_v20  ;;  %v3510_v2 = vmul.f32 1.442695, %v3007_v12  ;;  %v3894_v6 = vadd.f32 %v13004_v52, %v12999_v46  ;;  %v5046_v23 = vmul.f32 %v8216_v41, %v15711_v27  ;;  %v15713_v33 = vld [vmem:[#allocation154_spill] sm:$0xff] }
 0x7ac   :  { %3886 = vadd.xlane.f32.xlu1 %v3885_v26  ;;  %v3833_v57 = vpop.xlane.xlu1 %3832  ;;  %v4235_v5 = vmul.f32 %v8010_v51, %v12466_v53  ;;  %v4234_v24 = vmul.f32 %v8010_v51, %v12456_v61  ;;  %v8012_v30 = vpop.eup %8011  ;;  %v5341_v26 = vsel %vm96_vm0, %v5045_v0, 0.0 }
 0x7ad   :  { %8025 = vpow2.f32 %v3508_v44  ;;  %3895 = vadd.xlane.f32.xlu0 %v3894_v6  ;;  %v4746_v61 = vpop.f32.mrb[152].mxu0  ;;  %v4237_v35 = vmul.f32 %v8012_v30, %v15713_v33  ;;  %v15719_v33 = vld [vmem:[#allocation72_spill] sm:$0xff] }
 0x7ae   :  { %8027 = vpow2.f32 %v3510_v2  ;;  %v4393_v53 = vpack.c.bf16 %v4235_v5, %v4233_v58  ;;  %v4392_v11 = vpack.c.bf16 %v4234_v24, %v4232_v25  ;;  %v5077_v50 = vmul.f32 %v8217_v9, %v4746_v61  ;;  %v4748_v39 = vpop.f32.mrb[153].mxu0  ;;  %v15712_v2 = vld [vmem:[#allocation27_spill] sm:$0xff]  ;;  %v15715_v9 = vld [vmem:[#allocation46_spill] sm:$0xff] }
 0x7af   :  { %v13025_v59 = vpop.eup %8013  ;;  %8029 = vrcp.f32 %v3833_v57  ;;  %v4749_v51 = vpop.f32.mrb[154].mxu0  ;;  %v5348_v57 = vsel %vm96_vm0, %v5046_v23, 0.0  ;;  %v15716_v39 = vld [vmem:[#allocation157_spill] sm:$0xff] }
 0x7b0   :  { %v13027_v10 = vpop.eup %8015  ;;  %4888 = vmatprep.mubr.bf16.mxu0 %v4393_v53  ;;  %v2753_v20 = vpop.xlane.xlu1 %2752  ;;  %v5342_v5 = vsel %vm96_vm0, %v5077_v50, 0.0  ;;  %v5078_v25 = vmul.f32 %v8218_v40, %v4749_v51  ;;  %v4236_v50 = vmul.f32 %v8012_v30, %v15715_v9  ;;  %v8219_v51 = vld [vmem:[%s14415_s12 + $0xf0] sm:$0xff] }
 0x7b1   :  { %v13032_v12 = vpop.eup %8017  ;;  %4889 = vmatmul.mubr.bf16.gmra.mrb[224].mxu0 %v4392_v11  ;;  %v3010_v44 = vsub.f32 %v12562_v36, %v2753_v20  ;;  %v3011_v6 = vsub.f32 %v15712_v2, %v2753_v20  ;;  %v3891_v43 = vadd.f32 %v13027_v10, %v13025_v59  ;;  %v4751_v24 = vpop.f32.mrb[155].mxu0  ;;  %v13047_v0 = vadd.f32 %v5342_v5, %v5341_v26  ;;  %v15714_v11 = vld [vmem:[#allocation6_spill] sm:$0xff]  ;;  %v15717_v26 = vld [vmem:[#allocation20_spill] sm:$0xff] }
 0x7b2   :  { %v13039_v58 = vpop.eup %8019  ;;  %v5349_v23 = vsel %vm96_vm0, %v5078_v25, 0.0  ;;  %v5047_v2 = vmul.f32 %v8219_v51, %v15717_v26  ;;  %v8220_v24 = vld [vmem:[%s14415_s12 + $0xf8] sm:$0xff] }
 0x7b3   :  { %v8022_v36 = vpop.eup %8021  ;;  %v3516_v41 = vmul.f32 1.442695, %v3010_v44  ;;  %v3518_v27 = vmul.f32 1.442695, %v3011_v6  ;;  %3892 = vadd.xlane.f32.xlu1 %v3891_v43  ;;  %v3900_v53 = vadd.f32 %v13039_v58, %v13032_v12  ;;  %v13059_v44 = vadd.f32 %v5349_v23, %v5348_v57  ;;  %v4754_v25 = vpop.f32.mrb[156].mxu0  ;;  %v8221_v57 = vld [vmem:[%s14415_s12 + $0x1f0] sm:$0xff] }
 0x7b4   :  { %v4239_v61 = vmul.f32 %v8022_v36, %v15714_v11  ;;  %v4238_v20 = vmul.f32 %v8022_v36, %v15716_v39  ;;  %v8024_v6 = vpop.eup %8023  ;;  %v5048_v36 = vmul.f32 %v8220_v24, %v15719_v33  ;;  %v8222_v39 = vld [vmem:[%s14415_s12 + $0x1f8] sm:$0xff] }
 0x7b5   :  { %15718 = vst [vmem:[#allocation60_spill] sm:$0xff] %v13059_v44  ;;  %8031 = vpow2.f32 %v3516_v41  ;;  %3901 = vadd.xlane.f32.xlu0 %v3900_v53  ;;  %v5079_v41 = vmul.f32 %v8221_v57, %v4754_v25  ;;  %v5355_v53 = vsel %vm96_vm0, %v5047_v2, 0.0  ;;  %v15721_v26 = vld [vmem:[#allocation64_spill] sm:$0xff]  ;;  %v15722_v25 = vld [vmem:[#allocation53_spill] sm:$0xff] }
 0x7b6   :  { %8033 = vpow2.f32 %v3518_v27  ;;  %v4395_v43 = vpack.c.bf16 %v4239_v61, %v4237_v35  ;;  %v4394_v5 = vpack.c.bf16 %v4238_v20, %v4236_v50  ;;  %v4756_v27 = vpop.f32.mrb[157].mxu0  ;;  %v15720_v61 = vld [vmem:[#allocation17_spill] sm:$0xff]  ;;  %v5362_v57 = vsel %vm96_vm0, %v5048_v36, 0.0 }
 0x7b7   :  { %v13061_v40 = vpop.eup %8025  ;;  %v4757_v23 = vpop.f32.mrb[158].mxu0  ;;  %v4241_v9 = vmul.f32 %v8024_v6, %v15720_v61  ;;  %v5356_v50 = vsel %vm96_vm0, %v5079_v41, 0.0 }
 0x7b8   :  { %v13063_v30 = vpop.eup %8027  ;;  %4896 = vmatprep.mubr.bf16.mxu0 %v4395_v43  ;;  %v5080_v20 = vmul.f32 %v8222_v39, %v4757_v23  ;;  %v4759_v51 = vpop.f32.mrb[159].mxu0  ;;  %v13082_v2 = vadd.f32 %v5356_v50, %v5355_v53  ;;  %v8224_v50 = vld [vmem:[%s14415_s12 + $0x208] sm:$0xff] }
 0x7b9   :  { %v8030_v35 = vpop.eup %8029  ;;  %4897 = vmatmul.mubr.bf16.gmra.mrb[228].mxu0 %v4394_v5  ;;  %v3897_v11 = vadd.f32 %v13063_v30, %v13061_v40  ;;  %v15723_v5 = vld [vmem:[#allocation159_spill] sm:$0xff] }
 0x7ba   :  { %v4243_v43 = vmul.f32 %v8030_v35, %v15721_v26  ;;  %v4242_v24 = vmul.f32 %v8030_v35, %v15722_v25  ;;  %v4240_v33 = vmul.f32 %v8024_v6, %v15723_v5  ;;  %v5363_v27 = vsel %vm96_vm0, %v5080_v20, 0.0  ;;  %v8223_v35 = vld [vmem:[%s14415_s12 + $0x200] sm:$0xff]  ;;  %v15726_v5 = vld [vmem:[#allocation74_spill] sm:$0xff] }
 0x7bb   :  { %3898 = vadd.xlane.f32.xlu1 %v3897_v11  ;;  %v13087_v61 = vadd.f32 %v5363_v27, %v5362_v57  ;;  %v8225_v57 = vld [vmem:[%s14415_s12 + $0x210] sm:$0xff] }
 0x7bc   :  { %v4397_v41 = vpack.c.bf16 %v4243_v43, %v4241_v9  ;;  %v4396_v44 = vpack.c.bf16 %v4242_v24, %v4240_v33  ;;  %v4762_v39 = vpop.f32.mrb[160].mxu0  ;;  %v15724_v43 = vld [vmem:[#allocation85_spill] sm:$0xff] }
 0x7bd   :  { %v5081_v53 = vmul.f32 %v8223_v35, %v4762_v39  ;;  %v4764_v6 = vpop.f32.mrb[161].mxu0 }
 0x7be   :  { %4904 = vmatprep.mubr.bf16.mxu0 %v4397_v41  ;;  %v4765_v36 = vpop.f32.mrb[162].mxu0 }
 0x7bf   :  { %v13089_v23 = vpop.eup %8031  ;;  %v5148_v9 = vsel %vm96_vm0, %v5081_v53, 0.0  ;;  %v5082_v20 = vmul.f32 %v8224_v50, %v4765_v36  ;;  %v4767_v26 = vpop.f32.mrb[163].mxu0  ;;  %v8226_v53 = vld [vmem:[%s14415_s12 + $0x218] sm:$0xff] }
 0x7c0   :  { %v13091_v51 = vpop.eup %8033  ;;  %v13103_v25 = vadd.f32 %v5148_v9, %v15724_v43 }
 0x7c1   :  { %4905 = vmatmul.mubr.bf16.gmra.mrb[232].mxu0 %v4396_v44  ;;  %v3903_v11 = vadd.f32 %v13091_v51, %v13089_v23  ;;  %v5155_v24 = vsel %vm96_vm0, %v5082_v20, 0.0  ;;  %v15730_v20 = vld [vmem:[#allocation158_spill] sm:$0xff] }
 0x7c2   :  { %15725 = vst [vmem:[#allocation129_spill] sm:$0xff] %v13103_v25  ;;  %v13107_v44 = vadd.f32 %v5155_v24, %v15726_v5  ;;  %v8227_v24 = vld [vmem:[%s14415_s12 + $0x220] sm:$0xff] }
 0x7c3   :  { %3904 = vadd.xlane.f32.xlu1 %v3903_v11  ;;  %v15728_v11 = vld [vmem:[#allocation63_spill] sm:$0xff] }
 0x7c4   :  { %15727 = vst [vmem:[#allocation49_spill] sm:$0xff] %v13107_v44 }
 0x7c5   :  { %v4770_v33 = vpop.f32.mrb[164].mxu0 }
 0x7c6   :  { %v5083_v27 = vmul.f32 %v8225_v57, %v4770_v33  ;;  %v4772_v41 = vpop.f32.mrb[165].mxu0 }
 0x7c7   :  { %v4773_v39 = vpop.f32.mrb[166].mxu0  ;;  %v8228_v41 = vld [vmem:[%s14415_s12 + $0x228] sm:$0xff] }
 0x7c8   :  { %v5162_v35 = vsel %vm96_vm0, %v5083_v27, 0.0  ;;  %v5084_v6 = vmul.f32 %v8226_v53, %v4773_v39  ;;  %v4775_v36 = vpop.f32.mrb[167].mxu0  ;;  %v15732_v53 = vld [vmem:[#allocation33_spill] sm:$0xff] }
 0x7c9   :  { %v13117_v9 = vadd.f32 %v5162_v35, %v15728_v11  ;;  %v15734_v11 = vld [vmem:[#allocation71_spill] sm:$0xff] }
 0x7ca   :  { %v5169_v50 = vsel %vm96_vm0, %v5084_v6, 0.0 }
 0x7cb   :  { %15729 = vst [vmem:[#allocation58_spill] sm:$0xff] %v13117_v9  ;;  %v13121_v26 = vadd.f32 %v5169_v50, %v15730_v20 }
 0x7cd   :  { %15731 = vst [vmem:[#allocation22_spill] sm:$0xff] %v13121_v26  ;;  %v4778_v43 = vpop.f32.mrb[168].mxu0 }
 0x7ce   :  { %v5085_v5 = vmul.f32 %v8227_v24, %v4778_v43  ;;  %v4780_v33 = vpop.f32.mrb[169].mxu0  ;;  %v8229_v43 = vld [vmem:[%s14415_s12 + $0x230] sm:$0xff] }
 0x7cf   :  { %v4781_v57 = vpop.f32.mrb[170].mxu0 }
 0x7d0   :  { %v5176_v27 = vsel %vm96_vm0, %v5085_v5, 0.0  ;;  %v5086_v39 = vmul.f32 %v8228_v41, %v4781_v57  ;;  %v4783_v35 = vpop.f32.mrb[171].mxu0  ;;  %v8230_v57 = vld [vmem:[%s14415_s12 + $0x238] sm:$0xff] }
 0x7d1   :  { %v13131_v6 = vadd.f32 %v5176_v27, %v15732_v53 }
 0x7d2   :  { %v5183_v36 = vsel %vm96_vm0, %v5086_v39, 0.0  ;;  %v15736_v39 = vld [vmem:[#allocation43_spill] sm:$0xff] }
 0x7d3   :  { %15733 = vst [vmem:[#allocation105_spill] sm:$0xff] %v13131_v6  ;;  %v13135_v50 = vadd.f32 %v5183_v36, %v15734_v11  ;;  %v15738_v36 = vld [vmem:[#allocation69_spill] sm:$0xff] }
 0x7d5   :  { %15735 = vst [vmem:[#allocation109_spill] sm:$0xff] %v13135_v50  ;;  %v4786_v20 = vpop.f32.mrb[172].mxu0 }
 0x7d6   :  { %v5087_v24 = vmul.f32 %v8229_v43, %v4786_v20  ;;  %v4788_v5 = vpop.f32.mrb[173].mxu0  ;;  %v8231_v20 = vld [vmem:[%s14415_s12 + $0x240] sm:$0xff] }
 0x7d7   :  { %v4789_v33 = vpop.f32.mrb[174].mxu0 }
 0x7d8   :  { %v5190_v26 = vsel %vm96_vm0, %v5087_v24, 0.0  ;;  %v5088_v27 = vmul.f32 %v8230_v57, %v4789_v33  ;;  %v4791_v41 = vpop.f32.mrb[175].mxu0 }
 0x7d9   :  { %v13145_v35 = vadd.f32 %v5190_v26, %v15736_v39  ;;  %v8232_v26 = vld [vmem:[%s14415_s12 + $0x248] sm:$0xff] }
 0x7da   :  { %v5197_v53 = vsel %vm96_vm0, %v5088_v27, 0.0  ;;  %v15740_v27 = vld [vmem:[#allocation83_spill] sm:$0xff] }
 0x7db   :  { %15737 = vst [vmem:[#allocation94_spill] sm:$0xff] %v13145_v35  ;;  %v13149_v11 = vadd.f32 %v5197_v53, %v15738_v36  ;;  %v15742_v53 = vld [vmem:[#allocation32_spill] sm:$0xff] }
 0x7dd   :  { %15739 = vst [vmem:[#allocation38_spill] sm:$0xff] %v13149_v11 }
 0x7df   :  { %v4794_v50 = vpop.f32.mrb[176].mxu0 }
 0x7e0   :  { %v5089_v43 = vmul.f32 %v8231_v20, %v4794_v50  ;;  %v4796_v24 = vpop.f32.mrb[177].mxu0 }
 0x7e1   :  { %v4797_v5 = vpop.f32.mrb[178].mxu0 }
 0x7e2   :  { %v5204_v6 = vsel %vm96_vm0, %v5089_v43, 0.0  ;;  %v5090_v33 = vmul.f32 %v8232_v26, %v4797_v5  ;;  %v4799_v57 = vpop.f32.mrb[179].mxu0  ;;  %v3836_v11 = vpop.xlane.xlu0 %3835  ;;  %v8233_v43 = vld [vmem:[%s14415_s12 + $0x250] sm:$0xff] }
 0x7e3   :  { %v13159_v41 = vadd.f32 %v5204_v6, %v15740_v27  ;;  %8035 = vrcp.f32 %v3836_v11 }
 0x7e4   :  { %v5211_v39 = vsel %vm96_vm0, %v5090_v33, 0.0  ;;  %v3839_v20 = vpop.xlane.xlu1 %3838  ;;  %v8234_v33 = vld [vmem:[%s14415_s12 + $0x258] sm:$0xff] }
 0x7e5   :  { %15741 = vst [vmem:[#allocation95_spill] sm:$0xff] %v13159_v41  ;;  %v13163_v36 = vadd.f32 %v5211_v39, %v15742_v53  ;;  %8037 = vrcp.f32 %v3839_v20  ;;  %v15744_v53 = vld [vmem:[#allocation25_spill] sm:$0xff]  ;;  %v15746_v41 = vld [vmem:[#allocation10_spill] sm:$0xff] }
 0x7e6   :  { %v2756_v26 = vpop.xlane.xlu0 %2755 }
 0x7e7   :  { %15743 = vst [vmem:[#allocation34_spill] sm:$0xff] %v13163_v36  ;;  %v4802_v50 = vpop.f32.mrb[180].mxu0  ;;  %v3012_v11 = vsub.f32 %v12731_v16, %v2756_v26  ;;  %v3013_v39 = vsub.f32 %v12734_v62, %v2756_v26 }
 0x7e8   :  { %v5091_v24 = vmul.f32 %v8233_v43, %v4802_v50  ;;  %v4804_v35 = vpop.f32.mrb[181].mxu0  ;;  %v2759_v50 = vpop.xlane.xlu1 %2758 }
 0x7e9   :  { %v4805_v5 = vpop.f32.mrb[182].mxu0  ;;  %v3520_v20 = vmul.f32 1.442695, %v3012_v11  ;;  %v3522_v43 = vmul.f32 1.442695, %v3013_v39  ;;  %v15748_v39 = vld [vmem:[#allocation8_spill] sm:$0xff] }
 0x7ea   :  { %v5218_v6 = vsel %vm96_vm0, %v5091_v24, 0.0  ;;  %v5092_v57 = vmul.f32 %v8234_v33, %v4805_v5  ;;  %v4807_v27 = vpop.f32.mrb[183].mxu0  ;;  %v3014_v24 = vsub.f32 %v12745_v28, %v2759_v50  ;;  %v3015_v5 = vsub.f32 %v12748_v18, %v2759_v50 }
 0x7eb   :  { %v13175_v36 = vadd.f32 %v5218_v6, %v15744_v53  ;;  %8039 = vpow2.f32 %v3520_v20  ;;  %v3842_v26 = vpop.xlane.xlu0 %3841 }
 0x7ec   :  { %v5225_v35 = vsel %vm96_vm0, %v5092_v57, 0.0  ;;  %v3524_v33 = vmul.f32 1.442695, %v3014_v24  ;;  %8041 = vpow2.f32 %v3522_v43  ;;  %v3526_v16 = vmul.f32 1.442695, %v3015_v5  ;;  %v8235_v57 = vld [vmem:[%s14415_s12 + $0x260] sm:$0xff] }
 0x7ed   :  { %15745 = vst [vmem:[#allocation16_spill] sm:$0xff] %v13175_v36  ;;  %v13180_v9 = vadd.f32 %v5225_v35, %v15746_v41  ;;  %v8036_v6 = vpop.eup %8035  ;;  %v8236_v35 = vld [vmem:[%s14415_s12 + $0x268] sm:$0xff] }
 0x7ee   :  { %8043 = vpow2.f32 %v3524_v33  ;;  %v3845_v28 = vpop.xlane.xlu1 %3844  ;;  %v4245_v53 = vmul.f32 %v8036_v6, %v15748_v39  ;;  %v15749_v24 = vld [vmem:[#allocation110_spill] sm:$0xff]  ;;  %v15750_v33 = vld [vmem:[#allocation37_spill] sm:$0xff] }
 0x7ef   :  { %15747 = vst [vmem:[#allocation48_spill] sm:$0xff] %v13180_v9  ;;  %v4810_v62 = vpop.f32.mrb[184].mxu0  ;;  %8045 = vpow2.f32 %v3526_v16  ;;  %v8038_v18 = vpop.eup %8037  ;;  %v4244_v5 = vmul.f32 %v8036_v6, %v15749_v24  ;;  %v15752_v16 = vld [vmem:[#allocation128_spill] sm:$0xff] }
 0x7f0   :  { %v5093_v27 = vmul.f32 %v8235_v57, %v4810_v62  ;;  %v4812_v11 = vpop.f32.mrb[185].mxu0  ;;  %8047 = vrcp.f32 %v3842_v26  ;;  %v4247_v57 = vmul.f32 %v8038_v18, %v15752_v16 }
 0x7f1   :  { %v4813_v41 = vpop.f32.mrb[186].mxu0  ;;  %8049 = vrcp.f32 %v3845_v28  ;;  %v15753_v11 = vld [vmem:[#allocation123_spill] sm:$0xff] }
 0x7f2   :  { %v5232_v50 = vsel %vm96_vm0, %v5093_v27, 0.0  ;;  %v5094_v20 = vmul.f32 %v8236_v35, %v4813_v41  ;;  %v4815_v43 = vpop.f32.mrb[187].mxu0  ;;  %v4246_v39 = vmul.f32 %v8038_v18, %v15753_v11  ;;  %v15754_v27 = vld [vmem:[#allocation121_spill] sm:$0xff]  ;;  %v4399_v44 = vpack.c.bf16 %v4247_v57, %v4245_v53 }
 0x7f3   :  { %v13193_v62 = vadd.f32 %v5232_v50, %v15750_v33  ;;  %v15758_v43 = vld [vmem:[#allocation56_spill] sm:$0xff]  ;;  %v3848_v11 = vpop.xlane.xlu0 %3847 }
 0x7f4   :  { %v5239_v9 = vsel %vm96_vm0, %v5094_v20, 0.0  ;;  %v4398_v25 = vpack.c.bf16 %v4246_v39, %v4244_v5  ;;  %4912 = vmatprep.mubr.bf16.mxu0 %v4399_v44  ;;  %v15756_v44 = vld [vmem:[#allocation59_spill] sm:$0xff]  ;;  %v15757_v20 = vld [vmem:[#allocation108_spill] sm:$0xff]  ;;  %8051 = vrcp.f32 %v3848_v11 }
 0x7f5   :  { %15751 = vst [vmem:[#allocation111_spill] sm:$0xff] %v13193_v62  ;;  %v13199_v36 = vadd.f32 %v5239_v9, %v15754_v27  ;;  %v13201_v26 = vpop.eup %8039  ;;  %v15759_v5 = vld [vmem:[#allocation96_spill] sm:$0xff] }
 0x7f6   :  { %4913 = vmatmul.mubr.bf16.gmra.mrb[236].mxu0 %v4398_v25  ;;  %v13203_v6 = vpop.eup %8041  ;;  %v15762_v11 = vld [vmem:[#allocation160_spill] sm:$0xff] }
 0x7f7   :  { %15755 = vst [vmem:[#allocation12_spill] sm:$0xff] %v13199_v36  ;;  %v3906_v28 = vadd.f32 %v13203_v6, %v13201_v26 }
 0x7f8   :  { %v13205_v41 = vpop.eup %8043 }
 0x7f9   :  { %v13209_v50 = vpop.eup %8045  ;;  %3907 = vadd.xlane.f32.xlu0 %v3906_v28 }
 0x7fa   :  { %v8048_v18 = vpop.eup %8047  ;;  %v3909_v9 = vadd.f32 %v13209_v50, %v13205_v41 }
 0x7fb   :  { %v8050_v53 = vpop.eup %8049  ;;  %v4249_v35 = vmul.f32 %v8048_v18, %v15756_v44  ;;  %v4248_v24 = vmul.f32 %v8048_v18, %v15758_v43  ;;  %v3854_v27 = vpop.xlane.xlu0 %3853 }
 0x7fc   :  { %3910 = vadd.xlane.f32.xlu1 %v3909_v9  ;;  %v4251_v25 = vmul.f32 %v8050_v53, %v15757_v20  ;;  %v4250_v33 = vmul.f32 %v8050_v53, %v15759_v5  ;;  %v15760_v20 = vld [vmem:[#allocation87_spill] sm:$0xff]  ;;  %v15761_v53 = vld [vmem:[#allocation13_spill] sm:$0xff] }
 0x7fe   :  { %v4401_v16 = vpack.c.bf16 %v4251_v25, %v4249_v35  ;;  %v4400_v57 = vpack.c.bf16 %v4250_v33, %v4248_v24  ;;  %v8052_v9 = vpop.eup %8051 }
 0x7ff   :  { %v4253_v62 = vmul.f32 %v8052_v9, %v15760_v20  ;;  %v4252_v35 = vmul.f32 %v8052_v9, %v15761_v53 }
 0x800   :  { %4920 = vmatprep.mubr.bf16.mxu0 %v4401_v16 }
 0x801   :  { %4921 = vmatmul.mubr.bf16.gmra.mrb[240].mxu0 %v4400_v57 }
 0x802   :  { %v3851_v39 = vpop.xlane.xlu1 %3850 }
 0x803   :  { %8053 = vrcp.f32 %v3851_v39 }
 0x804   :  { %8055 = vrcp.f32 %v3854_v27 }
 0x806   :  { %v3860_v36 = vpop.xlane.xlu0 %3859 }
 0x80b   :  { %v3857_v28 = vpop.xlane.xlu1 %3856 }
 0x80c   :  { %8057 = vrcp.f32 %v3857_v28  ;;  %v15763_v28 = vld [vmem:[#allocation127_spill] sm:$0xff] }
 0x80d   :  { %v8054_v44 = vpop.eup %8053  ;;  %8059 = vrcp.f32 %v3860_v36 }
 0x80e   :  { %v4255_v18 = vmul.f32 %v8054_v44, %v12800_v54  ;;  %v4254_v25 = vmul.f32 %v8054_v44, %v12798_v56  ;;  %v8056_v33 = vpop.eup %8055 }
 0x80f   :  { %v4257_v39 = vmul.f32 %v8056_v33, %v15762_v11  ;;  %v4256_v54 = vmul.f32 %v8056_v33, %v15763_v28  ;;  %v8238_v28 = vld [vmem:[%s14415_s12 + $0x278] sm:$0xff] }
 0x810   :  { %v4403_v43 = vpack.c.bf16 %v4255_v18, %v4253_v62  ;;  %v4402_v24 = vpack.c.bf16 %v4254_v25, %v4252_v35  ;;  %v3866_v57 = vpop.xlane.xlu0 %3865  ;;  %v15764_v25 = vld [vmem:[#allocation36_spill] sm:$0xff] }
 0x812   :  { %4928 = vmatprep.mubr.bf16.mxu0 %v4403_v43 }
 0x813   :  { %4929 = vmatmul.mubr.bf16.gmra.mrb[244].mxu0 %v4402_v24 }
 0x816   :  { %v3863_v5 = vpop.xlane.xlu1 %3862  ;;  %v8058_v16 = vpop.eup %8057 }
 0x817   :  { %8061 = vrcp.f32 %v3863_v5  ;;  %v4259_v27 = vmul.f32 %v8058_v16, %v12822_v15  ;;  %v4258_v9 = vmul.f32 %v8058_v16, %v12818_v34  ;;  %v8060_v36 = vpop.eup %8059 }
 0x818   :  { %8063 = vrcp.f32 %v3866_v57  ;;  %v4261_v53 = vmul.f32 %v8060_v36, %v12808_v1  ;;  %v4260_v15 = vmul.f32 %v8060_v36, %v15764_v25  ;;  %v8237_v57 = vld [vmem:[%s14415_s12 + $0x270] sm:$0xff]  ;;  %v15767_v25 = vld [vmem:[#allocation156_spill] sm:$0xff] }
 0x819   :  { %v4405_v20 = vpack.c.bf16 %v4259_v27, %v4257_v39  ;;  %v4404_v56 = vpack.c.bf16 %v4258_v9, %v4256_v54  ;;  %v3872_v18 = vpop.xlane.xlu0 %3871  ;;  %v15765_v36 = vld [vmem:[#allocation151_spill] sm:$0xff] }
 0x81b   :  { %4936 = vmatprep.mubr.bf16.mxu0 %v4405_v20 }
 0x81c   :  { %4937 = vmatmul.mubr.bf16.gmra.mrb[248].mxu0 %v4404_v56 }
 0x820   :  { %v3869_v62 = vpop.xlane.xlu1 %3868 }
 0x821   :  { %8065 = vrcp.f32 %v3869_v62  ;;  %v8062_v44 = vpop.eup %8061 }
 0x822   :  { %v4263_v35 = vmul.f32 %v8062_v44, %v12856_v47  ;;  %v4262_v43 = vmul.f32 %v8062_v44, %v12851_v19  ;;  %8067 = vrcp.f32 %v3872_v18  ;;  %v8064_v5 = vpop.eup %8063  ;;  %v15766_v44 = vld [vmem:[#allocation39_spill] sm:$0xff] }
 0x823   :  { %v4264_v27 = vmul.f32 %v8064_v5, %v12824_v7  ;;  %v3878_v56 = vpop.xlane.xlu0 %3877  ;;  %v4265_v18 = vmul.f32 %v8064_v5, %v15766_v44 }
 0x824   :  { %v4407_v24 = vpack.c.bf16 %v4263_v35, %v4261_v53  ;;  %v4406_v34 = vpack.c.bf16 %v4262_v43, %v4260_v15 }
 0x825   :  { %v4818_v16 = vpop.f32.mrb[188].mxu0 }
 0x826   :  { %4944 = vmatprep.mubr.bf16.mxu0 %v4407_v24  ;;  %v5095_v1 = vmul.f32 %v8237_v57, %v4818_v16  ;;  %v4820_v11 = vpop.f32.mrb[189].mxu0 }
 0x827   :  { %4945 = vmatmul.mubr.bf16.gmra.mrb[252].mxu0 %v4406_v34  ;;  %v4821_v47 = vpop.f32.mrb[190].mxu0 }
 0x828   :  { %v3875_v33 = vpop.xlane.xlu1 %3874  ;;  %v5246_v19 = vsel %vm96_vm0, %v5095_v1, 0.0  ;;  %v5096_v54 = vmul.f32 %v8238_v28, %v4821_v47  ;;  %v4823_v9 = vpop.f32.mrb[191].mxu0 }
 0x829   :  { %8069 = vrcp.f32 %v3875_v33  ;;  %v13239_v62 = vadd.f32 %v5246_v19, %v15765_v36  ;;  %v15769_v36 = vld [vmem:[#allocation35_spill] sm:$0xff] }
 0x82a   :  { %v5253_v7 = vsel %vm96_vm0, %v5096_v54, 0.0  ;;  %8071 = vrcp.f32 %v3878_v56 }
 0x82b   :  { %v8066_v39 = vpop.eup %8065  ;;  %v13245_v15 = vadd.f32 %v5253_v7, %v15767_v25 }
 0x82c   :  { %v4266_v20 = vmul.f32 %v8066_v39, %v12895_v3  ;;  %v4267_v53 = vmul.f32 %v8066_v39, %v12898_v14  ;;  %v8068_v24 = vpop.eup %8067  ;;  %v8239_v14 = vld [vmem:[%s14415_s12 + $0x280] sm:$0xff]  ;;  %v3884_v39 = vpop.xlane.xlu0 %3883 }
 0x82d   :  { %v4268_v33 = vmul.f32 %v8068_v24, %v12863_v48  ;;  %v4269_v11 = vmul.f32 %v8068_v24, %v12873_v22  ;;  %v8240_v48 = vld [vmem:[%s14415_s12 + $0x288] sm:$0xff] }
 0x82e   :  { %v4408_v35 = vpack.c.bf16 %v4266_v20, %v4264_v27  ;;  %v4409_v43 = vpack.c.bf16 %v4267_v53, %v4265_v18  ;;  %v15768_v20 = vld [vmem:[#allocation70_spill] sm:$0xff] }
 0x82f   :  { %v4826_v16 = vpop.f32.mrb[192].mxu0 }
 0x830   :  { %v3881_v34 = vpop.xlane.xlu1 %3880  ;;  %4952 = vmatprep.mubr.bf16.mxu0 %v4409_v43  ;;  %v5097_v57 = vmul.f32 %v8239_v14, %v4826_v16  ;;  %v4828_v1 = vpop.f32.mrb[193].mxu0 }
 0x831   :  { %8073 = vrcp.f32 %v3881_v34  ;;  %4953 = vmatmul.mubr.bf16.gmra.mrb[0].mxu0 %v4408_v35  ;;  %v4829_v27 = vpop.f32.mrb[194].mxu0 }
 0x832   :  { %v5260_v28 = vsel %vm96_vm0, %v5097_v57, 0.0  ;;  %v4831_v54 = vpop.f32.mrb[195].mxu0  ;;  %8075 = vrcp.f32 %v3884_v39  ;;  %v3890_v7 = vpop.xlane.xlu0 %3889 }
 0x833   :  { %v8070_v3 = vpop.eup %8069  ;;  %v13259_v56 = vadd.f32 %v5260_v28, %v15768_v20 }
 0x834   :  { %v4270_v5 = vmul.f32 %v8070_v3, %v12932_v32  ;;  %v4271_v47 = vmul.f32 %v8070_v3, %v12934_v42  ;;  %v5098_v32 = vmul.f32 %v8240_v48, %v4829_v27  ;;  %v8072_v42 = vpop.eup %8071  ;;  %v8241_v27 = vld [vmem:[%s14415_s12 + $0x290] sm:$0xff] }
 0x835   :  { %v4272_v35 = vmul.f32 %v8072_v42, %v12905_v37  ;;  %v4273_v43 = vmul.f32 %v8072_v42, %v12911_v4 }
 0x836   :  { %v4410_v19 = vpack.c.bf16 %v4270_v5, %v4268_v33  ;;  %v4411_v9 = vpack.c.bf16 %v4271_v47, %v4269_v11  ;;  %v5267_v22 = vsel %vm96_vm0, %v5098_v32, 0.0 }
 0x837   :  { %v13263_v44 = vadd.f32 %v5267_v22, %v15769_v36  ;;  %v15770_v36 = vld [vmem:[#allocation92_spill] sm:$0xff] }
 0x838   :  { %4960 = vmatprep.mubr.bf16.mxu0 %v4411_v9  ;;  %v8242_v9 = vld [vmem:[%s14415_s12 + $0x298] sm:$0xff] }
 0x839   :  { %v3887_v18 = vpop.xlane.xlu1 %3886  ;;  %4961 = vmatmul.mubr.bf16.gmra.mrb[4].mxu0 %v4410_v19 }
 0x83a   :  { %8077 = vrcp.f32 %v3887_v18  ;;  %v3896_v5 = vpop.xlane.xlu0 %3895 }
 0x83b   :  { %v8074_v53 = vpop.eup %8073  ;;  %8079 = vrcp.f32 %v3890_v7 }
 0x83c   :  { %v4274_v25 = vmul.f32 %v8074_v53, %v12955_v63  ;;  %v4275_v24 = vmul.f32 %v8074_v53, %v12957_v38  ;;  %v8076_v16 = vpop.eup %8075 }
 0x83d   :  { %v4276_v57 = vmul.f32 %v8076_v16, %v12936_v31  ;;  %v4277_v63 = vmul.f32 %v8076_v16, %v12942_v29 }
 0x83e   :  { %v4412_v34 = vpack.c.bf16 %v4274_v25, %v4272_v35  ;;  %v4413_v3 = vpack.c.bf16 %v4275_v24, %v4273_v43 }
 0x840   :  { %v3893_v33 = vpop.xlane.xlu1 %3892  ;;  %4968 = vmatprep.mubr.bf16.mxu0 %v4413_v3  ;;  %v8243_v3 = vld [vmem:[%s14415_s12 + $0x2a0] sm:$0xff] }
 0x841   :  { %8081 = vrcp.f32 %v3893_v33  ;;  %4969 = vmatmul.mubr.bf16.gmra.mrb[8].mxu0 %v4412_v34 }
 0x842   :  { %8083 = vrcp.f32 %v3896_v5  ;;  %v3902_v32 = vpop.xlane.xlu0 %3901 }
 0x844   :  { %v8078_v14 = vpop.eup %8077 }
 0x845   :  { %v4278_v37 = vmul.f32 %v8078_v14, %v12987_v13  ;;  %v4279_v4 = vmul.f32 %v8078_v14, %v12994_v8  ;;  %v8080_v11 = vpop.eup %8079  ;;  %v4834_v39 = vpop.f32.mrb[196].mxu0 }
 0x846   :  { %v5099_v19 = vmul.f32 %v8241_v27, %v4834_v39  ;;  %v4836_v31 = vpop.f32.mrb[197].mxu0  ;;  %v4280_v29 = vmul.f32 %v8080_v11, %v12959_v49  ;;  %v4281_v8 = vmul.f32 %v8080_v11, %v12965_v55  ;;  %v15773_v39 = vld [vmem:[#allocation124_spill] sm:$0xff] }
 0x847   :  { %v4414_v38 = vpack.c.bf16 %v4278_v37, %v4276_v57  ;;  %v4415_v1 = vpack.c.bf16 %v4279_v4, %v4277_v63  ;;  %v4837_v28 = vpop.f32.mrb[198].mxu0 }
 0x848   :  { %v3899_v47 = vpop.xlane.xlu1 %3898  ;;  %v5274_v54 = vsel %vm96_vm0, %v5099_v19, 0.0  ;;  %v5100_v20 = vmul.f32 %v8242_v9, %v4837_v28  ;;  %v4839_v22 = vpop.f32.mrb[199].mxu0 }
 0x849   :  { %8085 = vrcp.f32 %v3899_v47  ;;  %4976 = vmatprep.mubr.bf16.mxu0 %v4415_v1  ;;  %v13285_v18 = vadd.f32 %v5274_v54, %v15770_v36  ;;  %v15772_v1 = vld [vmem:[#allocation30_spill] sm:$0xff] }
 0x84a   :  { %4977 = vmatmul.mubr.bf16.gmra.mrb[12].mxu0 %v4414_v38  ;;  %v5281_v53 = vsel %vm96_vm0, %v5100_v20, 0.0  ;;  %8087 = vrcp.f32 %v3902_v32 }
 0x84b   :  { %v8082_v13 = vpop.eup %8081 }
 0x84c   :  { %v4282_v48 = vmul.f32 %v8082_v13, %v13025_v59  ;;  %v4283_v42 = vmul.f32 %v8082_v13, %v13027_v10  ;;  %v15771_v59 = vld [vmem:[#allocation14_spill] sm:$0xff]  ;;  %v8084_v35 = vpop.eup %8083 }
 0x84d   :  { %v13289_v7 = vadd.f32 %v5281_v53, %v15771_v59  ;;  %v4284_v24 = vmul.f32 %v8084_v35, %v12999_v46  ;;  %v4285_v5 = vmul.f32 %v8084_v35, %v13004_v52  ;;  %v8244_v46 = vld [vmem:[%s14415_s12 + $0x2a8] sm:$0xff]  ;;  %v8247_v59 = vld [vmem:[%s14415_s12 + $0x2c0] sm:$0xff] }
 0x84e   :  { %v4416_v49 = vpack.c.bf16 %v4282_v48, %v4280_v29  ;;  %v4417_v55 = vpack.c.bf16 %v4283_v42, %v4281_v8  ;;  %v8245_v8 = vld [vmem:[%s14415_s12 + $0x2b0] sm:$0xff] }
 0x850   :  { %v3905_v25 = vpop.xlane.xlu1 %3904  ;;  %4984 = vmatprep.mubr.bf16.mxu0 %v4417_v55  ;;  %v4842_v10 = vpop.f32.mrb[200].mxu0 }
 0x851   :  { %8089 = vrcp.f32 %v3905_v25  ;;  %v5101_v33 = vmul.f32 %v8243_v3, %v4842_v10  ;;  %v4844_v16 = vpop.f32.mrb[201].mxu0  ;;  %v8248_v10 = vld [vmem:[%s14415_s12 + $0x2c8] sm:$0xff] }
 0x852   :  { %4985 = vmatmul.mubr.bf16.gmra.mrb[16].mxu0 %v4416_v49  ;;  %v4845_v57 = vpop.f32.mrb[202].mxu0  ;;  %v15775_v49 = vld [vmem:[#allocation61_spill] sm:$0xff] }
 0x853   :  { %v8086_v43 = vpop.eup %8085  ;;  %v5288_v63 = vsel %vm96_vm0, %v5101_v33, 0.0  ;;  %v5102_v4 = vmul.f32 %v8244_v46, %v4845_v57  ;;  %v8249_v57 = vld [vmem:[%s14415_s12 + $0x2d0] sm:$0xff] }
 0x854   :  { %v4286_v34 = vmul.f32 %v8086_v43, %v13061_v40  ;;  %v4287_v14 = vmul.f32 %v8086_v43, %v13063_v30  ;;  %v4847_v40 = vpop.f32.mrb[203].mxu0  ;;  %v13303_v11 = vadd.f32 %v5288_v63, %v15772_v1  ;;  %v8088_v52 = vpop.eup %8087 }
 0x855   :  { %v5295_v47 = vsel %vm96_vm0, %v5102_v4, 0.0  ;;  %v4288_v19 = vmul.f32 %v8088_v52, %v13032_v12  ;;  %v4289_v29 = vmul.f32 %v8088_v52, %v13039_v58  ;;  %v8246_v12 = vld [vmem:[%s14415_s12 + $0x2b8] sm:$0xff]  ;;  %v15774_v58 = vld [vmem:[#allocation99_spill] sm:$0xff] }
 0x856   :  { %v4418_v37 = vpack.c.bf16 %v4286_v34, %v4284_v24  ;;  %v4419_v38 = vpack.c.bf16 %v4287_v14, %v4285_v5  ;;  %v13307_v30 = vadd.f32 %v5295_v47, %v15773_v39  ;;  %v8251_v39 = vld [vmem:[%s14415_s12 + $0x2e0] sm:$0xff] }
 0x858   :  { %4992 = vmatprep.mubr.bf16.mxu0 %v4419_v38 }
 0x85a   :  { %4993 = vmatmul.mubr.bf16.gmra.mrb[20].mxu0 %v4418_v37  ;;  %v4850_v13 = vpop.f32.mrb[204].mxu0 }
 0x85b   :  { %v8090_v27 = vpop.eup %8089  ;;  %v5103_v48 = vmul.f32 %v8245_v8, %v4850_v13  ;;  %v4852_v32 = vpop.f32.mrb[205].mxu0 }
 0x85c   :  { %v4290_v31 = vmul.f32 %v8090_v27, %v13089_v23  ;;  %v4291_v28 = vmul.f32 %v8090_v27, %v13091_v51  ;;  %v4853_v9 = vpop.f32.mrb[206].mxu0 }
 0x85d   :  { %v5302_v22 = vsel %vm96_vm0, %v5103_v48, 0.0  ;;  %v5104_v23 = vmul.f32 %v8246_v12, %v4853_v9  ;;  %v4855_v42 = vpop.f32.mrb[207].mxu0  ;;  %v15776_v48 = vld [vmem:[#allocation60_spill] sm:$0xff]  ;;  %v8253_v9 = vld [vmem:[%s14415_s12 + $0x2f0] sm:$0xff] }
 0x85e   :  { %v4420_v54 = vpack.c.bf16 %v4290_v31, %v4288_v19  ;;  %v4421_v20 = vpack.c.bf16 %v4291_v28, %v4289_v29  ;;  %v13321_v36 = vadd.f32 %v5302_v22, %v15774_v58 }
 0x85f   :  { %v5309_v51 = vsel %vm96_vm0, %v5104_v23, 0.0 }
 0x860   :  { %5000 = vmatprep.mubr.bf16.mxu0 %v4421_v20  ;;  %v13325_v53 = vadd.f32 %v5309_v51, %v15775_v49 }
 0x862   :  { %5001 = vmatmul.mubr.bf16.gmra.mrb[24].mxu0 %v4420_v54 }
 0x863   :  { %v4858_v55 = vpop.f32.mrb[208].mxu0 }
 0x864   :  { %v5105_v35 = vmul.f32 %v8247_v59, %v4858_v55  ;;  %v4860_v25 = vpop.f32.mrb[209].mxu0 }
 0x865   :  { %v4861_v43 = vpop.f32.mrb[210].mxu0 }
 0x866   :  { %v5316_v24 = vsel %vm96_vm0, %v5105_v35, 0.0  ;;  %v5106_v34 = vmul.f32 %v8248_v10, %v4861_v43  ;;  %v4863_v3 = vpop.f32.mrb[211].mxu0  ;;  %v8255_v35 = vld [vmem:[%s14415_s12 + $0x300] sm:$0xff] }
 0x867   :  { %v13335_v33 = vadd.f32 %v5316_v24, %v12919_v21  ;;  %v8250_v21 = vld [vmem:[%s14415_s12 + $0x2d8] sm:$0xff] }
 0x868   :  { %v5323_v16 = vsel %vm96_vm0, %v5106_v34, 0.0 }
 0x869   :  { %v13339_v5 = vadd.f32 %v5323_v16, %v12927_v60  ;;  %v15777_v16 = vld [vmem:[#allocation129_spill] sm:$0xff] }
 0x86c   :  { %v4866_v14 = vpop.f32.mrb[212].mxu0 }
 0x86d   :  { %v5107_v37 = vmul.f32 %v8249_v57, %v4866_v14  ;;  %v4868_v63 = vpop.f32.mrb[213].mxu0  ;;  %v15778_v57 = vld [vmem:[#allocation49_spill] sm:$0xff] }
 0x86e   :  { %v4869_v46 = vpop.f32.mrb[214].mxu0 }
 0x86f   :  { %v5330_v4 = vsel %vm96_vm0, %v5107_v37, 0.0  ;;  %v5108_v40 = vmul.f32 %v8250_v21, %v4869_v46  ;;  %v4871_v38 = vpop.f32.mrb[215].mxu0 }
 0x870   :  { %v13349_v1 = vadd.f32 %v5330_v4, %v12997_v45  ;;  %v8252_v45 = vld [vmem:[%s14415_s12 + $0x2e8] sm:$0xff] }
 0x871   :  { %v5337_v60 = vsel %vm96_vm0, %v5108_v40, 0.0  ;;  %v8257_v40 = vld [vmem:[%s14415_s12 + $0x310] sm:$0xff] }
 0x872   :  { %v13353_v47 = vadd.f32 %v5337_v60, %v13006_v17 }
 0x874   :  { %v4874_v52 = vpop.f32.mrb[216].mxu0 }
 0x875   :  { %v5109_v27 = vmul.f32 %v8251_v39, %v4874_v52  ;;  %v4876_v19 = vpop.f32.mrb[217].mxu0 }
 0x876   :  { %v4877_v31 = vpop.f32.mrb[218].mxu0 }
 0x877   :  { %v5344_v13 = vsel %vm96_vm0, %v5109_v27, 0.0  ;;  %v5110_v29 = vmul.f32 %v8252_v45, %v4877_v31  ;;  %v4879_v28 = vpop.f32.mrb[219].mxu0  ;;  %v8258_v27 = vld [vmem:[%s14415_s12 + $0x318] sm:$0xff] }
 0x878   :  { %v13363_v8 = vadd.f32 %v5344_v13, %v13047_v0  ;;  %v8254_v0 = vld [vmem:[%s14415_s12 + $0x2f8] sm:$0xff]  ;;  %v15779_v13 = vld [vmem:[#allocation58_spill] sm:$0xff] }
 0x879   :  { %v5351_v17 = vsel %vm96_vm0, %v5110_v29, 0.0  ;;  %v15780_v28 = vld [vmem:[#allocation22_spill] sm:$0xff] }
 0x87a   :  { %v13367_v32 = vadd.f32 %v5351_v17, %v15776_v48 }
 0x87c   :  { %v4882_v54 = vpop.f32.mrb[220].mxu0 }
 0x87d   :  { %v5111_v20 = vmul.f32 %v8253_v9, %v4882_v54  ;;  %v4884_v22 = vpop.f32.mrb[221].mxu0 }
 0x87e   :  { %v4885_v12 = vpop.f32.mrb[222].mxu0 }
 0x87f   :  { %v5358_v23 = vsel %vm96_vm0, %v5111_v20, 0.0  ;;  %v5112_v42 = vmul.f32 %v8254_v0, %v4885_v12  ;;  %v4887_v58 = vpop.f32.mrb[223].mxu0  ;;  %v8259_v20 = vld [vmem:[%s14415_s12 + $0x320] sm:$0xff] }
 0x880   :  { %v13377_v51 = vadd.f32 %v5358_v23, %v13082_v2  ;;  %v8256_v2 = vld [vmem:[%s14415_s12 + $0x308] sm:$0xff] }
 0x881   :  { %v5365_v49 = vsel %vm96_vm0, %v5112_v42, 0.0 }
 0x882   :  { %v13381_v55 = vadd.f32 %v5365_v49, %v13087_v61  ;;  %v8260_v49 = vld [vmem:[%s14415_s12 + $0x328] sm:$0xff] }
 0x884   :  { %v4890_v59 = vpop.f32.mrb[224].mxu0 }
 0x885   :  { %v5113_v25 = vmul.f32 %v8255_v35, %v4890_v59  ;;  %v4892_v43 = vpop.f32.mrb[225].mxu0 }
 0x886   :  { %v4893_v24 = vpop.f32.mrb[226].mxu0  ;;  %v3908_v63 = vpop.xlane.xlu0 %3907  ;;  %v15781_v43 = vld [vmem:[#allocation105_spill] sm:$0xff] }
 0x887   :  { %v5150_v10 = vsel %vm96_vm0, %v5113_v25, 0.0  ;;  %v5114_v34 = vmul.f32 %v8256_v2, %v4893_v24  ;;  %v4895_v3 = vpop.f32.mrb[227].mxu0  ;;  %8091 = vrcp.f32 %v3908_v63 }
 0x888   :  { %v5151_v14 = vadd.f32 %v5150_v10, %v15777_v16 }
 0x889   :  { %v5157_v61 = vsel %vm96_vm0, %v5114_v34, 0.0  ;;  %v3911_v21 = vpop.xlane.xlu1 %3910 }
 0x88a   :  { %v5158_v37 = vadd.f32 %v5157_v61, %v15778_v57  ;;  %8093 = vrcp.f32 %v3911_v21 }
 0x88c   :  { %v5369_v46 = vpack.c.bf16 %v5158_v37, %v5151_v14  ;;  %v4898_v4 = vpop.f32.mrb[228].mxu0 }
 0x88d   :  { %v5115_v38 = vmul.f32 %v8257_v40, %v4898_v4  ;;  %v4900_v60 = vpop.f32.mrb[229].mxu0  ;;  %v8262_v4 = vld [vmem:[%s14415_s12 + $0x338] sm:$0xff]  ;;  %v15783_v40 = vld [vmem:[#allocation94_spill] sm:$0xff] }
 0x88e   :  { %v4901_v52 = vpop.f32.mrb[230].mxu0 }
 0x88f   :  { %v5164_v39 = vsel %vm96_vm0, %v5115_v38, 0.0  ;;  %v5116_v19 = vmul.f32 %v8258_v27, %v4901_v52  ;;  %v4903_v31 = vpop.f32.mrb[231].mxu0  ;;  %v15784_v52 = vld [vmem:[#allocation38_spill] sm:$0xff] }
 0x890   :  { %v5165_v45 = vadd.f32 %v5164_v39, %v15779_v13  ;;  %v8263_v31 = vld [vmem:[%s14415_s12 + $0x340] sm:$0xff] }
 0x891   :  { %v5171_v29 = vsel %vm96_vm0, %v5116_v19, 0.0  ;;  %v8092_v9 = vpop.eup %8091 }
 0x892   :  { %v5172_v17 = vadd.f32 %v5171_v29, %v15780_v28  ;;  %v4292_v42 = vmul.f32 %v8092_v9, %v13201_v26  ;;  %v4293_v10 = vmul.f32 %v8092_v9, %v13203_v6  ;;  %v15782_v26 = vld [vmem:[#allocation109_spill] sm:$0xff]  ;;  %v8261_v6 = vld [vmem:[%s14415_s12 + $0x330] sm:$0xff] }
 0x893   :  { %v15785_v9 = vld [vmem:[#allocation95_spill] sm:$0xff] }
 0x894   :  { %v5370_v48 = vpack.c.bf16 %v5172_v17, %v5165_v45  ;;  %v4906_v54 = vpop.f32.mrb[232].mxu0  ;;  %v8094_v0 = vpop.eup %8093  ;;  %v8264_v17 = vld [vmem:[%s14415_s12 + $0x348] sm:$0xff] }
 0x895   :  { %v5117_v22 = vmul.f32 %v8259_v20, %v4906_v54  ;;  %v4908_v12 = vpop.f32.mrb[233].mxu0  ;;  %v4294_v25 = vmul.f32 %v8094_v0, %v13205_v41  ;;  %v4295_v2 = vmul.f32 %v8094_v0, %v13209_v50 }
 0x896   :  { %v4909_v23 = vpop.f32.mrb[234].mxu0  ;;  %v15786_v12 = vld [vmem:[#allocation34_spill] sm:$0xff] }
 0x897   :  { %v5178_v58 = vsel %vm96_vm0, %v5117_v22, 0.0  ;;  %v5118_v59 = vmul.f32 %v8260_v49, %v4909_v23  ;;  %v4911_v35 = vpop.f32.mrb[235].mxu0  ;;  %v4422_v3 = vpack.c.bf16 %v4294_v25, %v4292_v42  ;;  %v4423_v14 = vpack.c.bf16 %v4295_v2, %v4293_v10  ;;  %v15787_v2 = vld [vmem:[#allocation16_spill] sm:$0xff] }
 0x898   :  { %v5179_v24 = vadd.f32 %v5178_v58, %v15781_v43  ;;  %v8265_v58 = vld [vmem:[%s14415_s12 + $0x350] sm:$0xff]  ;;  %v8266_v43 = vld [vmem:[%s14415_s12 + $0x358] sm:$0xff] }
 0x899   :  { %v5185_v34 = vsel %vm96_vm0, %v5118_v59, 0.0  ;;  %5008 = vmatprep.mubr.bf16.mxu0 %v4423_v14 }
 0x89a   :  { %v5186_v16 = vadd.f32 %v5185_v34, %v15782_v26  ;;  %5009 = vmatmul.mubr.bf16.gmra.mrb[28].mxu0 %v4422_v3  ;;  %v15788_v26 = vld [vmem:[#allocation48_spill] sm:$0xff] }
 0x89b   :  { %7134 = vmatprep.mubr.msk.bf16.mxu0 %vm96_vm0, %v5369_v46 }
 0x89c   :  { %v5371_v61 = vpack.c.bf16 %v5186_v16, %v5179_v24 }
 0x8a2   :  { %7135 = vmatmul.mubr.msk.bf16.vlgmr.msra.gmra.mrb[32].mxu0 %vm96_vm0, %v5370_v48 }
 0x8a3   :  { %7138 = vmatprep.mubr.msk.bf16.mxu0 %vm96_vm0, %v5371_v61 }
 0x8c9   :  { %v4914_v41 = vpop.f32.mrb[236].mxu0 }
 0x8ca   :  { %v5119_v50 = vmul.f32 %v8261_v6, %v4914_v41  ;;  %v4916_v57 = vpop.f32.mrb[237].mxu0  ;;  %v8267_v41 = vld [vmem:[%s14415_s12 + $0x360] sm:$0xff] }
 0x8cb   :  { %v4917_v37 = vpop.f32.mrb[238].mxu0 }
 0x8cc   :  { %v5192_v63 = vsel %vm96_vm0, %v5119_v50, 0.0  ;;  %v5120_v21 = vmul.f32 %v8262_v4, %v4917_v37  ;;  %v4919_v46 = vpop.f32.mrb[239].mxu0 }
 0x8cd   :  { %v5193_v38 = vadd.f32 %v5192_v63, %v15783_v40  ;;  %v8268_v63 = vld [vmem:[%s14415_s12 + $0x368] sm:$0xff]  ;;  %v15789_v46 = vld [vmem:[#allocation111_spill] sm:$0xff] }
 0x8ce   :  { %v5199_v60 = vsel %vm96_vm0, %v5120_v21, 0.0 }
 0x8cf   :  { %v5200_v39 = vadd.f32 %v5199_v60, %v15784_v52  ;;  %v15790_v60 = vld [vmem:[#allocation12_spill] sm:$0xff] }
 0x8d1   :  { %v5372_v27 = vpack.c.bf16 %v5200_v39, %v5193_v38 }
 0x8d3   :  { %7139 = vmatmul.mubr.msk.bf16.gmra.mrb[36].mxu0 %vm96_vm0, %v5372_v27 }
 0x8d4   :  { %v4922_v19 = vpop.f32.mrb[240].mxu0 }
 0x8d5   :  { %v5121_v13 = vmul.f32 %v8263_v31, %v4922_v19  ;;  %v4924_v45 = vpop.f32.mrb[241].mxu0  ;;  %v8269_v19 = vld [vmem:[%s14415_s12 + $0x370] sm:$0xff] }
 0x8d6   :  { %v4925_v29 = vpop.f32.mrb[242].mxu0 }
 0x8d7   :  { %v5206_v28 = vsel %vm96_vm0, %v5121_v13, 0.0  ;;  %v5122_v48 = vmul.f32 %v8264_v17, %v4925_v29  ;;  %v4927_v54 = vpop.f32.mrb[243].mxu0 }
 0x8d8   :  { %v5207_v20 = vadd.f32 %v5206_v28, %v15785_v9  ;;  %v8270_v28 = vld [vmem:[%s14415_s12 + $0x378] sm:$0xff] }
 0x8d9   :  { %v5213_v22 = vsel %vm96_vm0, %v5122_v48, 0.0 }
 0x8da   :  { %v5214_v23 = vadd.f32 %v5213_v22, %v15786_v12 }
 0x8dc   :  { %v5373_v0 = vpack.c.bf16 %v5214_v23, %v5207_v20  ;;  %v8271_v23 = vld [vmem:[%s14415_s12 + $0x380] sm:$0xff] }
 0x8de   :  { %7142 = vmatprep.mubr.msk.bf16.mxu0 %vm96_vm0, %v5373_v0 }
 0x8e6   :  { %v4930_v42 = vpop.f32.mrb[244].mxu0 }
 0x8e7   :  { %v5123_v49 = vmul.f32 %v8265_v58, %v4930_v42  ;;  %v4932_v59 = vpop.f32.mrb[245].mxu0 }
 0x8e8   :  { %v4933_v35 = vpop.f32.mrb[246].mxu0 }
 0x8e9   :  { %v5220_v25 = vsel %vm96_vm0, %v5123_v49, 0.0  ;;  %v5124_v24 = vmul.f32 %v8266_v43, %v4933_v35  ;;  %v4935_v10 = vpop.f32.mrb[247].mxu0 }
 0x8ea   :  { %v5221_v34 = vadd.f32 %v5220_v25, %v15787_v2  ;;  %v8273_v2 = vld [vmem:[%s14415_s12 + $0x390] sm:$0xff] }
 0x8eb   :  { %v5227_v3 = vsel %vm96_vm0, %v5124_v24, 0.0 }
 0x8ec   :  { %v5228_v16 = vadd.f32 %v5227_v3, %v15788_v26 }
 0x8ee   :  { %v5374_v14 = vpack.c.bf16 %v5228_v16, %v5221_v34 }
 0x8ef   :  { %v4938_v61 = vpop.f32.mrb[248].mxu0 }
 0x8f0   :  { %v5125_v6 = vmul.f32 %v8267_v41, %v4938_v61  ;;  %v4940_v50 = vpop.f32.mrb[249].mxu0  ;;  %7143 = vmatmul.mubr.msk.bf16.gmra.mrb[40].mxu0 %vm96_vm0, %v5374_v14 }
 0x8f1   :  { %v4941_v57 = vpop.f32.mrb[250].mxu0 }
 0x8f2   :  { %v5234_v37 = vsel %vm96_vm0, %v5125_v6, 0.0  ;;  %v5126_v4 = vmul.f32 %v8268_v63, %v4941_v57  ;;  %v4943_v21 = vpop.f32.mrb[251].mxu0 }
 0x8f3   :  { %v5235_v40 = vadd.f32 %v5234_v37, %v15789_v46  ;;  %v8275_v37 = vld [vmem:[%s14415_s12 + $0x3a0] sm:$0xff] }
 0x8f4   :  { %v5241_v38 = vsel %vm96_vm0, %v5126_v4, 0.0 }
 0x8f5   :  { %v5242_v52 = vadd.f32 %v5241_v38, %v15790_v60 }
 0x8f7   :  { %v5375_v39 = vpack.c.bf16 %v5242_v52, %v5235_v40 }
 0x8f9   :  { %7146 = vmatprep.mubr.msk.bf16.mxu1 %vm96_vm0, %v5375_v39 }
 0x8fa   :  { %v4946_v27 = vpop.f32.mrb[252].mxu0 }
 0x8fb   :  { %v5127_v31 = vmul.f32 %v8269_v19, %v4946_v27  ;;  %v4948_v13 = vpop.f32.mrb[253].mxu0  ;;  %v8277_v19 = vld [vmem:[%s14415_s12 + $0x3b0] sm:$0xff] }
 0x8fc   :  { %v4949_v45 = vpop.f32.mrb[254].mxu0 }
 0x8fd   :  { %v5248_v29 = vsel %vm96_vm0, %v5127_v31, 0.0  ;;  %v5128_v17 = vmul.f32 %v8270_v28, %v4949_v45  ;;  %v4951_v48 = vpop.f32.mrb[255].mxu0 }
 0x8fe   :  { %v5249_v54 = vadd.f32 %v5248_v29, %v13239_v62  ;;  %v8272_v62 = vld [vmem:[%s14415_s12 + $0x388] sm:$0xff] }
 0x8ff   :  { %v5255_v9 = vsel %vm96_vm0, %v5128_v17, 0.0 }
 0x900   :  { %v5256_v20 = vadd.f32 %v5255_v9, %v13245_v15 }
 0x902   :  { %v5376_v22 = vpack.c.bf16 %v5256_v20, %v5249_v54 }
 0x904   :  { %v4954_v12 = vpop.f32.mrb[0].mxu0  ;;  %7147 = vmatmul.mubr.msk.bf16.vlgmr.msra.gmra.mrb[0].mxu1 %vm96_vm0, %v5376_v22  ;;  %v8279_v22 = vld [vmem:[%s14415_s12 + $0x3c0] sm:$0xff] }
 0x905   :  { %v5129_v0 = vmul.f32 %v8271_v23, %v4954_v12  ;;  %v4956_v42 = vpop.f32.mrb[1].mxu0 }
 0x906   :  { %v4957_v58 = vpop.f32.mrb[2].mxu0 }
 0x907   :  { %v5262_v49 = vsel %vm96_vm0, %v5129_v0, 0.0  ;;  %v5130_v59 = vmul.f32 %v8272_v62, %v4957_v58  ;;  %v4959_v35 = vpop.f32.mrb[3].mxu0 }
 0x908   :  { %v5263_v15 = vadd.f32 %v5262_v49, %v13259_v56  ;;  %v8274_v56 = vld [vmem:[%s14415_s12 + $0x398] sm:$0xff] }
 0x909   :  { %v5269_v25 = vsel %vm96_vm0, %v5130_v59, 0.0 }
 0x90a   :  { %v5270_v43 = vadd.f32 %v5269_v25, %v13263_v44  ;;  %v8281_v25 = vld [vmem:[%s14415_s12 + $0x3d0] sm:$0xff] }
 0x90c   :  { %v5377_v24 = vpack.c.bf16 %v5270_v43, %v5263_v15  ;;  %v4962_v10 = vpop.f32.mrb[4].mxu0 }
 0x90d   :  { %v5131_v34 = vmul.f32 %v8273_v2, %v4962_v10  ;;  %v4964_v3 = vpop.f32.mrb[5].mxu0 }
 0x90e   :  { %v4965_v26 = vpop.f32.mrb[6].mxu0  ;;  %7150 = vmatprep.mubr.msk.bf16.mxu1 %vm96_vm0, %v5377_v24 }
 0x90f   :  { %v5276_v16 = vsel %vm96_vm0, %v5131_v34, 0.0  ;;  %v5132_v14 = vmul.f32 %v8274_v56, %v4965_v26  ;;  %v4967_v61 = vpop.f32.mrb[7].mxu0 }
 0x910   :  { %v5277_v44 = vadd.f32 %v5276_v16, %v13285_v18  ;;  %v8276_v18 = vld [vmem:[%s14415_s12 + $0x3a8] sm:$0xff]  ;;  %v8283_v61 = vld [vmem:[%s14415_s12 + $0x3e0] sm:$0xff] }
 0x911   :  { %v5283_v41 = vsel %vm96_vm0, %v5132_v14, 0.0 }
 0x912   :  { %v5284_v6 = vadd.f32 %v5283_v41, %v13289_v7 }
 0x914   :  { %v5378_v50 = vpack.c.bf16 %v5284_v6, %v5277_v44  ;;  %v4970_v57 = vpop.f32.mrb[8].mxu0 }
 0x915   :  { %v5133_v63 = vmul.f32 %v8275_v37, %v4970_v57  ;;  %v4972_v4 = vpop.f32.mrb[9].mxu0 }
 0x916   :  { %v4973_v21 = vpop.f32.mrb[10].mxu0  ;;  %7151 = vmatmul.mubr.msk.bf16.gmra.mrb[4].mxu1 %vm96_vm0, %v5378_v50 }
 0x917   :  { %v5290_v46 = vsel %vm96_vm0, %v5133_v63, 0.0  ;;  %v5134_v40 = vmul.f32 %v8276_v18, %v4973_v21  ;;  %v4975_v38 = vpop.f32.mrb[11].mxu0  ;;  %v8285_v18 = vld [vmem:[%s14415_s12 + $0x3f0] sm:$0xff] }
 0x918   :  { %v5291_v7 = vadd.f32 %v5290_v46, %v13303_v11  ;;  %v8278_v11 = vld [vmem:[%s14415_s12 + $0x3b8] sm:$0xff] }
 0x919   :  { %v5297_v60 = vsel %vm96_vm0, %v5134_v40, 0.0 }
 0x91a   :  { %v5298_v52 = vadd.f32 %v5297_v60, %v13307_v30 }
 0x91c   :  { %v5379_v39 = vpack.c.bf16 %v5298_v52, %v5291_v7 }
 0x91d   :  { %v4978_v27 = vpop.f32.mrb[12].mxu0 }
 0x91e   :  { %v5135_v31 = vmul.f32 %v8277_v19, %v4978_v27  ;;  %v4980_v13 = vpop.f32.mrb[13].mxu0  ;;  %7154 = vmatprep.mubr.msk.bf16.mxu1 %vm96_vm0, %v5379_v39 }
 0x91f   :  { %v4981_v45 = vpop.f32.mrb[14].mxu0 }
 0x920   :  { %v5304_v29 = vsel %vm96_vm0, %v5135_v31, 0.0  ;;  %v5136_v28 = vmul.f32 %v8278_v11, %v4981_v45  ;;  %v4983_v17 = vpop.f32.mrb[15].mxu0  ;;  %v13565_v31 = vld [vmem:[%s14406_s3] ss:$0 sm:$0xff] }
 0x921   :  { %v5305_v30 = vadd.f32 %v5304_v29, %v13321_v36  ;;  %v8280_v36 = vld [vmem:[%s14415_s12 + $0x3c8] sm:$0xff] }
 0x922   :  { %v5311_v48 = vsel %vm96_vm0, %v5136_v28, 0.0 }
 0x923   :  { %v5312_v54 = vadd.f32 %v5311_v48, %v13325_v53 }
 0x925   :  { %v5380_v9 = vpack.c.bf16 %v5312_v54, %v5305_v30  ;;  %v4986_v20 = vpop.f32.mrb[16].mxu0 }
 0x926   :  { %v5137_v12 = vmul.f32 %v8279_v22, %v4986_v20  ;;  %v4988_v23 = vpop.f32.mrb[17].mxu0  ;;  %v8289_v22 = vld [vmem:[%s14403_s0 + $0x8] sm:$0xff] }
 0x927   :  { %v4989_v0 = vpop.f32.mrb[18].mxu0  ;;  %7155 = vmatmul.mubr.msk.bf16.gmra.mrb[8].mxu1 %vm96_vm0, %v5380_v9  ;;  %v8288_v9 = vld [vmem:[%s14403_s0 + $0x10] sm:$0xff] }
 0x928   :  { %v5318_v42 = vsel %vm96_vm0, %v5137_v12, 0.0  ;;  %v5138_v58 = vmul.f32 %v8280_v36, %v4989_v0  ;;  %v4991_v49 = vpop.f32.mrb[19].mxu0  ;;  %v8290_v0 = vld [vmem:[%s14403_s0 + $0x18] sm:$0xff] }
 0x929   :  { %v5319_v53 = vadd.f32 %v5318_v42, %v13335_v33  ;;  %v8282_v33 = vld [vmem:[%s14415_s12 + $0x3d8] sm:$0xff] }
 0x92a   :  { %v5325_v62 = vsel %vm96_vm0, %v5138_v58, 0.0 }
 0x92b   :  { %v5326_v59 = vadd.f32 %v5325_v62, %v13339_v5 }
 0x92d   :  { %v5381_v35 = vpack.c.bf16 %v5326_v59, %v5319_v53  ;;  %v4994_v15 = vpop.f32.mrb[20].mxu0 }
 0x92e   :  { %v5139_v43 = vmul.f32 %v8281_v25, %v4994_v15  ;;  %v4996_v24 = vpop.f32.mrb[21].mxu0 }
 0x92f   :  { %v4997_v10 = vpop.f32.mrb[22].mxu0  ;;  %7158 = vmatprep.mubr.msk.bf16.mxu1 %vm96_vm0, %v5381_v35 }
 0x930   :  { %v5332_v2 = vsel %vm96_vm0, %v5139_v43, 0.0  ;;  %v5140_v34 = vmul.f32 %v8282_v33, %v4997_v10  ;;  %v4999_v3 = vpop.f32.mrb[23].mxu0  ;;  %v8291_v43 = vld [vmem:[%s14403_s0 + $0x20] sm:$0xff]  ;;  %v8292_v33 = vld [vmem:[%s14403_s0 + $0x30] sm:$0xff] }
 0x931   :  { %v5333_v5 = vadd.f32 %v5332_v2, %v13349_v1  ;;  %v8284_v1 = vld [vmem:[%s14415_s12 + $0x3e8] sm:$0xff] }
 0x932   :  { %v5339_v26 = vsel %vm96_vm0, %v5140_v34, 0.0  ;;  %v8293_v3 = vld [vmem:[%s14403_s0 + $0x28] sm:$0xff] }
 0x933   :  { %v5340_v16 = vadd.f32 %v5339_v26, %v13353_v47 }
 0x935   :  { %v5382_v56 = vpack.c.bf16 %v5340_v16, %v5333_v5  ;;  %v5002_v14 = vpop.f32.mrb[24].mxu0  ;;  %v8294_v16 = vld [vmem:[%s14403_s0 + $0x38] sm:$0xff] }
 0x936   :  { %v5141_v44 = vmul.f32 %v8283_v61, %v5002_v14  ;;  %v5004_v41 = vpop.f32.mrb[25].mxu0 }
 0x937   :  { %v5005_v6 = vpop.f32.mrb[26].mxu0  ;;  %7159 = vmatmul.mubr.msk.bf16.gmra.mrb[12].mxu1 %vm96_vm0, %v5382_v56 }
 0x938   :  { %v5346_v50 = vsel %vm96_vm0, %v5141_v44, 0.0  ;;  %v5142_v57 = vmul.f32 %v8284_v1, %v5005_v6  ;;  %v5007_v37 = vpop.f32.mrb[27].mxu0 }
 0x939   :  { %v5347_v47 = vadd.f32 %v5346_v50, %v13363_v8  ;;  %v8286_v8 = vld [vmem:[%s14415_s12 + $0x3f8] sm:$0xff] }
 0x93a   :  { %v5353_v63 = vsel %vm96_vm0, %v5142_v57, 0.0 }
 0x93b   :  { %v5354_v4 = vadd.f32 %v5353_v63, %v13367_v32 }
 0x93d   :  { %v5383_v21 = vpack.c.bf16 %v5354_v4, %v5347_v47  ;;  %v8295_v47 = vld [vmem:[%s14403_s0 + $0x40] sm:$0xff] }
 0x93f   :  { %7162 = vmatprep.mubr.msk.bf16.mxu1 %vm96_vm0, %v5383_v21 }
 0x96d   :  { %v5010_v46 = vpop.f32.mrb[28].mxu0 }
 0x96e   :  { %v5143_v40 = vmul.f32 %v8285_v18, %v5010_v46  ;;  %v5012_v38 = vpop.f32.mrb[29].mxu0  ;;  %v8296_v46 = vld [vmem:[%s14403_s0 + $0x50] sm:$0xff] }
 0x96f   :  { %v5013_v7 = vpop.f32.mrb[30].mxu0 }
 0x970   :  { %v5360_v60 = vsel %vm96_vm0, %v5143_v40, 0.0  ;;  %v5144_v52 = vmul.f32 %v8286_v8, %v5013_v7  ;;  %v5015_v39 = vpop.f32.mrb[31].mxu0  ;;  %v8297_v40 = vld [vmem:[%s14403_s0 + $0x48] sm:$0xff] }
 0x971   :  { %v5361_v32 = vadd.f32 %v5360_v60, %v13377_v51  ;;  %v8298_v60 = vld [vmem:[%s14403_s0 + $0x58] sm:$0xff] }
 0x972   :  { %v5367_v27 = vsel %vm96_vm0, %v5144_v52, 0.0 }
 0x973   :  { %v5368_v19 = vadd.f32 %v5367_v27, %v13381_v55  ;;  %v8287_v55 = vld [vmem:[%s14403_s0] sm:$0xff] }
 0x975   :  { %v5384_v13 = vpack.c.bf16 %v5368_v19, %v5361_v32  ;;  %v7136_v45 = vpop.f32.mrb[32].mxu0 }
 0x976   :  { %v5482_v29 = vpop.f32.mrb[33].mxu0  ;;  %v5491_v11 = vadd.f32 %v7136_v45, %v13565_v31 }
 0x977   :  { %v5483_v28 = vadd.f32 %v13565_v31, %v5482_v29  ;;  %v7137_v17 = vpop.f32.mrb[34].mxu0  ;;  %7163 = vmatmul.mubr.msk.bf16.gmra.mrb[16].mxu1 %vm96_vm0, %v5384_v13 }
 0x978   :  { %v5485_v51 = vpop.f32.mrb[35].mxu0  ;;  %v5494_v48 = vadd.f32 %v7137_v17, %v13565_v31  ;;  %v13580_v20 = vadd.f32 %v8288_v9, %v5491_v11  ;;  %v8301_v9 = vld [vmem:[%s14403_s0 + $0x68] sm:$0xff] }
 0x979   :  { %v13573_v30 = vadd.f32 %v8287_v55, %v5483_v28  ;;  %v5486_v54 = vadd.f32 %v13565_v31, %v5485_v51  ;;  %v8299_v28 = vld [vmem:[%s14403_s0 + $0x60] sm:$0xff] }
 0x97a   :  { %v13592_v42 = vadd.f32 %v8290_v0, %v5494_v48  ;;  %v5649_v58 = vsel %vm96_vm0, %v13580_v20, 0.0  ;;  %v8300_v48 = vld [vmem:[%s14403_s0 + $0x70] sm:$0xff]  ;;  %v8302_v0 = vld [vmem:[%s14403_s0 + $0x78] sm:$0xff] }
 0x97b   :  { %v13585_v12 = vadd.f32 %v8289_v22, %v5486_v54  ;;  %v5643_v23 = vsel %vm96_vm0, %v13573_v30, 0.0 }
 0x97c   :  { %5644 = vadd.xlane.f32.xlu0 %v5643_v23  ;;  %v5652_v49 = vsel %vm96_vm0, %v13592_v42, 0.0 }
 0x97d   :  { %v5646_v36 = vsel %vm96_vm0, %v13585_v12, 0.0 }
 0x97e   :  { %5647 = vadd.xlane.f32.xlu1 %v5646_v36 }
 0x980   :  { %5650 = vadd.xlane.f32.xlu0 %v5649_v58 }
 0x982   :  { %5653 = vadd.xlane.f32.xlu1 %v5652_v49 }
 0x9a6   :  { %v7140_v53 = vpop.f32.mrb[36].mxu0 }
 0x9a7   :  { %v5498_v62 = vpop.f32.mrb[37].mxu0  ;;  %v5507_v59 = vadd.f32 %v7140_v53, %v13565_v31 }
 0x9a8   :  { %v5499_v35 = vadd.f32 %v13565_v31, %v5498_v62  ;;  %v7141_v15 = vpop.f32.mrb[38].mxu0 }
 0x9a9   :  { %v5501_v25 = vpop.f32.mrb[39].mxu0  ;;  %v5510_v10 = vadd.f32 %v7141_v15, %v13565_v31  ;;  %v13612_v34 = vadd.f32 %v8292_v33, %v5507_v59 }
 0x9aa   :  { %v13605_v24 = vadd.f32 %v8291_v43, %v5499_v35  ;;  %v5502_v2 = vadd.f32 %v13565_v31, %v5501_v25 }
 0x9ab   :  { %v13624_v56 = vadd.f32 %v8294_v16, %v5510_v10  ;;  %v5661_v61 = vsel %vm96_vm0, %v13612_v34, 0.0  ;;  %v8303_v10 = vld [vmem:[%s14403_s0 + $0x80] sm:$0xff] }
 0x9ac   :  { %v13617_v5 = vadd.f32 %v8293_v3, %v5502_v2  ;;  %v5655_v26 = vsel %vm96_vm0, %v13605_v24, 0.0 }
 0x9ad   :  { %5656 = vadd.xlane.f32.xlu0 %v5655_v26  ;;  %v5664_v44 = vsel %vm96_vm0, %v13624_v56, 0.0  ;;  %v8304_v26 = vld [vmem:[%s14403_s0 + $0x90] sm:$0xff] }
 0x9ae   :  { %v5658_v14 = vsel %vm96_vm0, %v13617_v5, 0.0 }
 0x9af   :  { %5659 = vadd.xlane.f32.xlu1 %v5658_v14  ;;  %v8305_v14 = vld [vmem:[%s14403_s0 + $0x88] sm:$0xff] }
 0x9b1   :  { %5662 = vadd.xlane.f32.xlu0 %v5661_v61 }
 0x9b3   :  { %5665 = vadd.xlane.f32.xlu1 %v5664_v44 }
 0x9c3   :  { %v7144_v41 = vpop.f32.mrb[40].mxu0 }
 0x9c4   :  { %v5514_v6 = vpop.f32.mrb[41].mxu0  ;;  %v5523_v50 = vadd.f32 %v7144_v41, %v13565_v31  ;;  %v8306_v41 = vld [vmem:[%s14403_s0 + $0x98] sm:$0xff] }
 0x9c5   :  { %v5515_v1 = vadd.f32 %v13565_v31, %v5514_v6  ;;  %v7145_v57 = vpop.f32.mrb[42].mxu0 }
 0x9c6   :  { %v5517_v37 = vpop.f32.mrb[43].mxu0  ;;  %v5526_v4 = vadd.f32 %v7145_v57, %v13565_v31  ;;  %v13644_v18 = vadd.f32 %v8296_v46, %v5523_v50 }
 0x9c7   :  { %v13637_v63 = vadd.f32 %v8295_v47, %v5515_v1  ;;  %v5518_v21 = vadd.f32 %v13565_v31, %v5517_v37 }
 0x9c8   :  { %v13656_v8 = vadd.f32 %v8298_v60, %v5526_v4  ;;  %v5673_v39 = vsel %vm96_vm0, %v13644_v18, 0.0 }
 0x9c9   :  { %v13649_v38 = vadd.f32 %v8297_v40, %v5518_v21  ;;  %v5667_v7 = vsel %vm96_vm0, %v13637_v63, 0.0 }
 0x9ca   :  { %5668 = vadd.xlane.f32.xlu0 %v5667_v7  ;;  %v5676_v32 = vsel %vm96_vm0, %v13656_v8, 0.0  ;;  %v8307_v7 = vld [vmem:[%s14403_s0 + $0xa0] sm:$0xff] }
 0x9cb   :  { %v5670_v52 = vsel %vm96_vm0, %v13649_v38, 0.0 }
 0x9cc   :  { %5671 = vadd.xlane.f32.xlu1 %v5670_v52 }
 0x9ce   :  { %5674 = vadd.xlane.f32.xlu0 %v5673_v39 }
 0x9d0   :  { %5677 = vadd.xlane.f32.xlu1 %v5676_v32  ;;  %v8308_v32 = vld [vmem:[%s14403_s0 + $0xb0] sm:$0xff] }
 0x9d7   :  { %v7148_v27 = vpop.f32.mrb[0].mxu1 }
 0x9d8   :  { %v5530_v19 = vpop.f32.mrb[1].mxu1  ;;  %v5539_v13 = vadd.f32 %v7148_v27, %v13565_v31 }
 0x9d9   :  { %v5531_v45 = vadd.f32 %v13565_v31, %v5530_v19  ;;  %v7149_v29 = vpop.f32.mrb[2].mxu1  ;;  %v8309_v19 = vld [vmem:[%s14403_s0 + $0xa8] sm:$0xff] }
 0x9da   :  { %v5533_v11 = vpop.f32.mrb[3].mxu1  ;;  %v5542_v51 = vadd.f32 %v7149_v29, %v13565_v31  ;;  %v13676_v54 = vadd.f32 %v8300_v48, %v5539_v13  ;;  %v8310_v29 = vld [vmem:[%s14403_s0 + $0xb8] sm:$0xff] }
 0x9db   :  { %v13669_v17 = vadd.f32 %v8299_v28, %v5531_v45  ;;  %v5534_v55 = vadd.f32 %v13565_v31, %v5533_v11 }
 0x9dc   :  { %v13688_v36 = vadd.f32 %v8302_v0, %v5542_v51  ;;  %v5685_v49 = vsel %vm96_vm0, %v13676_v54, 0.0 }
 0x9dd   :  { %15791 = vst [vmem:[#allocation67_spill] sm:$0xff] %v13669_v17  ;;  %v13681_v22 = vadd.f32 %v8301_v9, %v5534_v55  ;;  %v5679_v23 = vsel %vm96_vm0, %v13669_v17, 0.0 }
 0x9de   :  { %5680 = vadd.xlane.f32.xlu0 %v5679_v23  ;;  %15793 = vst [vmem:[#allocation91_spill] sm:$0xff] %v13688_v36  ;;  %v5688_v53 = vsel %vm96_vm0, %v13688_v36, 0.0 }
 0x9df   :  { %15792 = vst [vmem:[#allocation7_spill] sm:$0xff] %v13681_v22  ;;  %v5682_v58 = vsel %vm96_vm0, %v13681_v22, 0.0 }
 0x9e0   :  { %5683 = vadd.xlane.f32.xlu1 %v5682_v58 }
 0x9e2   :  { %5686 = vadd.xlane.f32.xlu0 %v5685_v49 }
 0x9e4   :  { %5689 = vadd.xlane.f32.xlu1 %v5688_v53  ;;  %v8311_v53 = vld [vmem:[%s14403_s0 + $0xc0] sm:$0xff] }
 0x9e9   :  { %v7152_v62 = vpop.f32.mrb[4].mxu1 }
 0x9ea   :  { %v5546_v59 = vpop.f32.mrb[5].mxu1  ;;  %v5555_v35 = vadd.f32 %v7152_v62, %v13565_v31 }
 0x9eb   :  { %v5547_v15 = vadd.f32 %v13565_v31, %v5546_v59  ;;  %v7153_v25 = vpop.f32.mrb[6].mxu1 }
 0x9ec   :  { %v5549_v43 = vpop.f32.mrb[7].mxu1  ;;  %v5558_v33 = vadd.f32 %v7153_v25, %v13565_v31  ;;  %v13708_v16 = vadd.f32 %v8304_v26, %v5555_v35 }
 0x9ed   :  { %v13701_v2 = vadd.f32 %v8303_v10, %v5547_v15  ;;  %v5550_v3 = vadd.f32 %v13565_v31, %v5549_v43  ;;  %v8312_v15 = vld [vmem:[%s14403_s0 + $0xd0] sm:$0xff]  ;;  %v8313_v43 = vld [vmem:[%s14403_s0 + $0xc8] sm:$0xff] }
 0x9ee   :  { %15795 = vst [vmem:[#allocation125_spill] sm:$0xff] %v13708_v16  ;;  %v13720_v6 = vadd.f32 %v8306_v41, %v5558_v33  ;;  %v5697_v1 = vsel %vm96_vm0, %v13708_v16, 0.0 }
 0x9ef   :  { %15794 = vst [vmem:[#allocation65_spill] sm:$0xff] %v13701_v2  ;;  %v13713_v61 = vadd.f32 %v8305_v14, %v5550_v3  ;;  %v5691_v44 = vsel %vm96_vm0, %v13701_v2, 0.0  ;;  %v8314_v3 = vld [vmem:[%s14403_s0 + $0xd8] sm:$0xff] }
 0x9f0   :  { %5692 = vadd.xlane.f32.xlu0 %v5691_v44  ;;  %15797 = vst [vmem:[#allocation41_spill] sm:$0xff] %v13720_v6  ;;  %v5700_v57 = vsel %vm96_vm0, %v13720_v6, 0.0 }
 0x9f1   :  { %15796 = vst [vmem:[#allocation118_spill] sm:$0xff] %v13713_v61  ;;  %v5694_v50 = vsel %vm96_vm0, %v13713_v61, 0.0 }
 0x9f2   :  { %5695 = vadd.xlane.f32.xlu1 %v5694_v50 }
 0x9f4   :  { %5698 = vadd.xlane.f32.xlu0 %v5697_v1 }
 0x9f6   :  { %5701 = vadd.xlane.f32.xlu1 %v5700_v57 }
 0x9fa   :  { %v7156_v37 = vpop.f32.mrb[8].mxu1 }
 0x9fb   :  { %v5562_v47 = vpop.f32.mrb[9].mxu1  ;;  %v5571_v4 = vadd.f32 %v7156_v37, %v13565_v31 }
 0x9fc   :  { %v5563_v21 = vadd.f32 %v13565_v31, %v5562_v47  ;;  %v7157_v46 = vpop.f32.mrb[10].mxu1 }
 0x9fd   :  { %v5565_v40 = vpop.f32.mrb[11].mxu1  ;;  %v5574_v52 = vadd.f32 %v7157_v46, %v13565_v31  ;;  %v13740_v27 = vadd.f32 %v8308_v32, %v5571_v4  ;;  %v8315_v32 = vld [vmem:[%s14403_s0 + $0xe0] sm:$0xff] }
 0x9fe   :  { %v13733_v60 = vadd.f32 %v8307_v7, %v5563_v21  ;;  %v5566_v39 = vadd.f32 %v13565_v31, %v5565_v40 }
 0x9ff   :  { %15799 = vst [vmem:[#allocation122_spill] sm:$0xff] %v13740_v27  ;;  %v13752_v11 = vadd.f32 %v8310_v29, %v5574_v52  ;;  %v5709_v51 = vsel %vm96_vm0, %v13740_v27, 0.0 }
 0xa00   :  { %15798 = vst [vmem:[#allocation107_spill] sm:$0xff] %v13733_v60  ;;  %v13745_v13 = vadd.f32 %v8309_v19, %v5566_v39  ;;  %v5703_v45 = vsel %vm96_vm0, %v13733_v60, 0.0 }
 0xa01   :  { %5704 = vadd.xlane.f32.xlu0 %v5703_v45  ;;  %15801 = vst [vmem:[#allocation133_spill] sm:$0xff] %v13752_v11  ;;  %v5712_v55 = vsel %vm96_vm0, %v13752_v11, 0.0 }
 0xa02   :  { %15800 = vst [vmem:[#allocation97_spill] sm:$0xff] %v13745_v13  ;;  %v5706_v28 = vsel %vm96_vm0, %v13745_v13, 0.0 }
 0xa03   :  { %5707 = vadd.xlane.f32.xlu1 %v5706_v28 }
 0xa05   :  { %5710 = vadd.xlane.f32.xlu0 %v5709_v51 }
 0xa07   :  { %5713 = vadd.xlane.f32.xlu1 %v5712_v55 }
 0xa09   :  { %v5645_v50 = vpop.xlane.xlu0 %5644 }
 0xa0a   :  { %v7160_v48 = vpop.f32.mrb[12].mxu1  ;;  %v5739_v37 = vmul.f32 0.0625, %v5645_v50 }
 0xa0b   :  { %v5578_v9 = vpop.f32.mrb[13].mxu1  ;;  %v5587_v23 = vadd.f32 %v7160_v48, %v13565_v31  ;;  %v5648_v1 = vpop.xlane.xlu1 %5647  ;;  %v8316_v48 = vld [vmem:[%s14403_s0 + $0xf0] sm:$0xff] }
 0xa0c   :  { %v5579_v0 = vadd.f32 %v13565_v31, %v5578_v9  ;;  %v7161_v58 = vpop.f32.mrb[14].mxu1  ;;  %v5740_v39 = vmul.f32 0.0625, %v5648_v1  ;;  %v13802_v28 = vsub.f32 %v13573_v30, %v5739_v37 }
 0xa0d   :  { %v5581_v49 = vpop.f32.mrb[15].mxu1  ;;  %v5590_v59 = vadd.f32 %v7161_v58, %v13565_v31  ;;  %v13772_v25 = vadd.f32 %v8312_v15, %v5587_v23  ;;  %v5651_v47 = vpop.xlane.xlu0 %5650  ;;  %v8317_v23 = vld [vmem:[%s14403_s0 + $0xe8] sm:$0xff] }
 0xa0e   :  { %v13765_v62 = vadd.f32 %v8311_v53, %v5579_v0  ;;  %v5582_v35 = vadd.f32 %v13565_v31, %v5581_v49  ;;  %v5741_v55 = vmul.f32 0.0625, %v5651_v47  ;;  %v13817_v49 = vsub.f32 %v13585_v12, %v5740_v39 }
 0xa0f   :  { %15803 = vst [vmem:[#allocation90_spill] sm:$0xff] %v13772_v25  ;;  %v13784_v26 = vadd.f32 %v8314_v3, %v5590_v59  ;;  %v5721_v44 = vsel %vm96_vm0, %v13772_v25, 0.0  ;;  %v5654_v7 = vpop.xlane.xlu1 %5653  ;;  %v8318_v59 = vld [vmem:[%s14403_s0 + $0xf8] sm:$0xff] }
 0xa10   :  { %15802 = vst [vmem:[#allocation101_spill] sm:$0xff] %v13765_v62  ;;  %v13777_v10 = vadd.f32 %v8313_v43, %v5582_v35  ;;  %v5715_v33 = vsel %vm96_vm0, %v13765_v62, 0.0  ;;  %v5742_v53 = vmul.f32 0.0625, %v5654_v7  ;;  %v13827_v43 = vsub.f32 %v13580_v20, %v5741_v55 }
 0xa11   :  { %5716 = vadd.xlane.f32.xlu0 %v5715_v33  ;;  %15805 = vst [vmem:[#allocation89_spill] sm:$0xff] %v13784_v26  ;;  %v5724_v41 = vsel %vm96_vm0, %v13784_v26, 0.0 }
 0xa12   :  { %15804 = vst [vmem:[#allocation68_spill] sm:$0xff] %v13777_v10  ;;  %v5718_v14 = vsel %vm96_vm0, %v13777_v10, 0.0 }
 0xa13   :  { %5719 = vadd.xlane.f32.xlu1 %v5718_v14  ;;  %v5803_v14 = vmul.f32 %v13802_v28, %v13802_v28 }
 0xa15   :  { %5722 = vadd.xlane.f32.xlu0 %v5721_v44 }
 0xa17   :  { %5725 = vadd.xlane.f32.xlu1 %v5724_v41  ;;  %v13834_v41 = vsub.f32 %v13592_v42, %v5742_v53 }
 0xa3a   :  { %v5657_v51 = vpop.xlane.xlu0 %5656 }
 0xa3b   :  { %v5743_v33 = vmul.f32 0.0625, %v5657_v51 }
 0xa3c   :  { %v5660_v58 = vpop.xlane.xlu1 %5659 }
 0xa3d   :  { %v5744_v50 = vmul.f32 0.0625, %v5660_v58  ;;  %v13841_v47 = vsub.f32 %v13605_v24, %v5743_v33 }
 0xa3e   :  { %v5663_v44 = vpop.xlane.xlu0 %5662 }
 0xa3f   :  { %v13847_v7 = vsub.f32 %v13617_v5, %v5744_v50 }
 0xa40   :  { %v5666_v37 = vpop.xlane.xlu1 %5665 }
 0xa4a   :  { %v7164_v57 = vpop.f32.mrb[16].mxu1 }
 0xa4b   :  { %v5594_v4 = vpop.f32.mrb[17].mxu1  ;;  %v5603_v21 = vadd.f32 %v7164_v57, %v13565_v31  ;;  %v5804_v57 = vmul.f32 %v13817_v49, %v13817_v49 }
 0xa4c   :  { %v5595_v46 = vadd.f32 %v13565_v31, %v5594_v4  ;;  %v7165_v40 = vpop.f32.mrb[18].mxu1  ;;  %v5745_v4 = vmul.f32 0.0625, %v5663_v44 }
 0xa4d   :  { %v5597_v52 = vpop.f32.mrb[19].mxu1  ;;  %v5606_v45 = vadd.f32 %v7165_v40, %v13565_v31  ;;  %v13807_v9 = vadd.f32 %v8316_v48, %v5603_v21  ;;  %v5835_v21 = vsel %vm96_vm0, %v5803_v14, 0.0  ;;  %v5838_v39 = vsel %vm96_vm0, %v5804_v57, 0.0 }
 0xa4e   :  { %v13797_v19 = vadd.f32 %v8315_v32, %v5595_v46  ;;  %v5598_v29 = vadd.f32 %v13565_v31, %v5597_v52  ;;  %v5805_v46 = vmul.f32 %v13827_v43, %v13827_v43  ;;  %v5746_v52 = vmul.f32 0.0625, %v5666_v37 }
 0xa4f   :  { %15807 = vst [vmem:[#allocation136_spill] sm:$0xff] %v13807_v9  ;;  %v13822_v35 = vadd.f32 %v8318_v59, %v5606_v45  ;;  %v5733_v3 = vsel %vm96_vm0, %v13807_v9, 0.0  ;;  %v5806_v32 = vmul.f32 %v13834_v41, %v13834_v41  ;;  %v5807_v48 = vmul.f32 %v13841_v47, %v13841_v47 }
 0xa50   :  { %15806 = vst [vmem:[#allocation104_spill] sm:$0xff] %v13797_v19  ;;  %v13812_v0 = vadd.f32 %v8317_v23, %v5598_v29  ;;  %v5727_v31 = vsel %vm96_vm0, %v13797_v19, 0.0  ;;  %v13853_v29 = vsub.f32 %v13612_v34, %v5745_v4  ;;  %v5841_v55 = vsel %vm96_vm0, %v5805_v46, 0.0 }
 0xa51   :  { %5728 = vadd.xlane.f32.xlu0 %v5727_v31  ;;  %15809 = vst [vmem:[#allocation66_spill] sm:$0xff] %v13822_v35  ;;  %v5736_v1 = vsel %vm96_vm0, %v13822_v35, 0.0  ;;  %v13859_v31 = vsub.f32 %v13624_v56, %v5746_v52  ;;  %v5844_v53 = vsel %vm96_vm0, %v5806_v32, 0.0  ;;  %v5808_v59 = vmul.f32 %v13847_v7, %v13847_v7 }
 0xa52   :  { %15808 = vst [vmem:[#allocation98_spill] sm:$0xff] %v13812_v0  ;;  %v5730_v15 = vsel %vm96_vm0, %v13812_v0, 0.0  ;;  %v5847_v14 = vsel %vm96_vm0, %v5807_v48, 0.0  ;;  %v5809_v44 = vmul.f32 %v13853_v29, %v13853_v29 }
 0xa53   :  { %5731 = vadd.xlane.f32.xlu1 %v5730_v15  ;;  %v5850_v57 = vsel %vm96_vm0, %v5808_v59, 0.0  ;;  %v5810_v37 = vmul.f32 %v13859_v31, %v13859_v31 }
 0xa55   :  { %5734 = vadd.xlane.f32.xlu0 %v5733_v3  ;;  %v5856_v52 = vsel %vm96_vm0, %v5810_v37, 0.0 }
 0xa57   :  { %5737 = vadd.xlane.f32.xlu1 %v5736_v1  ;;  %v5669_v40 = vpop.xlane.xlu0 %5668 }
 0xa58   :  { %v5747_v51 = vmul.f32 0.0625, %v5669_v40 }
 0xa59   :  { %5836 = vadd.xlane.f32.xlu0 %v5835_v21  ;;  %v5672_v45 = vpop.xlane.xlu1 %5671  ;;  %v5853_v21 = vsel %vm96_vm0, %v5809_v44, 0.0 }
 0xa5a   :  { %v5748_v58 = vmul.f32 0.0625, %v5672_v45  ;;  %v13865_v33 = vsub.f32 %v13637_v63, %v5747_v51 }
 0xa5b   :  { %5839 = vadd.xlane.f32.xlu1 %v5838_v39  ;;  %v5675_v23 = vpop.xlane.xlu0 %5674 }
 0xa5c   :  { %v5749_v3 = vmul.f32 0.0625, %v5675_v23  ;;  %v13871_v50 = vsub.f32 %v13649_v38, %v5748_v58  ;;  %v5811_v46 = vmul.f32 %v13865_v33, %v13865_v33 }
 0xa5d   :  { %5842 = vadd.xlane.f32.xlu0 %v5841_v55  ;;  %v5678_v15 = vpop.xlane.xlu1 %5677 }
 0xa5e   :  { %v5750_v1 = vmul.f32 0.0625, %v5678_v15  ;;  %v13877_v4 = vsub.f32 %v13644_v18, %v5749_v3  ;;  %v5812_v39 = vmul.f32 %v13871_v50, %v13871_v50  ;;  %v5859_v32 = vsel %vm96_vm0, %v5811_v46, 0.0 }
 0xa5f   :  { %5845 = vadd.xlane.f32.xlu1 %v5844_v53 }
 0xa60   :  { %v13883_v40 = vsub.f32 %v13656_v8, %v5750_v1  ;;  %v5813_v45 = vmul.f32 %v13877_v4, %v13877_v4  ;;  %v5862_v48 = vsel %vm96_vm0, %v5812_v39, 0.0 }
 0xa61   :  { %5848 = vadd.xlane.f32.xlu0 %v5847_v14 }
 0xa62   :  { %v5814_v23 = vmul.f32 %v13883_v40, %v13883_v40  ;;  %v5865_v15 = vsel %vm96_vm0, %v5813_v45, 0.0 }
 0xa63   :  { %5851 = vadd.xlane.f32.xlu1 %v5850_v57 }
 0xa64   :  { %v5868_v1 = vsel %vm96_vm0, %v5814_v23, 0.0 }
 0xa65   :  { %5854 = vadd.xlane.f32.xlu0 %v5853_v21 }
 0xa67   :  { %5857 = vadd.xlane.f32.xlu1 %v5856_v52 }
 0xa69   :  { %5860 = vadd.xlane.f32.xlu0 %v5859_v32 }
 0xa6b   :  { %v5681_v51 = vpop.xlane.xlu0 %5680  ;;  %5863 = vadd.xlane.f32.xlu1 %v5862_v48 }
 0xa6c   :  { %v5751_v55 = vmul.f32 0.0625, %v5681_v51 }
 0xa6d   :  { %v5684_v58 = vpop.xlane.xlu1 %5683  ;;  %5866 = vadd.xlane.f32.xlu0 %v5865_v15 }
 0xa6e   :  { %v13895_v53 = vsub.f32 %v13669_v17, %v5751_v55  ;;  %v5752_v59 = vmul.f32 0.0625, %v5684_v58 }
 0xa6f   :  { %v5687_v3 = vpop.xlane.xlu0 %5686  ;;  %5869 = vadd.xlane.f32.xlu1 %v5868_v1 }
 0xa70   :  { %v13899_v14 = vsub.f32 %v13681_v22, %v5752_v59  ;;  %v5753_v44 = vmul.f32 0.0625, %v5687_v3  ;;  %v5815_v57 = vmul.f32 %v13895_v53, %v13895_v53 }
 0xa71   :  { %v5690_v37 = vpop.xlane.xlu1 %5689 }
 0xa72   :  { %v13905_v21 = vsub.f32 %v13676_v54, %v5753_v44  ;;  %v5754_v46 = vmul.f32 0.0625, %v5690_v37  ;;  %v5871_v52 = vsel %vm96_vm0, %v5815_v57, 0.0  ;;  %v5816_v39 = vmul.f32 %v13899_v14, %v13899_v14 }
 0xa73   :  { %5872 = vadd.xlane.f32.xlu0 %v5871_v52 }
 0xa74   :  { %v13911_v32 = vsub.f32 %v13688_v36, %v5754_v46  ;;  %v5874_v45 = vsel %vm96_vm0, %v5816_v39, 0.0  ;;  %v5817_v51 = vmul.f32 %v13905_v21, %v13905_v21 }
 0xa75   :  { %5875 = vadd.xlane.f32.xlu1 %v5874_v45 }
 0xa76   :  { %v5877_v55 = vsel %vm96_vm0, %v5817_v51, 0.0  ;;  %v5818_v48 = vmul.f32 %v13911_v32, %v13911_v32 }
 0xa77   :  { %5878 = vadd.xlane.f32.xlu0 %v5877_v55 }
 0xa78   :  { %v5880_v23 = vsel %vm96_vm0, %v5818_v48, 0.0 }
 0xa79   :  { %5881 = vadd.xlane.f32.xlu1 %v5880_v23 }
 0xa7d   :  { %v5693_v58 = vpop.xlane.xlu0 %5692 }
 0xa7e   :  { %v5755_v59 = vmul.f32 0.0625, %v5693_v58 }
 0xa7f   :  { %v5696_v15 = vpop.xlane.xlu1 %5695 }
 0xa80   :  { %v13921_v3 = vsub.f32 %v13701_v2, %v5755_v59  ;;  %v5756_v44 = vmul.f32 0.0625, %v5696_v15 }
 0xa81   :  { %v5699_v1 = vpop.xlane.xlu0 %5698 }
 0xa82   :  { %v13924_v57 = vsub.f32 %v13713_v61, %v5756_v44  ;;  %v5757_v37 = vmul.f32 0.0625, %v5699_v1  ;;  %v5819_v46 = vmul.f32 %v13921_v3, %v13921_v3  ;;  %v7258_v1 = vld [vmem:[%s14407_s4] sm:$0xff]  }
 0xa83   :  { %v5702_v52 = vpop.xlane.xlu1 %5701  ;;  %7166 = vmatprep.subr.bf16.mxu0 %v7258_v1 }
 0xa84   :  { %v13929_v39 = vsub.f32 %v13708_v16, %v5757_v37  ;;  %v5758_v45 = vmul.f32 0.0625, %v5702_v52  ;;  %v5883_v51 = vsel %vm96_vm0, %v5819_v46, 0.0  ;;  %v5820_v55 = vmul.f32 %v13924_v57, %v13924_v57  ;;  %7167 = vmatpush3.bf16.msra.mxu0 %v7258_v1 }
 0xa85   :  { %5884 = vadd.xlane.f32.xlu0 %v5883_v51 }
 0xa86   :  { %v13935_v48 = vsub.f32 %v13720_v6, %v5758_v45  ;;  %v5886_v23 = vsel %vm96_vm0, %v5820_v55, 0.0  ;;  %v5821_v58 = vmul.f32 %v13929_v39, %v13929_v39 }
 0xa87   :  { %5887 = vadd.xlane.f32.xlu1 %v5886_v23 }
 0xa88   :  { %v5889_v59 = vsel %vm96_vm0, %v5821_v58, 0.0  ;;  %v5822_v15 = vmul.f32 %v13935_v48, %v13935_v48 }
 0xa89   :  { %5890 = vadd.xlane.f32.xlu0 %v5889_v59 }
 0xa8a   :  { %v5892_v44 = vsel %vm96_vm0, %v5822_v15, 0.0 }
 0xa8b   :  { %5893 = vadd.xlane.f32.xlu1 %v5892_v44 }
 0xa8e   :  { %v5705_v37 = vpop.xlane.xlu0 %5704 }
 0xa8f   :  { %v5759_v46 = vmul.f32 0.0625, %v5705_v37 }
 0xa90   :  { %v5708_v52 = vpop.xlane.xlu1 %5707 }
 0xa91   :  { %v13948_v45 = vsub.f32 %v13733_v60, %v5759_v46  ;;  %v5760_v51 = vmul.f32 0.0625, %v5708_v52 }
 0xa92   :  { %v5711_v55 = vpop.xlane.xlu0 %5710 }
 0xa93   :  { %v13951_v23 = vsub.f32 %v13745_v13, %v5760_v51  ;;  %v5761_v58 = vmul.f32 0.0625, %v5711_v55  ;;  %v5823_v59 = vmul.f32 %v13948_v45, %v13948_v45 }
 0xa94   :  { %v5714_v15 = vpop.xlane.xlu1 %5713 }
 0xa95   :  { %v13956_v44 = vsub.f32 %v13740_v27, %v5761_v58  ;;  %v5762_v61 = vmul.f32 0.0625, %v5714_v15  ;;  %v5895_v1 = vsel %vm96_vm0, %v5823_v59, 0.0  ;;  %v5824_v37 = vmul.f32 %v13951_v23, %v13951_v23 }
 0xa96   :  { %5896 = vadd.xlane.f32.xlu0 %v5895_v1 }
 0xa97   :  { %v13962_v46 = vsub.f32 %v13752_v11, %v5762_v61  ;;  %v5898_v52 = vsel %vm96_vm0, %v5824_v37, 0.0  ;;  %v5825_v51 = vmul.f32 %v13956_v44, %v13956_v44 }
 0xa98   :  { %5899 = vadd.xlane.f32.xlu1 %v5898_v52 }
 0xa99   :  { %v5901_v55 = vsel %vm96_vm0, %v5825_v51, 0.0  ;;  %v5826_v58 = vmul.f32 %v13962_v46, %v13962_v46 }
 0xa9a   :  { %5902 = vadd.xlane.f32.xlu0 %v5901_v55 }
 0xa9b   :  { %v5904_v59 = vsel %vm96_vm0, %v5826_v58, 0.0 }
 0xa9c   :  { %5905 = vadd.xlane.f32.xlu1 %v5904_v59 }
 0xa9e   :  { %v5717_v15 = vpop.xlane.xlu0 %5716 }
 0xa9f   :  { %v5763_v1 = vmul.f32 0.0625, %v5717_v15 }
 0xaa0   :  { %v5720_v13 = vpop.xlane.xlu1 %5719 }
 0xaa1   :  { %v13972_v61 = vsub.f32 %v13765_v62, %v5763_v1  ;;  %v5764_v37 = vmul.f32 0.0625, %v5720_v13 }
 0xaa2   :  { %v5723_v11 = vpop.xlane.xlu0 %5722 }
 0xaa3   :  { %v13975_v60 = vsub.f32 %v13777_v10, %v5764_v37  ;;  %v5765_v52 = vmul.f32 0.0625, %v5723_v11  ;;  %v5827_v51 = vmul.f32 %v13972_v61, %v13972_v61 }
 0xaa4   :  { %v5726_v27 = vpop.xlane.xlu1 %5725 }
 0xaa5   :  { %v13980_v55 = vsub.f32 %v13772_v25, %v5765_v52  ;;  %v5766_v58 = vmul.f32 0.0625, %v5726_v27  ;;  %v5907_v59 = vsel %vm96_vm0, %v5827_v51, 0.0  ;;  %v5828_v15 = vmul.f32 %v13975_v60, %v13975_v60 }
 0xaa6   :  { %5908 = vadd.xlane.f32.xlu0 %v5907_v59 }
 0xaa7   :  { %v13986_v13 = vsub.f32 %v13784_v26, %v5766_v58  ;;  %v5910_v1 = vsel %vm96_vm0, %v5828_v15, 0.0  ;;  %v5829_v11 = vmul.f32 %v13980_v55, %v13980_v55 }
 0xaa8   :  { %5911 = vadd.xlane.f32.xlu1 %v5910_v1 }
 0xaa9   :  { %v5913_v37 = vsel %vm96_vm0, %v5829_v11, 0.0  ;;  %v5830_v27 = vmul.f32 %v13986_v13, %v13986_v13 }
 0xaaa   :  { %5914 = vadd.xlane.f32.xlu0 %v5913_v37 }
 0xaab   :  { %v5916_v52 = vsel %vm96_vm0, %v5830_v27, 0.0 }
 0xaac   :  { %5917 = vadd.xlane.f32.xlu1 %v5916_v52 }
 0xade   :  { %v5729_v51 = vpop.xlane.xlu0 %5728 }
 0xadf   :  { %v5767_v59 = vmul.f32 0.0625, %v5729_v51 }
 0xae0   :  { %v5732_v10 = vpop.xlane.xlu1 %5731 }
 0xae1   :  { %v13996_v58 = vsub.f32 %v13797_v19, %v5767_v59  ;;  %v5768_v15 = vmul.f32 0.0625, %v5732_v10 }
 0xae2   :  { %v5735_v26 = vpop.xlane.xlu0 %5734 }
 0xae3   :  { %v13999_v62 = vsub.f32 %v13812_v0, %v5768_v15  ;;  %v5769_v1 = vmul.f32 0.0625, %v5735_v26  ;;  %v5831_v11 = vmul.f32 %v13996_v58, %v13996_v58 }
 0xae4   :  { %v5738_v25 = vpop.xlane.xlu1 %5737 }
 0xae5   :  { %v14004_v37 = vsub.f32 %v13807_v9, %v5769_v1  ;;  %v5770_v27 = vmul.f32 0.0625, %v5738_v25  ;;  %v5919_v52 = vsel %vm96_vm0, %v5831_v11, 0.0  ;;  %v5832_v51 = vmul.f32 %v13999_v62, %v13999_v62 }
 0xae6   :  { %5920 = vadd.xlane.f32.xlu0 %v5919_v52  ;;  %v5837_v10 = vpop.xlane.xlu0 %5836 }
 0xae7   :  { %v14010_v59 = vsub.f32 %v13822_v35, %v5770_v27  ;;  %v5931_v15 = vmul.f32 0.0625, %v5837_v10  ;;  %v5922_v26 = vsel %vm96_vm0, %v5832_v51, 0.0  ;;  %v5833_v0 = vmul.f32 %v14004_v37, %v14004_v37 }
 0xae8   :  { %5923 = vadd.xlane.f32.xlu1 %v5922_v26  ;;  %v5840_v1 = vpop.xlane.xlu1 %5839 }
 0xae9   :  { %v5963_v19 = vadd.f32 1e-05, %v5931_v15  ;;  %v5932_v25 = vmul.f32 0.0625, %v5840_v1  ;;  %v5925_v11 = vsel %vm96_vm0, %v5833_v0, 0.0  ;;  %v5834_v9 = vmul.f32 %v14010_v59, %v14010_v59 }
 0xaea   :  { %5926 = vadd.xlane.f32.xlu0 %v5925_v11  ;;  %v5843_v52 = vpop.xlane.xlu0 %5842 }
 0xaeb   :  { %8095 = vrsqrt.f32 %v5963_v19  ;;  %v5964_v27 = vadd.f32 1e-05, %v5932_v25  ;;  %v5933_v35 = vmul.f32 0.0625, %v5843_v52  ;;  %v5928_v10 = vsel %vm96_vm0, %v5834_v9, 0.0  ;;  %v14022_v9 = vld [vmem:[%s14413_s10] ss:$0 sm:$0xff] }
 0xaec   :  { %5929 = vadd.xlane.f32.xlu1 %v5928_v10  ;;  %v5846_v51 = vpop.xlane.xlu1 %5845 }
 0xaed   :  { %8097 = vrsqrt.f32 %v5964_v27  ;;  %v5965_v6 = vadd.f32 1e-05, %v5933_v35  ;;  %v5934_v26 = vmul.f32 0.0625, %v5846_v51 }
 0xaee   :  { %v5849_v2 = vpop.xlane.xlu0 %5848 }
 0xaef   :  { %8099 = vrsqrt.f32 %v5965_v6  ;;  %v5966_v15 = vadd.f32 1e-05, %v5934_v26  ;;  %v5935_v1 = vmul.f32 0.0625, %v5849_v2 }
 0xaf0   :  { %v5852_v0 = vpop.xlane.xlu1 %5851 }
 0xaf1   :  { %8101 = vrsqrt.f32 %v5966_v15  ;;  %v5967_v16 = vadd.f32 1e-05, %v5935_v1  ;;  %v5936_v22 = vmul.f32 0.0625, %v5852_v0  ;;  %v14030_v0 = vld [vmem:[%s14414_s11] ss:$0 sm:$0xff] }
 0xaf2   :  { %v5855_v11 = vpop.xlane.xlu0 %5854 }
 0xaf3   :  { %8103 = vrsqrt.f32 %v5967_v16  ;;  %v5968_v19 = vadd.f32 1e-05, %v5936_v22  ;;  %v5937_v25 = vmul.f32 0.0625, %v5855_v11 }
 0xaf4   :  { %v5858_v52 = vpop.xlane.xlu1 %5857 }
 0xaf5   :  { %v8096_v36 = vpop.eup %8095  ;;  %8105 = vrsqrt.f32 %v5968_v19  ;;  %v5969_v35 = vadd.f32 1e-05, %v5937_v25  ;;  %v5938_v6 = vmul.f32 0.0625, %v5858_v52 }
 0xaf6   :  { %v6027_v2 = vmul.f32 %v8096_v36, %v13802_v28  ;;  %v5861_v27 = vpop.xlane.xlu0 %5860 }
 0xaf7   :  { %v8098_v10 = vpop.eup %8097  ;;  %8107 = vrsqrt.f32 %v5969_v35  ;;  %v5970_v51 = vadd.f32 1e-05, %v5938_v6  ;;  %v5939_v26 = vmul.f32 0.0625, %v5861_v27 }
 0xaf8   :  { %v6028_v22 = vmul.f32 %v8098_v10, %v13817_v49  ;;  %v5864_v16 = vpop.xlane.xlu1 %5863  ;;  %v6065_v15 = vmul.f32 %v14022_v9, %v6027_v2 }
 0xaf9   :  { %v8100_v1 = vpop.eup %8099  ;;  %8109 = vrsqrt.f32 %v5970_v51  ;;  %v5971_v11 = vadd.f32 1e-05, %v5939_v26  ;;  %v5940_v19 = vmul.f32 0.0625, %v5864_v16 }
 0xafa   :  { %v6029_v36 = vmul.f32 %v8100_v1, %v13827_v43  ;;  %v5867_v28 = vpop.xlane.xlu0 %5866  ;;  %v6066_v25 = vmul.f32 %v14022_v9, %v6028_v22  ;;  %v6103_v10 = vadd.f32 %v14030_v0, %v6065_v15 }
 0xafb   :  { %v8102_v52 = vpop.eup %8101  ;;  %8111 = vrsqrt.f32 %v5971_v11  ;;  %v5972_v49 = vadd.f32 1e-05, %v5940_v19  ;;  %v5941_v35 = vmul.f32 0.0625, %v5867_v28 }
 0xafc   :  { %v6067_v6 = vmul.f32 %v14022_v9, %v6029_v36  ;;  %v6030_v2 = vmul.f32 %v8102_v52, %v13834_v41  ;;  %v5870_v27 = vpop.xlane.xlu1 %5869  ;;  %v6104_v51 = vadd.f32 %v14030_v0, %v6066_v25 }
 0xafd   :  { %v8104_v26 = vpop.eup %8103  ;;  %8113 = vrsqrt.f32 %v5972_v49  ;;  %v5973_v16 = vadd.f32 1e-05, %v5941_v35  ;;  %v5942_v43 = vmul.f32 0.0625, %v5870_v27 }
 0xafe   :  { %v6068_v1 = vmul.f32 %v14022_v9, %v6030_v2  ;;  %v6031_v22 = vmul.f32 %v8104_v26, %v13841_v47  ;;  %v6135_v19 = vpack.c.bf16 %v6104_v51, %v6103_v10  ;;  %v6105_v41 = vadd.f32 %v14030_v0, %v6067_v6 }
 0xaff   :  { %v8106_v28 = vpop.eup %8105  ;;  %8115 = vrsqrt.f32 %v5973_v16  ;;  %v5974_v36 = vadd.f32 1e-05, %v5942_v43 }
 0xb00   :  { %v5873_v11 = vpop.xlane.xlu0 %5872  ;;  %v6106_v15 = vadd.f32 %v14030_v0, %v6068_v1  ;;  %v6032_v25 = vmul.f32 %v8106_v28, %v13847_v7  ;;  %7168 = vmatprep.mubr.msk.bf16.mxu0 %vm96_vm0, %v6135_v19  ;;  %v6069_v49 = vmul.f32 %v14022_v9, %v6031_v22 }
 0xb01   :  { %v5943_v17 = vmul.f32 0.0625, %v5873_v11  ;;  %v8108_v35 = vpop.eup %8107  ;;  %8117 = vrsqrt.f32 %v5974_v36 }
 0xb02   :  { %v5876_v52 = vpop.xlane.xlu1 %5875  ;;  %v6136_v27 = vpack.c.bf16 %v6106_v15, %v6105_v41  ;;  %v6033_v10 = vmul.f32 %v8108_v35, %v13853_v29  ;;  %v6070_v26 = vmul.f32 %v14022_v9, %v6032_v25 }
 0xb03   :  { %v5975_v47 = vadd.f32 1e-05, %v5943_v17  ;;  %v5944_v2 = vmul.f32 0.0625, %v5876_v52  ;;  %v8110_v6 = vpop.eup %8109  ;;  %v6107_v17 = vadd.f32 %v14030_v0, %v6069_v49 }
 0xb04   :  { %v5879_v51 = vpop.xlane.xlu0 %5878  ;;  %v6071_v7 = vmul.f32 %v14022_v9, %v6033_v10  ;;  %v6034_v1 = vmul.f32 %v8110_v6, %v13859_v31  ;;  %7169 = vmatmul.mubr.msk.bf16.vlgmr.msra.gmra.mrb[44].mxu0 %vm96_vm0, %v6136_v27  ;;  %v6108_v22 = vadd.f32 %v14030_v0, %v6070_v26 }
 0xb05   :  { %8119 = vrsqrt.f32 %v5975_v47  ;;  %v5976_v16 = vadd.f32 1e-05, %v5944_v2  ;;  %v5945_v43 = vmul.f32 0.0625, %v5879_v51  ;;  %v8112_v19 = vpop.eup %8111 }
 0xb06   :  { %v5882_v11 = vpop.xlane.xlu1 %5881  ;;  %v6072_v36 = vmul.f32 %v14022_v9, %v6034_v1  ;;  %v6035_v41 = vmul.f32 %v8112_v19, %v13865_v33  ;;  %v6137_v15 = vpack.c.bf16 %v6108_v22, %v6107_v17  ;;  %v6109_v31 = vadd.f32 %v14030_v0, %v6071_v7 }
 0xb07   :  { %8121 = vrsqrt.f32 %v5976_v16  ;;  %v5977_v29 = vadd.f32 1e-05, %v5945_v43  ;;  %v5946_v28 = vmul.f32 0.0625, %v5882_v11  ;;  %v8114_v25 = vpop.eup %8113 }
 0xb08   :  { %v6110_v35 = vadd.f32 %v14030_v0, %v6072_v36  ;;  %v6036_v49 = vmul.f32 %v8114_v25, %v13871_v50  ;;  %7172 = vmatprep.mubr.msk.bf16.mxu0 %vm96_vm0, %v6137_v15  ;;  %v6073_v47 = vmul.f32 %v14022_v9, %v6035_v41  ;;  %v7260_v15 = vld [vmem:[%s14409_s6 + $0x8] sm:$0xff]  }
 0xb09   :  { %8123 = vrsqrt.f32 %v5977_v29  ;;  %v5978_v52 = vadd.f32 1e-05, %v5946_v28  ;;  %v8116_v2 = vpop.eup %8115 }
 0xb0a   :  { %v6138_v27 = vpack.c.bf16 %v6110_v35, %v6109_v31  ;;  %v6037_v10 = vmul.f32 %v8116_v2, %v13877_v4  ;;  %v6074_v33 = vmul.f32 %v14022_v9, %v6036_v49  ;;  %v6111_v50 = vadd.f32 %v14030_v0, %v6073_v47 }
 0xb0b   :  { %8125 = vrsqrt.f32 %v5978_v52  ;;  %v8118_v51 = vpop.eup %8117 }
 0xb0c   :  { %v6075_v26 = vmul.f32 %v14022_v9, %v6037_v10  ;;  %v6038_v6 = vmul.f32 %v8118_v51, %v13883_v40  ;;  %7173 = vmatmul.mubr.msk.bf16.gmra.mrb[48].mxu0 %vm96_vm0, %v6138_v27  ;;  %v6112_v16 = vadd.f32 %v14030_v0, %v6074_v33 }
 0xb0e   :  { %v6076_v7 = vmul.f32 %v14022_v9, %v6038_v6  ;;  %v6139_v11 = vpack.c.bf16 %v6112_v16, %v6111_v50  ;;  %v6113_v22 = vadd.f32 %v14030_v0, %v6075_v26 }
 0xb0f   :  { %v8120_v43 = vpop.eup %8119 }
 0xb10   :  { %v6039_v1 = vmul.f32 %v8120_v43, %v13895_v53  ;;  %v6114_v19 = vadd.f32 %v14030_v0, %v6076_v7  ;;  %7176 = vmatprep.mubr.msk.bf16.mxu0 %vm96_vm0, %v6139_v11  ;;  %v7259_v53 = vld [vmem:[%s14409_s6] sm:$0xff]  }
 0xb11   :  { %v8122_v4 = vpop.eup %8121  ;;  %7200 = vmatprep.subr.bf16.mxu1 %v7259_v53 }
 0xb12   :  { %v5885_v17 = vpop.xlane.xlu0 %5884  ;;  %v6040_v40 = vmul.f32 %v8122_v4, %v13899_v14  ;;  %v6077_v41 = vmul.f32 %v14022_v9, %v6039_v1  ;;  %v6140_v25 = vpack.c.bf16 %v6114_v19, %v6113_v22  ;;  %7201 = vmatpush3.bf16.msra.mxu1 %v7259_v53 }
 0xb13   :  { %v5947_v29 = vmul.f32 0.0625, %v5885_v17  ;;  %v8124_v28 = vpop.eup %8123  ;;  %7202 = vmatprep.subr.bf16.mxu1 %v7260_v15 }
 0xb14   :  { %v5888_v36 = vpop.xlane.xlu1 %5887  ;;  %v6041_v52 = vmul.f32 %v8124_v28, %v13905_v21  ;;  %v6078_v47 = vmul.f32 %v14022_v9, %v6040_v40  ;;  %7177 = vmatmul.mubr.msk.bf16.gmra.mrb[52].mxu0 %vm96_vm0, %v6140_v25  ;;  %v6115_v21 = vadd.f32 %v14030_v0, %v6077_v41 }
 0xb15   :  { %v5979_v31 = vadd.f32 1e-05, %v5947_v29  ;;  %v5948_v14 = vmul.f32 0.0625, %v5888_v36  ;;  %v8126_v35 = vpop.eup %8125 }
 0xb16   :  { %v5891_v49 = vpop.xlane.xlu0 %5890  ;;  %v6079_v2 = vmul.f32 %v14022_v9, %v6041_v52  ;;  %v6042_v27 = vmul.f32 %v8126_v35, %v13911_v32  ;;  %v6116_v26 = vadd.f32 %v14030_v0, %v6078_v47  ;;  %7203 = vmatpush3.bf16.msra.mxu1 %v7260_v15 }
 0xb17   :  { %8127 = vrsqrt.f32 %v5979_v31  ;;  %v5980_v10 = vadd.f32 1e-05, %v5948_v14  ;;  %v5949_v33 = vmul.f32 0.0625, %v5891_v49 }
 0xb18   :  { %v5894_v51 = vpop.xlane.xlu1 %5893  ;;  %v6080_v6 = vmul.f32 %v14022_v9, %v6042_v27  ;;  %v6141_v43 = vpack.c.bf16 %v6116_v26, %v6115_v21  ;;  %v6117_v32 = vadd.f32 %v14030_v0, %v6079_v2 }
 0xb19   :  { %8129 = vrsqrt.f32 %v5980_v10  ;;  %v5950_v50 = vmul.f32 0.0625, %v5894_v51  ;;  %v5981_v16 = vadd.f32 1e-05, %v5949_v33 }
 0xb1a   :  { %v6118_v7 = vadd.f32 %v14030_v0, %v6080_v6  ;;  %7180 = vmatprep.mubr.msk.bf16.mxu0 %vm96_vm0, %v6141_v43 }
 0xb1b   :  { %v5982_v1 = vadd.f32 1e-05, %v5950_v50  ;;  %8131 = vrsqrt.f32 %v5981_v16 }
 0xb1c   :  { %v6142_v11 = vpack.c.bf16 %v6118_v7, %v6117_v32 }
 0xb1d   :  { %8133 = vrsqrt.f32 %v5982_v1 }
 0xb1e   :  { %7181 = vmatmul.mubr.msk.bf16.gmra.mrb[56].mxu0 %vm96_vm0, %v6142_v11 }
 0xb21   :  { %v8128_v4 = vpop.eup %8127 }
 0xb22   :  { %v6043_v17 = vmul.f32 %v8128_v4, %v13921_v3 }
 0xb23   :  { %v8130_v22 = vpop.eup %8129  ;;  %v5897_v19 = vpop.xlane.xlu0 %5896 }
 0xb24   :  { %v6044_v40 = vmul.f32 %v8130_v22, %v13924_v57  ;;  %v5951_v29 = vmul.f32 0.0625, %v5897_v19  ;;  %v6081_v36 = vmul.f32 %v14022_v9, %v6043_v17 }
 0xb25   :  { %v5900_v28 = vpop.xlane.xlu1 %5899  ;;  %v8132_v41 = vpop.eup %8131 }
 0xb26   :  { %v5983_v53 = vadd.f32 1e-05, %v5951_v29  ;;  %v5952_v15 = vmul.f32 0.0625, %v5900_v28  ;;  %v6082_v25 = vmul.f32 %v14022_v9, %v6044_v40  ;;  %v6045_v31 = vmul.f32 %v8132_v41, %v13929_v39 }
 0xb27   :  { %v8134_v52 = vpop.eup %8133  ;;  %v5903_v14 = vpop.xlane.xlu0 %5902  ;;  %v6119_v2 = vadd.f32 %v14030_v0, %v6081_v36 }
 0xb28   :  { %v6046_v35 = vmul.f32 %v8134_v52, %v13935_v48  ;;  %8135 = vrsqrt.f32 %v5983_v53  ;;  %v5984_v3 = vadd.f32 1e-05, %v5952_v15  ;;  %v5953_v49 = vmul.f32 0.0625, %v5903_v14 }
 0xb29   :  { %v6083_v57 = vmul.f32 %v14022_v9, %v6045_v31  ;;  %v5906_v47 = vpop.xlane.xlu1 %5905  ;;  %v6120_v27 = vadd.f32 %v14030_v0, %v6082_v25 }
 0xb2a   :  { %v6084_v10 = vmul.f32 %v14022_v9, %v6046_v35  ;;  %8137 = vrsqrt.f32 %v5984_v3  ;;  %v5985_v33 = vadd.f32 1e-05, %v5953_v49  ;;  %v5954_v51 = vmul.f32 0.0625, %v5906_v47 }
 0xb2b   :  { %v6143_v21 = vpack.c.bf16 %v6120_v27, %v6119_v2  ;;  %v6121_v39 = vadd.f32 %v14030_v0, %v6083_v57 }
 0xb2c   :  { %v6122_v48 = vadd.f32 %v14030_v0, %v6084_v10  ;;  %8139 = vrsqrt.f32 %v5985_v33  ;;  %v5986_v26 = vadd.f32 1e-05, %v5954_v51 }
 0xb2d   :  { %7184 = vmatprep.mubr.msk.bf16.mxu0 %vm96_vm0, %v6143_v21 }
 0xb2e   :  { %v6144_v6 = vpack.c.bf16 %v6122_v48, %v6121_v39  ;;  %8141 = vrsqrt.f32 %v5986_v26 }
 0xb30   :  { %7185 = vmatmul.mubr.msk.bf16.gmra.mrb[60].mxu0 %vm96_vm0, %v6144_v6 }
 0xb32   :  { %v8136_v50 = vpop.eup %8135 }
 0xb33   :  { %v6047_v16 = vmul.f32 %v8136_v50, %v13948_v45  ;;  %v5909_v43 = vpop.xlane.xlu0 %5908 }
 0xb34   :  { %v8138_v32 = vpop.eup %8137  ;;  %v5955_v7 = vmul.f32 0.0625, %v5909_v43 }
 0xb35   :  { %v6048_v1 = vmul.f32 %v8138_v32, %v13951_v23  ;;  %v5912_v11 = vpop.xlane.xlu1 %5911  ;;  %v6085_v4 = vmul.f32 %v14022_v9, %v6047_v16 }
 0xb36   :  { %v8140_v17 = vpop.eup %8139  ;;  %v5987_v22 = vadd.f32 1e-05, %v5955_v7  ;;  %v5956_v19 = vmul.f32 0.0625, %v5912_v11  ;;  %v7262_v7 = vld [vmem:[%s14409_s6 + $0x18] sm:$0xff]  }
 0xb37   :  { %v6049_v40 = vmul.f32 %v8140_v17, %v13956_v44  ;;  %v5915_v29 = vpop.xlane.xlu0 %5914  ;;  %v6086_v28 = vmul.f32 %v14022_v9, %v6048_v1  ;;  %v6123_v25 = vadd.f32 %v14030_v0, %v6085_v4 }
 0xb38   :  { %v8142_v36 = vpop.eup %8141  ;;  %8143 = vrsqrt.f32 %v5987_v22  ;;  %v5988_v41 = vadd.f32 1e-05, %v5956_v19  ;;  %v5957_v45 = vmul.f32 0.0625, %v5915_v29 }
 0xb39   :  { %v6087_v53 = vmul.f32 %v14022_v9, %v6049_v40  ;;  %v6050_v15 = vmul.f32 %v8142_v36, %v13962_v46  ;;  %v5918_v23 = vpop.xlane.xlu1 %5917  ;;  %v6124_v52 = vadd.f32 %v14030_v0, %v6086_v28 }
 0xb3a   :  { %8145 = vrsqrt.f32 %v5988_v41  ;;  %v5989_v31 = vadd.f32 1e-05, %v5957_v45  ;;  %v5958_v14 = vmul.f32 0.0625, %v5918_v23 }
 0xb3b   :  { %v6088_v44 = vmul.f32 %v14022_v9, %v6050_v15  ;;  %v6145_v35 = vpack.c.bf16 %v6124_v52, %v6123_v25  ;;  %v6125_v49 = vadd.f32 %v14030_v0, %v6087_v53 }
 0xb3c   :  { %8147 = vrsqrt.f32 %v5989_v31  ;;  %v5990_v3 = vadd.f32 1e-05, %v5958_v14 }
 0xb3d   :  { %v6126_v57 = vadd.f32 %v14030_v0, %v6088_v44  ;;  %7188 = vmatprep.mubr.msk.bf16.mxu0 %vm96_vm0, %v6145_v35 }
 0xb3e   :  { %8149 = vrsqrt.f32 %v5990_v3 }
 0xb3f   :  { %v6146_v46 = vpack.c.bf16 %v6126_v57, %v6125_v49 }
 0xb41   :  { %7189 = vmatmul.mubr.msk.bf16.gmra.mrb[64].mxu0 %vm96_vm0, %v6146_v46 }
 0xb42   :  { %v8144_v47 = vpop.eup %8143 }
 0xb43   :  { %v6051_v2 = vmul.f32 %v8144_v47, %v13972_v61 }
 0xb44   :  { %v8146_v27 = vpop.eup %8145 }
 0xb45   :  { %v6052_v10 = vmul.f32 %v8146_v27, %v13975_v60  ;;  %v6089_v33 = vmul.f32 %v14022_v9, %v6051_v2 }
 0xb46   :  { %v8148_v51 = vpop.eup %8147 }
 0xb47   :  { %v6053_v21 = vmul.f32 %v8148_v51, %v13980_v55  ;;  %v6090_v39 = vmul.f32 %v14022_v9, %v6052_v10  ;;  %v6127_v50 = vadd.f32 %v14030_v0, %v6089_v33 }
 0xb48   :  { %v8150_v48 = vpop.eup %8149 }
 0xb49   :  { %v6091_v26 = vmul.f32 %v14022_v9, %v6053_v21  ;;  %v6054_v6 = vmul.f32 %v8150_v48, %v13986_v13  ;;  %v6128_v16 = vadd.f32 %v14030_v0, %v6090_v39  ;;  %v7261_v13 = vld [vmem:[%s14409_s6 + $0x10] sm:$0xff]  }
 0xb4a   :  { %7204 = vmatprep.subr.bf16.mxu1 %v7261_v13 }
 0xb4b   :  { %v6092_v61 = vmul.f32 %v14022_v9, %v6054_v6  ;;  %v6147_v43 = vpack.c.bf16 %v6128_v16, %v6127_v50  ;;  %v6129_v60 = vadd.f32 %v14030_v0, %v6091_v26  ;;  %7205 = vmatpush3.bf16.msra.mxu1 %v7261_v13 }
 0xb4c   :  { %7206 = vmatprep.subr.bf16.mxu1 %v7262_v7 }
 0xb4d   :  { %v6130_v32 = vadd.f32 %v14030_v0, %v6092_v61  ;;  %7192 = vmatprep.mubr.msk.bf16.mxu0 %vm96_vm0, %v6147_v43 }
 0xb4f   :  { %v6148_v55 = vpack.c.bf16 %v6130_v32, %v6129_v60  ;;  %7207 = vmatpush3.bf16.msra.mxu1 %v7262_v7 }
 0xb51   :  { %7193 = vmatmul.mubr.msk.bf16.gmra.mrb[68].mxu0 %vm96_vm0, %v6148_v55 }
 0xb73   :  { %v5921_v1 = vpop.xlane.xlu0 %5920 }
 0xb74   :  { %v5959_v11 = vmul.f32 0.0625, %v5921_v1 }
 0xb75   :  { %v5924_v4 = vpop.xlane.xlu1 %5923 }
 0xb76   :  { %v5991_v17 = vadd.f32 1e-05, %v5959_v11  ;;  %v5960_v22 = vmul.f32 0.0625, %v5924_v4 }
 0xb77   :  { %v5927_v19 = vpop.xlane.xlu0 %5926 }
 0xb78   :  { %8151 = vrsqrt.f32 %v5991_v17  ;;  %v5992_v40 = vadd.f32 1e-05, %v5960_v22  ;;  %v5961_v29 = vmul.f32 0.0625, %v5927_v19 }
 0xb79   :  { %v5930_v28 = vpop.xlane.xlu1 %5929 }
 0xb7a   :  { %8153 = vrsqrt.f32 %v5992_v40  ;;  %v5993_v36 = vadd.f32 1e-05, %v5961_v29  ;;  %v5962_v41 = vmul.f32 0.0625, %v5930_v28 }
 0xb7c   :  { %8155 = vrsqrt.f32 %v5993_v36  ;;  %v5994_v45 = vadd.f32 1e-05, %v5962_v41 }
 0xb7e   :  { %8157 = vrsqrt.f32 %v5994_v45 }
 0xb82   :  { %v8152_v53 = vpop.eup %8151 }
 0xb83   :  { %v6055_v15 = vmul.f32 %v8152_v53, %v13996_v58 }
 0xb84   :  { %v8154_v23 = vpop.eup %8153 }
 0xb85   :  { %v6056_v25 = vmul.f32 %v8154_v23, %v13999_v62  ;;  %v6093_v52 = vmul.f32 %v14022_v9, %v6055_v15 }
 0xb86   :  { %v8156_v31 = vpop.eup %8155 }
 0xb87   :  { %v6057_v14 = vmul.f32 %v8156_v31, %v14004_v37  ;;  %v6094_v44 = vmul.f32 %v14022_v9, %v6056_v25  ;;  %v6131_v57 = vadd.f32 %v14030_v0, %v6093_v52 }
 0xb88   :  { %v8158_v35 = vpop.eup %8157 }
 0xb89   :  { %v6095_v3 = vmul.f32 %v14022_v9, %v6057_v14  ;;  %v6058_v49 = vmul.f32 %v8158_v35, %v14010_v59  ;;  %v6132_v46 = vadd.f32 %v14030_v0, %v6094_v44  ;;  %v14156_v59 = vld [vmem:[%s14408_s5] ss:$0 sm:$0xff] }
 0xb8b   :  { %v6096_v58 = vmul.f32 %v14022_v9, %v6058_v49  ;;  %v6149_v47 = vpack.c.bf16 %v6132_v46, %v6131_v57  ;;  %v6133_v62 = vadd.f32 %v14030_v0, %v6095_v3 }
 0xb8d   :  { %v6134_v2 = vadd.f32 %v14030_v0, %v6096_v58  ;;  %7196 = vmatprep.mubr.msk.bf16.mxu0 %vm96_vm0, %v6149_v47 }
 0xb8f   :  { %v6150_v37 = vpack.c.bf16 %v6134_v2, %v6133_v62 }
 0xb91   :  { %7197 = vmatmul.mubr.msk.bf16.gmra.mrb[72].mxu0 %vm96_vm0, %v6150_v37 }
 0xbd7   :  { %v7170_v27 = vpop.f32.mrb[44].mxu0 }
 0xbd8   :  { %v6257_v10 = vadd.f32 %v7170_v27, %v14156_v59  ;;  %v6248_v33 = vpop.f32.mrb[45].mxu0 }
 0xbd9   :  { %v6249_v9 = vadd.f32 %v14156_v59, %v6248_v33  ;;  %v7171_v51 = vpop.f32.mrb[46].mxu0 }
 0xbda   :  { %v6260_v21 = vadd.f32 %v7171_v51, %v14156_v59  ;;  %v6251_v0 = vpop.f32.mrb[47].mxu0  ;;  %v6377_v48 = vmax.f32 %v6257_v10, 0.0 }
 0xbdb   :  { %v6252_v39 = vadd.f32 %v14156_v59, %v6251_v0  ;;  %v6375_v6 = vmax.f32 %v6249_v9, 0.0 }
 0xbdc   :  { %v6378_v26 = vmax.f32 %v6260_v21, 0.0 }
 0xbdd   :  { %v6376_v50 = vmax.f32 %v6252_v39, 0.0 }
 0xbde   :  { %v6408_v16 = vpack.c.bf16 %v6378_v26, %v6377_v48 }
 0xbdf   :  { %v6407_v61 = vpack.c.bf16 %v6376_v50, %v6375_v6  ;;  %v7174_v43 = vpop.f32.mrb[48].mxu0 }
 0xbe0   :  { %v6273_v60 = vadd.f32 %v7174_v43, %v14156_v59  ;;  %v6264_v32 = vpop.f32.mrb[49].mxu0 }
 0xbe1   :  { %v6265_v55 = vadd.f32 %v14156_v59, %v6264_v32  ;;  %v7175_v13 = vpop.f32.mrb[50].mxu0  ;;  %7208 = vmatprep.mubr.msk.bf16.mxu1 %vm6462_vm1, %v6407_v61 }
 0xbe2   :  { %v6276_v7 = vadd.f32 %v7175_v13, %v14156_v59  ;;  %v6267_v1 = vpop.f32.mrb[51].mxu0  ;;  %7209 = vmatmul.mubr.msk.bf16.vlgmr.msra.gmra.mrb[20].mxu1 %vm6462_vm1, %v6408_v16  ;;  %v6381_v4 = vmax.f32 %v6273_v60, 0.0 }
 0xbe3   :  { %v6268_v11 = vadd.f32 %v14156_v59, %v6267_v1  ;;  %v6379_v22 = vmax.f32 %v6265_v55, 0.0 }
 0xbe4   :  { %v6382_v17 = vmax.f32 %v6276_v7, 0.0 }
 0xbe5   :  { %v6380_v19 = vmax.f32 %v6268_v11, 0.0 }
 0xbe6   :  { %v6410_v40 = vpack.c.bf16 %v6382_v17, %v6381_v4 }
 0xbe7   :  { %v6409_v29 = vpack.c.bf16 %v6380_v19, %v6379_v22  ;;  %v7178_v28 = vpop.f32.mrb[52].mxu0 }
 0xbe8   :  { %v6289_v36 = vadd.f32 %v7178_v28, %v14156_v59  ;;  %v6280_v41 = vpop.f32.mrb[53].mxu0 }
 0xbe9   :  { %v6281_v45 = vadd.f32 %v14156_v59, %v6280_v41  ;;  %v7179_v53 = vpop.f32.mrb[54].mxu0  ;;  %7212 = vmatprep.mubr.msk.bf16.mxu1 %vm6462_vm1, %v6409_v29 }
 0xbea   :  { %v6292_v15 = vadd.f32 %v7179_v53, %v14156_v59  ;;  %v6283_v23 = vpop.f32.mrb[55].mxu0  ;;  %7213 = vmatmul.mubr.msk.bf16.gmra.mrb[24].mxu1 %vm6462_vm1, %v6410_v40  ;;  %v6385_v52 = vmax.f32 %v6289_v36, 0.0 }
 0xbeb   :  { %v6284_v25 = vadd.f32 %v14156_v59, %v6283_v23  ;;  %v6383_v14 = vmax.f32 %v6281_v45, 0.0 }
 0xbec   :  { %v6386_v31 = vmax.f32 %v6292_v15, 0.0 }
 0xbed   :  { %v6384_v44 = vmax.f32 %v6284_v25, 0.0 }
 0xbee   :  { %v6412_v35 = vpack.c.bf16 %v6386_v31, %v6385_v52 }
 0xbef   :  { %v6411_v3 = vpack.c.bf16 %v6384_v44, %v6383_v14 }
 0xbf1   :  { %v7182_v49 = vpop.f32.mrb[56].mxu0  ;;  %7216 = vmatprep.mubr.msk.bf16.mxu1 %vm6462_vm1, %v6411_v3 }
 0xbf2   :  { %v6305_v57 = vadd.f32 %v7182_v49, %v14156_v59  ;;  %v6296_v46 = vpop.f32.mrb[57].mxu0  ;;  %7217 = vmatmul.mubr.msk.bf16.gmra.mrb[28].mxu1 %vm6462_vm1, %v6412_v35 }
 0xbf3   :  { %v6297_v58 = vadd.f32 %v14156_v59, %v6296_v46  ;;  %v7183_v47 = vpop.f32.mrb[58].mxu0 }
 0xbf4   :  { %v6308_v62 = vadd.f32 %v7183_v47, %v14156_v59  ;;  %v6299_v2 = vpop.f32.mrb[59].mxu0  ;;  %v6389_v27 = vmax.f32 %v6305_v57, 0.0 }
 0xbf5   :  { %v6300_v37 = vadd.f32 %v14156_v59, %v6299_v2  ;;  %v6387_v33 = vmax.f32 %v6297_v58, 0.0 }
 0xbf6   :  { %v6390_v10 = vmax.f32 %v6308_v62, 0.0 }
 0xbf7   :  { %v6388_v9 = vmax.f32 %v6300_v37, 0.0 }
 0xbf8   :  { %v6414_v51 = vpack.c.bf16 %v6390_v10, %v6389_v27 }
 0xbf9   :  { %v6413_v21 = vpack.c.bf16 %v6388_v9, %v6387_v33 }
 0xbfb   :  { %7220 = vmatprep.mubr.msk.bf16.mxu1 %vm6462_vm1, %v6413_v21 }
 0xbfc   :  { %7221 = vmatmul.mubr.msk.bf16.gmra.mrb[32].mxu1 %vm6462_vm1, %v6414_v51 }
 0xc03   :  { %v7186_v0 = vpop.f32.mrb[60].mxu0 }
 0xc04   :  { %v6321_v39 = vadd.f32 %v7186_v0, %v14156_v59  ;;  %v6312_v48 = vpop.f32.mrb[61].mxu0 }
 0xc05   :  { %v6313_v26 = vadd.f32 %v14156_v59, %v6312_v48  ;;  %v7187_v6 = vpop.f32.mrb[62].mxu0 }
 0xc06   :  { %v6324_v50 = vadd.f32 %v7187_v6, %v14156_v59  ;;  %v6315_v16 = vpop.f32.mrb[63].mxu0  ;;  %v6393_v43 = vmax.f32 %v6321_v39, 0.0 }
 0xc07   :  { %v6316_v61 = vadd.f32 %v14156_v59, %v6315_v16  ;;  %v6391_v32 = vmax.f32 %v6313_v26, 0.0  ;;  %v14209_v16 = vld [vmem:[%s14410_s7] ss:$0 sm:$0xff] }
 0xc08   :  { %v6394_v60 = vmax.f32 %v6324_v50, 0.0 }
 0xc09   :  { %v6392_v55 = vmax.f32 %v6316_v61, 0.0 }
 0xc0a   :  { %v6416_v13 = vpack.c.bf16 %v6394_v60, %v6393_v43 }
 0xc0b   :  { %v6415_v7 = vpack.c.bf16 %v6392_v55, %v6391_v32 }
 0xc0d   :  { %7224 = vmatprep.mubr.msk.bf16.mxu1 %vm6462_vm1, %v6415_v7 }
 0xc0e   :  { %7225 = vmatmul.mubr.msk.bf16.gmra.mrb[36].mxu1 %vm6462_vm1, %v6416_v13 }
 0xc14   :  { %v7190_v1 = vpop.f32.mrb[64].mxu0 }
 0xc15   :  { %v6337_v11 = vadd.f32 %v7190_v1, %v14156_v59  ;;  %v6328_v4 = vpop.f32.mrb[65].mxu0 }
 0xc16   :  { %v6329_v17 = vadd.f32 %v14156_v59, %v6328_v4  ;;  %v7191_v22 = vpop.f32.mrb[66].mxu0 }
 0xc17   :  { %v6340_v19 = vadd.f32 %v7191_v22, %v14156_v59  ;;  %v6331_v40 = vpop.f32.mrb[67].mxu0  ;;  %v6397_v28 = vmax.f32 %v6337_v11, 0.0 }
 0xc18   :  { %v6332_v29 = vadd.f32 %v14156_v59, %v6331_v40  ;;  %v6395_v41 = vmax.f32 %v6329_v17, 0.0 }
 0xc19   :  { %v6398_v36 = vmax.f32 %v6340_v19, 0.0 }
 0xc1a   :  { %v6396_v45 = vmax.f32 %v6332_v29, 0.0 }
 0xc1b   :  { %v6418_v53 = vpack.c.bf16 %v6398_v36, %v6397_v28 }
 0xc1c   :  { %v6417_v15 = vpack.c.bf16 %v6396_v45, %v6395_v41 }
 0xc1e   :  { %7228 = vmatprep.mubr.msk.bf16.mxu1 %vm6462_vm1, %v6417_v15 }
 0xc1f   :  { %7229 = vmatmul.mubr.msk.bf16.gmra.mrb[40].mxu1 %vm6462_vm1, %v6418_v53 }
 0xc24   :  { %v7194_v23 = vpop.f32.mrb[68].mxu0 }
 0xc25   :  { %v6353_v25 = vadd.f32 %v7194_v23, %v14156_v59  ;;  %v6344_v52 = vpop.f32.mrb[69].mxu0 }
 0xc26   :  { %v6345_v31 = vadd.f32 %v14156_v59, %v6344_v52  ;;  %v7195_v14 = vpop.f32.mrb[70].mxu0 }
 0xc27   :  { %v6356_v44 = vadd.f32 %v7195_v14, %v14156_v59  ;;  %v6347_v35 = vpop.f32.mrb[71].mxu0  ;;  %v6401_v49 = vmax.f32 %v6353_v25, 0.0 }
 0xc28   :  { %v6348_v3 = vadd.f32 %v14156_v59, %v6347_v35  ;;  %v6399_v46 = vmax.f32 %v6345_v31, 0.0 }
 0xc29   :  { %v6402_v57 = vmax.f32 %v6356_v44, 0.0 }
 0xc2a   :  { %v6400_v58 = vmax.f32 %v6348_v3, 0.0 }
 0xc2b   :  { %v6420_v47 = vpack.c.bf16 %v6402_v57, %v6401_v49 }
 0xc2c   :  { %v6419_v62 = vpack.c.bf16 %v6400_v58, %v6399_v46  ;;  %v15810_v46 = vld [vmem:[#allocation67_spill] sm:$0xff] }
 0xc2e   :  { %7232 = vmatprep.mubr.msk.bf16.mxu1 %vm6462_vm1, %v6419_v62  ;;  %v15811_v62 = vld [vmem:[#allocation91_spill] sm:$0xff] }
 0xc2f   :  { %7233 = vmatmul.mubr.msk.bf16.gmra.mrb[44].mxu1 %vm6462_vm1, %v6420_v47 }
 0xc64   :  { %v7198_v2 = vpop.f32.mrb[72].mxu0 }
 0xc65   :  { %v6369_v37 = vadd.f32 %v7198_v2, %v14156_v59  ;;  %v6360_v27 = vpop.f32.mrb[73].mxu0 }
 0xc66   :  { %v6361_v10 = vadd.f32 %v14156_v59, %v6360_v27  ;;  %v7199_v33 = vpop.f32.mrb[74].mxu0 }
 0xc67   :  { %v6372_v9 = vadd.f32 %v7199_v33, %v14156_v59  ;;  %v6363_v51 = vpop.f32.mrb[75].mxu0  ;;  %v6405_v0 = vmax.f32 %v6369_v37, 0.0 }
 0xc68   :  { %v6364_v21 = vadd.f32 %v14156_v59, %v6363_v51  ;;  %v6403_v48 = vmax.f32 %v6361_v10, 0.0 }
 0xc69   :  { %v6406_v39 = vmax.f32 %v6372_v9, 0.0 }
 0xc6a   :  { %v6404_v26 = vmax.f32 %v6364_v21, 0.0  ;;  %v15813_v21 = vld [vmem:[#allocation125_spill] sm:$0xff] }
 0xc6b   :  { %v6422_v6 = vpack.c.bf16 %v6406_v39, %v6405_v0 }
 0xc6c   :  { %v6421_v50 = vpack.c.bf16 %v6404_v26, %v6403_v48  ;;  %v15814_v26 = vld [vmem:[#allocation65_spill] sm:$0xff] }
 0xc6e   :  { %7236 = vmatprep.mubr.msk.bf16.mxu1 %vm6462_vm1, %v6421_v50 }
 0xc6f   :  { %7237 = vmatmul.mubr.msk.bf16.gmra.mrb[48].mxu1 %vm6462_vm1, %v6422_v6 }
 0xcb5   :  { %v7210_v61 = vpop.f32.mrb[20].mxu1 }
 0xcb6   :  { %v6554_v43 = vadd.f32 %v7210_v61, %v14209_v16  ;;  %v6545_v60 = vpop.f32.mrb[21].mxu1  ;;  %v15815_v61 = vld [vmem:[#allocation41_spill] sm:$0xff] }
 0xcb7   :  { %v6546_v59 = vadd.f32 %v14209_v16, %v6545_v60  ;;  %v7211_v32 = vpop.f32.mrb[22].mxu1  ;;  %v15816_v60 = vld [vmem:[#allocation118_spill] sm:$0xff] }
 0xcb8   :  { %v6674_v55 = vadd.f32 %v6554_v43, %v13580_v20  ;;  %v6557_v13 = vadd.f32 %v7211_v32, %v14209_v16  ;;  %v6548_v7 = vpop.f32.mrb[23].mxu1 }
 0xcb9   :  { %v6672_v1 = vadd.f32 %v6546_v59, %v13573_v30  ;;  %v6549_v11 = vadd.f32 %v14209_v16, %v6548_v7 }
 0xcba   :  { %6706 = vst.msk [vmem:[%s14417_s14 + $0x10] sm:$0xff] %vm96_vm0, %v6674_v55  ;;  %v6675_v4 = vadd.f32 %v6557_v13, %v13592_v42 }
 0xcbb   :  { %6704 = vst.msk [vmem:[%s14417_s14] sm:$0xff] %vm96_vm0, %v6672_v1  ;;  %v6673_v20 = vadd.f32 %v6549_v11, %v13585_v12  ;;  %v15817_v11 = vld [vmem:[#allocation122_spill] sm:$0xff] }
 0xcbc   :  { %6707 = vst.msk [vmem:[%s14417_s14 + $0x18] sm:$0xff] %vm96_vm0, %v6675_v4 }
 0xcbd   :  { %6705 = vst.msk [vmem:[%s14417_s14 + $0x8] sm:$0xff] %vm96_vm0, %v6673_v20  ;;  %v7214_v30 = vpop.f32.mrb[24].mxu1 }
 0xcbe   :  { %v6570_v42 = vadd.f32 %v7214_v30, %v14209_v16  ;;  %v6561_v17 = vpop.f32.mrb[25].mxu1 }
 0xcbf   :  { %v6562_v22 = vadd.f32 %v14209_v16, %v6561_v17  ;;  %v7215_v19 = vpop.f32.mrb[26].mxu1 }
 0xcc0   :  { %v6678_v40 = vadd.f32 %v6570_v42, %v13612_v34  ;;  %v6573_v12 = vadd.f32 %v7215_v19, %v14209_v16  ;;  %v6564_v29 = vpop.f32.mrb[27].mxu1  ;;  %v15818_v42 = vld [vmem:[#allocation107_spill] sm:$0xff]  ;;  %v15819_v19 = vld [vmem:[#allocation133_spill] sm:$0xff] }
 0xcc1   :  { %v6676_v28 = vadd.f32 %v6562_v22, %v13605_v24  ;;  %v6565_v36 = vadd.f32 %v14209_v16, %v6564_v29 }
 0xcc2   :  { %6710 = vst.msk [vmem:[%s14417_s14 + $0x30] sm:$0xff] %vm96_vm0, %v6678_v40  ;;  %v6679_v41 = vadd.f32 %v6573_v12, %v13624_v56  ;;  %v15820_v12 = vld [vmem:[#allocation97_spill] sm:$0xff] }
 0xcc3   :  { %6708 = vst.msk [vmem:[%s14417_s14 + $0x20] sm:$0xff] %vm96_vm0, %v6676_v28  ;;  %v6677_v34 = vadd.f32 %v6565_v36, %v13617_v5 }
 0xcc4   :  { %6711 = vst.msk [vmem:[%s14417_s14 + $0x38] sm:$0xff] %vm96_vm0, %v6679_v41 }
 0xcc5   :  { %6709 = vst.msk [vmem:[%s14417_s14 + $0x28] sm:$0xff] %vm96_vm0, %v6677_v34  ;;  %v7218_v24 = vpop.f32.mrb[28].mxu1 }
 0xcc6   :  { %v6586_v56 = vadd.f32 %v7218_v24, %v14209_v16  ;;  %v6577_v45 = vpop.f32.mrb[29].mxu1 }
 0xcc7   :  { %v6578_v53 = vadd.f32 %v14209_v16, %v6577_v45  ;;  %v7219_v15 = vpop.f32.mrb[30].mxu1 }
 0xcc8   :  { %v6682_v23 = vadd.f32 %v6586_v56, %v13644_v18  ;;  %v6589_v5 = vadd.f32 %v7219_v15, %v14209_v16  ;;  %v6580_v25 = vpop.f32.mrb[31].mxu1  ;;  %v15821_v56 = vld [vmem:[#allocation90_spill] sm:$0xff] }
 0xcc9   :  { %v6680_v52 = vadd.f32 %v6578_v53, %v13637_v63  ;;  %v6581_v31 = vadd.f32 %v14209_v16, %v6580_v25 }
 0xcca   :  { %6714 = vst.msk [vmem:[%s14417_s14 + $0x50] sm:$0xff] %vm96_vm0, %v6682_v23  ;;  %v6683_v14 = vadd.f32 %v6589_v5, %v13656_v8  ;;  %v15822_v23 = vld [vmem:[#allocation101_spill] sm:$0xff] }
 0xccb   :  { %6712 = vst.msk [vmem:[%s14417_s14 + $0x40] sm:$0xff] %vm96_vm0, %v6680_v52  ;;  %v6681_v18 = vadd.f32 %v6581_v31, %v13649_v38  ;;  %v15823_v52 = vld [vmem:[#allocation89_spill] sm:$0xff] }
 0xccc   :  { %6715 = vst.msk [vmem:[%s14417_s14 + $0x58] sm:$0xff] %vm96_vm0, %v6683_v14  ;;  %v15824_v14 = vld [vmem:[#allocation68_spill] sm:$0xff] }
 0xccd   :  { %6713 = vst.msk [vmem:[%s14417_s14 + $0x48] sm:$0xff] %vm96_vm0, %v6681_v18 }
 0xccf   :  { %v7222_v63 = vpop.f32.mrb[32].mxu1 }
 0xcd0   :  { %v6602_v8 = vadd.f32 %v7222_v63, %v14209_v16  ;;  %v6593_v44 = vpop.f32.mrb[33].mxu1 }
 0xcd1   :  { %v6594_v35 = vadd.f32 %v14209_v16, %v6593_v44  ;;  %v7223_v3 = vpop.f32.mrb[34].mxu1 }
 0xcd2   :  { %v6686_v49 = vadd.f32 %v6602_v8, %v13676_v54  ;;  %v6605_v38 = vadd.f32 %v7223_v3, %v14209_v16  ;;  %v6596_v57 = vpop.f32.mrb[35].mxu1  ;;  %v15812_v54 = vld [vmem:[#allocation7_spill] sm:$0xff] }
 0xcd3   :  { %v6684_v58 = vadd.f32 %v6594_v35, %v15810_v46  ;;  %v6597_v47 = vadd.f32 %v14209_v16, %v6596_v57 }
 0xcd4   :  { %6718 = vst.msk [vmem:[%s14417_s14 + $0x70] sm:$0xff] %vm96_vm0, %v6686_v49  ;;  %v6687_v2 = vadd.f32 %v6605_v38, %v15811_v62  ;;  %v15825_v49 = vld [vmem:[#allocation136_spill] sm:$0xff] }
 0xcd5   :  { %6716 = vst.msk [vmem:[%s14417_s14 + $0x60] sm:$0xff] %vm96_vm0, %v6684_v58  ;;  %v6685_v37 = vadd.f32 %v6597_v47, %v15812_v54  ;;  %v15826_v58 = vld [vmem:[#allocation104_spill] sm:$0xff] }
 0xcd6   :  { %6719 = vst.msk [vmem:[%s14417_s14 + $0x78] sm:$0xff] %vm96_vm0, %v6687_v2  ;;  %v15827_v2 = vld [vmem:[#allocation66_spill] sm:$0xff] }
 0xcd7   :  { %6717 = vst.msk [vmem:[%s14417_s14 + $0x68] sm:$0xff] %vm96_vm0, %v6685_v37  ;;  %v15828_v37 = vld [vmem:[#allocation98_spill] sm:$0xff] }
 0xce1   :  { %v7226_v27 = vpop.f32.mrb[36].mxu1 }
 0xce2   :  { %v6618_v10 = vadd.f32 %v7226_v27, %v14209_v16  ;;  %v6609_v33 = vpop.f32.mrb[37].mxu1 }
 0xce3   :  { %v6610_v9 = vadd.f32 %v14209_v16, %v6609_v33  ;;  %v7227_v51 = vpop.f32.mrb[38].mxu1 }
 0xce4   :  { %v6690_v0 = vadd.f32 %v6618_v10, %v15813_v21  ;;  %v6621_v39 = vadd.f32 %v7227_v51, %v14209_v16  ;;  %v6612_v48 = vpop.f32.mrb[39].mxu1 }
 0xce5   :  { %v6688_v6 = vadd.f32 %v6610_v9, %v15814_v26  ;;  %v6613_v50 = vadd.f32 %v14209_v16, %v6612_v48 }
 0xce6   :  { %6722 = vst.msk [vmem:[%s14417_s14 + $0x90] sm:$0xff] %vm96_vm0, %v6690_v0  ;;  %v6691_v43 = vadd.f32 %v6621_v39, %v15815_v61 }
 0xce7   :  { %6720 = vst.msk [vmem:[%s14417_s14 + $0x80] sm:$0xff] %vm96_vm0, %v6688_v6  ;;  %v6689_v59 = vadd.f32 %v6613_v50, %v15816_v60 }
 0xce8   :  { %6723 = vst.msk [vmem:[%s14417_s14 + $0x98] sm:$0xff] %vm96_vm0, %v6691_v43 }
 0xce9   :  { %6721 = vst.msk [vmem:[%s14417_s14 + $0x88] sm:$0xff] %vm96_vm0, %v6689_v59 }
 0xcf2   :  { %v7230_v32 = vpop.f32.mrb[40].mxu1 }
 0xcf3   :  { %v6634_v55 = vadd.f32 %v7230_v32, %v14209_v16  ;;  %v6625_v13 = vpop.f32.mrb[41].mxu1 }
 0xcf4   :  { %v6626_v7 = vadd.f32 %v14209_v16, %v6625_v13  ;;  %v7231_v1 = vpop.f32.mrb[42].mxu1 }
 0xcf5   :  { %v6694_v4 = vadd.f32 %v6634_v55, %v15817_v11  ;;  %v6637_v20 = vadd.f32 %v7231_v1, %v14209_v16  ;;  %v6628_v30 = vpop.f32.mrb[43].mxu1 }
 0xcf6   :  { %v6692_v17 = vadd.f32 %v6626_v7, %v15818_v42  ;;  %v6629_v22 = vadd.f32 %v14209_v16, %v6628_v30 }
 0xcf7   :  { %6726 = vst.msk [vmem:[%s14417_s14 + $0xb0] sm:$0xff] %vm96_vm0, %v6694_v4  ;;  %v6695_v40 = vadd.f32 %v6637_v20, %v15819_v19 }
 0xcf8   :  { %6724 = vst.msk [vmem:[%s14417_s14 + $0xa0] sm:$0xff] %vm96_vm0, %v6692_v17  ;;  %v6693_v29 = vadd.f32 %v6629_v22, %v15820_v12 }
 0xcf9   :  { %6727 = vst.msk [vmem:[%s14417_s14 + $0xb8] sm:$0xff] %vm96_vm0, %v6695_v40 }
 0xcfa   :  { %6725 = vst.msk [vmem:[%s14417_s14 + $0xa8] sm:$0xff] %vm96_vm0, %v6693_v29 }
 0xd02   :  { %v7234_v28 = vpop.f32.mrb[44].mxu1 }
 0xd03   :  { %v6650_v36 = vadd.f32 %v7234_v28, %v14209_v16  ;;  %v6641_v41 = vpop.f32.mrb[45].mxu1 }
 0xd04   :  { %v6642_v34 = vadd.f32 %v14209_v16, %v6641_v41  ;;  %v7235_v24 = vpop.f32.mrb[46].mxu1 }
 0xd05   :  { %v6698_v45 = vadd.f32 %v6650_v36, %v15821_v56  ;;  %v6653_v53 = vadd.f32 %v7235_v24, %v14209_v16  ;;  %v6644_v15 = vpop.f32.mrb[47].mxu1 }
 0xd06   :  { %v6696_v5 = vadd.f32 %v6642_v34, %v15822_v23  ;;  %v6645_v25 = vadd.f32 %v14209_v16, %v6644_v15 }
 0xd07   :  { %6730 = vst.msk [vmem:[%s14417_s14 + $0xd0] sm:$0xff] %vm96_vm0, %v6698_v45  ;;  %v6699_v31 = vadd.f32 %v6653_v53, %v15823_v52 }
 0xd08   :  { %6728 = vst.msk [vmem:[%s14417_s14 + $0xc0] sm:$0xff] %vm96_vm0, %v6696_v5  ;;  %v6697_v18 = vadd.f32 %v6645_v25, %v15824_v14 }
 0xd09   :  { %6731 = vst.msk [vmem:[%s14417_s14 + $0xd8] sm:$0xff] %vm96_vm0, %v6699_v31 }
 0xd0a   :  { %6729 = vst.msk [vmem:[%s14417_s14 + $0xc8] sm:$0xff] %vm96_vm0, %v6697_v18 }
 0xd42   :  { %v7238_v63 = vpop.f32.mrb[48].mxu1 }
 0xd43   :  { %v6666_v8 = vadd.f32 %v7238_v63, %v14209_v16  ;;  %v6657_v44 = vpop.f32.mrb[49].mxu1 }
 0xd44   :  { %v6658_v35 = vadd.f32 %v14209_v16, %v6657_v44  ;;  %v7239_v3 = vpop.f32.mrb[50].mxu1 }
 0xd45   :  { %v6702_v38 = vadd.f32 %v6666_v8, %v15825_v49  ;;  %v6669_v57 = vadd.f32 %v7239_v3, %v14209_v16  ;;  %v6660_v46 = vpop.f32.mrb[51].mxu1 }
 0xd46   :  { %v6700_v47 = vadd.f32 %v6658_v35, %v15826_v58  ;;  %v6661_v62 = vadd.f32 %v14209_v16, %v6660_v46 }
 0xd47   :  { %6734 = vst.msk [vmem:[%s14417_s14 + $0xf0] sm:$0xff] %vm96_vm0, %v6702_v38  ;;  %v6703_v54 = vadd.f32 %v6669_v57, %v15827_v2 }
 0xd48   :  { %6732 = vst.msk [vmem:[%s14417_s14 + $0xe0] sm:$0xff] %vm96_vm0, %v6700_v47  ;;  %v6701_v27 = vadd.f32 %v6661_v62, %v15828_v37 }
 0xd49   :  { %6735 = vst.msk [vmem:[%s14417_s14 + $0xf8] sm:$0xff] %vm96_vm0, %v6703_v54 }
 0xd4a   :  { %6733 = vst.msk [vmem:[%s14417_s14 + $0xe8] sm:$0xff] %vm96_vm0, %v6701_v27 }
 0xd4b   :  { %6740 = vsyncpa [#allocation3], 1 }

</bundles_post_ra>
